<compile_context>
chip_gen: v5e
topology: v5e:2x2
jax: 0.10.0
libtpu: 0.0.40
codegen_flags: <defaults>
</compile_context>

<pallas_src>
import jax
import jax.numpy as jnp
from jax import lax
from jax.experimental import pallas as pl
from jax.experimental.pallas import tpu as pltpu

_VMEM = pl.BlockSpec(memory_space=pltpu.MemorySpace.VMEM)
_SMEM = pl.BlockSpec(memory_space=pltpu.MemorySpace.SMEM)

# dot_general dims for A[m, k] x B[n, k] -> [m, n]  (rhs transposed / "NT")
_NT_DIMS = (((1,), (1,)), ((), ()))
_F32_MIN = jnp.finfo(jnp.float32).min


def _tree_reduce(fn, xs):
    """Balanced (log-depth) reduction of a Python list of traced arrays."""
    xs = list(xs)
    while len(xs) > 1:
        nxt = [fn(xs[i], xs[i + 1]) for i in range(0, len(xs) - 1, 2)]
        if len(xs) % 2:
            nxt.append(xs[-1])
        xs = nxt
    return xs[0]


# ----------------------------------------------------------------------------
# In-kernel building blocks (called while tracing the fused kernel body)
# ----------------------------------------------------------------------------
def _linear(x, w_ref, b_ref, relu):
    y = jnp.dot(x.astype(jnp.bfloat16), w_ref[...],
                preferred_element_type=jnp.float32) + b_ref[...]
    return jnp.maximum(y, 0.0) if relu else y


def _feast_conv(x, adj_fac, eye_h, wpack_ref, c_ref, b_ref, s_ref, ystk_ref,
                *, heads, relu):
    """Dense FeaStConv (mean aggregation, self loops folded into adj_fac):
         out_i = bias + sum_j adj_fac[i, j] * sum_h q_ij[h] * (W_h x_j)
         q_ij  = softmax_h( u_h . (x_j - x_i) + c_h )
    """
    n = x.shape[0]
    cout = b_ref.shape[1]
    xb = x.astype(jnp.bfloat16)

    # One packed matmul (shared LHS): z = x @ [ W_1 .. W_H | u ]
    z = jnp.dot(xb, wpack_ref[...], preferred_element_type=jnp.float32)  # [N, H*cout + H]
    y = z[:, :heads * cout]                                              # [N, H*cout]
    ux = z[:, heads * cout:]                                             # [N, H]

    # ux^T via an MXU identity matmul (NT form) -> no wrapper transposes, no
    # extra HBM inputs; any rounding here is negligible for the softmax.
    uxT = lax.dot_general(eye_h, ux, _NT_DIMS,
                          preferred_element_type=jnp.float32)            # [H, N]

    # Per-head attention logits on 2-D [N, N] tiles; softmax over the head
    # axis with log-depth reductions.  c_h comes from SMEM as a scalar.
    logits = [(uxT[h:h + 1, :] + c_ref[h]) - ux[:, h:h + 1]
              for h in range(heads)]                                     # each [N, N]
    m = _tree_reduce(jnp.maximum, logits)
    exps = [jnp.exp(l - m) for l in logits]
    denom = _tree_reduce(jnp.add, exps)

    # Fold adjacency mask, mean-degree normalisation and softmax denominator
    # into one [N, N] factor; approx reciprocal runs on the EUP slot.
    sfac = adj_fac * pl.reciprocal(denom, approx=True)                   # [N, N]

    # Stage S = [adj_fac*attn_1 | ... | adj_fac*attn_H]  (N, H*N) and the
    # head-stacked Y (H*N, cout) in bf16 VMEM scratch, then aggregate with a
    # single K = H*N matmul on the MXU (instead of 8 tiny K=N matmuls).
    for h in range(heads):
        s_ref[:, h * n:(h + 1) * n] = (exps[h] * sfac).astype(jnp.bfloat16)
        ystk_ref[h * n:(h + 1) * n, :cout] = (
            y[:, h * cout:(h + 1) * cout].astype(jnp.bfloat16))
    out = jnp.dot(s_ref[...], ystk_ref[:, :cout],
                  preferred_element_type=jnp.float32)                    # [N, cout]
    out = out + b_ref[...]
    if relu:
        out = jnp.maximum(out, 0.0)
    return out


# ----------------------------------------------------------------------------
# Fused kernel: the whole FeastGCN forward in one pallas_call
# ----------------------------------------------------------------------------
def _make_fused_kernel(n_inputs, skip_flags, n_head_layers, heads):
    def kernel(*args):
        in_refs = args[:n_inputs]
        out_ref = args[n_inputs]
        s_ref, ystk_ref, pool_ref = args[n_inputs + 1:]
        it = iter(in_refs)

        x = next(it)[...]                       # [N, Cin]  f32
        adj_fac = next(it)[...]                 # [N, N]    adj * 1/deg (self loops in)
        mask = next(it)[...]                    # [N, B]    one-hot pooling mask

        # 8x8 identity for the MXU transpose trick (2-D iota only; 1-D iota is
        # not supported on TPU).
        eye_h = (lax.broadcasted_iota(jnp.int32, (heads, heads), 0) ==
                 lax.broadcasted_iota(jnp.int32, (heads, heads), 1)
                 ).astype(jnp.float32)

        def conv(xin, relu):
            w_ref = next(it)
            c_ref = next(it)
            b_ref = next(it)
            return _feast_conv(xin, adj_fac, eye_h, w_ref, c_ref, b_ref,
                               s_ref, ystk_ref, heads=heads, relu=relu)

        # FeaStEncoderBlocks of FeaStResBlocks.
        # TODO(synk): the ResBlock base class was not included in the reference
        # source; using the standard conv->relu->conv + (projected) skip, relu.
        xs = []
        h = x
        for block_flags in skip_flags:
            for has_skip in block_flags:
                y1 = conv(h, relu=True)
                y2 = conv(y1, relu=False)
                if has_skip:
                    sw = next(it)
                    sb = next(it)
                    skip = _linear(h, sw, sb, relu=False)
                else:
                    skip = h
                h = jnp.maximum(y2 + skip, 0.0)
            xs.append(h)

        # aggr_mlp on cat(block outputs, dim=1): split the matmul per block
        # instead of materialising the concatenation in VMEM.
        aw_ref = next(it)
        ab_ref = next(it)
        acc = None
        off = 0
        for feat in xs:
            width = feat.shape[1]
            part = jnp.dot(feat.astype(jnp.bfloat16), aw_ref[off:off + width, :],
                           preferred_element_type=jnp.float32)
            acc = part if acc is None else acc + part
            off += width
        graph_out = acc + ab_ref[...]                                    # [N, F]

        # global max pool per graph (general batch mask; staged in VMEM scratch
        # so only the final [B, num_classes] result goes to HBM).
        num_graphs = mask.shape[1]
        for b in range(num_graphs):
            col = mask[:, b:b + 1]
            masked = jnp.where(col > 0.5, graph_out, _F32_MIN)
            pool_ref[b:b + 1, :] = jnp.max(masked, axis=0, keepdims=True)
        pooled = pool_ref[...]                                           # [B, F]

        # head MLP: Linear+ReLU for hidden layers, plain Linear last.
        # TODO(synk): PyG MLP default batch_norm treated as identity (fresh
        # running stats) and dropout(0.5) skipped (eval-mode forward).
        out = pooled
        for li in range(n_head_layers):
            w_ref = next(it)
            b_ref = next(it)
            out = _linear(out, w_ref, b_ref, relu=(li < n_head_layers - 1))
        out_ref[...] = out

    return kernel


def feast_gcn_forward(params, x, adj_fac, pool_mask, heads):
    """Pack parameters, build the fused kernel and run one pallas_call."""
    n = x.shape[0]
    num_graphs = pool_mask.shape[1]

    inputs = [x, adj_fac, pool_mask]
    specs = [_VMEM, _VMEM, _VMEM]
    couts = []

    def add_conv(p):
        couts.append(p["bias"].shape[1])
        # pack [lin_w | u_w] so y sits at lane offset 0 and ux at H*cout.
        wpack = jnp.concatenate([p["lin_w"], p["u_w"]], axis=1).astype(jnp.bfloat16)
        inputs.extend([wpack, p["c"].reshape(-1), p["bias"]])
        specs.extend([_VMEM, _SMEM, _VMEM])

    skip_flags = []
    for block in params["blocks"]:
        flags = []
        for rb in block:
            add_conv(rb["conv1"])
            add_conv(rb["conv2"])
            if rb["skip"] is not None:
                sw, sb = rb["skip"]
                inputs.extend([sw.astype(jnp.bfloat16), sb])
                specs.extend([_VMEM, _VMEM])
                flags.append(True)
            else:
                flags.append(False)
        skip_flags.append(flags)

    aw, ab = params["aggr"]
    inputs.extend([aw.astype(jnp.bfloat16), ab])
    specs.extend([_VMEM, _VMEM])
    for w, b in params["head"]:
        inputs.extend([w.astype(jnp.bfloat16), b])
        specs.extend([_VMEM, _VMEM])

    aggr_out = ab.shape[1]
    num_classes = params["head"][-1][1].shape[1]
    max_cout = max(couts)

    kernel = _make_fused_kernel(len(inputs), skip_flags, len(params["head"]), heads)
    return pl.pallas_call(
        kernel,
        out_shape=jax.ShapeDtypeStruct((num_graphs, num_classes), jnp.float32),
        in_specs=specs,
        out_specs=_VMEM,
        scratch_shapes=[
            pltpu.VMEM((n, heads * n), jnp.bfloat16),         # S (masked attention)
            pltpu.VMEM((heads * n, max_cout), jnp.bfloat16),  # head-stacked Y
            pltpu.VMEM((num_graphs, aggr_out), jnp.float32),  # pooled features
        ],
        # Single invocation (no grid): everything fits comfortably in VMEM.
        # For larger graphs: per-graph 'parallel' grid (block-diagonal adj) for
        # v7x's two TensorCores + vmem_limit_bytes / adjacency row-tiling.
    )(*inputs)


# ----------------------------------------------------------------------------
# Deterministic parameter init (same as the reference setup)
# ----------------------------------------------------------------------------
def _dense_init(key, fan_in, fan_out):
    wk, bk = jax.random.split(key)
    scale = 1.0 / jnp.sqrt(jnp.float32(fan_in))
    w = jax.random.uniform(wk, (fan_in, fan_out), jnp.float32, -scale, scale)
    b = jax.random.uniform(bk, (1, fan_out), jnp.float32, -scale, scale)
    return w, b


def init_params(key, block_channels, aggr_channels, head_channels, heads):
    keys = iter(jax.random.split(key, 128))

    def feast_conv_params(cin, cout):
        return {
            "u_w": 0.1 * jax.random.normal(next(keys), (cin, heads), jnp.float32),
            "c": 0.1 * jax.random.normal(next(keys), (1, heads), jnp.float32),
            "lin_w": 0.1 * jax.random.normal(next(keys), (cin, heads * cout), jnp.float32),
            "bias": jnp.zeros((1, cout), jnp.float32),
        }

    def res_block_params(cin, cout):
        return {
            "conv1": feast_conv_params(cin, cout),
            "conv2": feast_conv_params(cout, cout),
            "skip": _dense_init(next(keys), cin, cout) if cin != cout else None,
        }

    blocks = []
    for channels in block_channels:
        blocks.append([res_block_params(a, b) for a, b in zip(channels, channels[1:])])
    aggr = _dense_init(next(keys), aggr_channels[0], aggr_channels[1])
    head = [_dense_init(next(keys), a, b) for a, b in zip(head_channels, head_channels[1:])]
    return {"blocks": blocks, "aggr": aggr, "head": head}


def build_adj(edge_index, num_nodes):
    src, dst = edge_index[0], edge_index[1]
    adj = jnp.zeros((num_nodes, num_nodes), jnp.float32)
    adj = adj.at[dst, src].set(1.0)                 # message flows src(j) -> dst(i)
    eye = jnp.eye(num_nodes, dtype=jnp.float32)
    adj = adj * (1.0 - eye) + eye                   # remove_self_loops then add_self_loops
    return adj


# ----------------------------------------------------------------------------
# Main
# ----------------------------------------------------------------------------
if __name__ == "__main__":
    heads = 8
    c_in = 16
    block_channels = [[16, 32], [32, 32]]
    aggr_channels = [32 + 32, 32]
    head_channels = [32, 32, 10]
    nodes_per_graph = 16
    num_graphs = 2
    N = nodes_per_graph * num_graphs

    # deterministic inputs
    x = jax.random.normal(jax.random.PRNGKey(0), (N, c_in), jnp.float32)

    # simple deterministic edge structure: two ring-ish graphs
    src_list, dst_list = [], []
    for g in range(num_graphs):
        base = g * nodes_per_graph
        for i in range(nodes_per_graph):
            for off in (1, 4):
                j = (i + off) % nodes_per_graph
                src_list += [base + i, base + j]
                dst_list += [base + j, base + i]
    edge_index = jnp.array([src_list, dst_list], dtype=jnp.int32)      # [2, E]

    adj = build_adj(edge_index, N)
    deg = jnp.sum(adj, axis=1, keepdims=True)
    adj_fac = adj / jnp.maximum(deg, 1.0)                              # adj * 1/deg, [N, N]

    batch = jnp.repeat(jnp.arange(num_graphs, dtype=jnp.int32), nodes_per_graph)
    pool_mask = jax.nn.one_hot(batch, num_graphs, dtype=jnp.float32)   # [N, B]

    params = init_params(jax.random.PRNGKey(1), block_channels,
                         aggr_channels, head_channels, heads)

    out = feast_gcn_forward(params, x, adj_fac, pool_mask, heads)
    out = jax.block_until_ready(out)
    assert out.shape == (num_graphs, head_channels[-1]), out.shape
    assert bool(jnp.all(jnp.isfinite(out)))
    print("KERNEL_OK")
</pallas_src>

<mosaic_0001>
module attributes {stable_mosaic.version = 11 : i64} {
  func.func @kernel(%arg0: memref<32x16xf32, #tpu.memory_space<vmem>>, %arg1: memref<32x32xf32, #tpu.memory_space<vmem>>, %arg2: memref<32x2xf32, #tpu.memory_space<vmem>>, %arg3: memref<16x264xbf16, #tpu.memory_space<vmem>>, %arg4: memref<8xf32, #tpu.memory_space<smem>>, %arg5: memref<1x32xf32, #tpu.memory_space<vmem>>, %arg6: memref<32x264xbf16, #tpu.memory_space<vmem>>, %arg7: memref<8xf32, #tpu.memory_space<smem>>, %arg8: memref<1x32xf32, #tpu.memory_space<vmem>>, %arg9: memref<16x32xbf16, #tpu.memory_space<vmem>>, %arg10: memref<1x32xf32, #tpu.memory_space<vmem>>, %arg11: memref<32x264xbf16, #tpu.memory_space<vmem>>, %arg12: memref<8xf32, #tpu.memory_space<smem>>, %arg13: memref<1x32xf32, #tpu.memory_space<vmem>>, %arg14: memref<32x264xbf16, #tpu.memory_space<vmem>>, %arg15: memref<8xf32, #tpu.memory_space<smem>>, %arg16: memref<1x32xf32, #tpu.memory_space<vmem>>, %arg17: memref<64x32xbf16, #tpu.memory_space<vmem>>, %arg18: memref<1x32xf32, #tpu.memory_space<vmem>>, %arg19: memref<32x32xbf16, #tpu.memory_space<vmem>>, %arg20: memref<1x32xf32, #tpu.memory_space<vmem>>, %arg21: memref<32x10xbf16, #tpu.memory_space<vmem>>, %arg22: memref<1x10xf32, #tpu.memory_space<vmem>>, %arg23: memref<2x10xf32, #tpu.memory_space<vmem>>, %arg24: memref<32x256xbf16, #tpu.memory_space<vmem>>, %arg25: memref<256x32xbf16, #tpu.memory_space<vmem>>, %arg26: memref<2x32xf32, #tpu.memory_space<vmem>>) attributes {dimension_semantics = [], scalar_prefetch = 0 : i64, scratch_operands = 3 : i64, tpu.core_type = #tpu.core_type<tc>} {
    %c0 = arith.constant 0 : index
    %c0_0 = arith.constant 0 : index
    %0 = vector.load %arg0[%c0, %c0_0] : memref<32x16xf32, #tpu.memory_space<vmem>>, vector<32x16xf32>
    %c0_1 = arith.constant 0 : index
    %c0_2 = arith.constant 0 : index
    %1 = vector.load %arg1[%c0_1, %c0_2] : memref<32x32xf32, #tpu.memory_space<vmem>>, vector<32x32xf32>
    %c0_3 = arith.constant 0 : index
    %c0_4 = arith.constant 0 : index
    %2 = vector.load %arg2[%c0_3, %c0_4] : memref<32x2xf32, #tpu.memory_space<vmem>>, vector<32x2xf32>
    %3 = tpu.iota {dimensions = array<i32: 0>} : vector<8x8xi32>
    %4 = tpu.iota {dimensions = array<i32: 1>} : vector<8x8xi32>
    %5 = arith.cmpi eq, %3, %4 : vector<8x8xi32>
    %6 = arith.extui %5 : vector<8x8xi1> to vector<8x8xi32>
    %7 = arith.sitofp %6 : vector<8x8xi32> to vector<8x8xf32>
    %8 = arith.truncf %0 : vector<32x16xf32> to vector<32x16xbf16>
    %c0_5 = arith.constant 0 : index
    %c0_6 = arith.constant 0 : index
    %9 = vector.load %arg3[%c0_5, %c0_6] : memref<16x264xbf16, #tpu.memory_space<vmem>>, vector<16x264xbf16>
    %cst = arith.constant dense<0.000000e+00> : vector<32x264xf32>
    %10 = tpu.matmul %8, %9, %cst {dimension_numbers = #tpu.dot_dimension_numbers<[1], [0], [0], [1], [0, 0, 1, 1], [], []>} : vector<32x16xbf16>, vector<16x264xbf16>, vector<32x264xf32> -> vector<32x264xf32>
    %11 = vector.extract_strided_slice %10 {offsets = [0, 0], sizes = [32, 256], strides = [1, 1]} : vector<32x264xf32> to vector<32x256xf32>
    %12 = vector.extract_strided_slice %10 {offsets = [0, 256], sizes = [32, 8], strides = [1, 1]} : vector<32x264xf32> to vector<32x8xf32>
    %cst_7 = arith.constant dense<0.000000e+00> : vector<8x32xf32>
    %13 = tpu.matmul %7, %12, %cst_7 {dimension_numbers = #tpu.dot_dimension_numbers<[1], [1], [0], [0], [0, 0, 1, 0], [], []>} : vector<8x8xf32>, vector<32x8xf32>, vector<8x32xf32> -> vector<8x32xf32>
    %14 = vector.extract_strided_slice %13 {offsets = [0, 0], sizes = [1, 32], strides = [1, 1]} : vector<8x32xf32> to vector<1x32xf32>
    %c0_8 = arith.constant 0 : index
    %15 = memref.load %arg4[%c0_8] : memref<8xf32, #tpu.memory_space<smem>>
    %16 = vector.broadcast %15 : f32 to vector<1x32xf32>
    %17 = arith.addf %14, %16 : vector<1x32xf32>
    %18 = vector.extract_strided_slice %12 {offsets = [0, 0], sizes = [32, 1], strides = [1, 1]} : vector<32x8xf32> to vector<32x1xf32>
    %19 = vector.broadcast %17 : vector<1x32xf32> to vector<32x32xf32>
    %20 = vector.broadcast %18 : vector<32x1xf32> to vector<32x32xf32>
    %21 = arith.subf %19, %20 : vector<32x32xf32>
    %22 = vector.extract_strided_slice %13 {offsets = [1, 0], sizes = [1, 32], strides = [1, 1]} : vector<8x32xf32> to vector<1x32xf32>
    %c1 = arith.constant 1 : index
    %23 = memref.load %arg4[%c1] : memref<8xf32, #tpu.memory_space<smem>>
    %24 = vector.broadcast %23 : f32 to vector<1x32xf32>
    %25 = arith.addf %22, %24 : vector<1x32xf32>
    %26 = vector.extract_strided_slice %12 {offsets = [0, 1], sizes = [32, 1], strides = [1, 1]} : vector<32x8xf32> to vector<32x1xf32>
    %27 = vector.broadcast %25 : vector<1x32xf32> to vector<32x32xf32>
    %28 = vector.broadcast %26 : vector<32x1xf32> to vector<32x32xf32>
    %29 = arith.subf %27, %28 : vector<32x32xf32>
    %30 = vector.extract_strided_slice %13 {offsets = [2, 0], sizes = [1, 32], strides = [1, 1]} : vector<8x32xf32> to vector<1x32xf32>
    %c2 = arith.constant 2 : index
    %31 = memref.load %arg4[%c2] : memref<8xf32, #tpu.memory_space<smem>>
    %32 = vector.broadcast %31 : f32 to vector<1x32xf32>
    %33 = arith.addf %30, %32 : vector<1x32xf32>
    %34 = vector.extract_strided_slice %12 {offsets = [0, 2], sizes = [32, 1], strides = [1, 1]} : vector<32x8xf32> to vector<32x1xf32>
    %35 = vector.broadcast %33 : vector<1x32xf32> to vector<32x32xf32>
    %36 = vector.broadcast %34 : vector<32x1xf32> to vector<32x32xf32>
    %37 = arith.subf %35, %36 : vector<32x32xf32>
    %38 = vector.extract_strided_slice %13 {offsets = [3, 0], sizes = [1, 32], strides = [1, 1]} : vector<8x32xf32> to vector<1x32xf32>
    %c3 = arith.constant 3 : index
    %39 = memref.load %arg4[%c3] : memref<8xf32, #tpu.memory_space<smem>>
    %40 = vector.broadcast %39 : f32 to vector<1x32xf32>
    %41 = arith.addf %38, %40 : vector<1x32xf32>
    %42 = vector.extract_strided_slice %12 {offsets = [0, 3], sizes = [32, 1], strides = [1, 1]} : vector<32x8xf32> to vector<32x1xf32>
    %43 = vector.broadcast %41 : vector<1x32xf32> to vector<32x32xf32>
    %44 = vector.broadcast %42 : vector<32x1xf32> to vector<32x32xf32>
    %45 = arith.subf %43, %44 : vector<32x32xf32>
    %46 = vector.extract_strided_slice %13 {offsets = [4, 0], sizes = [1, 32], strides = [1, 1]} : vector<8x32xf32> to vector<1x32xf32>
    %c4 = arith.constant 4 : index
    %47 = memref.load %arg4[%c4] : memref<8xf32, #tpu.memory_space<smem>>
    %48 = vector.broadcast %47 : f32 to vector<1x32xf32>
    %49 = arith.addf %46, %48 : vector<1x32xf32>
    %50 = vector.extract_strided_slice %12 {offsets = [0, 4], sizes = [32, 1], strides = [1, 1]} : vector<32x8xf32> to vector<32x1xf32>
    %51 = vector.broadcast %49 : vector<1x32xf32> to vector<32x32xf32>
    %52 = vector.broadcast %50 : vector<32x1xf32> to vector<32x32xf32>
    %53 = arith.subf %51, %52 : vector<32x32xf32>
    %54 = vector.extract_strided_slice %13 {offsets = [5, 0], sizes = [1, 32], strides = [1, 1]} : vector<8x32xf32> to vector<1x32xf32>
    %c5 = arith.constant 5 : index
    %55 = memref.load %arg4[%c5] : memref<8xf32, #tpu.memory_space<smem>>
    %56 = vector.broadcast %55 : f32 to vector<1x32xf32>
    %57 = arith.addf %54, %56 : vector<1x32xf32>
    %58 = vector.extract_strided_slice %12 {offsets = [0, 5], sizes = [32, 1], strides = [1, 1]} : vector<32x8xf32> to vector<32x1xf32>
    %59 = vector.broadcast %57 : vector<1x32xf32> to vector<32x32xf32>
    %60 = vector.broadcast %58 : vector<32x1xf32> to vector<32x32xf32>
    %61 = arith.subf %59, %60 : vector<32x32xf32>
    %62 = vector.extract_strided_slice %13 {offsets = [6, 0], sizes = [1, 32], strides = [1, 1]} : vector<8x32xf32> to vector<1x32xf32>
    %c6 = arith.constant 6 : index
    %63 = memref.load %arg4[%c6] : memref<8xf32, #tpu.memory_space<smem>>
    %64 = vector.broadcast %63 : f32 to vector<1x32xf32>
    %65 = arith.addf %62, %64 : vector<1x32xf32>
    %66 = vector.extract_strided_slice %12 {offsets = [0, 6], sizes = [32, 1], strides = [1, 1]} : vector<32x8xf32> to vector<32x1xf32>
    %67 = vector.broadcast %65 : vector<1x32xf32> to vector<32x32xf32>
    %68 = vector.broadcast %66 : vector<32x1xf32> to vector<32x32xf32>
    %69 = arith.subf %67, %68 : vector<32x32xf32>
    %70 = vector.extract_strided_slice %13 {offsets = [7, 0], sizes = [1, 32], strides = [1, 1]} : vector<8x32xf32> to vector<1x32xf32>
    %c7 = arith.constant 7 : index
    %71 = memref.load %arg4[%c7] : memref<8xf32, #tpu.memory_space<smem>>
    %72 = vector.broadcast %71 : f32 to vector<1x32xf32>
    %73 = arith.addf %70, %72 : vector<1x32xf32>
    %74 = vector.extract_strided_slice %12 {offsets = [0, 7], sizes = [32, 1], strides = [1, 1]} : vector<32x8xf32> to vector<32x1xf32>
    %75 = vector.broadcast %73 : vector<1x32xf32> to vector<32x32xf32>
    %76 = vector.broadcast %74 : vector<32x1xf32> to vector<32x32xf32>
    %77 = arith.subf %75, %76 : vector<32x32xf32>
    %78 = arith.maximumf %21, %29 : vector<32x32xf32>
    %79 = arith.maximumf %37, %45 : vector<32x32xf32>
    %80 = arith.maximumf %53, %61 : vector<32x32xf32>
    %81 = arith.maximumf %69, %77 : vector<32x32xf32>
    %82 = arith.maximumf %78, %79 : vector<32x32xf32>
    %83 = arith.maximumf %80, %81 : vector<32x32xf32>
    %84 = arith.maximumf %82, %83 : vector<32x32xf32>
    %85 = arith.subf %21, %84 : vector<32x32xf32>
    %86 = math.exp %85 : vector<32x32xf32>
    %87 = arith.subf %29, %84 : vector<32x32xf32>
    %88 = math.exp %87 : vector<32x32xf32>
    %89 = arith.subf %37, %84 : vector<32x32xf32>
    %90 = math.exp %89 : vector<32x32xf32>
    %91 = arith.subf %45, %84 : vector<32x32xf32>
    %92 = math.exp %91 : vector<32x32xf32>
    %93 = arith.subf %53, %84 : vector<32x32xf32>
    %94 = math.exp %93 : vector<32x32xf32>
    %95 = arith.subf %61, %84 : vector<32x32xf32>
    %96 = math.exp %95 : vector<32x32xf32>
    %97 = arith.subf %69, %84 : vector<32x32xf32>
    %98 = math.exp %97 : vector<32x32xf32>
    %99 = arith.subf %77, %84 : vector<32x32xf32>
    %100 = math.exp %99 : vector<32x32xf32>
    %101 = arith.addf %86, %88 : vector<32x32xf32>
    %102 = arith.addf %90, %92 : vector<32x32xf32>
    %103 = arith.addf %94, %96 : vector<32x32xf32>
    %104 = arith.addf %98, %100 : vector<32x32xf32>
    %105 = arith.addf %101, %102 : vector<32x32xf32>
    %106 = arith.addf %103, %104 : vector<32x32xf32>
    %107 = arith.addf %105, %106 : vector<32x32xf32>
    %108 = tpu.reciprocal %107 {approx = true} : vector<32x32xf32> -> vector<32x32xf32>
    %109 = arith.mulf %1, %108 : vector<32x32xf32>
    %110 = arith.mulf %86, %109 : vector<32x32xf32>
    %111 = arith.truncf %110 : vector<32x32xf32> to vector<32x32xbf16>
    %c0_9 = arith.constant 0 : index
    %c0_10 = arith.constant 0 : index
    %112 = vector.load %arg24[%c0_9, %c0_10] : memref<32x256xbf16, #tpu.memory_space<vmem>>, vector<32x32xbf16>
    tpu.vector_store %arg24[%c0_9, %c0_10], %111 {strides = array<i32>} : memref<32x256xbf16, #tpu.memory_space<vmem>>, vector<32x32xbf16>,
    %113 = vector.extract_strided_slice %11 {offsets = [0, 0], sizes = [32, 32], strides = [1, 1]} : vector<32x256xf32> to vector<32x32xf32>
    %114 = arith.truncf %113 : vector<32x32xf32> to vector<32x32xbf16>
    %c0_11 = arith.constant 0 : index
    %c0_12 = arith.constant 0 : index
    %115 = vector.load %arg25[%c0_11, %c0_12] : memref<256x32xbf16, #tpu.memory_space<vmem>>, vector<32x32xbf16>
    tpu.vector_store %arg25[%c0_11, %c0_12], %114 {strides = array<i32>} : memref<256x32xbf16, #tpu.memory_space<vmem>>, vector<32x32xbf16>,
    %116 = arith.mulf %88, %109 : vector<32x32xf32>
    %117 = arith.truncf %116 : vector<32x32xf32> to vector<32x32xbf16>
    %c0_13 = arith.constant 0 : index
    %c32 = arith.constant 32 : index
    %118 = vector.load %arg24[%c0_13, %c32] : memref<32x256xbf16, #tpu.memory_space<vmem>>, vector<32x32xbf16>
    tpu.vector_store %arg24[%c0_13, %c32], %117 {strides = array<i32>} : memref<32x256xbf16, #tpu.memory_space<vmem>>, vector<32x32xbf16>,
    %119 = vector.extract_strided_slice %11 {offsets = [0, 32], sizes = [32, 32], strides = [1, 1]} : vector<32x256xf32> to vector<32x32xf32>
    %120 = arith.truncf %119 : vector<32x32xf32> to vector<32x32xbf16>
    %c32_14 = arith.constant 32 : index
    %c0_15 = arith.constant 0 : index
    %121 = vector.load %arg25[%c32_14, %c0_15] : memref<256x32xbf16, #tpu.memory_space<vmem>>, vector<32x32xbf16>
    tpu.vector_store %arg25[%c32_14, %c0_15], %120 {strides = array<i32>} : memref<256x32xbf16, #tpu.memory_space<vmem>>, vector<32x32xbf16>,
    %122 = arith.mulf %90, %109 : vector<32x32xf32>
    %123 = arith.truncf %122 : vector<32x32xf32> to vector<32x32xbf16>
    %c0_16 = arith.constant 0 : index
    %c64 = arith.constant 64 : index
    %124 = vector.load %arg24[%c0_16, %c64] : memref<32x256xbf16, #tpu.memory_space<vmem>>, vector<32x32xbf16>
    tpu.vector_store %arg24[%c0_16, %c64], %123 {strides = array<i32>} : memref<32x256xbf16, #tpu.memory_space<vmem>>, vector<32x32xbf16>,
    %125 = vector.extract_strided_slice %11 {offsets = [0, 64], sizes = [32, 32], strides = [1, 1]} : vector<32x256xf32> to vector<32x32xf32>
    %126 = arith.truncf %125 : vector<32x32xf32> to vector<32x32xbf16>
    %c64_17 = arith.constant 64 : index
    %c0_18 = arith.constant 0 : index
    %127 = vector.load %arg25[%c64_17, %c0_18] : memref<256x32xbf16, #tpu.memory_space<vmem>>, vector<32x32xbf16>
    tpu.vector_store %arg25[%c64_17, %c0_18], %126 {strides = array<i32>} : memref<256x32xbf16, #tpu.memory_space<vmem>>, vector<32x32xbf16>,
    %128 = arith.mulf %92, %109 : vector<32x32xf32>
    %129 = arith.truncf %128 : vector<32x32xf32> to vector<32x32xbf16>
    %c0_19 = arith.constant 0 : index
    %c96 = arith.constant 96 : index
    %130 = vector.load %arg24[%c0_19, %c96] : memref<32x256xbf16, #tpu.memory_space<vmem>>, vector<32x32xbf16>
    tpu.vector_store %arg24[%c0_19, %c96], %129 {strides = array<i32>} : memref<32x256xbf16, #tpu.memory_space<vmem>>, vector<32x32xbf16>,
    %131 = vector.extract_strided_slice %11 {offsets = [0, 96], sizes = [32, 32], strides = [1, 1]} : vector<32x256xf32> to vector<32x32xf32>
    %132 = arith.truncf %131 : vector<32x32xf32> to vector<32x32xbf16>
    %c96_20 = arith.constant 96 : index
    %c0_21 = arith.constant 0 : index
    %133 = vector.load %arg25[%c96_20, %c0_21] : memref<256x32xbf16, #tpu.memory_space<vmem>>, vector<32x32xbf16>
    tpu.vector_store %arg25[%c96_20, %c0_21], %132 {strides = array<i32>} : memref<256x32xbf16, #tpu.memory_space<vmem>>, vector<32x32xbf16>,
    %134 = arith.mulf %94, %109 : vector<32x32xf32>
    %135 = arith.truncf %134 : vector<32x32xf32> to vector<32x32xbf16>
    %c0_22 = arith.constant 0 : index
    %c128 = arith.constant 128 : index
    %136 = vector.load %arg24[%c0_22, %c128] : memref<32x256xbf16, #tpu.memory_space<vmem>>, vector<32x32xbf16>
    tpu.vector_store %arg24[%c0_22, %c128], %135 {strides = array<i32>} : memref<32x256xbf16, #tpu.memory_space<vmem>>, vector<32x32xbf16>,
    %137 = vector.extract_strided_slice %11 {offsets = [0, 128], sizes = [32, 32], strides = [1, 1]} : vector<32x256xf32> to vector<32x32xf32>
    %138 = arith.truncf %137 : vector<32x32xf32> to vector<32x32xbf16>
    %c128_23 = arith.constant 128 : index
    %c0_24 = arith.constant 0 : index
    %139 = vector.load %arg25[%c128_23, %c0_24] : memref<256x32xbf16, #tpu.memory_space<vmem>>, vector<32x32xbf16>
    tpu.vector_store %arg25[%c128_23, %c0_24], %138 {strides = array<i32>} : memref<256x32xbf16, #tpu.memory_space<vmem>>, vector<32x32xbf16>,
    %140 = arith.mulf %96, %109 : vector<32x32xf32>
    %141 = arith.truncf %140 : vector<32x32xf32> to vector<32x32xbf16>
    %c0_25 = arith.constant 0 : index
    %c160 = arith.constant 160 : index
    %142 = vector.load %arg24[%c0_25, %c160] : memref<32x256xbf16, #tpu.memory_space<vmem>>, vector<32x32xbf16>
    tpu.vector_store %arg24[%c0_25, %c160], %141 {strides = array<i32>} : memref<32x256xbf16, #tpu.memory_space<vmem>>, vector<32x32xbf16>,
    %143 = vector.extract_strided_slice %11 {offsets = [0, 160], sizes = [32, 32], strides = [1, 1]} : vector<32x256xf32> to vector<32x32xf32>
    %144 = arith.truncf %143 : vector<32x32xf32> to vector<32x32xbf16>
    %c160_26 = arith.constant 160 : index
    %c0_27 = arith.constant 0 : index
    %145 = vector.load %arg25[%c160_26, %c0_27] : memref<256x32xbf16, #tpu.memory_space<vmem>>, vector<32x32xbf16>
    tpu.vector_store %arg25[%c160_26, %c0_27], %144 {strides = array<i32>} : memref<256x32xbf16, #tpu.memory_space<vmem>>, vector<32x32xbf16>,
    %146 = arith.mulf %98, %109 : vector<32x32xf32>
    %147 = arith.truncf %146 : vector<32x32xf32> to vector<32x32xbf16>
    %c0_28 = arith.constant 0 : index
    %c192 = arith.constant 192 : index
    %148 = vector.load %arg24[%c0_28, %c192] : memref<32x256xbf16, #tpu.memory_space<vmem>>, vector<32x32xbf16>
    tpu.vector_store %arg24[%c0_28, %c192], %147 {strides = array<i32>} : memref<32x256xbf16, #tpu.memory_space<vmem>>, vector<32x32xbf16>,
    %149 = vector.extract_strided_slice %11 {offsets = [0, 192], sizes = [32, 32], strides = [1, 1]} : vector<32x256xf32> to vector<32x32xf32>
    %150 = arith.truncf %149 : vector<32x32xf32> to vector<32x32xbf16>
    %c192_29 = arith.constant 192 : index
    %c0_30 = arith.constant 0 : index
    %151 = vector.load %arg25[%c192_29, %c0_30] : memref<256x32xbf16, #tpu.memory_space<vmem>>, vector<32x32xbf16>
    tpu.vector_store %arg25[%c192_29, %c0_30], %150 {strides = array<i32>} : memref<256x32xbf16, #tpu.memory_space<vmem>>, vector<32x32xbf16>,
    %152 = arith.mulf %100, %109 : vector<32x32xf32>
    %153 = arith.truncf %152 : vector<32x32xf32> to vector<32x32xbf16>
    %c0_31 = arith.constant 0 : index
    %c224 = arith.constant 224 : index
    %154 = vector.load %arg24[%c0_31, %c224] : memref<32x256xbf16, #tpu.memory_space<vmem>>, vector<32x32xbf16>
    tpu.vector_store %arg24[%c0_31, %c224], %153 {strides = array<i32>} : memref<32x256xbf16, #tpu.memory_space<vmem>>, vector<32x32xbf16>,
    %155 = vector.extract_strided_slice %11 {offsets = [0, 224], sizes = [32, 32], strides = [1, 1]} : vector<32x256xf32> to vector<32x32xf32>
    %156 = arith.truncf %155 : vector<32x32xf32> to vector<32x32xbf16>
    %c224_32 = arith.constant 224 : index
    %c0_33 = arith.constant 0 : index
    %157 = vector.load %arg25[%c224_32, %c0_33] : memref<256x32xbf16, #tpu.memory_space<vmem>>, vector<32x32xbf16>
    tpu.vector_store %arg25[%c224_32, %c0_33], %156 {strides = array<i32>} : memref<256x32xbf16, #tpu.memory_space<vmem>>, vector<32x32xbf16>,
    %c0_34 = arith.constant 0 : index
    %c0_35 = arith.constant 0 : index
    %158 = vector.load %arg24[%c0_34, %c0_35] : memref<32x256xbf16, #tpu.memory_space<vmem>>, vector<32x256xbf16>
    %c0_36 = arith.constant 0 : index
    %c0_37 = arith.constant 0 : index
    %159 = vector.load %arg25[%c0_36, %c0_37] : memref<256x32xbf16, #tpu.memory_space<vmem>>, vector<256x32xbf16>
    %cst_38 = arith.constant dense<0.000000e+00> : vector<32x32xf32>
    %160 = tpu.matmul %158, %159, %cst_38 {dimension_numbers = #tpu.dot_dimension_numbers<[1], [0], [0], [1], [0, 0, 1, 1], [], []>} : vector<32x256xbf16>, vector<256x32xbf16>, vector<32x32xf32> -> vector<32x32xf32>
    %c0_39 = arith.constant 0 : index
    %c0_40 = arith.constant 0 : index
    %161 = vector.load %arg5[%c0_39, %c0_40] : memref<1x32xf32, #tpu.memory_space<vmem>>, vector<1x32xf32>
    %162 = vector.broadcast %161 : vector<1x32xf32> to vector<32x32xf32>
    %163 = arith.addf %160, %162 : vector<32x32xf32>
    %cst_41 = arith.constant 0.000000e+00 : f32
    %164 = vector.broadcast %cst_41 : f32 to vector<32x32xf32>
    %165 = arith.maximumf %163, %164 : vector<32x32xf32>
    %166 = arith.truncf %165 : vector<32x32xf32> to vector<32x32xbf16>
    %c0_42 = arith.constant 0 : index
    %c0_43 = arith.constant 0 : index
    %167 = vector.load %arg6[%c0_42, %c0_43] : memref<32x264xbf16, #tpu.memory_space<vmem>>, vector<32x264xbf16>
    %cst_44 = arith.constant dense<0.000000e+00> : vector<32x264xf32>
    %168 = tpu.matmul %166, %167, %cst_44 {dimension_numbers = #tpu.dot_dimension_numbers<[1], [0], [0], [1], [0, 0, 1, 1], [], []>} : vector<32x32xbf16>, vector<32x264xbf16>, vector<32x264xf32> -> vector<32x264xf32>
    %169 = vector.extract_strided_slice %168 {offsets = [0, 0], sizes = [32, 256], strides = [1, 1]} : vector<32x264xf32> to vector<32x256xf32>
    %170 = vector.extract_strided_slice %168 {offsets = [0, 256], sizes = [32, 8], strides = [1, 1]} : vector<32x264xf32> to vector<32x8xf32>
    %cst_45 = arith.constant dense<0.000000e+00> : vector<8x32xf32>
    %171 = tpu.matmul %7, %170, %cst_45 {dimension_numbers = #tpu.dot_dimension_numbers<[1], [1], [0], [0], [0, 0, 1, 0], [], []>} : vector<8x8xf32>, vector<32x8xf32>, vector<8x32xf32> -> vector<8x32xf32>
    %172 = vector.extract_strided_slice %171 {offsets = [0, 0], sizes = [1, 32], strides = [1, 1]} : vector<8x32xf32> to vector<1x32xf32>
    %c0_46 = arith.constant 0 : index
    %173 = memref.load %arg7[%c0_46] : memref<8xf32, #tpu.memory_space<smem>>
    %174 = vector.broadcast %173 : f32 to vector<1x32xf32>
    %175 = arith.addf %172, %174 : vector<1x32xf32>
    %176 = vector.extract_strided_slice %170 {offsets = [0, 0], sizes = [32, 1], strides = [1, 1]} : vector<32x8xf32> to vector<32x1xf32>
    %177 = vector.broadcast %175 : vector<1x32xf32> to vector<32x32xf32>
    %178 = vector.broadcast %176 : vector<32x1xf32> to vector<32x32xf32>
    %179 = arith.subf %177, %178 : vector<32x32xf32>
    %180 = vector.extract_strided_slice %171 {offsets = [1, 0], sizes = [1, 32], strides = [1, 1]} : vector<8x32xf32> to vector<1x32xf32>
    %c1_47 = arith.constant 1 : index
    %181 = memref.load %arg7[%c1_47] : memref<8xf32, #tpu.memory_space<smem>>
    %182 = vector.broadcast %181 : f32 to vector<1x32xf32>
    %183 = arith.addf %180, %182 : vector<1x32xf32>
    %184 = vector.extract_strided_slice %170 {offsets = [0, 1], sizes = [32, 1], strides = [1, 1]} : vector<32x8xf32> to vector<32x1xf32>
    %185 = vector.broadcast %183 : vector<1x32xf32> to vector<32x32xf32>
    %186 = vector.broadcast %184 : vector<32x1xf32> to vector<32x32xf32>
    %187 = arith.subf %185, %186 : vector<32x32xf32>
    %188 = vector.extract_strided_slice %171 {offsets = [2, 0], sizes = [1, 32], strides = [1, 1]} : vector<8x32xf32> to vector<1x32xf32>
    %c2_48 = arith.constant 2 : index
    %189 = memref.load %arg7[%c2_48] : memref<8xf32, #tpu.memory_space<smem>>
    %190 = vector.broadcast %189 : f32 to vector<1x32xf32>
    %191 = arith.addf %188, %190 : vector<1x32xf32>
    %192 = vector.extract_strided_slice %170 {offsets = [0, 2], sizes = [32, 1], strides = [1, 1]} : vector<32x8xf32> to vector<32x1xf32>
    %193 = vector.broadcast %191 : vector<1x32xf32> to vector<32x32xf32>
    %194 = vector.broadcast %192 : vector<32x1xf32> to vector<32x32xf32>
    %195 = arith.subf %193, %194 : vector<32x32xf32>
    %196 = vector.extract_strided_slice %171 {offsets = [3, 0], sizes = [1, 32], strides = [1, 1]} : vector<8x32xf32> to vector<1x32xf32>
    %c3_49 = arith.constant 3 : index
    %197 = memref.load %arg7[%c3_49] : memref<8xf32, #tpu.memory_space<smem>>
    %198 = vector.broadcast %197 : f32 to vector<1x32xf32>
    %199 = arith.addf %196, %198 : vector<1x32xf32>
    %200 = vector.extract_strided_slice %170 {offsets = [0, 3], sizes = [32, 1], strides = [1, 1]} : vector<32x8xf32> to vector<32x1xf32>
    %201 = vector.broadcast %199 : vector<1x32xf32> to vector<32x32xf32>
    %202 = vector.broadcast %200 : vector<32x1xf32> to vector<32x32xf32>
    %203 = arith.subf %201, %202 : vector<32x32xf32>
    %204 = vector.extract_strided_slice %171 {offsets = [4, 0], sizes = [1, 32], strides = [1, 1]} : vector<8x32xf32> to vector<1x32xf32>
    %c4_50 = arith.constant 4 : index
    %205 = memref.load %arg7[%c4_50] : memref<8xf32, #tpu.memory_space<smem>>
    %206 = vector.broadcast %205 : f32 to vector<1x32xf32>
    %207 = arith.addf %204, %206 : vector<1x32xf32>
    %208 = vector.extract_strided_slice %170 {offsets = [0, 4], sizes = [32, 1], strides = [1, 1]} : vector<32x8xf32> to vector<32x1xf32>
    %209 = vector.broadcast %207 : vector<1x32xf32> to vector<32x32xf32>
    %210 = vector.broadcast %208 : vector<32x1xf32> to vector<32x32xf32>
    %211 = arith.subf %209, %210 : vector<32x32xf32>
    %212 = vector.extract_strided_slice %171 {offsets = [5, 0], sizes = [1, 32], strides = [1, 1]} : vector<8x32xf32> to vector<1x32xf32>
    %c5_51 = arith.constant 5 : index
    %213 = memref.load %arg7[%c5_51] : memref<8xf32, #tpu.memory_space<smem>>
    %214 = vector.broadcast %213 : f32 to vector<1x32xf32>
    %215 = arith.addf %212, %214 : vector<1x32xf32>
    %216 = vector.extract_strided_slice %170 {offsets = [0, 5], sizes = [32, 1], strides = [1, 1]} : vector<32x8xf32> to vector<32x1xf32>
    %217 = vector.broadcast %215 : vector<1x32xf32> to vector<32x32xf32>
    %218 = vector.broadcast %216 : vector<32x1xf32> to vector<32x32xf32>
    %219 = arith.subf %217, %218 : vector<32x32xf32>
    %220 = vector.extract_strided_slice %171 {offsets = [6, 0], sizes = [1, 32], strides = [1, 1]} : vector<8x32xf32> to vector<1x32xf32>
    %c6_52 = arith.constant 6 : index
    %221 = memref.load %arg7[%c6_52] : memref<8xf32, #tpu.memory_space<smem>>
    %222 = vector.broadcast %221 : f32 to vector<1x32xf32>
    %223 = arith.addf %220, %222 : vector<1x32xf32>
    %224 = vector.extract_strided_slice %170 {offsets = [0, 6], sizes = [32, 1], strides = [1, 1]} : vector<32x8xf32> to vector<32x1xf32>
    %225 = vector.broadcast %223 : vector<1x32xf32> to vector<32x32xf32>
    %226 = vector.broadcast %224 : vector<32x1xf32> to vector<32x32xf32>
    %227 = arith.subf %225, %226 : vector<32x32xf32>
    %228 = vector.extract_strided_slice %171 {offsets = [7, 0], sizes = [1, 32], strides = [1, 1]} : vector<8x32xf32> to vector<1x32xf32>
    %c7_53 = arith.constant 7 : index
    %229 = memref.load %arg7[%c7_53] : memref<8xf32, #tpu.memory_space<smem>>
    %230 = vector.broadcast %229 : f32 to vector<1x32xf32>
    %231 = arith.addf %228, %230 : vector<1x32xf32>
    %232 = vector.extract_strided_slice %170 {offsets = [0, 7], sizes = [32, 1], strides = [1, 1]} : vector<32x8xf32> to vector<32x1xf32>
    %233 = vector.broadcast %231 : vector<1x32xf32> to vector<32x32xf32>
    %234 = vector.broadcast %232 : vector<32x1xf32> to vector<32x32xf32>
    %235 = arith.subf %233, %234 : vector<32x32xf32>
    %236 = arith.maximumf %179, %187 : vector<32x32xf32>
    %237 = arith.maximumf %195, %203 : vector<32x32xf32>
    %238 = arith.maximumf %211, %219 : vector<32x32xf32>
    %239 = arith.maximumf %227, %235 : vector<32x32xf32>
    %240 = arith.maximumf %236, %237 : vector<32x32xf32>
    %241 = arith.maximumf %238, %239 : vector<32x32xf32>
    %242 = arith.maximumf %240, %241 : vector<32x32xf32>
    %243 = arith.subf %179, %242 : vector<32x32xf32>
    %244 = math.exp %243 : vector<32x32xf32>
    %245 = arith.subf %187, %242 : vector<32x32xf32>
    %246 = math.exp %245 : vector<32x32xf32>
    %247 = arith.subf %195, %242 : vector<32x32xf32>
    %248 = math.exp %247 : vector<32x32xf32>
    %249 = arith.subf %203, %242 : vector<32x32xf32>
    %250 = math.exp %249 : vector<32x32xf32>
    %251 = arith.subf %211, %242 : vector<32x32xf32>
    %252 = math.exp %251 : vector<32x32xf32>
    %253 = arith.subf %219, %242 : vector<32x32xf32>
    %254 = math.exp %253 : vector<32x32xf32>
    %255 = arith.subf %227, %242 : vector<32x32xf32>
    %256 = math.exp %255 : vector<32x32xf32>
    %257 = arith.subf %235, %242 : vector<32x32xf32>
    %258 = math.exp %257 : vector<32x32xf32>
    %259 = arith.addf %244, %246 : vector<32x32xf32>
    %260 = arith.addf %248, %250 : vector<32x32xf32>
    %261 = arith.addf %252, %254 : vector<32x32xf32>
    %262 = arith.addf %256, %258 : vector<32x32xf32>
    %263 = arith.addf %259, %260 : vector<32x32xf32>
    %264 = arith.addf %261, %262 : vector<32x32xf32>
    %265 = arith.addf %263, %264 : vector<32x32xf32>
    %266 = tpu.reciprocal %265 {approx = true} : vector<32x32xf32> -> vector<32x32xf32>
    %267 = arith.mulf %1, %266 : vector<32x32xf32>
    %268 = arith.mulf %244, %267 : vector<32x32xf32>
    %269 = arith.truncf %268 : vector<32x32xf32> to vector<32x32xbf16>
    %c0_54 = arith.constant 0 : index
    %c0_55 = arith.constant 0 : index
    %270 = vector.load %arg24[%c0_54, %c0_55] : memref<32x256xbf16, #tpu.memory_space<vmem>>, vector<32x32xbf16>
    tpu.vector_store %arg24[%c0_54, %c0_55], %269 {strides = array<i32>} : memref<32x256xbf16, #tpu.memory_space<vmem>>, vector<32x32xbf16>,
    %271 = vector.extract_strided_slice %169 {offsets = [0, 0], sizes = [32, 32], strides = [1, 1]} : vector<32x256xf32> to vector<32x32xf32>
    %272 = arith.truncf %271 : vector<32x32xf32> to vector<32x32xbf16>
    %c0_56 = arith.constant 0 : index
    %c0_57 = arith.constant 0 : index
    %273 = vector.load %arg25[%c0_56, %c0_57] : memref<256x32xbf16, #tpu.memory_space<vmem>>, vector<32x32xbf16>
    tpu.vector_store %arg25[%c0_56, %c0_57], %272 {strides = array<i32>} : memref<256x32xbf16, #tpu.memory_space<vmem>>, vector<32x32xbf16>,
    %274 = arith.mulf %246, %267 : vector<32x32xf32>
    %275 = arith.truncf %274 : vector<32x32xf32> to vector<32x32xbf16>
    %c0_58 = arith.constant 0 : index
    %c32_59 = arith.constant 32 : index
    %276 = vector.load %arg24[%c0_58, %c32_59] : memref<32x256xbf16, #tpu.memory_space<vmem>>, vector<32x32xbf16>
    tpu.vector_store %arg24[%c0_58, %c32_59], %275 {strides = array<i32>} : memref<32x256xbf16, #tpu.memory_space<vmem>>, vector<32x32xbf16>,
    %277 = vector.extract_strided_slice %169 {offsets = [0, 32], sizes = [32, 32], strides = [1, 1]} : vector<32x256xf32> to vector<32x32xf32>
    %278 = arith.truncf %277 : vector<32x32xf32> to vector<32x32xbf16>
    %c32_60 = arith.constant 32 : index
    %c0_61 = arith.constant 0 : index
    %279 = vector.load %arg25[%c32_60, %c0_61] : memref<256x32xbf16, #tpu.memory_space<vmem>>, vector<32x32xbf16>
    tpu.vector_store %arg25[%c32_60, %c0_61], %278 {strides = array<i32>} : memref<256x32xbf16, #tpu.memory_space<vmem>>, vector<32x32xbf16>,
    %280 = arith.mulf %248, %267 : vector<32x32xf32>
    %281 = arith.truncf %280 : vector<32x32xf32> to vector<32x32xbf16>
    %c0_62 = arith.constant 0 : index
    %c64_63 = arith.constant 64 : index
    %282 = vector.load %arg24[%c0_62, %c64_63] : memref<32x256xbf16, #tpu.memory_space<vmem>>, vector<32x32xbf16>
    tpu.vector_store %arg24[%c0_62, %c64_63], %281 {strides = array<i32>} : memref<32x256xbf16, #tpu.memory_space<vmem>>, vector<32x32xbf16>,
    %283 = vector.extract_strided_slice %169 {offsets = [0, 64], sizes = [32, 32], strides = [1, 1]} : vector<32x256xf32> to vector<32x32xf32>
    %284 = arith.truncf %283 : vector<32x32xf32> to vector<32x32xbf16>
    %c64_64 = arith.constant 64 : index
    %c0_65 = arith.constant 0 : index
    %285 = vector.load %arg25[%c64_64, %c0_65] : memref<256x32xbf16, #tpu.memory_space<vmem>>, vector<32x32xbf16>
    tpu.vector_store %arg25[%c64_64, %c0_65], %284 {strides = array<i32>} : memref<256x32xbf16, #tpu.memory_space<vmem>>, vector<32x32xbf16>,
    %286 = arith.mulf %250, %267 : vector<32x32xf32>
    %287 = arith.truncf %286 : vector<32x32xf32> to vector<32x32xbf16>
    %c0_66 = arith.constant 0 : index
    %c96_67 = arith.constant 96 : index
    %288 = vector.load %arg24[%c0_66, %c96_67] : memref<32x256xbf16, #tpu.memory_space<vmem>>, vector<32x32xbf16>
    tpu.vector_store %arg24[%c0_66, %c96_67], %287 {strides = array<i32>} : memref<32x256xbf16, #tpu.memory_space<vmem>>, vector<32x32xbf16>,
    %289 = vector.extract_strided_slice %169 {offsets = [0, 96], sizes = [32, 32], strides = [1, 1]} : vector<32x256xf32> to vector<32x32xf32>
    %290 = arith.truncf %289 : vector<32x32xf32> to vector<32x32xbf16>
    %c96_68 = arith.constant 96 : index
    %c0_69 = arith.constant 0 : index
    %291 = vector.load %arg25[%c96_68, %c0_69] : memref<256x32xbf16, #tpu.memory_space<vmem>>, vector<32x32xbf16>
    tpu.vector_store %arg25[%c96_68, %c0_69], %290 {strides = array<i32>} : memref<256x32xbf16, #tpu.memory_space<vmem>>, vector<32x32xbf16>,
    %292 = arith.mulf %252, %267 : vector<32x32xf32>
    %293 = arith.truncf %292 : vector<32x32xf32> to vector<32x32xbf16>
    %c0_70 = arith.constant 0 : index
    %c128_71 = arith.constant 128 : index
    %294 = vector.load %arg24[%c0_70, %c128_71] : memref<32x256xbf16, #tpu.memory_space<vmem>>, vector<32x32xbf16>
    tpu.vector_store %arg24[%c0_70, %c128_71], %293 {strides = array<i32>} : memref<32x256xbf16, #tpu.memory_space<vmem>>, vector<32x32xbf16>,
    %295 = vector.extract_strided_slice %169 {offsets = [0, 128], sizes = [32, 32], strides = [1, 1]} : vector<32x256xf32> to vector<32x32xf32>
    %296 = arith.truncf %295 : vector<32x32xf32> to vector<32x32xbf16>
    %c128_72 = arith.constant 128 : index
    %c0_73 = arith.constant 0 : index
    %297 = vector.load %arg25[%c128_72, %c0_73] : memref<256x32xbf16, #tpu.memory_space<vmem>>, vector<32x32xbf16>
    tpu.vector_store %arg25[%c128_72, %c0_73], %296 {strides = array<i32>} : memref<256x32xbf16, #tpu.memory_space<vmem>>, vector<32x32xbf16>,
    %298 = arith.mulf %254, %267 : vector<32x32xf32>
    %299 = arith.truncf %298 : vector<32x32xf32> to vector<32x32xbf16>
    %c0_74 = arith.constant 0 : index
    %c160_75 = arith.constant 160 : index
    %300 = vector.load %arg24[%c0_74, %c160_75] : memref<32x256xbf16, #tpu.memory_space<vmem>>, vector<32x32xbf16>
    tpu.vector_store %arg24[%c0_74, %c160_75], %299 {strides = array<i32>} : memref<32x256xbf16, #tpu.memory_space<vmem>>, vector<32x32xbf16>,
    %301 = vector.extract_strided_slice %169 {offsets = [0, 160], sizes = [32, 32], strides = [1, 1]} : vector<32x256xf32> to vector<32x32xf32>
    %302 = arith.truncf %301 : vector<32x32xf32> to vector<32x32xbf16>
    %c160_76 = arith.constant 160 : index
    %c0_77 = arith.constant 0 : index
    %303 = vector.load %arg25[%c160_76, %c0_77] : memref<256x32xbf16, #tpu.memory_space<vmem>>, vector<32x32xbf16>
    tpu.vector_store %arg25[%c160_76, %c0_77], %302 {strides = array<i32>} : memref<256x32xbf16, #tpu.memory_space<vmem>>, vector<32x32xbf16>,
    %304 = arith.mulf %256, %267 : vector<32x32xf32>
    %305 = arith.truncf %304 : vector<32x32xf32> to vector<32x32xbf16>
    %c0_78 = arith.constant 0 : index
    %c192_79 = arith.constant 192 : index
    %306 = vector.load %arg24[%c0_78, %c192_79] : memref<32x256xbf16, #tpu.memory_space<vmem>>, vector<32x32xbf16>
    tpu.vector_store %arg24[%c0_78, %c192_79], %305 {strides = array<i32>} : memref<32x256xbf16, #tpu.memory_space<vmem>>, vector<32x32xbf16>,
    %307 = vector.extract_strided_slice %169 {offsets = [0, 192], sizes = [32, 32], strides = [1, 1]} : vector<32x256xf32> to vector<32x32xf32>
    %308 = arith.truncf %307 : vector<32x32xf32> to vector<32x32xbf16>
    %c192_80 = arith.constant 192 : index
    %c0_81 = arith.constant 0 : index
    %309 = vector.load %arg25[%c192_80, %c0_81] : memref<256x32xbf16, #tpu.memory_space<vmem>>, vector<32x32xbf16>
    tpu.vector_store %arg25[%c192_80, %c0_81], %308 {strides = array<i32>} : memref<256x32xbf16, #tpu.memory_space<vmem>>, vector<32x32xbf16>,
    %310 = arith.mulf %258, %267 : vector<32x32xf32>
    %311 = arith.truncf %310 : vector<32x32xf32> to vector<32x32xbf16>
    %c0_82 = arith.constant 0 : index
    %c224_83 = arith.constant 224 : index
    %312 = vector.load %arg24[%c0_82, %c224_83] : memref<32x256xbf16, #tpu.memory_space<vmem>>, vector<32x32xbf16>
    tpu.vector_store %arg24[%c0_82, %c224_83], %311 {strides = array<i32>} : memref<32x256xbf16, #tpu.memory_space<vmem>>, vector<32x32xbf16>,
    %313 = vector.extract_strided_slice %169 {offsets = [0, 224], sizes = [32, 32], strides = [1, 1]} : vector<32x256xf32> to vector<32x32xf32>
    %314 = arith.truncf %313 : vector<32x32xf32> to vector<32x32xbf16>
    %c224_84 = arith.constant 224 : index
    %c0_85 = arith.constant 0 : index
    %315 = vector.load %arg25[%c224_84, %c0_85] : memref<256x32xbf16, #tpu.memory_space<vmem>>, vector<32x32xbf16>
    tpu.vector_store %arg25[%c224_84, %c0_85], %314 {strides = array<i32>} : memref<256x32xbf16, #tpu.memory_space<vmem>>, vector<32x32xbf16>,
    %c0_86 = arith.constant 0 : index
    %c0_87 = arith.constant 0 : index
    %316 = vector.load %arg24[%c0_86, %c0_87] : memref<32x256xbf16, #tpu.memory_space<vmem>>, vector<32x256xbf16>
    %c0_88 = arith.constant 0 : index
    %c0_89 = arith.constant 0 : index
    %317 = vector.load %arg25[%c0_88, %c0_89] : memref<256x32xbf16, #tpu.memory_space<vmem>>, vector<256x32xbf16>
    %cst_90 = arith.constant dense<0.000000e+00> : vector<32x32xf32>
    %318 = tpu.matmul %316, %317, %cst_90 {dimension_numbers = #tpu.dot_dimension_numbers<[1], [0], [0], [1], [0, 0, 1, 1], [], []>} : vector<32x256xbf16>, vector<256x32xbf16>, vector<32x32xf32> -> vector<32x32xf32>
    %c0_91 = arith.constant 0 : index
    %c0_92 = arith.constant 0 : index
    %319 = vector.load %arg8[%c0_91, %c0_92] : memref<1x32xf32, #tpu.memory_space<vmem>>, vector<1x32xf32>
    %320 = vector.broadcast %319 : vector<1x32xf32> to vector<32x32xf32>
    %321 = arith.addf %318, %320 : vector<32x32xf32>
    %322 = arith.truncf %0 : vector<32x16xf32> to vector<32x16xbf16>
    %c0_93 = arith.constant 0 : index
    %c0_94 = arith.constant 0 : index
    %323 = vector.load %arg9[%c0_93, %c0_94] : memref<16x32xbf16, #tpu.memory_space<vmem>>, vector<16x32xbf16>
    %cst_95 = arith.constant dense<0.000000e+00> : vector<32x32xf32>
    %324 = tpu.matmul %322, %323, %cst_95 {dimension_numbers = #tpu.dot_dimension_numbers<[1], [0], [0], [1], [0, 0, 1, 1], [], []>} : vector<32x16xbf16>, vector<16x32xbf16>, vector<32x32xf32> -> vector<32x32xf32>
    %c0_96 = arith.constant 0 : index
    %c0_97 = arith.constant 0 : index
    %325 = vector.load %arg10[%c0_96, %c0_97] : memref<1x32xf32, #tpu.memory_space<vmem>>, vector<1x32xf32>
    %326 = vector.broadcast %325 : vector<1x32xf32> to vector<32x32xf32>
    %327 = arith.addf %324, %326 : vector<32x32xf32>
    %328 = arith.addf %321, %327 : vector<32x32xf32>
    %cst_98 = arith.constant 0.000000e+00 : f32
    %329 = vector.broadcast %cst_98 : f32 to vector<32x32xf32>
    %330 = arith.maximumf %328, %329 : vector<32x32xf32>
    %331 = arith.truncf %330 : vector<32x32xf32> to vector<32x32xbf16>
    %c0_99 = arith.constant 0 : index
    %c0_100 = arith.constant 0 : index
    %332 = vector.load %arg11[%c0_99, %c0_100] : memref<32x264xbf16, #tpu.memory_space<vmem>>, vector<32x264xbf16>
    %cst_101 = arith.constant dense<0.000000e+00> : vector<32x264xf32>
    %333 = tpu.matmul %331, %332, %cst_101 {dimension_numbers = #tpu.dot_dimension_numbers<[1], [0], [0], [1], [0, 0, 1, 1], [], []>} : vector<32x32xbf16>, vector<32x264xbf16>, vector<32x264xf32> -> vector<32x264xf32>
    %334 = vector.extract_strided_slice %333 {offsets = [0, 0], sizes = [32, 256], strides = [1, 1]} : vector<32x264xf32> to vector<32x256xf32>
    %335 = vector.extract_strided_slice %333 {offsets = [0, 256], sizes = [32, 8], strides = [1, 1]} : vector<32x264xf32> to vector<32x8xf32>
    %cst_102 = arith.constant dense<0.000000e+00> : vector<8x32xf32>
    %336 = tpu.matmul %7, %335, %cst_102 {dimension_numbers = #tpu.dot_dimension_numbers<[1], [1], [0], [0], [0, 0, 1, 0], [], []>} : vector<8x8xf32>, vector<32x8xf32>, vector<8x32xf32> -> vector<8x32xf32>
    %337 = vector.extract_strided_slice %336 {offsets = [0, 0], sizes = [1, 32], strides = [1, 1]} : vector<8x32xf32> to vector<1x32xf32>
    %c0_103 = arith.constant 0 : index
    %338 = memref.load %arg12[%c0_103] : memref<8xf32, #tpu.memory_space<smem>>
    %339 = vector.broadcast %338 : f32 to vector<1x32xf32>
    %340 = arith.addf %337, %339 : vector<1x32xf32>
    %341 = vector.extract_strided_slice %335 {offsets = [0, 0], sizes = [32, 1], strides = [1, 1]} : vector<32x8xf32> to vector<32x1xf32>
    %342 = vector.broadcast %340 : vector<1x32xf32> to vector<32x32xf32>
    %343 = vector.broadcast %341 : vector<32x1xf32> to vector<32x32xf32>
    %344 = arith.subf %342, %343 : vector<32x32xf32>
    %345 = vector.extract_strided_slice %336 {offsets = [1, 0], sizes = [1, 32], strides = [1, 1]} : vector<8x32xf32> to vector<1x32xf32>
    %c1_104 = arith.constant 1 : index
    %346 = memref.load %arg12[%c1_104] : memref<8xf32, #tpu.memory_space<smem>>
    %347 = vector.broadcast %346 : f32 to vector<1x32xf32>
    %348 = arith.addf %345, %347 : vector<1x32xf32>
    %349 = vector.extract_strided_slice %335 {offsets = [0, 1], sizes = [32, 1], strides = [1, 1]} : vector<32x8xf32> to vector<32x1xf32>
    %350 = vector.broadcast %348 : vector<1x32xf32> to vector<32x32xf32>
    %351 = vector.broadcast %349 : vector<32x1xf32> to vector<32x32xf32>
    %352 = arith.subf %350, %351 : vector<32x32xf32>
    %353 = vector.extract_strided_slice %336 {offsets = [2, 0], sizes = [1, 32], strides = [1, 1]} : vector<8x32xf32> to vector<1x32xf32>
    %c2_105 = arith.constant 2 : index
    %354 = memref.load %arg12[%c2_105] : memref<8xf32, #tpu.memory_space<smem>>
    %355 = vector.broadcast %354 : f32 to vector<1x32xf32>
    %356 = arith.addf %353, %355 : vector<1x32xf32>
    %357 = vector.extract_strided_slice %335 {offsets = [0, 2], sizes = [32, 1], strides = [1, 1]} : vector<32x8xf32> to vector<32x1xf32>
    %358 = vector.broadcast %356 : vector<1x32xf32> to vector<32x32xf32>
    %359 = vector.broadcast %357 : vector<32x1xf32> to vector<32x32xf32>
    %360 = arith.subf %358, %359 : vector<32x32xf32>
    %361 = vector.extract_strided_slice %336 {offsets = [3, 0], sizes = [1, 32], strides = [1, 1]} : vector<8x32xf32> to vector<1x32xf32>
    %c3_106 = arith.constant 3 : index
    %362 = memref.load %arg12[%c3_106] : memref<8xf32, #tpu.memory_space<smem>>
    %363 = vector.broadcast %362 : f32 to vector<1x32xf32>
    %364 = arith.addf %361, %363 : vector<1x32xf32>
    %365 = vector.extract_strided_slice %335 {offsets = [0, 3], sizes = [32, 1], strides = [1, 1]} : vector<32x8xf32> to vector<32x1xf32>
    %366 = vector.broadcast %364 : vector<1x32xf32> to vector<32x32xf32>
    %367 = vector.broadcast %365 : vector<32x1xf32> to vector<32x32xf32>
    %368 = arith.subf %366, %367 : vector<32x32xf32>
    %369 = vector.extract_strided_slice %336 {offsets = [4, 0], sizes = [1, 32], strides = [1, 1]} : vector<8x32xf32> to vector<1x32xf32>
    %c4_107 = arith.constant 4 : index
    %370 = memref.load %arg12[%c4_107] : memref<8xf32, #tpu.memory_space<smem>>
    %371 = vector.broadcast %370 : f32 to vector<1x32xf32>
    %372 = arith.addf %369, %371 : vector<1x32xf32>
    %373 = vector.extract_strided_slice %335 {offsets = [0, 4], sizes = [32, 1], strides = [1, 1]} : vector<32x8xf32> to vector<32x1xf32>
    %374 = vector.broadcast %372 : vector<1x32xf32> to vector<32x32xf32>
    %375 = vector.broadcast %373 : vector<32x1xf32> to vector<32x32xf32>
    %376 = arith.subf %374, %375 : vector<32x32xf32>
    %377 = vector.extract_strided_slice %336 {offsets = [5, 0], sizes = [1, 32], strides = [1, 1]} : vector<8x32xf32> to vector<1x32xf32>
    %c5_108 = arith.constant 5 : index
    %378 = memref.load %arg12[%c5_108] : memref<8xf32, #tpu.memory_space<smem>>
    %379 = vector.broadcast %378 : f32 to vector<1x32xf32>
    %380 = arith.addf %377, %379 : vector<1x32xf32>
    %381 = vector.extract_strided_slice %335 {offsets = [0, 5], sizes = [32, 1], strides = [1, 1]} : vector<32x8xf32> to vector<32x1xf32>
    %382 = vector.broadcast %380 : vector<1x32xf32> to vector<32x32xf32>
    %383 = vector.broadcast %381 : vector<32x1xf32> to vector<32x32xf32>
    %384 = arith.subf %382, %383 : vector<32x32xf32>
    %385 = vector.extract_strided_slice %336 {offsets = [6, 0], sizes = [1, 32], strides = [1, 1]} : vector<8x32xf32> to vector<1x32xf32>
    %c6_109 = arith.constant 6 : index
    %386 = memref.load %arg12[%c6_109] : memref<8xf32, #tpu.memory_space<smem>>
    %387 = vector.broadcast %386 : f32 to vector<1x32xf32>
    %388 = arith.addf %385, %387 : vector<1x32xf32>
    %389 = vector.extract_strided_slice %335 {offsets = [0, 6], sizes = [32, 1], strides = [1, 1]} : vector<32x8xf32> to vector<32x1xf32>
    %390 = vector.broadcast %388 : vector<1x32xf32> to vector<32x32xf32>
    %391 = vector.broadcast %389 : vector<32x1xf32> to vector<32x32xf32>
    %392 = arith.subf %390, %391 : vector<32x32xf32>
    %393 = vector.extract_strided_slice %336 {offsets = [7, 0], sizes = [1, 32], strides = [1, 1]} : vector<8x32xf32> to vector<1x32xf32>
    %c7_110 = arith.constant 7 : index
    %394 = memref.load %arg12[%c7_110] : memref<8xf32, #tpu.memory_space<smem>>
    %395 = vector.broadcast %394 : f32 to vector<1x32xf32>
    %396 = arith.addf %393, %395 : vector<1x32xf32>
    %397 = vector.extract_strided_slice %335 {offsets = [0, 7], sizes = [32, 1], strides = [1, 1]} : vector<32x8xf32> to vector<32x1xf32>
    %398 = vector.broadcast %396 : vector<1x32xf32> to vector<32x32xf32>
    %399 = vector.broadcast %397 : vector<32x1xf32> to vector<32x32xf32>
    %400 = arith.subf %398, %399 : vector<32x32xf32>
    %401 = arith.maximumf %344, %352 : vector<32x32xf32>
    %402 = arith.maximumf %360, %368 : vector<32x32xf32>
    %403 = arith.maximumf %376, %384 : vector<32x32xf32>
    %404 = arith.maximumf %392, %400 : vector<32x32xf32>
    %405 = arith.maximumf %401, %402 : vector<32x32xf32>
    %406 = arith.maximumf %403, %404 : vector<32x32xf32>
    %407 = arith.maximumf %405, %406 : vector<32x32xf32>
    %408 = arith.subf %344, %407 : vector<32x32xf32>
    %409 = math.exp %408 : vector<32x32xf32>
    %410 = arith.subf %352, %407 : vector<32x32xf32>
    %411 = math.exp %410 : vector<32x32xf32>
    %412 = arith.subf %360, %407 : vector<32x32xf32>
    %413 = math.exp %412 : vector<32x32xf32>
    %414 = arith.subf %368, %407 : vector<32x32xf32>
    %415 = math.exp %414 : vector<32x32xf32>
    %416 = arith.subf %376, %407 : vector<32x32xf32>
    %417 = math.exp %416 : vector<32x32xf32>
    %418 = arith.subf %384, %407 : vector<32x32xf32>
    %419 = math.exp %418 : vector<32x32xf32>
    %420 = arith.subf %392, %407 : vector<32x32xf32>
    %421 = math.exp %420 : vector<32x32xf32>
    %422 = arith.subf %400, %407 : vector<32x32xf32>
    %423 = math.exp %422 : vector<32x32xf32>
    %424 = arith.addf %409, %411 : vector<32x32xf32>
    %425 = arith.addf %413, %415 : vector<32x32xf32>
    %426 = arith.addf %417, %419 : vector<32x32xf32>
    %427 = arith.addf %421, %423 : vector<32x32xf32>
    %428 = arith.addf %424, %425 : vector<32x32xf32>
    %429 = arith.addf %426, %427 : vector<32x32xf32>
    %430 = arith.addf %428, %429 : vector<32x32xf32>
    %431 = tpu.reciprocal %430 {approx = true} : vector<32x32xf32> -> vector<32x32xf32>
    %432 = arith.mulf %1, %431 : vector<32x32xf32>
    %433 = arith.mulf %409, %432 : vector<32x32xf32>
    %434 = arith.truncf %433 : vector<32x32xf32> to vector<32x32xbf16>
    %c0_111 = arith.constant 0 : index
    %c0_112 = arith.constant 0 : index
    %435 = vector.load %arg24[%c0_111, %c0_112] : memref<32x256xbf16, #tpu.memory_space<vmem>>, vector<32x32xbf16>
    tpu.vector_store %arg24[%c0_111, %c0_112], %434 {strides = array<i32>} : memref<32x256xbf16, #tpu.memory_space<vmem>>, vector<32x32xbf16>,
    %436 = vector.extract_strided_slice %334 {offsets = [0, 0], sizes = [32, 32], strides = [1, 1]} : vector<32x256xf32> to vector<32x32xf32>
    %437 = arith.truncf %436 : vector<32x32xf32> to vector<32x32xbf16>
    %c0_113 = arith.constant 0 : index
    %c0_114 = arith.constant 0 : index
    %438 = vector.load %arg25[%c0_113, %c0_114] : memref<256x32xbf16, #tpu.memory_space<vmem>>, vector<32x32xbf16>
    tpu.vector_store %arg25[%c0_113, %c0_114], %437 {strides = array<i32>} : memref<256x32xbf16, #tpu.memory_space<vmem>>, vector<32x32xbf16>,
    %439 = arith.mulf %411, %432 : vector<32x32xf32>
    %440 = arith.truncf %439 : vector<32x32xf32> to vector<32x32xbf16>
    %c0_115 = arith.constant 0 : index
    %c32_116 = arith.constant 32 : index
    %441 = vector.load %arg24[%c0_115, %c32_116] : memref<32x256xbf16, #tpu.memory_space<vmem>>, vector<32x32xbf16>
    tpu.vector_store %arg24[%c0_115, %c32_116], %440 {strides = array<i32>} : memref<32x256xbf16, #tpu.memory_space<vmem>>, vector<32x32xbf16>,
    %442 = vector.extract_strided_slice %334 {offsets = [0, 32], sizes = [32, 32], strides = [1, 1]} : vector<32x256xf32> to vector<32x32xf32>
    %443 = arith.truncf %442 : vector<32x32xf32> to vector<32x32xbf16>
    %c32_117 = arith.constant 32 : index
    %c0_118 = arith.constant 0 : index
    %444 = vector.load %arg25[%c32_117, %c0_118] : memref<256x32xbf16, #tpu.memory_space<vmem>>, vector<32x32xbf16>
    tpu.vector_store %arg25[%c32_117, %c0_118], %443 {strides = array<i32>} : memref<256x32xbf16, #tpu.memory_space<vmem>>, vector<32x32xbf16>,
    %445 = arith.mulf %413, %432 : vector<32x32xf32>
    %446 = arith.truncf %445 : vector<32x32xf32> to vector<32x32xbf16>
    %c0_119 = arith.constant 0 : index
    %c64_120 = arith.constant 64 : index
    %447 = vector.load %arg24[%c0_119, %c64_120] : memref<32x256xbf16, #tpu.memory_space<vmem>>, vector<32x32xbf16>
    tpu.vector_store %arg24[%c0_119, %c64_120], %446 {strides = array<i32>} : memref<32x256xbf16, #tpu.memory_space<vmem>>, vector<32x32xbf16>,
    %448 = vector.extract_strided_slice %334 {offsets = [0, 64], sizes = [32, 32], strides = [1, 1]} : vector<32x256xf32> to vector<32x32xf32>
    %449 = arith.truncf %448 : vector<32x32xf32> to vector<32x32xbf16>
    %c64_121 = arith.constant 64 : index
    %c0_122 = arith.constant 0 : index
    %450 = vector.load %arg25[%c64_121, %c0_122] : memref<256x32xbf16, #tpu.memory_space<vmem>>, vector<32x32xbf16>
    tpu.vector_store %arg25[%c64_121, %c0_122], %449 {strides = array<i32>} : memref<256x32xbf16, #tpu.memory_space<vmem>>, vector<32x32xbf16>,
    %451 = arith.mulf %415, %432 : vector<32x32xf32>
    %452 = arith.truncf %451 : vector<32x32xf32> to vector<32x32xbf16>
    %c0_123 = arith.constant 0 : index
    %c96_124 = arith.constant 96 : index
    %453 = vector.load %arg24[%c0_123, %c96_124] : memref<32x256xbf16, #tpu.memory_space<vmem>>, vector<32x32xbf16>
    tpu.vector_store %arg24[%c0_123, %c96_124], %452 {strides = array<i32>} : memref<32x256xbf16, #tpu.memory_space<vmem>>, vector<32x32xbf16>,
    %454 = vector.extract_strided_slice %334 {offsets = [0, 96], sizes = [32, 32], strides = [1, 1]} : vector<32x256xf32> to vector<32x32xf32>
    %455 = arith.truncf %454 : vector<32x32xf32> to vector<32x32xbf16>
    %c96_125 = arith.constant 96 : index
    %c0_126 = arith.constant 0 : index
    %456 = vector.load %arg25[%c96_125, %c0_126] : memref<256x32xbf16, #tpu.memory_space<vmem>>, vector<32x32xbf16>
    tpu.vector_store %arg25[%c96_125, %c0_126], %455 {strides = array<i32>} : memref<256x32xbf16, #tpu.memory_space<vmem>>, vector<32x32xbf16>,
    %457 = arith.mulf %417, %432 : vector<32x32xf32>
    %458 = arith.truncf %457 : vector<32x32xf32> to vector<32x32xbf16>
    %c0_127 = arith.constant 0 : index
    %c128_128 = arith.constant 128 : index
    %459 = vector.load %arg24[%c0_127, %c128_128] : memref<32x256xbf16, #tpu.memory_space<vmem>>, vector<32x32xbf16>
    tpu.vector_store %arg24[%c0_127, %c128_128], %458 {strides = array<i32>} : memref<32x256xbf16, #tpu.memory_space<vmem>>, vector<32x32xbf16>,
    %460 = vector.extract_strided_slice %334 {offsets = [0, 128], sizes = [32, 32], strides = [1, 1]} : vector<32x256xf32> to vector<32x32xf32>
    %461 = arith.truncf %460 : vector<32x32xf32> to vector<32x32xbf16>
    %c128_129 = arith.constant 128 : index
    %c0_130 = arith.constant 0 : index
    %462 = vector.load %arg25[%c128_129, %c0_130] : memref<256x32xbf16, #tpu.memory_space<vmem>>, vector<32x32xbf16>
    tpu.vector_store %arg25[%c128_129, %c0_130], %461 {strides = array<i32>} : memref<256x32xbf16, #tpu.memory_space<vmem>>, vector<32x32xbf16>,
    %463 = arith.mulf %419, %432 : vector<32x32xf32>
    %464 = arith.truncf %463 : vector<32x32xf32> to vector<32x32xbf16>
    %c0_131 = arith.constant 0 : index
    %c160_132 = arith.constant 160 : index
    %465 = vector.load %arg24[%c0_131, %c160_132] : memref<32x256xbf16, #tpu.memory_space<vmem>>, vector<32x32xbf16>
    tpu.vector_store %arg24[%c0_131, %c160_132], %464 {strides = array<i32>} : memref<32x256xbf16, #tpu.memory_space<vmem>>, vector<32x32xbf16>,
    %466 = vector.extract_strided_slice %334 {offsets = [0, 160], sizes = [32, 32], strides = [1, 1]} : vector<32x256xf32> to vector<32x32xf32>
    %467 = arith.truncf %466 : vector<32x32xf32> to vector<32x32xbf16>
    %c160_133 = arith.constant 160 : index
    %c0_134 = arith.constant 0 : index
    %468 = vector.load %arg25[%c160_133, %c0_134] : memref<256x32xbf16, #tpu.memory_space<vmem>>, vector<32x32xbf16>
    tpu.vector_store %arg25[%c160_133, %c0_134], %467 {strides = array<i32>} : memref<256x32xbf16, #tpu.memory_space<vmem>>, vector<32x32xbf16>,
    %469 = arith.mulf %421, %432 : vector<32x32xf32>
    %470 = arith.truncf %469 : vector<32x32xf32> to vector<32x32xbf16>
    %c0_135 = arith.constant 0 : index
    %c192_136 = arith.constant 192 : index
    %471 = vector.load %arg24[%c0_135, %c192_136] : memref<32x256xbf16, #tpu.memory_space<vmem>>, vector<32x32xbf16>
    tpu.vector_store %arg24[%c0_135, %c192_136], %470 {strides = array<i32>} : memref<32x256xbf16, #tpu.memory_space<vmem>>, vector<32x32xbf16>,
    %472 = vector.extract_strided_slice %334 {offsets = [0, 192], sizes = [32, 32], strides = [1, 1]} : vector<32x256xf32> to vector<32x32xf32>
    %473 = arith.truncf %472 : vector<32x32xf32> to vector<32x32xbf16>
    %c192_137 = arith.constant 192 : index
    %c0_138 = arith.constant 0 : index
    %474 = vector.load %arg25[%c192_137, %c0_138] : memref<256x32xbf16, #tpu.memory_space<vmem>>, vector<32x32xbf16>
    tpu.vector_store %arg25[%c192_137, %c0_138], %473 {strides = array<i32>} : memref<256x32xbf16, #tpu.memory_space<vmem>>, vector<32x32xbf16>,
    %475 = arith.mulf %423, %432 : vector<32x32xf32>
    %476 = arith.truncf %475 : vector<32x32xf32> to vector<32x32xbf16>
    %c0_139 = arith.constant 0 : index
    %c224_140 = arith.constant 224 : index
    %477 = vector.load %arg24[%c0_139, %c224_140] : memref<32x256xbf16, #tpu.memory_space<vmem>>, vector<32x32xbf16>
    tpu.vector_store %arg24[%c0_139, %c224_140], %476 {strides = array<i32>} : memref<32x256xbf16, #tpu.memory_space<vmem>>, vector<32x32xbf16>,
    %478 = vector.extract_strided_slice %334 {offsets = [0, 224], sizes = [32, 32], strides = [1, 1]} : vector<32x256xf32> to vector<32x32xf32>
    %479 = arith.truncf %478 : vector<32x32xf32> to vector<32x32xbf16>
    %c224_141 = arith.constant 224 : index
    %c0_142 = arith.constant 0 : index
    %480 = vector.load %arg25[%c224_141, %c0_142] : memref<256x32xbf16, #tpu.memory_space<vmem>>, vector<32x32xbf16>
    tpu.vector_store %arg25[%c224_141, %c0_142], %479 {strides = array<i32>} : memref<256x32xbf16, #tpu.memory_space<vmem>>, vector<32x32xbf16>,
    %c0_143 = arith.constant 0 : index
    %c0_144 = arith.constant 0 : index
    %481 = vector.load %arg24[%c0_143, %c0_144] : memref<32x256xbf16, #tpu.memory_space<vmem>>, vector<32x256xbf16>
    %c0_145 = arith.constant 0 : index
    %c0_146 = arith.constant 0 : index
    %482 = vector.load %arg25[%c0_145, %c0_146] : memref<256x32xbf16, #tpu.memory_space<vmem>>, vector<256x32xbf16>
    %cst_147 = arith.constant dense<0.000000e+00> : vector<32x32xf32>
    %483 = tpu.matmul %481, %482, %cst_147 {dimension_numbers = #tpu.dot_dimension_numbers<[1], [0], [0], [1], [0, 0, 1, 1], [], []>} : vector<32x256xbf16>, vector<256x32xbf16>, vector<32x32xf32> -> vector<32x32xf32>
    %c0_148 = arith.constant 0 : index
    %c0_149 = arith.constant 0 : index
    %484 = vector.load %arg13[%c0_148, %c0_149] : memref<1x32xf32, #tpu.memory_space<vmem>>, vector<1x32xf32>
    %485 = vector.broadcast %484 : vector<1x32xf32> to vector<32x32xf32>
    %486 = arith.addf %483, %485 : vector<32x32xf32>
    %cst_150 = arith.constant 0.000000e+00 : f32
    %487 = vector.broadcast %cst_150 : f32 to vector<32x32xf32>
    %488 = arith.maximumf %486, %487 : vector<32x32xf32>
    %489 = arith.truncf %488 : vector<32x32xf32> to vector<32x32xbf16>
    %c0_151 = arith.constant 0 : index
    %c0_152 = arith.constant 0 : index
    %490 = vector.load %arg14[%c0_151, %c0_152] : memref<32x264xbf16, #tpu.memory_space<vmem>>, vector<32x264xbf16>
    %cst_153 = arith.constant dense<0.000000e+00> : vector<32x264xf32>
    %491 = tpu.matmul %489, %490, %cst_153 {dimension_numbers = #tpu.dot_dimension_numbers<[1], [0], [0], [1], [0, 0, 1, 1], [], []>} : vector<32x32xbf16>, vector<32x264xbf16>, vector<32x264xf32> -> vector<32x264xf32>
    %492 = vector.extract_strided_slice %491 {offsets = [0, 0], sizes = [32, 256], strides = [1, 1]} : vector<32x264xf32> to vector<32x256xf32>
    %493 = vector.extract_strided_slice %491 {offsets = [0, 256], sizes = [32, 8], strides = [1, 1]} : vector<32x264xf32> to vector<32x8xf32>
    %cst_154 = arith.constant dense<0.000000e+00> : vector<8x32xf32>
    %494 = tpu.matmul %7, %493, %cst_154 {dimension_numbers = #tpu.dot_dimension_numbers<[1], [1], [0], [0], [0, 0, 1, 0], [], []>} : vector<8x8xf32>, vector<32x8xf32>, vector<8x32xf32> -> vector<8x32xf32>
    %495 = vector.extract_strided_slice %494 {offsets = [0, 0], sizes = [1, 32], strides = [1, 1]} : vector<8x32xf32> to vector<1x32xf32>
    %c0_155 = arith.constant 0 : index
    %496 = memref.load %arg15[%c0_155] : memref<8xf32, #tpu.memory_space<smem>>
    %497 = vector.broadcast %496 : f32 to vector<1x32xf32>
    %498 = arith.addf %495, %497 : vector<1x32xf32>
    %499 = vector.extract_strided_slice %493 {offsets = [0, 0], sizes = [32, 1], strides = [1, 1]} : vector<32x8xf32> to vector<32x1xf32>
    %500 = vector.broadcast %498 : vector<1x32xf32> to vector<32x32xf32>
    %501 = vector.broadcast %499 : vector<32x1xf32> to vector<32x32xf32>
    %502 = arith.subf %500, %501 : vector<32x32xf32>
    %503 = vector.extract_strided_slice %494 {offsets = [1, 0], sizes = [1, 32], strides = [1, 1]} : vector<8x32xf32> to vector<1x32xf32>
    %c1_156 = arith.constant 1 : index
    %504 = memref.load %arg15[%c1_156] : memref<8xf32, #tpu.memory_space<smem>>
    %505 = vector.broadcast %504 : f32 to vector<1x32xf32>
    %506 = arith.addf %503, %505 : vector<1x32xf32>
    %507 = vector.extract_strided_slice %493 {offsets = [0, 1], sizes = [32, 1], strides = [1, 1]} : vector<32x8xf32> to vector<32x1xf32>
    %508 = vector.broadcast %506 : vector<1x32xf32> to vector<32x32xf32>
    %509 = vector.broadcast %507 : vector<32x1xf32> to vector<32x32xf32>
    %510 = arith.subf %508, %509 : vector<32x32xf32>
    %511 = vector.extract_strided_slice %494 {offsets = [2, 0], sizes = [1, 32], strides = [1, 1]} : vector<8x32xf32> to vector<1x32xf32>
    %c2_157 = arith.constant 2 : index
    %512 = memref.load %arg15[%c2_157] : memref<8xf32, #tpu.memory_space<smem>>
    %513 = vector.broadcast %512 : f32 to vector<1x32xf32>
    %514 = arith.addf %511, %513 : vector<1x32xf32>
    %515 = vector.extract_strided_slice %493 {offsets = [0, 2], sizes = [32, 1], strides = [1, 1]} : vector<32x8xf32> to vector<32x1xf32>
    %516 = vector.broadcast %514 : vector<1x32xf32> to vector<32x32xf32>
    %517 = vector.broadcast %515 : vector<32x1xf32> to vector<32x32xf32>
    %518 = arith.subf %516, %517 : vector<32x32xf32>
    %519 = vector.extract_strided_slice %494 {offsets = [3, 0], sizes = [1, 32], strides = [1, 1]} : vector<8x32xf32> to vector<1x32xf32>
    %c3_158 = arith.constant 3 : index
    %520 = memref.load %arg15[%c3_158] : memref<8xf32, #tpu.memory_space<smem>>
    %521 = vector.broadcast %520 : f32 to vector<1x32xf32>
    %522 = arith.addf %519, %521 : vector<1x32xf32>
    %523 = vector.extract_strided_slice %493 {offsets = [0, 3], sizes = [32, 1], strides = [1, 1]} : vector<32x8xf32> to vector<32x1xf32>
    %524 = vector.broadcast %522 : vector<1x32xf32> to vector<32x32xf32>
    %525 = vector.broadcast %523 : vector<32x1xf32> to vector<32x32xf32>
    %526 = arith.subf %524, %525 : vector<32x32xf32>
    %527 = vector.extract_strided_slice %494 {offsets = [4, 0], sizes = [1, 32], strides = [1, 1]} : vector<8x32xf32> to vector<1x32xf32>
    %c4_159 = arith.constant 4 : index
    %528 = memref.load %arg15[%c4_159] : memref<8xf32, #tpu.memory_space<smem>>
    %529 = vector.broadcast %528 : f32 to vector<1x32xf32>
    %530 = arith.addf %527, %529 : vector<1x32xf32>
    %531 = vector.extract_strided_slice %493 {offsets = [0, 4], sizes = [32, 1], strides = [1, 1]} : vector<32x8xf32> to vector<32x1xf32>
    %532 = vector.broadcast %530 : vector<1x32xf32> to vector<32x32xf32>
    %533 = vector.broadcast %531 : vector<32x1xf32> to vector<32x32xf32>
    %534 = arith.subf %532, %533 : vector<32x32xf32>
    %535 = vector.extract_strided_slice %494 {offsets = [5, 0], sizes = [1, 32], strides = [1, 1]} : vector<8x32xf32> to vector<1x32xf32>
    %c5_160 = arith.constant 5 : index
    %536 = memref.load %arg15[%c5_160] : memref<8xf32, #tpu.memory_space<smem>>
    %537 = vector.broadcast %536 : f32 to vector<1x32xf32>
    %538 = arith.addf %535, %537 : vector<1x32xf32>
    %539 = vector.extract_strided_slice %493 {offsets = [0, 5], sizes = [32, 1], strides = [1, 1]} : vector<32x8xf32> to vector<32x1xf32>
    %540 = vector.broadcast %538 : vector<1x32xf32> to vector<32x32xf32>
    %541 = vector.broadcast %539 : vector<32x1xf32> to vector<32x32xf32>
    %542 = arith.subf %540, %541 : vector<32x32xf32>
    %543 = vector.extract_strided_slice %494 {offsets = [6, 0], sizes = [1, 32], strides = [1, 1]} : vector<8x32xf32> to vector<1x32xf32>
    %c6_161 = arith.constant 6 : index
    %544 = memref.load %arg15[%c6_161] : memref<8xf32, #tpu.memory_space<smem>>
    %545 = vector.broadcast %544 : f32 to vector<1x32xf32>
    %546 = arith.addf %543, %545 : vector<1x32xf32>
    %547 = vector.extract_strided_slice %493 {offsets = [0, 6], sizes = [32, 1], strides = [1, 1]} : vector<32x8xf32> to vector<32x1xf32>
    %548 = vector.broadcast %546 : vector<1x32xf32> to vector<32x32xf32>
    %549 = vector.broadcast %547 : vector<32x1xf32> to vector<32x32xf32>
    %550 = arith.subf %548, %549 : vector<32x32xf32>
    %551 = vector.extract_strided_slice %494 {offsets = [7, 0], sizes = [1, 32], strides = [1, 1]} : vector<8x32xf32> to vector<1x32xf32>
    %c7_162 = arith.constant 7 : index
    %552 = memref.load %arg15[%c7_162] : memref<8xf32, #tpu.memory_space<smem>>
    %553 = vector.broadcast %552 : f32 to vector<1x32xf32>
    %554 = arith.addf %551, %553 : vector<1x32xf32>
    %555 = vector.extract_strided_slice %493 {offsets = [0, 7], sizes = [32, 1], strides = [1, 1]} : vector<32x8xf32> to vector<32x1xf32>
    %556 = vector.broadcast %554 : vector<1x32xf32> to vector<32x32xf32>
    %557 = vector.broadcast %555 : vector<32x1xf32> to vector<32x32xf32>
    %558 = arith.subf %556, %557 : vector<32x32xf32>
    %559 = arith.maximumf %502, %510 : vector<32x32xf32>
    %560 = arith.maximumf %518, %526 : vector<32x32xf32>
    %561 = arith.maximumf %534, %542 : vector<32x32xf32>
    %562 = arith.maximumf %550, %558 : vector<32x32xf32>
    %563 = arith.maximumf %559, %560 : vector<32x32xf32>
    %564 = arith.maximumf %561, %562 : vector<32x32xf32>
    %565 = arith.maximumf %563, %564 : vector<32x32xf32>
    %566 = arith.subf %502, %565 : vector<32x32xf32>
    %567 = math.exp %566 : vector<32x32xf32>
    %568 = arith.subf %510, %565 : vector<32x32xf32>
    %569 = math.exp %568 : vector<32x32xf32>
    %570 = arith.subf %518, %565 : vector<32x32xf32>
    %571 = math.exp %570 : vector<32x32xf32>
    %572 = arith.subf %526, %565 : vector<32x32xf32>
    %573 = math.exp %572 : vector<32x32xf32>
    %574 = arith.subf %534, %565 : vector<32x32xf32>
    %575 = math.exp %574 : vector<32x32xf32>
    %576 = arith.subf %542, %565 : vector<32x32xf32>
    %577 = math.exp %576 : vector<32x32xf32>
    %578 = arith.subf %550, %565 : vector<32x32xf32>
    %579 = math.exp %578 : vector<32x32xf32>
    %580 = arith.subf %558, %565 : vector<32x32xf32>
    %581 = math.exp %580 : vector<32x32xf32>
    %582 = arith.addf %567, %569 : vector<32x32xf32>
    %583 = arith.addf %571, %573 : vector<32x32xf32>
    %584 = arith.addf %575, %577 : vector<32x32xf32>
    %585 = arith.addf %579, %581 : vector<32x32xf32>
    %586 = arith.addf %582, %583 : vector<32x32xf32>
    %587 = arith.addf %584, %585 : vector<32x32xf32>
    %588 = arith.addf %586, %587 : vector<32x32xf32>
    %589 = tpu.reciprocal %588 {approx = true} : vector<32x32xf32> -> vector<32x32xf32>
    %590 = arith.mulf %1, %589 : vector<32x32xf32>
    %591 = arith.mulf %567, %590 : vector<32x32xf32>
    %592 = arith.truncf %591 : vector<32x32xf32> to vector<32x32xbf16>
    %c0_163 = arith.constant 0 : index
    %c0_164 = arith.constant 0 : index
    %593 = vector.load %arg24[%c0_163, %c0_164] : memref<32x256xbf16, #tpu.memory_space<vmem>>, vector<32x32xbf16>
    tpu.vector_store %arg24[%c0_163, %c0_164], %592 {strides = array<i32>} : memref<32x256xbf16, #tpu.memory_space<vmem>>, vector<32x32xbf16>,
    %594 = vector.extract_strided_slice %492 {offsets = [0, 0], sizes = [32, 32], strides = [1, 1]} : vector<32x256xf32> to vector<32x32xf32>
    %595 = arith.truncf %594 : vector<32x32xf32> to vector<32x32xbf16>
    %c0_165 = arith.constant 0 : index
    %c0_166 = arith.constant 0 : index
    %596 = vector.load %arg25[%c0_165, %c0_166] : memref<256x32xbf16, #tpu.memory_space<vmem>>, vector<32x32xbf16>
    tpu.vector_store %arg25[%c0_165, %c0_166], %595 {strides = array<i32>} : memref<256x32xbf16, #tpu.memory_space<vmem>>, vector<32x32xbf16>,
    %597 = arith.mulf %569, %590 : vector<32x32xf32>
    %598 = arith.truncf %597 : vector<32x32xf32> to vector<32x32xbf16>
    %c0_167 = arith.constant 0 : index
    %c32_168 = arith.constant 32 : index
    %599 = vector.load %arg24[%c0_167, %c32_168] : memref<32x256xbf16, #tpu.memory_space<vmem>>, vector<32x32xbf16>
    tpu.vector_store %arg24[%c0_167, %c32_168], %598 {strides = array<i32>} : memref<32x256xbf16, #tpu.memory_space<vmem>>, vector<32x32xbf16>,
    %600 = vector.extract_strided_slice %492 {offsets = [0, 32], sizes = [32, 32], strides = [1, 1]} : vector<32x256xf32> to vector<32x32xf32>
    %601 = arith.truncf %600 : vector<32x32xf32> to vector<32x32xbf16>
    %c32_169 = arith.constant 32 : index
    %c0_170 = arith.constant 0 : index
    %602 = vector.load %arg25[%c32_169, %c0_170] : memref<256x32xbf16, #tpu.memory_space<vmem>>, vector<32x32xbf16>
    tpu.vector_store %arg25[%c32_169, %c0_170], %601 {strides = array<i32>} : memref<256x32xbf16, #tpu.memory_space<vmem>>, vector<32x32xbf16>,
    %603 = arith.mulf %571, %590 : vector<32x32xf32>
    %604 = arith.truncf %603 : vector<32x32xf32> to vector<32x32xbf16>
    %c0_171 = arith.constant 0 : index
    %c64_172 = arith.constant 64 : index
    %605 = vector.load %arg24[%c0_171, %c64_172] : memref<32x256xbf16, #tpu.memory_space<vmem>>, vector<32x32xbf16>
    tpu.vector_store %arg24[%c0_171, %c64_172], %604 {strides = array<i32>} : memref<32x256xbf16, #tpu.memory_space<vmem>>, vector<32x32xbf16>,
    %606 = vector.extract_strided_slice %492 {offsets = [0, 64], sizes = [32, 32], strides = [1, 1]} : vector<32x256xf32> to vector<32x32xf32>
    %607 = arith.truncf %606 : vector<32x32xf32> to vector<32x32xbf16>
    %c64_173 = arith.constant 64 : index
    %c0_174 = arith.constant 0 : index
    %608 = vector.load %arg25[%c64_173, %c0_174] : memref<256x32xbf16, #tpu.memory_space<vmem>>, vector<32x32xbf16>
    tpu.vector_store %arg25[%c64_173, %c0_174], %607 {strides = array<i32>} : memref<256x32xbf16, #tpu.memory_space<vmem>>, vector<32x32xbf16>,
    %609 = arith.mulf %573, %590 : vector<32x32xf32>
    %610 = arith.truncf %609 : vector<32x32xf32> to vector<32x32xbf16>
    %c0_175 = arith.constant 0 : index
    %c96_176 = arith.constant 96 : index
    %611 = vector.load %arg24[%c0_175, %c96_176] : memref<32x256xbf16, #tpu.memory_space<vmem>>, vector<32x32xbf16>
    tpu.vector_store %arg24[%c0_175, %c96_176], %610 {strides = array<i32>} : memref<32x256xbf16, #tpu.memory_space<vmem>>, vector<32x32xbf16>,
    %612 = vector.extract_strided_slice %492 {offsets = [0, 96], sizes = [32, 32], strides = [1, 1]} : vector<32x256xf32> to vector<32x32xf32>
    %613 = arith.truncf %612 : vector<32x32xf32> to vector<32x32xbf16>
    %c96_177 = arith.constant 96 : index
    %c0_178 = arith.constant 0 : index
    %614 = vector.load %arg25[%c96_177, %c0_178] : memref<256x32xbf16, #tpu.memory_space<vmem>>, vector<32x32xbf16>
    tpu.vector_store %arg25[%c96_177, %c0_178], %613 {strides = array<i32>} : memref<256x32xbf16, #tpu.memory_space<vmem>>, vector<32x32xbf16>,
    %615 = arith.mulf %575, %590 : vector<32x32xf32>
    %616 = arith.truncf %615 : vector<32x32xf32> to vector<32x32xbf16>
    %c0_179 = arith.constant 0 : index
    %c128_180 = arith.constant 128 : index
    %617 = vector.load %arg24[%c0_179, %c128_180] : memref<32x256xbf16, #tpu.memory_space<vmem>>, vector<32x32xbf16>
    tpu.vector_store %arg24[%c0_179, %c128_180], %616 {strides = array<i32>} : memref<32x256xbf16, #tpu.memory_space<vmem>>, vector<32x32xbf16>,
    %618 = vector.extract_strided_slice %492 {offsets = [0, 128], sizes = [32, 32], strides = [1, 1]} : vector<32x256xf32> to vector<32x32xf32>
    %619 = arith.truncf %618 : vector<32x32xf32> to vector<32x32xbf16>
    %c128_181 = arith.constant 128 : index
    %c0_182 = arith.constant 0 : index
    %620 = vector.load %arg25[%c128_181, %c0_182] : memref<256x32xbf16, #tpu.memory_space<vmem>>, vector<32x32xbf16>
    tpu.vector_store %arg25[%c128_181, %c0_182], %619 {strides = array<i32>} : memref<256x32xbf16, #tpu.memory_space<vmem>>, vector<32x32xbf16>,
    %621 = arith.mulf %577, %590 : vector<32x32xf32>
    %622 = arith.truncf %621 : vector<32x32xf32> to vector<32x32xbf16>
    %c0_183 = arith.constant 0 : index
    %c160_184 = arith.constant 160 : index
    %623 = vector.load %arg24[%c0_183, %c160_184] : memref<32x256xbf16, #tpu.memory_space<vmem>>, vector<32x32xbf16>
    tpu.vector_store %arg24[%c0_183, %c160_184], %622 {strides = array<i32>} : memref<32x256xbf16, #tpu.memory_space<vmem>>, vector<32x32xbf16>,
    %624 = vector.extract_strided_slice %492 {offsets = [0, 160], sizes = [32, 32], strides = [1, 1]} : vector<32x256xf32> to vector<32x32xf32>
    %625 = arith.truncf %624 : vector<32x32xf32> to vector<32x32xbf16>
    %c160_185 = arith.constant 160 : index
    %c0_186 = arith.constant 0 : index
    %626 = vector.load %arg25[%c160_185, %c0_186] : memref<256x32xbf16, #tpu.memory_space<vmem>>, vector<32x32xbf16>
    tpu.vector_store %arg25[%c160_185, %c0_186], %625 {strides = array<i32>} : memref<256x32xbf16, #tpu.memory_space<vmem>>, vector<32x32xbf16>,
    %627 = arith.mulf %579, %590 : vector<32x32xf32>
    %628 = arith.truncf %627 : vector<32x32xf32> to vector<32x32xbf16>
    %c0_187 = arith.constant 0 : index
    %c192_188 = arith.constant 192 : index
    %629 = vector.load %arg24[%c0_187, %c192_188] : memref<32x256xbf16, #tpu.memory_space<vmem>>, vector<32x32xbf16>
    tpu.vector_store %arg24[%c0_187, %c192_188], %628 {strides = array<i32>} : memref<32x256xbf16, #tpu.memory_space<vmem>>, vector<32x32xbf16>,
    %630 = vector.extract_strided_slice %492 {offsets = [0, 192], sizes = [32, 32], strides = [1, 1]} : vector<32x256xf32> to vector<32x32xf32>
    %631 = arith.truncf %630 : vector<32x32xf32> to vector<32x32xbf16>
    %c192_189 = arith.constant 192 : index
    %c0_190 = arith.constant 0 : index
    %632 = vector.load %arg25[%c192_189, %c0_190] : memref<256x32xbf16, #tpu.memory_space<vmem>>, vector<32x32xbf16>
    tpu.vector_store %arg25[%c192_189, %c0_190], %631 {strides = array<i32>} : memref<256x32xbf16, #tpu.memory_space<vmem>>, vector<32x32xbf16>,
    %633 = arith.mulf %581, %590 : vector<32x32xf32>
    %634 = arith.truncf %633 : vector<32x32xf32> to vector<32x32xbf16>
    %c0_191 = arith.constant 0 : index
    %c224_192 = arith.constant 224 : index
    %635 = vector.load %arg24[%c0_191, %c224_192] : memref<32x256xbf16, #tpu.memory_space<vmem>>, vector<32x32xbf16>
    tpu.vector_store %arg24[%c0_191, %c224_192], %634 {strides = array<i32>} : memref<32x256xbf16, #tpu.memory_space<vmem>>, vector<32x32xbf16>,
    %636 = vector.extract_strided_slice %492 {offsets = [0, 224], sizes = [32, 32], strides = [1, 1]} : vector<32x256xf32> to vector<32x32xf32>
    %637 = arith.truncf %636 : vector<32x32xf32> to vector<32x32xbf16>
    %c224_193 = arith.constant 224 : index
    %c0_194 = arith.constant 0 : index
    %638 = vector.load %arg25[%c224_193, %c0_194] : memref<256x32xbf16, #tpu.memory_space<vmem>>, vector<32x32xbf16>
    tpu.vector_store %arg25[%c224_193, %c0_194], %637 {strides = array<i32>} : memref<256x32xbf16, #tpu.memory_space<vmem>>, vector<32x32xbf16>,
    %c0_195 = arith.constant 0 : index
    %c0_196 = arith.constant 0 : index
    %639 = vector.load %arg24[%c0_195, %c0_196] : memref<32x256xbf16, #tpu.memory_space<vmem>>, vector<32x256xbf16>
    %c0_197 = arith.constant 0 : index
    %c0_198 = arith.constant 0 : index
    %640 = vector.load %arg25[%c0_197, %c0_198] : memref<256x32xbf16, #tpu.memory_space<vmem>>, vector<256x32xbf16>
    %cst_199 = arith.constant dense<0.000000e+00> : vector<32x32xf32>
    %641 = tpu.matmul %639, %640, %cst_199 {dimension_numbers = #tpu.dot_dimension_numbers<[1], [0], [0], [1], [0, 0, 1, 1], [], []>} : vector<32x256xbf16>, vector<256x32xbf16>, vector<32x32xf32> -> vector<32x32xf32>
    %c0_200 = arith.constant 0 : index
    %c0_201 = arith.constant 0 : index
    %642 = vector.load %arg16[%c0_200, %c0_201] : memref<1x32xf32, #tpu.memory_space<vmem>>, vector<1x32xf32>
    %643 = vector.broadcast %642 : vector<1x32xf32> to vector<32x32xf32>
    %644 = arith.addf %641, %643 : vector<32x32xf32>
    %645 = arith.addf %644, %330 : vector<32x32xf32>
    %cst_202 = arith.constant 0.000000e+00 : f32
    %646 = vector.broadcast %cst_202 : f32 to vector<32x32xf32>
    %647 = arith.maximumf %645, %646 : vector<32x32xf32>
    %648 = arith.truncf %330 : vector<32x32xf32> to vector<32x32xbf16>
    %c0_203 = arith.constant 0 : index
    %c0_204 = arith.constant 0 : index
    %649 = vector.load %arg17[%c0_203, %c0_204] : memref<64x32xbf16, #tpu.memory_space<vmem>>, vector<32x32xbf16>
    %cst_205 = arith.constant dense<0.000000e+00> : vector<32x32xf32>
    %650 = tpu.matmul %648, %649, %cst_205 {dimension_numbers = #tpu.dot_dimension_numbers<[1], [0], [0], [1], [0, 0, 1, 1], [], []>} : vector<32x32xbf16>, vector<32x32xbf16>, vector<32x32xf32> -> vector<32x32xf32>
    %651 = arith.truncf %647 : vector<32x32xf32> to vector<32x32xbf16>
    %c32_206 = arith.constant 32 : index
    %c0_207 = arith.constant 0 : index
    %652 = vector.load %arg17[%c32_206, %c0_207] : memref<64x32xbf16, #tpu.memory_space<vmem>>, vector<32x32xbf16>
    %cst_208 = arith.constant dense<0.000000e+00> : vector<32x32xf32>
    %653 = tpu.matmul %651, %652, %cst_208 {dimension_numbers = #tpu.dot_dimension_numbers<[1], [0], [0], [1], [0, 0, 1, 1], [], []>} : vector<32x32xbf16>, vector<32x32xbf16>, vector<32x32xf32> -> vector<32x32xf32>
    %654 = arith.addf %650, %653 : vector<32x32xf32>
    %c0_209 = arith.constant 0 : index
    %c0_210 = arith.constant 0 : index
    %655 = vector.load %arg18[%c0_209, %c0_210] : memref<1x32xf32, #tpu.memory_space<vmem>>, vector<1x32xf32>
    %656 = vector.broadcast %655 : vector<1x32xf32> to vector<32x32xf32>
    %657 = arith.addf %654, %656 : vector<32x32xf32>
    %658 = vector.extract_strided_slice %2 {offsets = [0, 0], sizes = [32, 1], strides = [1, 1]} : vector<32x2xf32> to vector<32x1xf32>
    %cst_211 = arith.constant 5.000000e-01 : f32
    %659 = vector.broadcast %cst_211 : f32 to vector<32x1xf32>
    %660 = arith.cmpf ogt, %658, %659 : vector<32x1xf32>
    %cst_212 = arith.constant -3.40282347E+38 : f32
    %661 = vector.shape_cast %660 : vector<32x1xi1> to vector<32x1xi1>
    %662 = vector.broadcast %661 : vector<32x1xi1> to vector<32x32xi1>
    %663 = vector.broadcast %cst_212 : f32 to vector<32x32xf32>
    %664 = arith.select %662, %657, %663 : vector<32x32xi1>, vector<32x32xf32>
    %cst_213 = arith.constant dense<0xFF800000> : vector<32xf32>
    %665 = vector.multi_reduction <maximumf>, %664, %cst_213 [0] : vector<32x32xf32> to vector<32xf32>
    %666 = vector.shape_cast %665 : vector<32xf32> to vector<1x32xf32>
    %c0_214 = arith.constant 0 : index
    %c0_215 = arith.constant 0 : index
    %667 = vector.load %arg26[%c0_214, %c0_215] : memref<2x32xf32, #tpu.memory_space<vmem>>, vector<1x32xf32>
    tpu.vector_store %arg26[%c0_214, %c0_215], %666 {strides = array<i32>} : memref<2x32xf32, #tpu.memory_space<vmem>>, vector<1x32xf32>,
    %668 = vector.extract_strided_slice %2 {offsets = [0, 1], sizes = [32, 1], strides = [1, 1]} : vector<32x2xf32> to vector<32x1xf32>
    %cst_216 = arith.constant 5.000000e-01 : f32
    %669 = vector.broadcast %cst_216 : f32 to vector<32x1xf32>
    %670 = arith.cmpf ogt, %668, %669 : vector<32x1xf32>
    %cst_217 = arith.constant -3.40282347E+38 : f32
    %671 = vector.shape_cast %670 : vector<32x1xi1> to vector<32x1xi1>
    %672 = vector.broadcast %671 : vector<32x1xi1> to vector<32x32xi1>
    %673 = vector.broadcast %cst_217 : f32 to vector<32x32xf32>
    %674 = arith.select %672, %657, %673 : vector<32x32xi1>, vector<32x32xf32>
    %cst_218 = arith.constant dense<0xFF800000> : vector<32xf32>
    %675 = vector.multi_reduction <maximumf>, %674, %cst_218 [0] : vector<32x32xf32> to vector<32xf32>
    %676 = vector.shape_cast %675 : vector<32xf32> to vector<1x32xf32>
    %c1_219 = arith.constant 1 : index
    %c0_220 = arith.constant 0 : index
    %677 = vector.load %arg26[%c1_219, %c0_220] : memref<2x32xf32, #tpu.memory_space<vmem>>, vector<1x32xf32>
    tpu.vector_store %arg26[%c1_219, %c0_220], %676 {strides = array<i32>} : memref<2x32xf32, #tpu.memory_space<vmem>>, vector<1x32xf32>,
    %c0_221 = arith.constant 0 : index
    %c0_222 = arith.constant 0 : index
    %678 = vector.load %arg26[%c0_221, %c0_222] : memref<2x32xf32, #tpu.memory_space<vmem>>, vector<2x32xf32>
    %679 = arith.truncf %678 : vector<2x32xf32> to vector<2x32xbf16>
    %c0_223 = arith.constant 0 : index
    %c0_224 = arith.constant 0 : index
    %680 = vector.load %arg19[%c0_223, %c0_224] : memref<32x32xbf16, #tpu.memory_space<vmem>>, vector<32x32xbf16>
    %cst_225 = arith.constant dense<0.000000e+00> : vector<2x32xf32>
    %681 = tpu.matmul %679, %680, %cst_225 {dimension_numbers = #tpu.dot_dimension_numbers<[1], [0], [0], [1], [0, 0, 1, 1], [], []>} : vector<2x32xbf16>, vector<32x32xbf16>, vector<2x32xf32> -> vector<2x32xf32>
    %c0_226 = arith.constant 0 : index
    %c0_227 = arith.constant 0 : index
    %682 = vector.load %arg20[%c0_226, %c0_227] : memref<1x32xf32, #tpu.memory_space<vmem>>, vector<1x32xf32>
    %683 = vector.broadcast %682 : vector<1x32xf32> to vector<2x32xf32>
    %684 = arith.addf %681, %683 : vector<2x32xf32>
    %cst_228 = arith.constant 0.000000e+00 : f32
    %685 = vector.broadcast %cst_228 : f32 to vector<2x32xf32>
    %686 = arith.maximumf %684, %685 : vector<2x32xf32>
    %687 = arith.truncf %686 : vector<2x32xf32> to vector<2x32xbf16>
    %c0_229 = arith.constant 0 : index
    %c0_230 = arith.constant 0 : index
    %688 = vector.load %arg21[%c0_229, %c0_230] : memref<32x10xbf16, #tpu.memory_space<vmem>>, vector<32x10xbf16>
    %cst_231 = arith.constant dense<0.000000e+00> : vector<2x10xf32>
    %689 = tpu.matmul %687, %688, %cst_231 {dimension_numbers = #tpu.dot_dimension_numbers<[1], [0], [0], [1], [0, 0, 1, 1], [], []>} : vector<2x32xbf16>, vector<32x10xbf16>, vector<2x10xf32> -> vector<2x10xf32>
    %c0_232 = arith.constant 0 : index
    %c0_233 = arith.constant 0 : index
    %690 = vector.load %arg22[%c0_232, %c0_233] : memref<1x10xf32, #tpu.memory_space<vmem>>, vector<1x10xf32>
    %691 = vector.broadcast %690 : vector<1x10xf32> to vector<2x10xf32>
    %692 = arith.addf %689, %691 : vector<2x10xf32>
    %c0_234 = arith.constant 0 : index
    %c0_235 = arith.constant 0 : index
    %693 = vector.load %arg23[%c0_234, %c0_235] : memref<2x10xf32, #tpu.memory_space<vmem>>, vector<2x10xf32>
    tpu.vector_store %arg23[%c0_234, %c0_235], %692 {strides = array<i32>} : memref<2x10xf32, #tpu.memory_space<vmem>>, vector<2x10xf32>,
    return
  }
}

</mosaic_0001>

<bundles_post_ra>
// kernel: tpu_custom_call.1
= control target key start
LH: loop header
LB: loop body
LE: loop exit
PB: predicated region body
PF: predicated region fallthrough
CT: control target
= control target key end

     0   :  { %s8328_s0 = inlined_call_operand.vmem [shape: f32[32,16], index: 0, kind: input, shape index: {}]   ;;  %s8329_s1 = inlined_call_operand.hbm [shape: f32[32,32], index: 1, kind: input, shape index: {}]   ;;  %s8330_s2 = inlined_call_operand.vmem [shape: f32[32,2], index: 2, kind: input, shape index: {}]   ;;  %s8331_s3 = inlined_call_operand.vmem [shape: bf16[16,264], index: 3, kind: input, shape index: {}]   ;;  %s8332_s4 = inlined_call_operand.vmem [shape: f32[8], index: 4, kind: input, shape index: {}]   ;;  %s8333_s5 = inlined_call_operand.vmem [shape: f32[1,32], index: 5, kind: input, shape index: {}]   ;;  %s8334_s6 = inlined_call_operand.vmem [shape: bf16[32,264], index: 6, kind: input, shape index: {}]   ;;  %s8335_s7 = inlined_call_operand.vmem [shape: f32[8], index: 7, kind: input, shape index: {}]   ;;  %s8336_s8 = inlined_call_operand.vmem [shape: f32[1,32], index: 8, kind: input, shape index: {}]   ;;  %s8337_s9 = inlined_call_operand.hbm [shape: bf16[16,32], index: 9, kind: input, shape index: {}]   ;;  %s8338_s10 = inlined_call_operand.vmem [shape: f32[1,32], index: 10, kind: input, shape index: {}]   ;;  %s8339_s11 = inlined_call_operand.vmem [shape: bf16[32,264], index: 11, kind: input, shape index: {}]   ;;  %s8340_s12 = inlined_call_operand.vmem [shape: f32[8], index: 12, kind: input, shape index: {}]   ;;  %s8341_s13 = inlined_call_operand.vmem [shape: f32[1,32], index: 13, kind: input, shape index: {}]   ;;  %s8342_s14 = inlined_call_operand.hbm [shape: bf16[32,264], index: 14, kind: input, shape index: {}]   ;;  %s8343_s15 = inlined_call_operand.vmem [shape: f32[8], index: 15, kind: input, shape index: {}]   ;;  %s8344_s16 = inlined_call_operand.hbm [shape: f32[1,32], index: 16, kind: input, shape index: {}]   ;;  %s8345_s17 = inlined_call_operand.vmem [shape: bf16[64,32], index: 17, kind: input, shape index: {}]   ;;  %s8346_s18 = inlined_call_operand.vmem [shape: f32[1,32], index: 18, kind: input, shape index: {}]   ;;  %s8347_s19 = inlined_call_operand.hbm [shape: bf16[32,32], index: 19, kind: input, shape index: {}]   ;;  %s8348_s20 = inlined_call_operand.vmem [shape: f32[1,32], index: 20, kind: input, shape index: {}]   ;;  %s8349_s21 = inlined_call_operand.vmem [shape: bf16[32,10], index: 21, kind: input, shape index: {}]   ;;  %s8350_s22 = inlined_call_operand.vmem [shape: f32[1,10], index: 22, kind: input, shape index: {}]   ;;  %s8351_s23 = inlined_call_operand.hbm [shape: f32[2,10], index: 23, kind: output, shape index: {}]  }
   0x1   :  { %8384 = sst [smem:[#allocation35_spill]] %s8328_s0 }
   0x2   :  { %8385 = sst [smem:[#allocation36_spill]] %s8329_s1 }
   0x3   :  { %8386 = sst [smem:[#allocation37_spill]] %s8330_s2 }
   0x4   :  { %8387 = sst [smem:[#allocation38_spill]] %s8331_s3 }
   0x5   :  { %8388 = sst [smem:[#allocation39_spill]] %s8332_s4 }
   0x6   :  { %8389 = sst [smem:[#allocation40_spill]] %s8333_s5 }
   0x7   :  { %8390 = sst [smem:[#allocation41_spill]] %s8334_s6 }
   0x8   :  { %8391 = sst [smem:[#allocation42_spill]] %s8335_s7 }
   0x9   :  { %8392 = sst [smem:[#allocation43_spill]] %s8351_s23 }
   0xa   :  { %28 = vsyncpa [#allocation6], 0 }
   0xb   :  { %29 = vsyncpa [#allocation8], 0 }
   0xc   :  { %30 = vsyncpa [#allocation11], 0 }
   0xd   :  { %31 = vsyncpa [#allocation13], 0 }
   0xe   :  { %32 = vsyncpa [#allocation17], 0 }
   0xf   :  { %33 = vsyncpa [#allocation19], 0  ;;  %s8393_s24 = sld [smem:[#allocation42_spill]] }
  0x15   :  { %s72_s25 = sshll.u32 %s8393_s24, 4  ;;  %s73_s25 = int_to_ptr.vmem [resolvable:$true] %s72_s25 }
  0x16   :  { %34 = vsyncpa [#allocation7], 0  ;;  %s82_s26 = sshll.u32 %s8337_s9, 4  ;;  %s5817_s2 = smov [#allocation10]   ;;  %s83_s26 = int_to_ptr.hbm [resolvable:$true] %s82_s26 }
  0x17   :  { %75 = dma.vmem_to_smem %s73_s25, 16, %s5817_s2, [#allocation11]  }
  0x18   :  { %s5818_s6 = smov [#allocation12]   ;;  %s8356_s7 = smov 64  }
  0x19   :  { %s84_s27 = sshll.u32 %s5818_s6, 4  ;;  %s8358_s28 = smov 4   ;;  %s85_s27 = int_to_ptr.vmem [resolvable:$true] %s84_s27 }
  0x1a   :  { %90 = dma.hbm_to_vmem [thread:$0]  %s83_s26, 128, %s85_s27, [#allocation13], %s8356_s7, %s8356_s7, %s8358_s28  }
  0x1b   :  { %s133_s0 = sshll.u32 %s8344_s16, 4  ;;  %s5821_s4 = smov [#allocation18]   ;;  %s134_s0 = int_to_ptr.hbm [resolvable:$true] %s133_s0 }
  0x1c   :  { %s135_s30 = sshll.u32 %s5821_s4, 4  ;;  %s8394_s25 = sld [smem:[#allocation36_spill]]  ;;  %s136_s30 = int_to_ptr.vmem [resolvable:$true] %s135_s30 }
  0x1d   :  { %138 = dma.hbm_to_vmem [thread:$0]  %s134_s0, 16, %s136_s30, [#allocation19]  }
  0x1e   :  { %s5822_s1 = smov [#allocation5]   ;;  %s5823_s6 = smov 128  }
  0x1f   :  { %s43_s2 = sshll.u32 %s5822_s1, 4  ;;  %s5824_s23 = smov 8   ;;  %s44_s2 = int_to_ptr.vmem [resolvable:$true] %s43_s2 }
  0x20   :  { %s8395_s29 = sld [smem:[#allocation39_spill]]  ;;  %s100_s7 = sshll.u32 %s8340_s12, 4  ;;  %s101_s7 = int_to_ptr.vmem [resolvable:$true] %s100_s7 }
  0x21   :  { %s5825_s28 = smov [#allocation9]   ;;  %s5826_s0 = smov [#allocation14]  }
  0x22   :  { %s41_s5 = sshll.u32 %s8394_s25, 4  ;;  %s110_s24 = sshll.u32 %s8342_s14, 4  ;;  %s42_s5 = int_to_ptr.hbm [resolvable:$true] %s41_s5  ;;  %s111_s24 = int_to_ptr.hbm [resolvable:$true] %s110_s24 }
  0x23   :  { %49 = dma.hbm_to_vmem [thread:$0]  %s42_s5, 512, %s44_s2, [#allocation6], %s5823_s6, %s5823_s6, %s5824_s23  }
  0x24   :  { %103 = dma.vmem_to_smem %s101_s7, 16, %s5826_s0, [#allocation11]  }
  0x25   :  { %s5827_s23 = smov [#allocation15]   ;;  %s124_s2 = sshll.u32 %s8343_s15, 4  ;;  %s125_s2 = int_to_ptr.vmem [resolvable:$true] %s124_s2 }
  0x26   :  { %s59_s16 = sshll.u32 %s8395_s29, 4  ;;  %s112_s25 = sshll.u32 %s5827_s23, 4  ;;  %s60_s16 = int_to_ptr.vmem [resolvable:$true] %s59_s16  ;;  %s113_s25 = int_to_ptr.vmem [resolvable:$true] %s112_s25 }
  0x27   :  { %62 = dma.vmem_to_smem %s60_s16, 16, %s5825_s28, [#allocation8]  }
  0x28   :  { %s5828_s6 = smov 192   ;;  %s5829_s26 = smov 12  }
  0x29   :  { %118 = dma.hbm_to_vmem [thread:$0]  %s111_s24, 768, %s113_s25, [#allocation13], %s5828_s6, %s5828_s6, %s5829_s26  }
  0x2a   :  { %s5830_s12 = smov [#allocation16]   ;;  %s147_s27 = sshll.u32 %s8347_s19, 4  ;;  %s148_s27 = int_to_ptr.hbm [resolvable:$true] %s147_s27 }
  0x2b   :  { %127 = dma.vmem_to_smem %s125_s2, 16, %s5830_s12, [#allocation17]  }
  0x2c   :  { %s5831_s14 = smov [#allocation20]   ;;  %s8396_s16 = smov 4  }
  0x2d   :  { %s149_s29 = sshll.u32 %s5831_s14, 4  ;;  %s8397_s3 = smov 64   ;;  %s150_s29 = int_to_ptr.vmem [resolvable:$true] %s149_s29 }
  0x2e   :  { %155 = dma.hbm_to_vmem [thread:$0]  %s148_s27, 256, %s150_s29, [#allocation19], %s8397_s3, %s8397_s3, %s8396_s16  }
  0x2f   :  { %5799 = dma.done.wait [#allocation6], 512  }
  0x30   :  { %5800 = vsyncadd [#allocation6], 4294966784 }
  0x31   :  { %5801 = dma.done.wait [#allocation8], 16  }
  0x32   :  { %5802 = vsyncadd [#allocation8], 4294967280 }
  0x33   :  { %5803 = dma.done.wait [#allocation11], 16  }
  0x34   :  { %5804 = vsyncadd [#allocation11], 4294967280 }
  0x35   :  { %5805 = dma.done.wait [#allocation13], 128  }
  0x36   :  { %5806 = vsyncadd [#allocation13], 4294967168 }
  0x37   :  { %5807 = dma.done.wait [#allocation11], 16  }
  0x38   :  { %5808 = vsyncadd [#allocation11], 4294967280 }
  0x39   :  { %5809 = dma.done.wait [#allocation13], 768  }
  0x3a   :  { %5810 = vsyncadd [#allocation13], 4294966528 }
  0x3b   :  { %5811 = dma.done.wait [#allocation17], 16  }
  0x3c   :  { %5812 = vsyncadd [#allocation17], 4294967280 }
  0x3d   :  { %5813 = dma.done.wait [#allocation19], 272  }
  0x3e   :  { %5814 = vsyncadd [#allocation19], 4294967024 }
  0x3f   :  { %198 = sfence }
  0x40   :  { %s8398_s4 = sld [smem:[#allocation38_spill]]  ;;  %vm241_vm0 = vcmask 130048   ;;  %v8361_v15 = vmov 1   ;;  %v8377_v16 = vmov 0   ;;  %v8371_v17 = vmov 2   ;;  %s5835_s19 = smov 32  }
  0x41   :  { %s8399_s28 = sld [smem:[#allocation35_spill]]  ;;  %5166 = vset.pattern.permute.xlu1 %v8361_v15  ;;  %5165 = vset.pattern.permute.xlu0 %v8377_v16  ;;  %vm701_vm1 = vcmask 257024   ;;  %v8359_v28 = vmov 3   ;;  %v8365_v29 = vmov 6   ;;  %v8375_v35 = vmov 4  }
  0x42   :  { %5167 = vset.pattern.permute.xlu2 %v8371_v17  ;;  %v8363_v36 = vmov 7   ;;  %vm305_vm2 = vcmask 64512   ;;  %v212_v38 = vlaneseq  ;;  %v8373_v41 = vmov 5   ;;  %s341_s0 = sld [smem:[#allocation9]] }
  0x43   :  { %v5841_v46 = vmov 0.0   ;;  %s4531_s30 = sld [smem:[#allocation9 + $0x1]]  ;;  %vm738_vm4 = vcmask 519424   ;;  %vm787_vm5 = vcmask 781824   ;;  %vm832_vm6 = vcmask 1044224  }
  0x44   :  { %v213_v42 = vshrl.u32 %v212_v38, 7  ;;  %v215_v43 = vand.u32 127, %v212_v38  ;;  %s4532_s9 = sld [smem:[#allocation9 + $0x2]]  ;;  %vm1249_vm7 = vcmask 261120  }
  0x45   :  { %s4533_s24 = sld [smem:[#allocation9 + $0x3]] }
  0x46   :  { %v4510_v0 = vld [vmem:[%s8398_s4] sm:$0xf]  ;;  %v5029_v1 = vld [vmem:[%s8398_s4 + $0x8] sm:$0xf0]  ;;  %v5028_v2 = vld [vmem:[%s8398_s4 + $0x4] sm:$0xf]  ;;  %vm216_vm3 = vcmp.eq.s32.totalorder %v213_v42, %v215_v43 }
  0x47   :  { %v4511_v3 = vor.u32 %v5029_v1, %v4510_v0  ;;  %v4512_v4 = vld [vmem:[%s8398_s4 + $0xc] sm:$0xf0]  ;;  %v4518_v5 = vld [vmem:[%s8398_s4 + $0x8] sm:$0xf]  ;;  %v5030_v6 = vld [vmem:[%s8398_s4 + $0x10] sm:$0xf0] }
  0x48   :  { %v4515_v7 = vor.u32 %v5028_v2, %v4512_v4  ;;  %v4519_v8 = vor.u32 %v5030_v6, %v4518_v5  ;;  %v200_v9 = vld [vmem:[%s8399_s28] sm:$0xff]  ;;  %v201_v10 = vld [vmem:[%s8399_s28 + $0x8] sm:$0xff]  ;;  %v202_v12 = vld [vmem:[%s8399_s28 + $0x10] sm:$0xff]  ;;  %v6107_v47 = vsel %vm216_vm3, 1.0, %v5841_v46  ;;  %s5842_s4 = smov 96   ;;  %s4534_s23 = sld [smem:[#allocation9 + $0x4]] }
  0x49   :  { %255 = vmatpush.bf16.msra.mxu0 %v4511_v3  ;;  %v6021_v11 = vpack.c.bf16 %v201_v10, %v200_v9  ;;  %v203_v13 = vld [vmem:[%s8399_s28 + $0x18] sm:$0xff]  ;;  %s4535_s25 = sld [smem:[#allocation9 + $0x5]]  ;;  %v366_v9 = vstv %s4531_s30 }
  0x4a   :  { %274 = vmatpush.bf16.msra.mxu1 %v4515_v7  ;;  %293 = vmatpush.bf16.msra.mxu2 %v4519_v8  ;;  %v6035_v14 = vpack.c.bf16 %v203_v13, %v202_v12  ;;  %s4536_s5 = sld [smem:[#allocation9 + $0x6]]  ;;  %v342_v8 = vstv %s341_s0  ;;  %v390_v10 = vstv %s4532_s9 }
  0x4b   :  { %s4537_s1 = sld [smem:[#allocation9 + $0x7]]  ;;  %v414_v12 = vstv %s4533_s24 }
  0x4c   :  { %4520 = vmatmul.msk.bf16.vlgmr.msra.gmra.mxu0 %vm241_vm0, %v6021_v11  ;;  %s8400_s26 = sld [smem:[#allocation41_spill]] }
  0x4d   :  { %4522 = vmatmul.msk.bf16.vlgmr.msra.gmra.mxu1 %vm241_vm0, %v6021_v11  ;;  %4524 = vmatmul.msk.bf16.vlgmr.msra.gmra.mxu2 %vm241_vm0, %v6021_v11  ;;  %s8401_s2 = sld [smem:[#allocation40_spill]] }
  0x4e   :  { %s4653_s15 = sld [smem:[#allocation10 + $0x1]] }
  0x4f   :  { %s4654_s0 = sld [smem:[#allocation10 + $0x2]] }
  0x50   :  { %s4655_s30 = sld [smem:[#allocation10 + $0x3]] }
  0x51   :  { %s4659_s9 = sld [smem:[#allocation10 + $0x7]] }
  0x52   :  { %s4656_s24 = sld [smem:[#allocation10 + $0x4]] }
  0x53   :  { %s4784_s29 = sld [smem:[#allocation14 + $0x4]] }
  0x54   :  { %s4785_s16 = sld [smem:[#allocation14 + $0x5]] }
  0x55   :  { %s4905_s6 = sld [smem:[#allocation16 + $0x3]] }
  0x56   :  { %s4909_s12 = sld [smem:[#allocation16 + $0x7]] }
  0x57   :  { %s4906_s28 = sld [smem:[#allocation16 + $0x4]] }
  0x58   :  { %s4907_s7 = sld [smem:[#allocation16 + $0x5]] }
  0x59   :  { %s4908_s27 = sld [smem:[#allocation16 + $0x6]] }
  0x5c   :  { %4521 = vmatmul.msk.bf16.gmra.mxu0 %vm241_vm0, %v6035_v14 }
  0x5d   :  { %4525 = vmatmul.msk.bf16.gmra.mxu2 %vm241_vm0, %v6035_v14  ;;  %4523 = vmatmul.msk.bf16.gmra.mxu1 %vm241_vm0, %v6035_v14 }
  0xc9   :  { %v257_v18 = vpop.f32.mrf.mxu0 }
  0xca   :  { %v6046_v19 = vpack.c.bf16 %v257_v18, %v257_v18  ;;  %v276_v20 = vpop.f32.mrf.mxu1  ;;  %v438_v18 = vstv %s4534_s23  ;;  %s4657_s23 = sld [smem:[#allocation10 + $0x5]] }
  0xcb   :  { %v6048_v21 = vpack.c.bf16 %v276_v20, %v276_v20  ;;  %v486_v20 = vstv %s4536_s5  ;;  %s3378_s5 = sld [smem:[#allocation16]] }
  0xcc   :  { %710 = vst.msk [vmem:[#allocation3] sm:$0xf] %vm701_vm1, %v6046_v19  ;;  %837 = vrot.lane.b32.xlu0 %v6046_v19, %s5835_s19 }
  0xcd   :  { %869 = vst.msk [vmem:[#allocation3 + $0x40] sm:$0xf] %vm701_vm1, %v6048_v21  ;;  %949 = vrot.lane.b32.xlu1 %v6048_v21, %s8397_s3  ;;  %993 = vrot.lane.b32.xlu2 %v6048_v21, %s5835_s19 }
  0xd0   :  { %v295_v22 = vpop.f32.mrf.mxu2 }
  0xd1   :  { %v259_v23 = vpop.f32.mrf.mxu0 }
  0xd2   :  { %v278_v24 = vpop.f32.mrf.mxu1  ;;  %v6060_v25 = vpack.c.bf16 %v259_v23, %v259_v23 }
  0xd3   :  { %v6062_v26 = vpack.c.bf16 %v278_v24, %v278_v24 }
  0xd4   :  { %346 = vperm.xlu0 %5165, %v295_v22   ;;  %711 = vst.msk [vmem:[#allocation3 + $0x4] sm:$0xf] %vm701_vm1, %v6060_v25 }
  0xd5   :  { %870 = vst.msk [vmem:[#allocation3 + $0x44] sm:$0xf] %vm701_vm1, %v6062_v26  ;;  %370 = vperm.xlu1 %5166, %v295_v22   ;;  %792 = vrot.lane.b32.xlu2 %v6046_v19, %s8397_s3 }
  0xd8   :  { %v6070_v27 = vpop.f32.mrf.mxu2 }
  0xd9   :  { %v262_v32 = vpop.f32.mrf.mxu0 }
  0xda   :  { %v281_v31 = vpop.f32.mrf.mxu1  ;;  %v708_v34 = vpack.c.bf16 %v262_v32, %v262_v32 }
  0xdb   :  { %v6076_v33 = vpack.c.bf16 %v281_v31, %v281_v31 }
  0xdc   :  { %5168 = vset.pattern.permute.xlu0 %v8359_v28  ;;  %712 = vst.msk [vmem:[#allocation3 + $0x8] sm:$0xf] %vm701_vm1, %v708_v34 }
  0xdd   :  { %5171 = vset.pattern.permute.xlu1 %v8365_v29  ;;  %394 = vperm.xlu2 %5167, %v295_v22   ;;  %871 = vst.msk [vmem:[#allocation3 + $0x48] sm:$0xf] %vm701_vm1, %v6076_v33 }
  0xde   :  { %490 = vperm.xlu1 %5171, %v295_v22   ;;  %418 = vperm.xlu0 %5168, %v295_v22  }
  0xe0   :  { %v6074_v30 = vpop.f32.mrf.mxu2 }
  0xe1   :  { %v264_v39 = vpop.f32.mrf.mxu0 }
  0xe2   :  { %v6090_v40 = vpack.c.bf16 %v264_v39, %v264_v39  ;;  %v283_v44 = vpop.f32.mrf.mxu1 }
  0xe3   :  { %v6104_v45 = vpack.c.bf16 %v283_v44, %v283_v44 }
  0xe4   :  { %713 = vst.msk [vmem:[#allocation3 + $0xc] sm:$0xf] %vm701_vm1, %v6090_v40 }
  0xe5   :  { %5169 = vset.pattern.permute.xlu2 %v8375_v35  ;;  %872 = vst.msk [vmem:[#allocation3 + $0x4c] sm:$0xf] %vm701_vm1, %v6104_v45 }
  0xe6   :  { %5172 = vset.pattern.permute.xlu1 %v8363_v36  ;;  %442 = vperm.xlu2 %5169, %v295_v22  }
  0xe7   :  { %995 = vrot.lane.b32.xlu0 %v6062_v26, %s5835_s19  ;;  %514 = vperm.xlu1 %5172, %v295_v22  }
  0xe8   :  { %v6085_v37 = vpop.f32.mrf.mxu2  ;;  %5173 = vset.pattern.permute.xlu0 %v8377_v16 }
  0xe9   :  { %4526 = vmatpush.xpose.msk.msra.mxu3 %vm305_vm2, %v6085_v37 }
  0xed   :  { %4527 = vmatpush.xpose.msk.msra.mxu3 %vm305_vm2, %v6074_v30 }
  0xee   :  { %5170 = vset.pattern.permute.xlu2 %v8373_v41 }
  0xef   :  { %794 = vrot.lane.b32.xlu0 %v6060_v25, %s8397_s3  ;;  %466 = vperm.xlu2 %5170, %v295_v22  }
  0xf0   :  { %839 = vrot.lane.b32.xlu1 %v6060_v25, %s5835_s19 }
  0xf1   :  { %4528 = vmatpush.xpose.msk.msra.mxu3 %vm305_vm2, %v6070_v27  ;;  %5174 = vset.pattern.permute.xlu1 %v8361_v15 }
  0xf5   :  { %4529 = vmatpush.xpose.msk.msra.mxu3 %vm305_vm2, %v295_v22 }
  0xf7   :  { %350 = vperm.xlu0 %5173, %v6070_v27   ;;  %951 = vrot.lane.b32.xlu2 %v6062_v26, %s8397_s3 }
  0xf8   :  { %374 = vperm.xlu1 %5174, %v6070_v27   ;;  %4530 = vmatmul.msk.f32.vlgmr.msra.gmra.mxu3 %vm305_vm2, %v6107_v47 }
  0xf9   :  { %5175 = vset.pattern.permute.xlu2 %v8371_v17 }
  0xff   :  { %5178 = vset.pattern.permute.xlu0 %v8373_v41  ;;  %398 = vperm.xlu2 %5175, %v6070_v27  }
 0x100   :  { %470 = vperm.xlu0 %5178, %v6070_v27   ;;  %5176 = vset.pattern.permute.xlu1 %v8359_v28 }
 0x101   :  { %422 = vperm.xlu1 %5176, %v6070_v27  }
 0x107   :  { %5179 = vset.pattern.permute.xlu2 %v8365_v29 }
 0x108   :  { %953 = vrot.lane.b32.xlu0 %v6076_v33, %s8397_s3  ;;  %494 = vperm.xlu2 %5179, %v6070_v27  }
 0x109   :  { %5177 = vset.pattern.permute.xlu1 %v8375_v35  ;;  %5181 = vset.pattern.permute.xlu0 %v8377_v16 }
 0x10a   :  { %446 = vperm.xlu1 %5177, %v6070_v27  }
 0x110   :  { %751 = vrot.lane.b32.xlu0 %v708_v34, %s5842_s4  ;;  %5180 = vset.pattern.permute.xlu2 %v8363_v36 }
 0x111   :  { %518 = vperm.xlu2 %5180, %v6070_v27  }
 0x112   :  { %841 = vrot.lane.b32.xlu1 %v708_v34, %s5835_s19 }
 0x113   :  { %5184 = vset.pattern.permute.xlu1 %v8359_v28 }
 0x118   :  { %354 = vperm.xlu0 %5181, %v6074_v30  }
 0x119   :  { %5182 = vset.pattern.permute.xlu2 %v8361_v15 }
 0x11a   :  { %997 = vrot.lane.b32.xlu1 %v6076_v33, %s5835_s19  ;;  %378 = vperm.xlu2 %5182, %v6074_v30  }
 0x120   :  { %5186 = vset.pattern.permute.xlu0 %v8373_v41 }
 0x121   :  { %474 = vperm.xlu0 %5186, %v6074_v30  }
 0x122   :  { %796 = vrot.lane.b32.xlu1 %v708_v34, %s8397_s3  ;;  %5183 = vset.pattern.permute.xlu2 %v8371_v17 }
 0x123   :  { %402 = vperm.xlu2 %5183, %v6074_v30  }
 0x127   :  { %v994_v48 = vpop.permute.xlu2 %993 }
 0x128   :  { %1005 = vst.msk [vmem:[#allocation3 + $0x70] sm:$0xf] %vm701_vm1, %v994_v48 }
 0x129   :  { %5191 = vset.pattern.permute.xlu0 %v8371_v17 }
 0x12a   :  { %406 = vperm.xlu0 %5191, %v6085_v37   ;;  %426 = vperm.xlu1 %5184, %v6074_v30  }
 0x12b   :  { %5187 = vset.pattern.permute.xlu2 %v8365_v29 }
 0x12c   :  { %498 = vperm.xlu2 %5187, %v6074_v30  }
 0x12f   :  { %v793_v49 = vpop.permute.xlu2 %792 }
 0x130   :  { %804 = vst.msk [vmem:[#allocation3 + $0x20] sm:$0xf] %vm701_vm1, %v793_v49 }
 0x132   :  { %5196 = vset.pattern.permute.xlu0 %v8363_v36  ;;  %5185 = vset.pattern.permute.xlu1 %v8375_v35 }
 0x133   :  { %526 = vperm.xlu0 %5196, %v6085_v37   ;;  %450 = vperm.xlu1 %5185, %v6074_v30  }
 0x134   :  { %5188 = vset.pattern.permute.xlu2 %v8363_v36 }
 0x135   :  { %522 = vperm.xlu2 %5188, %v6074_v30  }
 0x137   :  { %v6158_v50 = vpop.permute.xlu2 %394 }
 0x13b   :  { %911 = vrot.lane.b32.xlu0 %v6104_v45, %s5842_s4  ;;  %955 = vrot.lane.b32.xlu1 %v6104_v45, %s8397_s3 }
 0x13c   :  { %5189 = vset.pattern.permute.xlu1 %v8377_v16  ;;  %5200 = vset.pattern.permute.xlu0 %v8359_v28 }
 0x13d   :  { %843 = vrot.lane.b32.xlu2 %v6090_v40, %s5835_s19 }
 0x13e   :  { %v838_v51 = vpop.permute.xlu0 %837  ;;  %5192 = vset.pattern.permute.xlu2 %v8359_v28 }
 0x13f   :  { %v950_v52 = vpop.permute.xlu1 %949  ;;  %849 = vst.msk [vmem:[#allocation3 + $0x30] sm:$0xf] %vm701_vm1, %v838_v51 }
 0x140   :  { %961 = vst.msk [vmem:[#allocation3 + $0x60] sm:$0xf] %vm701_vm1, %v950_v52  ;;  %v6171_v53 = vpop.permute.xlu2 %442 }
 0x143   :  { %905 = vrot.lane.b32.xlu0 %v6048_v21, %s5842_s4  ;;  %358 = vperm.xlu1 %5189, %v6085_v37   ;;  %v510_v21 = vstv %s4537_s1  ;;  %s4903_s1 = sld [smem:[#allocation16 + $0x1]] }
 0x145   :  { %999 = vrot.lane.b32.xlu2 %v6104_v45, %s5835_s19 }
 0x146   :  { %v6178_v54 = vpop.permute.xlu0 %346 }
 0x147   :  { %v6180_v55 = vpop.permute.xlu1 %370 }
 0x149   :  { %v6182_v56 = vpop.permute.xlu2 %466 }
 0x14b   :  { %5190 = vset.pattern.permute.xlu1 %v8361_v15 }
 0x14c   :  { %382 = vperm.xlu1 %5190, %v6085_v37  }
 0x14d   :  { %798 = vrot.lane.b32.xlu2 %v6090_v40, %s8397_s3 }
 0x150   :  { %v6188_v57 = vpop.permute.xlu1 %490  ;;  %v6190_v58 = vpop.permute.xlu0 %418 }
 0x151   :  { %v952_v59 = vpop.permute.xlu2 %951 }
 0x152   :  { %962 = vst.msk [vmem:[#allocation3 + $0x64] sm:$0xf] %vm701_vm1, %v952_v59 }
 0x154   :  { %5194 = vset.pattern.permute.xlu1 %v8373_v41 }
 0x155   :  { %478 = vperm.xlu1 %5194, %v6085_v37   ;;  %430 = vperm.xlu2 %5192, %v6085_v37  }
 0x159   :  { %v996_v60 = vpop.permute.xlu0 %995  ;;  %v6196_v61 = vpop.permute.xlu1 %514 }
 0x15a   :  { %1006 = vst.msk [vmem:[#allocation3 + $0x74] sm:$0xf] %vm701_vm1, %v996_v60  ;;  %v399_v62 = vpop.permute.xlu2 %398 }
 0x15d   :  { %5195 = vset.pattern.permute.xlu1 %v8365_v29  ;;  %5193 = vset.pattern.permute.xlu2 %v8375_v35 }
 0x15e   :  { %502 = vperm.xlu1 %5195, %v6085_v37   ;;  %454 = vperm.xlu2 %5193, %v6085_v37  }
 0x161   :  { %v795_v63 = vpop.permute.xlu0 %794 }
 0x162   :  { %805 = vst.msk [vmem:[#allocation3 + $0x24] sm:$0xf] %vm701_vm1, %v795_v63  ;;  %v840_v0 = vpop.permute.xlu1 %839  ;;  %v495_v1 = vpop.permute.xlu2 %494 }
 0x163   :  { %850 = vst.msk [vmem:[#allocation3 + $0x34] sm:$0xf] %vm701_vm1, %v840_v0 }
 0x166   :  { %753 = vrot.lane.b32.xlu1 %v6090_v40, %s5842_s4  ;;  %909 = vrot.lane.b32.xlu2 %v6076_v33, %s5842_s4 }
 0x167   :  { %5198 = vset.pattern.permute.xlu1 %v8361_v15  ;;  %5197 = vset.pattern.permute.xlu2 %v8377_v16 }
 0x169   :  { %v351_v2 = vpop.permute.xlu0 %350 }
 0x16a   :  { %v375_v3 = vpop.permute.xlu1 %374 }
 0x16b   :  { %v519_v4 = vpop.permute.xlu2 %518 }
 0x16e   :  { %747 = vrot.lane.b32.xlu1 %v6046_v19, %s5842_s4  ;;  %749 = vrot.lane.b32.xlu2 %v6060_v25, %s5842_s4  ;;  %v462_v19 = vstv %s4535_s25  ;;  %s4658_s25 = sld [smem:[#allocation10 + $0x6]] }
 0x172   :  { %v471_v5 = vpop.permute.xlu0 %470 }
 0x173   :  { %v423_v6 = vpop.permute.xlu1 %422 }
 0x174   :  { %v6215_v7 = vpop.permute.xlu2 %378 }
 0x176   :  { %907 = vrot.lane.b32.xlu1 %v6062_v26, %s5842_s4 }
 0x17a   :  { %v954_v13 = vpop.permute.xlu0 %953 }
 0x17b   :  { %963 = vst.msk [vmem:[#allocation3 + $0x68] sm:$0xf] %vm701_vm1, %v954_v13  ;;  %v338_v22 = vpop.f32.mrf.mxu3 }
 0x17c   :  { %v343_v23 = vadd.f32 %v342_v8, %v338_v22  ;;  %v367_v24 = vadd.f32 %v366_v9, %v338_v22  ;;  %v391_v25 = vadd.f32 %v390_v10, %v338_v22  ;;  %v415_v27 = vadd.f32 %v414_v12, %v338_v22  ;;  %v447_v30 = vpop.permute.xlu1 %446 }
 0x17d   :  { %v439_v31 = vadd.f32 %v438_v18, %v338_v22  ;;  %v463_v32 = vadd.f32 %v462_v19, %v338_v22  ;;  %v487_v26 = vadd.f32 %v486_v20, %v338_v22  ;;  %v511_v33 = vadd.f32 %v510_v21, %v338_v22  ;;  %v6220_v34 = vpop.permute.xlu2 %402 }
 0x17e   :  { %v6222_v37 = vperm.slane %v343_v23, 0  ;;  %v6224_v38 = vperm.slane %v367_v24, 1  ;;  %v6226_v39 = vperm.slane %v391_v25, 2  ;;  %v6228_v40 = vperm.slane %v415_v27, 3 }
 0x17f   :  { %v6230_v42 = vperm.slane %v439_v31, 4  ;;  %v6232_v43 = vperm.slane %v463_v32, 5  ;;  %v6234_v44 = vperm.slane %v487_v26, 6  ;;  %v6236_v45 = vperm.slane %v511_v33, 7 }
 0x180   :  { %v362_v46 = vsub.f32 %v6222_v37, %v351_v2  ;;  %v386_v48 = vsub.f32 %v6224_v38, %v375_v3  ;;  %v410_v49 = vsub.f32 %v6226_v39, %v399_v62  ;;  %v434_v51 = vsub.f32 %v6228_v40, %v423_v6 }
 0x181   :  { %v6244_v52 = vsub.f32 %v6230_v42, %v6171_v53  ;;  %v6248_v59 = vsub.f32 %v6232_v43, %v6182_v56  ;;  %v482_v60 = vsub.f32 %v6232_v43, %v471_v5  ;;  %v506_v63 = vsub.f32 %v6234_v44, %v495_v1 }
 0x182   :  { %v530_v0 = vsub.f32 %v6236_v45, %v519_v4  ;;  %v534_v2 = vmax.f32 %v362_v46, %v386_v48  ;;  %v538_v3 = vmax.f32 %v410_v49, %v434_v51  ;;  %v458_v62 = vsub.f32 %v6230_v42, %v447_v30  ;;  %v752_v8 = vpop.permute.xlu0 %751 }
 0x183   :  { %v541_v6 = vmax.f32 %v6244_v52, %v6248_v59  ;;  %761 = vst.msk [vmem:[#allocation3 + $0x18] sm:$0xf] %vm701_vm1, %v752_v8  ;;  %v361_v53 = vsub.f32 %v6222_v37, %v6178_v54  ;;  %v385_v1 = vsub.f32 %v6224_v38, %v6180_v55  ;;  %v409_v4 = vsub.f32 %v6226_v39, %v6158_v50 }
 0x184   :  { %v546_v56 = vmax.f32 %v506_v63, %v530_v0  ;;  %v550_v9 = vmax.f32 %v534_v2, %v538_v3  ;;  %v542_v5 = vmax.f32 %v458_v62, %v482_v60  ;;  %v842_v10 = vpop.permute.xlu1 %841  ;;  %v433_v12 = vsub.f32 %v6228_v40, %v6190_v58 }
 0x185   :  { %851 = vst.msk [vmem:[#allocation3 + $0x38] sm:$0xf] %vm701_vm1, %v842_v10  ;;  %v6268_v13 = vsub.f32 %v6234_v44, %v6188_v57  ;;  %v6272_v54 = vsub.f32 %v6236_v45, %v6196_v61  ;;  %v533_v55 = vmax.f32 %v361_v53, %v385_v1 }
 0x186   :  { %v554_v18 = vmax.f32 %v542_v5, %v546_v56  ;;  %v6274_v19 = vpop.permute.xlu2 %498  ;;  %v537_v20 = vmax.f32 %v409_v4, %v433_v12 }
 0x187   :  { %v545_v21 = vmax.f32 %v6268_v13, %v6272_v54 }
 0x188   :  { %v558_v50 = vmax.f32 %v550_v9, %v554_v18  ;;  %v549_v22 = vmax.f32 %v533_v55, %v537_v20 }
 0x189   :  { %v553_v23 = vmax.f32 %v541_v6, %v545_v21 }
 0x18a   :  { %v562_v58 = vsub.f32 %v362_v46, %v558_v50  ;;  %v586_v24 = vsub.f32 %v410_v49, %v558_v50  ;;  %v598_v25 = vsub.f32 %v434_v51, %v558_v50  ;;  %v610_v57 = vsub.f32 %v458_v62, %v558_v50  ;;  %v6278_v27 = vpop.permute.xlu0 %354 }
 0x18b   :  { %v622_v30 = vsub.f32 %v482_v60, %v558_v50  ;;  %v634_v61 = vsub.f32 %v506_v63, %v558_v50  ;;  %v646_v33 = vsub.f32 %v530_v0, %v558_v50  ;;  %v574_v8 = vsub.f32 %v386_v48, %v558_v50 }
 0x18c   :  { %v567_v31 = vmul.f32 1.442695, %v562_v58  ;;  %v591_v32 = vmul.f32 1.442695, %v586_v24  ;;  %v603_v26 = vmul.f32 1.442695, %v598_v25  ;;  %v998_v2 = vpop.permute.xlu1 %997  ;;  %v557_v6 = vmax.f32 %v549_v22, %v553_v23 }
 0x18d   :  { %v615_v3 = vmul.f32 1.442695, %v610_v57  ;;  %v627_v56 = vmul.f32 1.442695, %v622_v30  ;;  %1007 = vst.msk [vmem:[#allocation3 + $0x78] sm:$0xf] %vm701_vm1, %v998_v2 }
 0x18e   :  { %5307 = vpow2.f32 %v567_v31  ;;  %v639_v46 = vmul.f32 1.442695, %v634_v61  ;;  %v651_v51 = vmul.f32 1.442695, %v646_v33  ;;  %v561_v60 = vsub.f32 %v361_v53, %v557_v6 }
 0x18f   :  { %5309 = vpow2.f32 %v591_v32  ;;  %v6281_v49 = vpop.permute.xlu2 %522  ;;  %v573_v63 = vsub.f32 %v385_v1, %v557_v6  ;;  %v579_v62 = vmul.f32 1.442695, %v574_v8  ;;  %v585_v9 = vsub.f32 %v409_v4, %v557_v6 }
 0x190   :  { %5311 = vpow2.f32 %v603_v26  ;;  %v597_v0 = vsub.f32 %v433_v12, %v557_v6  ;;  %v565_v5 = vmul.f32 1.442695, %v561_v60  ;;  %v609_v48 = vsub.f32 %v6244_v52, %v557_v6 }
 0x191   :  { %5313 = vpow2.f32 %v615_v3  ;;  %v577_v18 = vmul.f32 1.442695, %v573_v63  ;;  %v589_v21 = vmul.f32 1.442695, %v585_v9  ;;  %v621_v53 = vsub.f32 %v6248_v59, %v557_v6 }
 0x192   :  { %5315 = vpow2.f32 %v627_v56  ;;  %v633_v1 = vsub.f32 %v6268_v13, %v557_v6  ;;  %v601_v4 = vmul.f32 1.442695, %v597_v0  ;;  %v645_v52 = vsub.f32 %v6272_v54, %v557_v6 }
 0x193   :  { %5317 = vpow2.f32 %v639_v46  ;;  %v6284_v10 = vpop.permute.xlu0 %474  ;;  %v613_v22 = vmul.f32 1.442695, %v609_v48  ;;  %v625_v24 = vmul.f32 1.442695, %v621_v53 }
 0x194   :  { %v6286_v55 = vpop.eup %5307  ;;  %5319 = vpow2.f32 %v651_v51  ;;  %v797_v20 = vpop.permute.xlu1 %796  ;;  %v637_v13 = vmul.f32 1.442695, %v633_v1  ;;  %v649_v57 = vmul.f32 1.442695, %v645_v52  ;;  %v6342_v1 = vsub.f32 %v6226_v39, %v6220_v34 }
 0x195   :  { %v6290_v50 = vpop.eup %5309  ;;  %806 = vst.msk [vmem:[#allocation3 + $0x28] sm:$0xf] %vm701_vm1, %v797_v20  ;;  %5321 = vpow2.f32 %v579_v62  ;;  %v363_v52 = vsub.f32 %v6222_v37, %v6278_v27  ;;  %v483_v27 = vsub.f32 %v6232_v43, %v6284_v10 }
 0x196   :  { %v6294_v12 = vpop.eup %5311  ;;  %5323 = vpow2.f32 %v565_v5 }
 0x197   :  { %v6296_v23 = vpop.eup %5313  ;;  %v844_v58 = vpop.permute.xlu2 %843  ;;  %5325 = vpow2.f32 %v577_v18  ;;  %v662_v61 = vadd.f32 %v6294_v12, %v6290_v50 }
 0x198   :  { %v6298_v59 = vpop.eup %5315  ;;  %852 = vst.msk [vmem:[#allocation3 + $0x3c] sm:$0xf] %vm701_vm1, %v844_v58  ;;  %5327 = vpow2.f32 %v589_v21 }
 0x199   :  { %v6301_v25 = vpop.eup %5317  ;;  %v666_v54 = vadd.f32 %v6298_v59, %v6296_v23  ;;  %5329 = vpow2.f32 %v601_v4  ;;  %v5041_v4 = vld [vmem:[#allocation3 + $0x30] sm:$0xff] }
 0x19a   :  { %v6305_v30 = vpop.eup %5319  ;;  %5331 = vpow2.f32 %v613_v22  ;;  %v531_v22 = vsub.f32 %v6236_v45, %v6281_v49 }
 0x19b   :  { %v5322_v31 = vpop.eup %5321  ;;  %v670_v32 = vadd.f32 %v6305_v30, %v6301_v25  ;;  %5333 = vpow2.f32 %v625_v24 }
 0x19c   :  { %v6311_v26 = vpop.eup %5323  ;;  %v6313_v33 = vpop.permute.xlu0 %406  ;;  %v658_v3 = vadd.f32 %v5322_v31, %v6286_v55  ;;  %5335 = vpow2.f32 %v637_v13  ;;  %v507_v13 = vsub.f32 %v6234_v44, %v6274_v19 }
 0x19d   :  { %v427_v2 = vpop.permute.xlu1 %426  ;;  %v6316_v8 = vpop.eup %5325  ;;  %v678_v56 = vadd.f32 %v670_v32, %v666_v54  ;;  %5337 = vpow2.f32 %v649_v57  ;;  %v6354_v54 = vsub.f32 %v6224_v38, %v6215_v7  ;;  %v205_v32 = vld [vmem:[#allocation5 + $0x8] sm:$0xff] }
 0x19e   :  { %v6318_v6 = vpop.eup %5327  ;;  %v674_v46 = vadd.f32 %v662_v61, %v658_v3  ;;  %v657_v0 = vadd.f32 %v6316_v8, %v6311_v26  ;;  %v6334_v20 = vsub.f32 %v6228_v40, %v427_v2 }
 0x19f   :  { %v6320_v51 = vpop.eup %5329  ;;  %v1000_v60 = vpop.permute.xlu2 %999  ;;  %v5042_v63 = vld [vmem:[#allocation3 + $0x38] sm:$0xff]  ;;  %v535_v7 = vmax.f32 %v363_v52, %v6354_v54 }
 0x1a0   :  { %v6322_v62 = vpop.eup %5331  ;;  %1008 = vst.msk [vmem:[#allocation3 + $0x7c] sm:$0xf] %vm701_vm1, %v1000_v60  ;;  %v682_v9 = vadd.f32 %v678_v56, %v674_v46  ;;  %v661_v5 = vadd.f32 %v6320_v51, %v6318_v6  ;;  %1165 = vmatpush.bf16.msrb.mxu0 %v5042_v63  ;;  %v539_v49 = vmax.f32 %v6342_v1, %v6334_v20 }
 0x1a1   :  { %v6329_v48 = vpop.eup %5333  ;;  %v547_v46 = vmax.f32 %v507_v13, %v531_v22 }
 0x1a2   :  { %v6331_v18 = vpop.eup %5335  ;;  %5339 = vrcp.f32 %v682_v9  ;;  %v665_v21 = vadd.f32 %v6329_v48, %v6322_v62  ;;  %v673_v24 = vadd.f32 %v661_v5, %v657_v0  ;;  %v551_v10 = vmax.f32 %v535_v7, %v539_v49 }
 0x1a3   :  { %v6338_v53 = vpop.eup %5337  ;;  %v6371_v49 = vsub.f32 %v6226_v39, %v6313_v33 }
 0x1a4   :  { %v669_v58 = vadd.f32 %v6338_v53, %v6331_v18  ;;  %1166 = vmatpush.bf16.msrb.mxu0 %v5041_v4  ;;  %v5049_v4 = vld [vmem:[#allocation3 + $0x70] sm:$0xff] }
 0x1a5   :  { %v6356_v34 = vpop.permute.xlu0 %526  ;;  %v451_v57 = vpop.permute.xlu1 %450 }
 0x1a6   :  { %v459_v61 = vsub.f32 %v6230_v42, %v451_v57  ;;  %v677_v2 = vadd.f32 %v669_v58, %v665_v21 }
 0x1a7   :  { %v799_v3 = vpop.permute.xlu2 %798  ;;  %v5050_v19 = vld [vmem:[#allocation3 + $0x78] sm:$0xff] }
 0x1a8   :  { %v5340_v56 = vpop.eup %5339  ;;  %v543_v60 = vmax.f32 %v459_v61, %v483_v27  ;;  %v681_v63 = vadd.f32 %v677_v2, %v673_v24  ;;  %807 = vst.msk [vmem:[#allocation3 + $0x2c] sm:$0xf] %vm701_vm1, %v799_v3  ;;  %1184 = vmatpush.bf16.msrb.mxu1 %v5050_v19  ;;  %v204_v2 = vld [vmem:[#allocation5] sm:$0xff] }
 0x1a9   :  { %v6365_v9 = vmul.f32 %v5340_v56, %v205_v32 }
 0x1aa   :  { %v555_v0 = vmax.f32 %v543_v60, %v547_v46  ;;  %5341 = vrcp.f32 %v681_v63  ;;  %v5039_v46 = vld [vmem:[#allocation3 + $0x20] sm:$0xff] }
 0x1ab   :  { %v715_v5 = vmul.f32 %v5322_v31, %v6365_v9 }
 0x1ac   :  { %v559_v21 = vmax.f32 %v551_v10, %v555_v0  ;;  %1185 = vmatpush.bf16.msrb.mxu1 %v5049_v4 }
 0x1ad   :  { %v719_v58 = vpack.c.bf16 %v715_v5, %v715_v5  ;;  %v912_v57 = vpop.permute.xlu0 %911  ;;  %v956_v28 = vpop.permute.xlu1 %955 }
 0x1ae   :  { %v611_v15 = vsub.f32 %v459_v61, %v559_v21  ;;  %v623_v36 = vsub.f32 %v483_v27, %v559_v21  ;;  %v635_v29 = vsub.f32 %v507_v13, %v559_v21  ;;  %v647_v24 = vsub.f32 %v531_v22, %v559_v21  ;;  %920 = vst.msk [vmem:[#allocation3 + $0x5c] sm:$0xf] %vm701_vm1, %v912_v57 }
 0x1af   :  { %728 = vrot.lane.b32.xlu0 %v719_v58, %s5835_s19  ;;  %964 = vst.msk [vmem:[#allocation3 + $0x6c] sm:$0xf] %vm701_vm1, %v956_v28  ;;  %v431_v31 = vpop.permute.xlu2 %430  ;;  %v5040_v32 = vld [vmem:[#allocation3 + $0x28] sm:$0xff]  ;;  %v563_v3 = vsub.f32 %v363_v52, %v559_v21  ;;  %v575_v33 = vsub.f32 %v6354_v54, %v559_v21  ;;  %v587_v52 = vsub.f32 %v6342_v1, %v559_v21 }
 0x1b0   :  { %v5342_v19 = vpop.eup %5341  ;;  %v617_v56 = vmul.f32 1.442695, %v611_v15  ;;  %v629_v61 = vmul.f32 1.442695, %v623_v36  ;;  %v641_v27 = vmul.f32 1.442695, %v635_v29  ;;  %v6376_v22 = vsub.f32 %v6228_v40, %v431_v31  ;;  %1167 = vmatpush.bf16.msrb.mxu0 %v5040_v32 }
 0x1b1   :  { %v653_v13 = vmul.f32 1.442695, %v647_v24  ;;  %v6378_v7 = vmul.f32 %v5342_v19, %v204_v2  ;;  %v569_v39 = vmul.f32 1.442695, %v563_v3  ;;  %v599_v15 = vsub.f32 %v6334_v20, %v559_v21  ;;  %v5047_v3 = vld [vmem:[#allocation3 + $0x60] sm:$0xff] }
 0x1b2   :  { %5343 = vpow2.f32 %v617_v56  ;;  %v540_v28 = vmax.f32 %v6371_v49, %v6376_v22  ;;  %v694_v54 = vmul.f32 %v6286_v55, %v6365_v9  ;;  %v809_v24 = vmul.f32 %v6294_v12, %v6365_v9 }
 0x1b3   :  { %5345 = vpow2.f32 %v629_v61  ;;  %v763_v29 = vmul.f32 %v6318_v6, %v6378_v7  ;;  %v714_v36 = vmul.f32 %v6316_v8, %v6378_v7  ;;  %v808_v40 = vmul.f32 %v6320_v51, %v6378_v7 }
 0x1b4   :  { %5347 = vpow2.f32 %v641_v27  ;;  %1168 = vmatpush.bf16.msrb.mxu0 %v5039_v46  ;;  %v581_v8 = vmul.f32 1.442695, %v575_v33  ;;  %v593_v51 = vmul.f32 1.442695, %v587_v52  ;;  %v605_v0 = vmul.f32 1.442695, %v599_v15 }
 0x1b5   :  { %5349 = vpow2.f32 %v653_v13  ;;  %v767_v60 = vpack.c.bf16 %v763_v29, %v763_v29  ;;  %v718_v1 = vpack.c.bf16 %v714_v36, %v714_v36  ;;  %v906_v63 = vpop.permute.xlu0 %905  ;;  %v359_v20 = vpop.permute.xlu1 %358  ;;  %v812_v10 = vpack.c.bf16 %v808_v40, %v808_v40 }
 0x1b6   :  { %917 = vst.msk [vmem:[#allocation3 + $0x50] sm:$0xf] %vm701_vm1, %v906_v63  ;;  %v5048_v6 = vld [vmem:[#allocation3 + $0x68] sm:$0xff]  ;;  %5351 = vpow2.f32 %v569_v39  ;;  %v693_v4 = vmul.f32 %v6311_v26, %v6378_v7  ;;  %v853_v21 = vmul.f32 %v6322_v62, %v6378_v7  ;;  %v698_v58 = vpack.c.bf16 %v694_v54, %v694_v54 }
 0x1b7   :  { %775 = vrot.lane.b32.xlu1 %v767_v60, %s8397_s3  ;;  %726 = vrot.lane.b32.xlu2 %v718_v1, %s5835_s19  ;;  %v764_v2 = vmul.f32 %v6290_v50, %v6365_v9  ;;  %5353 = vpow2.f32 %v581_v8  ;;  %v854_v31 = vmul.f32 %v6296_v23, %v6365_v9  ;;  %v874_v26 = vmul.f32 %v6298_v59, %v6365_v9 }
 0x1b8   :  { %v6396_v5 = vpop.eup %5343  ;;  %820 = vrot.lane.b32.xlu0 %v812_v10, %s5842_s4  ;;  %1186 = vmatpush.bf16.msrb.mxu1 %v5048_v6  ;;  %v6399_v55 = vpop.permute.xlu2 %454  ;;  %5355 = vpow2.f32 %v593_v51  ;;  %v697_v62 = vpack.c.bf16 %v693_v4, %v693_v4  ;;  %v857_v19 = vpack.c.bf16 %v853_v21, %v853_v21  ;;  %703 = vst.msk [vmem:[#allocation2 + $0x8] sm:$0xf] %vm701_vm1, %v698_v58  ;;  %v206_v4 = vld [vmem:[#allocation5 + $0x10] sm:$0xff] }
 0x1b9   :  { %v6405_v57 = vpop.eup %5345  ;;  %5357 = vpow2.f32 %v605_v0  ;;  %v858_v12 = vpack.c.bf16 %v854_v31, %v854_v31  ;;  %v813_v61 = vpack.c.bf16 %v809_v24, %v809_v24  ;;  %v768_v23 = vpack.c.bf16 %v764_v2, %v764_v2 }
 0x1ba   :  { %v6413_v32 = vpop.eup %5347  ;;  %702 = vst.msk [vmem:[#allocation2] sm:$0xf] %vm701_vm1, %v697_v62  ;;  %v667_v59 = vadd.f32 %v6405_v57, %v6396_v5  ;;  %v878_v13 = vpack.c.bf16 %v874_v26, %v874_v26  ;;  %v6427_v52 = vsub.f32 %v6222_v37, %v359_v20  ;;  %v921_v54 = vmul.f32 %v6331_v18, %v6378_v7 }
 0x1bb   :  { %v5350_v56 = vpop.eup %5349  ;;  %861 = vst.msk [vmem:[#allocation2 + $0x4] sm:$0xf] %vm701_vm1, %v857_v19  ;;  %v873_v60 = vmul.f32 %v6329_v48, %v6378_v7  ;;  %v965_v1 = vmul.f32 %v6338_v53, %v6378_v7  ;;  %v966_v7 = vmul.f32 %v6305_v30, %v6365_v9  ;;  %v532_v30 = vsub.f32 %v6236_v45, %v6356_v34 }
 0x1bc   :  { %1187 = vmatpush.bf16.msrb.mxu1 %v5047_v3  ;;  %v5352_v50 = vpop.eup %5351  ;;  %v671_v27 = vadd.f32 %v5350_v56, %v6413_v32  ;;  %862 = vst.msk [vmem:[#allocation2 + $0xc] sm:$0xf] %vm701_vm1, %v858_v12  ;;  %v925_v18 = vpack.c.bf16 %v921_v54, %v921_v54 }
 0x1bd   :  { %v5354_v33 = vpop.eup %5353  ;;  %v877_v6 = vpack.c.bf16 %v873_v60, %v873_v60  ;;  %v969_v8 = vpack.c.bf16 %v965_v1, %v965_v1  ;;  %v970_v21 = vpack.c.bf16 %v966_v7, %v966_v7 }
 0x1be   :  { %v383_v39 = vpop.permute.xlu1 %382  ;;  %v5356_v29 = vpop.eup %5355  ;;  %v659_v40 = vadd.f32 %v5354_v33, %v5352_v50 }
 0x1bf   :  { %822 = vrot.lane.b32.xlu1 %v813_v61, %s5842_s4  ;;  %777 = vrot.lane.b32.xlu2 %v768_v23, %s8397_s3  ;;  %v6430_v15 = vsub.f32 %v6224_v38, %v383_v39  ;;  %v6433_v46 = vpop.eup %5357  ;;  %v679_v38 = vadd.f32 %v671_v27, %v667_v59 }
 0x1c0   :  { %887 = vrot.lane.b32.xlu0 %v878_v13, %s5835_s19  ;;  %v910_v36 = vpop.permute.xlu2 %909  ;;  %v663_v63 = vadd.f32 %v6433_v46, %v5356_v29 }
 0x1c1   :  { %v536_v37 = vmax.f32 %v6427_v52, %v6430_v15  ;;  %919 = vst.msk [vmem:[#allocation3 + $0x58] sm:$0xf] %vm701_vm1, %v910_v36 }
 0x1c2   :  { %v675_v10 = vadd.f32 %v663_v63, %v659_v40 }
 0x1c3   :  { %v552_v20 = vmax.f32 %v536_v37, %v540_v28  ;;  %v922_v28 = vmul.f32 %v6301_v25, %v6365_v9  ;;  %v460_v25 = vsub.f32 %v6230_v42, %v6399_v55 }
 0x1c4   :  { %v683_v48 = vadd.f32 %v679_v38, %v675_v10 }
 0x1c5   :  { %v926_v58 = vpack.c.bf16 %v922_v28, %v922_v28 }
 0x1c6   :  { %5359 = vrcp.f32 %v683_v48 }
 0x1c7   :  { %933 = vrot.lane.b32.xlu1 %v925_v18, %s8397_s3  ;;  %885 = vrot.lane.b32.xlu2 %v877_v6, %s5835_s19  ;;  %v479_v51 = vpop.permute.xlu1 %478 }
 0x1c8   :  { %977 = vrot.lane.b32.xlu0 %v969_v8, %s5842_s4  ;;  %v750_v0 = vpop.permute.xlu2 %749  ;;  %v5046_v53 = vld [vmem:[#allocation3 + $0x58] sm:$0xff]  ;;  %v484_v2 = vsub.f32 %v6232_v43, %v479_v51 }
 0x1c9   :  { %760 = vst.msk [vmem:[#allocation3 + $0x14] sm:$0xf] %vm701_vm1, %v750_v0  ;;  %1188 = vmatpush.bf16.msrb.mxu1 %v5046_v53 }
 0x1ca   :  { %v544_v12 = vmax.f32 %v460_v25, %v484_v2 }
 0x1cc   :  { %v5360_v24 = vpop.eup %5359 }
 0x1cd   :  { %v6459_v31 = vmul.f32 %v5360_v24, %v206_v4  ;;  %v5036_v24 = vld [vmem:[#allocation3 + $0x8] sm:$0xff] }
 0x1cf   :  { %979 = vrot.lane.b32.xlu1 %v970_v21, %s5842_s4  ;;  %935 = vrot.lane.b32.xlu2 %v926_v58, %s8397_s3  ;;  %v765_v9 = vmul.f32 %v5356_v29, %v6459_v31  ;;  %v716_v3 = vmul.f32 %v5354_v33, %v6459_v31  ;;  %v6469_v19 = vmul.f32 %v5350_v56, %v6459_v31 }
 0x1d0   :  { %v503_v26 = vpop.permute.xlu1 %502  ;;  %v695_v43 = vmul.f32 %v5352_v50, %v6459_v31  ;;  %v855_v42 = vmul.f32 %v6396_v5, %v6459_v31 }
 0x1d1   :  { %v508_v62 = vsub.f32 %v6234_v44, %v503_v26  ;;  %v769_v61 = vpack.c.bf16 %v765_v9, %v765_v9  ;;  %v720_v23 = vpack.c.bf16 %v716_v3, %v716_v3  ;;  %v5035_v26 = vld [vmem:[#allocation3] sm:$0xff]  ;;  %v5044_v9 = vld [vmem:[#allocation3 + $0x48] sm:$0xff] }
 0x1d2   :  { %v699_v45 = vpack.c.bf16 %v695_v43, %v695_v43  ;;  %v859_v55 = vpack.c.bf16 %v855_v42, %v855_v42  ;;  %v207_v3 = vld [vmem:[#allocation5 + $0x18] sm:$0xff] }
 0x1d3   :  { %v548_v59 = vmax.f32 %v508_v62, %v532_v30 }
 0x1d4   :  { %704 = vst.msk [vmem:[#allocation2 + $0x10] sm:$0xf] %vm701_vm1, %v699_v45 }
 0x1d5   :  { %v556_v34 = vmax.f32 %v544_v12, %v548_v59  ;;  %863 = vst.msk [vmem:[#allocation2 + $0x14] sm:$0xf] %vm701_vm1, %v859_v55  ;;  %v5043_v12 = vld [vmem:[#allocation3 + $0x40] sm:$0xff] }
 0x1d7   :  { %779 = vrot.lane.b32.xlu1 %v769_v61, %s8397_s3  ;;  %730 = vrot.lane.b32.xlu2 %v720_v23, %s5835_s19  ;;  %v560_v44 = vmax.f32 %v552_v20, %v556_v34 }
 0x1d8   :  { %v754_v56 = vpop.permute.xlu1 %753 }
 0x1d9   :  { %v612_v27 = vsub.f32 %v460_v25, %v560_v44  ;;  %v624_v50 = vsub.f32 %v484_v2, %v560_v44  ;;  %v636_v13 = vsub.f32 %v508_v62, %v560_v44  ;;  %v648_v39 = vsub.f32 %v532_v30, %v560_v44  ;;  %762 = vst.msk [vmem:[#allocation3 + $0x1c] sm:$0xf] %vm701_vm1, %v754_v56 }
 0x1da   :  { %v564_v33 = vsub.f32 %v6427_v52, %v560_v44  ;;  %v576_v29 = vsub.f32 %v6430_v15, %v560_v44  ;;  %v588_v5 = vsub.f32 %v6371_v49, %v560_v44  ;;  %v600_v36 = vsub.f32 %v6376_v22, %v560_v44 }
 0x1db   :  { %v619_v40 = vmul.f32 1.442695, %v612_v27  ;;  %v631_v54 = vmul.f32 1.442695, %v624_v50  ;;  %v643_v60 = vmul.f32 1.442695, %v636_v13 }
 0x1dc   :  { %v655_v37 = vmul.f32 1.442695, %v648_v39  ;;  %v571_v38 = vmul.f32 1.442695, %v564_v33  ;;  %v583_v1 = vmul.f32 1.442695, %v576_v29  ;;  %v923_v33 = vmul.f32 %v6413_v32, %v6459_v31 }
 0x1dd   :  { %5361 = vpow2.f32 %v619_v40  ;;  %v595_v63 = vmul.f32 1.442695, %v588_v5  ;;  %v607_v15 = vmul.f32 1.442695, %v600_v36  ;;  %v875_v29 = vmul.f32 %v6405_v57, %v6459_v31 }
 0x1de   :  { %5363 = vpow2.f32 %v631_v54  ;;  %v810_v5 = vmul.f32 %v6433_v46, %v6459_v31  ;;  %v927_v36 = vpack.c.bf16 %v923_v33, %v923_v33  ;;  %v971_v46 = vpack.c.bf16 %v6469_v19, %v6469_v19 }
 0x1df   :  { %5365 = vpow2.f32 %v643_v60  ;;  %v879_v40 = vpack.c.bf16 %v875_v29, %v875_v29 }
 0x1e0   :  { %5367 = vpow2.f32 %v655_v37  ;;  %v748_v52 = vpop.permute.xlu1 %747  ;;  %v5038_v20 = vld [vmem:[#allocation3 + $0x18] sm:$0xff]  ;;  %v814_v54 = vpack.c.bf16 %v810_v5, %v810_v5 }
 0x1e1   :  { %759 = vst.msk [vmem:[#allocation3 + $0x10] sm:$0xf] %vm701_vm1, %v748_v52  ;;  %5369 = vpow2.f32 %v571_v38  ;;  %1169 = vmatpush.bf16.msrb.mxu0 %v5038_v20 }
 0x1e2   :  { %5371 = vpow2.f32 %v583_v1 }
 0x1e3   :  { %v5362_v49 = vpop.eup %5361  ;;  %5373 = vpow2.f32 %v595_v63 }
 0x1e4   :  { %v5364_v22 = vpop.eup %5363  ;;  %5375 = vpow2.f32 %v607_v15 }
 0x1e5   :  { %v5366_v10 = vpop.eup %5365  ;;  %v668_v18 = vadd.f32 %v5364_v22, %v5362_v49 }
 0x1e6   :  { %v5368_v6 = vpop.eup %5367 }
 0x1e7   :  { %v5370_v8 = vpop.eup %5369  ;;  %v672_v48 = vadd.f32 %v5368_v6, %v5366_v10 }
 0x1e8   :  { %v5372_v51 = vpop.eup %5371  ;;  %v908_v0 = vpop.permute.xlu1 %907  ;;  %v5037_v53 = vld [vmem:[#allocation3 + $0x10] sm:$0xff] }
 0x1e9   :  { %v5374_v7 = vpop.eup %5373  ;;  %v680_v28 = vadd.f32 %v672_v48, %v668_v18  ;;  %918 = vst.msk [vmem:[#allocation3 + $0x54] sm:$0xf] %vm701_vm1, %v908_v0  ;;  %v660_v4 = vadd.f32 %v5372_v51, %v5370_v8  ;;  %1170 = vmatpush.bf16.msrb.mxu0 %v5037_v53 }
 0x1ea   :  { %v5376_v21 = vpop.eup %5375 }
 0x1eb   :  { %v664_v58 = vadd.f32 %v5376_v21, %v5374_v7 }
 0x1ed   :  { %v676_v2 = vadd.f32 %v664_v58, %v660_v4  ;;  %1171 = vmatpush.bf16.msrb.mxu0 %v5036_v24 }
 0x1ef   :  { %v684_v30 = vadd.f32 %v680_v28, %v676_v2 }
 0x1f0   :  { %v5045_v25 = vld [vmem:[#allocation3 + $0x50] sm:$0xff] }
 0x1f1   :  { %5377 = vrcp.f32 %v684_v30  ;;  %1172 = vmatpush.bf16.msrb.mxu0 %v5035_v26  ;;  %1189 = vmatpush.bf16.msrb.mxu1 %v5045_v25 }
 0x1f5   :  { %1190 = vmatpush.bf16.msrb.mxu1 %v5044_v9 }
 0x1f7   :  { %v5378_v62 = vpop.eup %5377 }
 0x1f8   :  { %v692_v43 = vmul.f32 %v5378_v62, %v207_v3 }
 0x1f9   :  { %1191 = vmatpush.bf16.msrb.mxu1 %v5043_v12 }
 0x1fa   :  { %v811_v61 = vmul.f32 %v5376_v21, %v692_v43  ;;  %v766_v23 = vmul.f32 %v5374_v7, %v692_v43  ;;  %v717_v59 = vmul.f32 %v5372_v51, %v692_v43  ;;  %v968_v45 = vmul.f32 %v5368_v6, %v692_v43 }
 0x1fb   :  { %v924_v34 = vmul.f32 %v5366_v10, %v692_v43  ;;  %v876_v42 = vmul.f32 %v5364_v22, %v692_v43  ;;  %v696_v44 = vmul.f32 %v5370_v8, %v692_v43  ;;  %v856_v55 = vmul.f32 %v5362_v49, %v692_v43 }
 0x1fc   :  { %v815_v56 = vpack.c.bf16 %v811_v61, %v811_v61  ;;  %v770_v27 = vpack.c.bf16 %v766_v23, %v766_v23  ;;  %v721_v50 = vpack.c.bf16 %v717_v59, %v717_v59  ;;  %v972_v60 = vpack.c.bf16 %v968_v45, %v968_v45  ;;  %v4632_v59 = vld [vmem:[%s8400_s26 + $0x18] sm:$0xf]  ;;  %v5055_v45 = vld [vmem:[%s8400_s26 + $0x20] sm:$0xf0] }
 0x1fd   :  { %v700_v13 = vpack.c.bf16 %v696_v44, %v696_v44  ;;  %v860_v39 = vpack.c.bf16 %v856_v55, %v856_v55  ;;  %v928_v37 = vpack.c.bf16 %v924_v34, %v924_v34  ;;  %v880_v32 = vpack.c.bf16 %v876_v42, %v876_v42  ;;  %v5054_v34 = vld [vmem:[%s8400_s26 + $0x1c] sm:$0xf]  ;;  %v4634_v44 = vld [vmem:[%s8400_s26 + $0x24] sm:$0xf0]  ;;  %v4620_v55 = vld [vmem:[%s8400_s26] sm:$0xf] }
 0x1fe   :  { %826 = vrot.lane.b32.xlu1 %v815_v56, %s5842_s4  ;;  %781 = vrot.lane.b32.xlu2 %v770_v27, %s8397_s3  ;;  %v4633_v42 = vor.u32 %v5055_v45, %v4632_v59  ;;  %v5052_v56 = vld [vmem:[%s8400_s26 + $0x8] sm:$0xf0]  ;;  %v4637_v27 = vor.u32 %v5054_v34, %v4634_v44 }
 0x1ff   :  { %732 = vrot.lane.b32.xlu0 %v721_v50, %s5835_s19  ;;  %705 = vst.msk [vmem:[#allocation2 + $0x18] sm:$0xf] %vm701_vm1, %v700_v13  ;;  %v5051_v50 = vld [vmem:[%s8400_s26 + $0x4] sm:$0xf]  ;;  %v4622_v13 = vld [vmem:[%s8400_s26 + $0xc] sm:$0xf0] }
 0x200   :  { %864 = vst.msk [vmem:[#allocation2 + $0x1c] sm:$0xf] %vm701_vm1, %v860_v39  ;;  %1262 = vmatpush.bf16.msrb.mxu3 %v4633_v42  ;;  %v4621_v39 = vor.u32 %v5052_v56, %v4620_v55  ;;  %1281 = vmatpush.bf16.msrb.mxu2 %v4637_v27  ;;  %v4625_v33 = vor.u32 %v5051_v50, %v4622_v13  ;;  %v8402_v50 = vmov 6  }
 0x204   :  { %1263 = vmatpush.bf16.msrb.mxu3 %v4621_v39  ;;  %1282 = vmatpush.bf16.msrb.mxu2 %v4625_v33 }
 0x206   :  { %937 = vrot.lane.b32.xlu1 %v927_v36, %s8397_s3  ;;  %889 = vrot.lane.b32.xlu2 %v879_v40, %s5835_s19  ;;  %v5299_v36 = vld [vmem:[%s8401_s2] ss:$0 sm:$0xff]  ;;  %s4904_s2 = sld [smem:[#allocation16 + $0x2]] }
 0x207   :  { %824 = vrot.lane.b32.xlu0 %v814_v54, %s5842_s4 }
 0x20e   :  { %983 = vrot.lane.b32.xlu1 %v972_v60, %s5842_s4  ;;  %939 = vrot.lane.b32.xlu2 %v928_v37, %s8397_s3 }
 0x20f   :  { %891 = vrot.lane.b32.xlu0 %v880_v32, %s5835_s19 }
 0x211   :  { %v727_v57 = vpop.permute.xlu2 %726 }
 0x212   :  { %739 = vst.msk [vmem:[#allocation2] sm:$0xf] %vm738_vm4, %v727_v57 }
 0x217   :  { %981 = vrot.lane.b32.xlu0 %v971_v46, %s5842_s4 }
 0x219   :  { %v778_v31 = vpop.permute.xlu2 %777 }
 0x221   :  { %v886_v38 = vpop.permute.xlu2 %885  ;;  %v729_v1 = vpop.permute.xlu0 %728 }
 0x222   :  { %897 = vst.msk [vmem:[#allocation2 + $0x4] sm:$0xf] %vm738_vm4, %v886_v38 }
 0x223   :  { %740 = vst.msk [vmem:[#allocation2 + $0x8] sm:$0xf] %vm738_vm4, %v729_v1  ;;  %v4640_v1 = vld [vmem:[%s8400_s26 + $0x20] sm:$0xf] }
 0x224   :  { %789 = vst.msk [vmem:[#allocation2 + $0x8] sm:$0xf] %vm787_vm5, %v778_v31 }
 0x229   :  { %v776_v63 = vpop.permute.xlu1 %775  ;;  %v936_v52 = vpop.permute.xlu2 %935 }
 0x22a   :  { %788 = vst.msk [vmem:[#allocation2] sm:$0xf] %vm787_vm5, %v776_v63  ;;  %v821_v20 = vpop.permute.xlu0 %820  ;;  %v5056_v63 = vld [vmem:[%s8400_s26 + $0x28] sm:$0xf0] }
 0x22b   :  { %833 = vst.msk [vmem:[#allocation2] sm:$0xf] %vm832_vm6, %v821_v20  ;;  %v4641_v20 = vor.u32 %v5056_v63, %v4640_v1 }
 0x22d   :  { %1300 = vmatpush.bf16.msra.mxu3 %v4641_v20 }
 0x231   :  { %v823_v19 = vpop.permute.xlu1 %822  ;;  %v731_v15 = vpop.permute.xlu2 %730 }
 0x232   :  { %834 = vst.msk [vmem:[#allocation2 + $0x8] sm:$0xf] %vm832_vm6, %v823_v19  ;;  %v888_v49 = vpop.permute.xlu0 %887  ;;  %v4540_v22 = vld [vmem:[#allocation2] sm:$0xf]  ;;  %v5053_v19 = vld [vmem:[%s8400_s26 + $0x10] sm:$0xf0] }
 0x233   :  { %741 = vst.msk [vmem:[#allocation2 + $0x10] sm:$0xf] %vm738_vm4, %v731_v15 }
 0x234   :  { %898 = vst.msk [vmem:[#allocation2 + $0xc] sm:$0xf] %vm738_vm4, %v888_v49 }
 0x235   :  { %946 = vst.msk [vmem:[#allocation2 + $0xc] sm:$0xf] %vm787_vm5, %v936_v52  ;;  %v4628_v52 = vld [vmem:[%s8400_s26 + $0x8] sm:$0xf]  ;;  %s1345_s26 = sld [smem:[#allocation10]] }
 0x236   :  { %v4629_v15 = vor.u32 %v5053_v19, %v4628_v52 }
 0x238   :  { %1301 = vmatpush.bf16.msra.mxu3 %v4629_v15 }
 0x239   :  { %v5032_v10 = vld [vmem:[#allocation2 + $0x4] sm:$0xf0]  ;;  %v934_v18 = vpop.permute.xlu1 %933 }
 0x23a   :  { %945 = vst.msk [vmem:[#allocation2 + $0x4] sm:$0xf] %vm787_vm5, %v934_v18  ;;  %v4541_v6 = vor.u32 %v5032_v10, %v4540_v22  ;;  %v978_v8 = vpop.permute.xlu0 %977 }
 0x23b   :  { %989 = vst.msk [vmem:[#allocation2 + $0x4] sm:$0xf] %vm832_vm6, %v978_v8 }
 0x23c   :  { %1173 = vmatmul.bf16.vlgmr.msrb.gmra.mxu0 %v4541_v6 }
 0x241   :  { %v980_v48 = vpop.permute.xlu1 %979 }
 0x242   :  { %990 = vst.msk [vmem:[#allocation2 + $0xc] sm:$0xf] %vm832_vm6, %v980_v48  ;;  %v5031_v51 = vld [vmem:[#allocation2 + $0x4] sm:$0xf] }
 0x249   :  { %v4542_v0 = vld [vmem:[#allocation2 + $0x8] sm:$0xf0]  ;;  %v780_v53 = vpop.permute.xlu1 %779 }
 0x24a   :  { %v4545_v7 = vor.u32 %v5031_v51, %v4542_v0  ;;  %790 = vst.msk [vmem:[#allocation2 + $0x10] sm:$0xf] %vm787_vm5, %v780_v53 }
 0x24c   :  { %1192 = vmatmul.bf16.vlgmr.msrb.gmra.mxu1 %v4545_v7 }
 0x258   :  { %v782_v28 = vpop.permute.xlu2 %781 }
 0x260   :  { %v890_v4 = vpop.permute.xlu2 %889 }
 0x261   :  { %899 = vst.msk [vmem:[#allocation2 + $0x14] sm:$0xf] %vm738_vm4, %v890_v4 }
 0x268   :  { %v940_v9 = vpop.permute.xlu2 %939 }
 0x270   :  { %v827_v21 = vpop.permute.xlu1 %826 }
 0x271   :  { %v733_v58 = vpop.permute.xlu0 %732 }
 0x272   :  { %742 = vst.msk [vmem:[#allocation2 + $0x18] sm:$0xf] %vm738_vm4, %v733_v58 }
 0x273   :  { %791 = vst.msk [vmem:[#allocation2 + $0x18] sm:$0xf] %vm787_vm5, %v782_v28 }
 0x274   :  { %836 = vst.msk [vmem:[#allocation2 + $0x18] sm:$0xf] %vm832_vm6, %v827_v21 }
 0x278   :  { %v938_v24 = vpop.permute.xlu1 %937 }
 0x279   :  { %947 = vst.msk [vmem:[#allocation2 + $0x14] sm:$0xf] %vm787_vm5, %v938_v24  ;;  %v825_v2 = vpop.permute.xlu0 %824 }
 0x27a   :  { %835 = vst.msk [vmem:[#allocation2 + $0x10] sm:$0xf] %vm832_vm6, %v825_v2 }
 0x27b   :  { %v5034_v30 = vld [vmem:[#allocation2 + $0x14] sm:$0xf0] }
 0x280   :  { %v984_v62 = vpop.permute.xlu1 %983 }
 0x281   :  { %v4548_v26 = vld [vmem:[#allocation2 + $0x10] sm:$0xf]  ;;  %v892_v25 = vpop.permute.xlu0 %891 }
 0x282   :  { %900 = vst.msk [vmem:[#allocation2 + $0x1c] sm:$0xf] %vm738_vm4, %v892_v25  ;;  %v4549_v3 = vor.u32 %v5034_v30, %v4548_v26 }
 0x283   :  { %948 = vst.msk [vmem:[#allocation2 + $0x1c] sm:$0xf] %vm787_vm5, %v940_v9 }
 0x284   :  { %992 = vst.msk [vmem:[#allocation2 + $0x1c] sm:$0xf] %vm832_vm6, %v984_v62  ;;  %1178 = vmatmul.bf16.gmra.mxu0 %v4549_v3 }
 0x289   :  { %v982_v43 = vpop.permute.xlu0 %981 }
 0x28a   :  { %991 = vst.msk [vmem:[#allocation2 + $0x14] sm:$0xf] %vm832_vm6, %v982_v43 }
 0x28b   :  { %v4550_v12 = vld [vmem:[#allocation2 + $0x18] sm:$0xf0] }
 0x291   :  { %v5033_v61 = vld [vmem:[#allocation2 + $0x14] sm:$0xf] }
 0x292   :  { %v4553_v23 = vor.u32 %v5033_v61, %v4550_v12 }
 0x294   :  { %1197 = vmatmul.bf16.gmra.mxu1 %v4553_v23 }
 0x2b9   :  { %v1174_v29 = vpop.f32.mrf.mxu0 }
 0x2ba   :  { %v1175_v54 = vadd.f32 %v5299_v36, %v1174_v29  ;;  %v8403_v29 = vmov 7  }
 0x2c1   :  { %v1176_v40 = vpop.f32.mrf.mxu0 }
 0x2c2   :  { %v1177_v60 = vadd.f32 %v5299_v36, %v1176_v40 }
 0x2c9   :  { %v1193_v5 = vpop.f32.mrf.mxu1 }
 0x2ca   :  { %v1194_v37 = vadd.f32 %v1193_v5, %v1175_v54  ;;  %v8404_v5 = vmov 1  }
 0x2cc   :  { %v1203_v46 = vmax.f32 %v1194_v37, 0.0 }
 0x2d1   :  { %v1195_v32 = vpop.f32.mrf.mxu1 }
 0x2d2   :  { %v1196_v57 = vadd.f32 %v1195_v32, %v1177_v60 }
 0x2d4   :  { %v1204_v31 = vmax.f32 %v1196_v57, 0.0 }
 0x2d6   :  { %v1207_v38 = vpack.c.bf16 %v1204_v31, %v1203_v46 }
 0x2d8   :  { %4642 = vmatmul.msk.bf16.vlgmr.msrb.gmra.mxu3 %vm1249_vm7, %v1207_v38  ;;  %4644 = vmatmul.msk.bf16.vlgmr.msrb.gmra.mxu2 %vm1249_vm7, %v1207_v38 }
 0x301   :  { %v1179_v49 = vpop.f32.mrf.mxu0 }
 0x302   :  { %v1180_v18 = vadd.f32 %v5299_v36, %v1179_v49 }
 0x309   :  { %v1181_v10 = vpop.f32.mrf.mxu0 }
 0x30a   :  { %v1182_v6 = vadd.f32 %v5299_v36, %v1181_v10  ;;  %v8405_v36 = vmov 3  }
 0x311   :  { %v1198_v22 = vpop.f32.mrf.mxu1 }
 0x312   :  { %v1199_v8 = vadd.f32 %v1198_v22, %v1180_v18 }
 0x314   :  { %v1205_v0 = vmax.f32 %v1199_v8, 0.0 }
 0x319   :  { %v1200_v48 = vpop.f32.mrf.mxu1 }
 0x31a   :  { %v1201_v51 = vadd.f32 %v1200_v48, %v1182_v6 }
 0x31c   :  { %v1206_v53 = vmax.f32 %v1201_v51, 0.0 }
 0x31e   :  { %v1208_v7 = vpack.c.bf16 %v1206_v53, %v1205_v0 }
 0x320   :  { %4643 = vmatmul.msk.bf16.gmra.mxu3 %vm1249_vm7, %v1208_v7  ;;  %4645 = vmatmul.msk.bf16.gmra.mxu2 %vm1249_vm7, %v1208_v7 }
 0x330   :  { %4646 = vmatmul.msk.bf16.vlgmr.msra.gmra.mxu3 %vm1249_vm7, %v1207_v38 }
 0x340   :  { %4647 = vmatmul.msk.bf16.gmra.mxu3 %vm1249_vm7, %v1208_v7 }
 0x35b   :  { %v1265_v28 = vpop.f32.mrf.mxu3  ;;  %v1284_v4 = vpop.f32.mrf.mxu2 }
 0x35c   :  { %v6574_v21 = vpack.c.bf16 %v1265_v28, %v1265_v28  ;;  %v6576_v58 = vpack.c.bf16 %v1284_v4, %v1284_v4 }
 0x35e   :  { %1713 = vst.msk [vmem:[#allocation3] sm:$0xf] %vm701_vm1, %v6574_v21  ;;  %1993 = vrot.lane.b32.xlu0 %v6576_v58, %s5835_s19  ;;  %1793 = vrot.lane.b32.xlu1 %v6574_v21, %s8397_s3 }
 0x35f   :  { %1869 = vst.msk [vmem:[#allocation3 + $0x40] sm:$0xf] %vm701_vm1, %v6576_v58  ;;  %1837 = vrot.lane.b32.xlu2 %v6574_v21, %s5835_s19 }
 0x363   :  { %v1267_v24 = vpop.f32.mrf.mxu3  ;;  %v1286_v2 = vpop.f32.mrf.mxu2 }
 0x364   :  { %v6588_v30 = vpack.c.bf16 %v1267_v24, %v1267_v24  ;;  %v6590_v26 = vpack.c.bf16 %v1286_v2, %v1286_v2 }
 0x366   :  { %1714 = vst.msk [vmem:[#allocation3 + $0x4] sm:$0xf] %vm701_vm1, %v6588_v30  ;;  %1995 = vrot.lane.b32.xlu1 %v6590_v26, %s5835_s19  ;;  %1839 = vrot.lane.b32.xlu0 %v6588_v30, %s5835_s19 }
 0x367   :  { %1870 = vst.msk [vmem:[#allocation3 + $0x44] sm:$0xf] %vm701_vm1, %v6590_v26  ;;  %1949 = vrot.lane.b32.xlu2 %v6576_v58, %s8397_s3 }
 0x36e   :  { %1951 = vrot.lane.b32.xlu0 %v6590_v26, %s8397_s3 }
 0x3a3   :  { %v1270_v25 = vpop.f32.mrf.mxu3  ;;  %v1289_v9 = vpop.f32.mrf.mxu2 }
 0x3a4   :  { %v6604_v3 = vpack.c.bf16 %v1270_v25, %v1270_v25  ;;  %v6606_v62 = vpack.c.bf16 %v1289_v9, %v1289_v9  ;;  %v1370_v25 = vstv %s4653_s15  ;;  %v1394_v9 = vstv %s4654_s0  ;;  %s4787_s15 = sld [smem:[#allocation14 + $0x7]] }
 0x3a5   :  { %s4783_s0 = sld [smem:[#allocation14 + $0x3]] }
 0x3a6   :  { %1715 = vst.msk [vmem:[#allocation3 + $0x8] sm:$0xf] %vm701_vm1, %v6604_v3  ;;  %1997 = vrot.lane.b32.xlu1 %v6606_v62, %s5835_s19  ;;  %1797 = vrot.lane.b32.xlu0 %v6604_v3, %s8397_s3 }
 0x3a7   :  { %1871 = vst.msk [vmem:[#allocation3 + $0x48] sm:$0xf] %vm701_vm1, %v6606_v62 }
 0x3ab   :  { %v1272_v43 = vpop.f32.mrf.mxu3  ;;  %v1291_v12 = vpop.f32.mrf.mxu2 }
 0x3ac   :  { %v6616_v61 = vpack.c.bf16 %v1272_v43, %v1272_v43  ;;  %v6618_v23 = vpack.c.bf16 %v1291_v12, %v1291_v12  ;;  %v1442_v43 = vstv %s4656_s24  ;;  %v1466_v12 = vstv %s4657_s23 }
 0x3ae   :  { %1716 = vst.msk [vmem:[#allocation3 + $0xc] sm:$0xf] %vm701_vm1, %v6616_v61  ;;  %1999 = vrot.lane.b32.xlu2 %v6618_v23, %s5835_s19  ;;  %1841 = vrot.lane.b32.xlu1 %v6604_v3, %s5835_s19 }
 0x3af   :  { %1872 = vst.msk [vmem:[#allocation3 + $0x4c] sm:$0xf] %vm701_vm1, %v6618_v23 }
 0x3b3   :  { %v1303_v59 = vpop.f32.mrf.mxu3 }
 0x3b4   :  { %1422 = vperm.xlu0 %5200, %v1303_v59  }
 0x3b6   :  { %1953 = vrot.lane.b32.xlu1 %v6606_v62, %s8397_s3  ;;  %1843 = vrot.lane.b32.xlu2 %v6616_v61, %s5835_s19 }
 0x3b9   :  { %v1838_v45 = vpop.permute.xlu2 %1837 }
 0x3ba   :  { %1849 = vst.msk [vmem:[#allocation3 + $0x30] sm:$0xf] %vm701_vm1, %v1838_v45 }
 0x3bb   :  { %v1305_v34 = vpop.f32.mrf.mxu3 }
 0x3bc   :  { %5205 = vset.pattern.permute.xlu0 %v8377_v16 }
 0x3bd   :  { %1354 = vperm.xlu0 %5205, %v1305_v34  }
 0x3be   :  { %1799 = vrot.lane.b32.xlu1 %v6616_v61, %s8397_s3  ;;  %1955 = vrot.lane.b32.xlu2 %v6618_v23, %s8397_s3 }
 0x3c1   :  { %v1950_v42 = vpop.permute.xlu2 %1949 }
 0x3c2   :  { %1961 = vst.msk [vmem:[#allocation3 + $0x60] sm:$0xf] %vm701_vm1, %v1950_v42 }
 0x3c3   :  { %v6639_v44 = vpop.f32.mrf.mxu3 }
 0x3c5   :  { %5210 = vset.pattern.permute.xlu0 %v8373_v41 }
 0x3c6   :  { %1374 = vperm.xlu1 %5198, %v1303_v59   ;;  %1350 = vperm.xlu2 %5197, %v1303_v59  }
 0x3c7   :  { %1474 = vperm.xlu0 %5210, %v1305_v34  }
 0x3cb   :  { %v6642_v55 = vpop.f32.mrf.mxu3 }
 0x3cc   :  { %4648 = vmatpush.xpose.msk.msra.mxu0 %vm305_vm2, %v6642_v55 }
 0x3ce   :  { %5199 = vset.pattern.permute.xlu1 %v8371_v17  ;;  %5201 = vset.pattern.permute.xlu2 %v8375_v35 }
 0x3cf   :  { %5213 = vset.pattern.permute.xlu0 %v8377_v16  ;;  %1398 = vperm.xlu1 %5199, %v1303_v59  }
 0x3d0   :  { %v1994_v56 = vpop.permute.xlu0 %1993  ;;  %v1794_v27 = vpop.permute.xlu1 %1793  ;;  %1446 = vperm.xlu2 %5201, %v1303_v59   ;;  %1358 = vperm.xlu0 %5213, %v6639_v44  }
 0x3d1   :  { %2005 = vst.msk [vmem:[#allocation3 + $0x70] sm:$0xf] %vm701_vm1, %v1994_v56  ;;  %4649 = vmatpush.xpose.msk.msra.mxu0 %vm305_vm2, %v6639_v44 }
 0x3d2   :  { %1805 = vst.msk [vmem:[#allocation3 + $0x20] sm:$0xf] %vm701_vm1, %v1794_v27 }
 0x3d5   :  { %4650 = vmatpush.xpose.msk.msra.mxu0 %vm305_vm2, %v1305_v34 }
 0x3d7   :  { %5203 = vset.pattern.permute.xlu1 %v8402_v50 }
 0x3d8   :  { %v1996_v13 = vpop.permute.xlu1 %1995  ;;  %v1840_v39 = vpop.permute.xlu0 %1839  ;;  %5202 = vset.pattern.permute.xlu2 %v8373_v41  ;;  %5218 = vset.pattern.permute.xlu0 %v8373_v41 }
 0x3d9   :  { %2006 = vst.msk [vmem:[#allocation3 + $0x74] sm:$0xf] %vm701_vm1, %v1996_v13  ;;  %1494 = vperm.xlu1 %5203, %v1303_v59   ;;  %1470 = vperm.xlu2 %5202, %v1303_v59  }
 0x3da   :  { %1850 = vst.msk [vmem:[#allocation3 + $0x34] sm:$0xf] %vm701_vm1, %v1840_v39  ;;  %1478 = vperm.xlu0 %5218, %v6639_v44   ;;  %4651 = vmatpush.xpose.msk.msra.mxu0 %vm305_vm2, %v1303_v59 }
 0x3dd   :  { %4652 = vmatmul.msk.f32.vlgmr.msra.gmra.mxu0 %vm305_vm2, %v6107_v47 }
 0x3e0   :  { %v1952_v33 = vpop.permute.xlu0 %1951  ;;  %v5075_v38 = vld [vmem:[#allocation3 + $0x70] sm:$0xff] }
 0x3e1   :  { %1962 = vst.msk [vmem:[#allocation3 + $0x64] sm:$0xf] %vm701_vm1, %v1952_v33  ;;  %5204 = vset.pattern.permute.xlu1 %v8403_v29  ;;  %5206 = vset.pattern.permute.xlu2 %v8404_v5  ;;  %v5067_v19 = vld [vmem:[#allocation3 + $0x30] sm:$0xff] }
 0x3e2   :  { %5223 = vset.pattern.permute.xlu0 %v8371_v17  ;;  %1518 = vperm.xlu1 %5204, %v1303_v59  }
 0x3e3   :  { %1378 = vperm.xlu2 %5206, %v1305_v34   ;;  %1410 = vperm.xlu0 %5223, %v6642_v55  }
 0x3e8   :  { %v5073_v18 = vld [vmem:[#allocation3 + $0x60] sm:$0xff] }
 0x3ea   :  { %5208 = vset.pattern.permute.xlu1 %v8405_v36 }
 0x3eb   :  { %5207 = vset.pattern.permute.xlu2 %v8371_v17  ;;  %1909 = vrot.lane.b32.xlu0 %v6606_v62, %s5842_s4  ;;  %v1514_v62 = vstv %s4659_s9 }
 0x3ec   :  { %1426 = vperm.xlu1 %5208, %v1305_v34   ;;  %1402 = vperm.xlu2 %5207, %v1305_v34  }
 0x3ed   :  { %5228 = vset.pattern.permute.xlu0 %v8403_v29 }
 0x3f3   :  { %1530 = vperm.xlu0 %5228, %v6642_v55  }
 0x3f4   :  { %5209 = vset.pattern.permute.xlu1 %v8375_v35  ;;  %5211 = vset.pattern.permute.xlu2 %v8402_v50 }
 0x3f5   :  { %1450 = vperm.xlu1 %5209, %v1305_v34   ;;  %1498 = vperm.xlu2 %5211, %v1305_v34  }
 0x3fb   :  { %1755 = vrot.lane.b32.xlu0 %v6616_v61, %s5842_s4  ;;  %v1490_v61 = vstv %s4658_s25 }
 0x3fc   :  { %5232 = vset.pattern.permute.xlu0 %v8405_v36 }
 0x3fd   :  { %5216 = vset.pattern.permute.xlu1 %v8405_v36  ;;  %5212 = vset.pattern.permute.xlu2 %v8403_v29 }
 0x3fe   :  { %1522 = vperm.xlu2 %5212, %v1305_v34   ;;  %1430 = vperm.xlu1 %5216, %v6639_v44  }
 0x403   :  { %1749 = vrot.lane.b32.xlu0 %v6574_v21, %s5842_s4 }
 0x406   :  { %5214 = vset.pattern.permute.xlu2 %v8404_v5  ;;  %5217 = vset.pattern.permute.xlu1 %v8375_v35 }
 0x407   :  { %1454 = vperm.xlu1 %5217, %v6639_v44   ;;  %1382 = vperm.xlu2 %5214, %v6639_v44  }
 0x408   :  { %v2000_v40 = vpop.permute.xlu2 %1999 }
 0x409   :  { %2008 = vst.msk [vmem:[#allocation3 + $0x7c] sm:$0xf] %vm701_vm1, %v2000_v40 }
 0x40f   :  { %5221 = vset.pattern.permute.xlu1 %v8377_v16  ;;  %5215 = vset.pattern.permute.xlu2 %v8371_v17 }
 0x410   :  { %1406 = vperm.xlu2 %5215, %v6639_v44   ;;  %1362 = vperm.xlu1 %5221, %v6642_v55   ;;  %v1844_v54 = vpop.permute.xlu2 %1843 }
 0x411   :  { %1852 = vst.msk [vmem:[#allocation3 + $0x3c] sm:$0xf] %vm701_vm1, %v1844_v54 }
 0x418   :  { %5219 = vset.pattern.permute.xlu2 %v8402_v50  ;;  %5222 = vset.pattern.permute.xlu1 %v8404_v5  ;;  %v1998_v60 = vpop.permute.xlu1 %1997  ;;  %v1798_v37 = vpop.permute.xlu0 %1797 }
 0x419   :  { %1502 = vperm.xlu2 %5219, %v6639_v44   ;;  %1386 = vperm.xlu1 %5222, %v6642_v55   ;;  %2007 = vst.msk [vmem:[#allocation3 + $0x78] sm:$0xf] %vm701_vm1, %v1998_v60  ;;  %v1956_v32 = vpop.permute.xlu2 %1955 }
 0x41a   :  { %1807 = vst.msk [vmem:[#allocation3 + $0x28] sm:$0xf] %vm701_vm1, %v1798_v37 }
 0x41b   :  { %1964 = vst.msk [vmem:[#allocation3 + $0x6c] sm:$0xf] %vm701_vm1, %v1956_v32 }
 0x420   :  { %v1842_v57 = vpop.permute.xlu1 %1841  ;;  %v5076_v46 = vld [vmem:[#allocation3 + $0x78] sm:$0xff] }
 0x421   :  { %5220 = vset.pattern.permute.xlu2 %v8403_v29  ;;  %5226 = vset.pattern.permute.xlu1 %v8373_v41  ;;  %1851 = vst.msk [vmem:[#allocation3 + $0x38] sm:$0xf] %vm701_vm1, %v1842_v57  ;;  %v6705_v31 = vpop.permute.xlu2 %1350 }
 0x422   :  { %1526 = vperm.xlu2 %5220, %v6639_v44   ;;  %1482 = vperm.xlu1 %5226, %v6642_v55  }
 0x423   :  { %2184 = vmatpush.bf16.msra.mxu2 %v5076_v46 }
 0x426   :  { %v6709_v1 = vpop.permute.xlu0 %1422 }
 0x427   :  { %2185 = vmatpush.bf16.msra.mxu2 %v5075_v38 }
 0x428   :  { %v1954_v63 = vpop.permute.xlu1 %1953  ;;  %v5068_v52 = vld [vmem:[#allocation3 + $0x38] sm:$0xff] }
 0x429   :  { %1963 = vst.msk [vmem:[#allocation3 + $0x68] sm:$0xf] %vm701_vm1, %v1954_v63  ;;  %2165 = vmatpush.bf16.msra.mxu1 %v5068_v52 }
 0x42a   :  { %5224 = vset.pattern.permute.xlu2 %v8405_v36  ;;  %5227 = vset.pattern.permute.xlu1 %v8402_v50  ;;  %v6714_v20 = vpop.permute.xlu2 %1446 }
 0x42b   :  { %1434 = vperm.xlu2 %5224, %v6642_v55   ;;  %1506 = vperm.xlu1 %5227, %v6642_v55  }
 0x42d   :  { %2166 = vmatpush.bf16.msra.mxu1 %v5067_v19 }
 0x42f   :  { %v6718_v15 = vpop.permute.xlu0 %1354 }
 0x430   :  { %v1800_v49 = vpop.permute.xlu1 %1799  ;;  %v5074_v22 = vld [vmem:[#allocation3 + $0x68] sm:$0xff] }
 0x431   :  { %1808 = vst.msk [vmem:[#allocation3 + $0x2c] sm:$0xf] %vm701_vm1, %v1800_v49  ;;  %2186 = vmatpush.bf16.msra.mxu2 %v5074_v22 }
 0x433   :  { %5225 = vset.pattern.permute.xlu2 %v8375_v35  ;;  %1911 = vrot.lane.b32.xlu1 %v6618_v23, %s5842_s4  ;;  %v6724_v10 = vpop.permute.xlu2 %1470 }
 0x434   :  { %1458 = vperm.xlu2 %5225, %v6642_v55   ;;  %5230 = vset.pattern.permute.xlu1 %v8404_v5 }
 0x435   :  { %2187 = vmatpush.bf16.msra.mxu2 %v5073_v18 }
 0x438   :  { %v1375_v6 = vpop.permute.xlu1 %1374  ;;  %v5066_v8 = vld [vmem:[#allocation3 + $0x28] sm:$0xff] }
 0x439   :  { %v6728_v48 = vpop.permute.xlu0 %1474  ;;  %2167 = vmatpush.bf16.msra.mxu1 %v5066_v8 }
 0x43b   :  { %1905 = vrot.lane.b32.xlu1 %v6576_v58, %s5842_s4 }
 0x43c   :  { %1795 = vrot.lane.b32.xlu2 %v6588_v30, %s8397_s3 }
 0x43d   :  { %v1379_v51 = vpop.permute.xlu2 %1378  ;;  %5229 = vset.pattern.permute.xlu2 %v8377_v16 }
 0x441   :  { %v1399_v0 = vpop.permute.xlu1 %1398 }
 0x442   :  { %v6735_v53 = vpop.permute.xlu0 %1358 }
 0x443   :  { %1751 = vrot.lane.b32.xlu1 %v6588_v30, %s5842_s4  ;;  %v1346_v30 = vstv %s1345_s26  ;;  %s4786_s26 = sld [smem:[#allocation14 + $0x6]] }
 0x444   :  { %1753 = vrot.lane.b32.xlu2 %v6604_v3, %s5842_s4  ;;  %v1418_v3 = vstv %s4655_s30 }
 0x446   :  { %v1403_v7 = vpop.permute.xlu2 %1402 }
 0x44b   :  { %v1495_v28 = vpop.permute.xlu1 %1494 }
 0x44c   :  { %v6741_v4 = vpop.permute.xlu0 %1478  ;;  %1907 = vrot.lane.b32.xlu2 %v6590_v26, %s5842_s4 }
 0x44f   :  { %v1499_v21 = vpop.permute.xlu2 %1498 }
 0x454   :  { %v1519_v58 = vpop.permute.xlu1 %1518 }
 0x455   :  { %v6745_v24 = vpop.permute.xlu0 %1410 }
 0x458   :  { %v1523_v2 = vpop.permute.xlu2 %1522 }
 0x45a   :  { %v1342_v26 = vpop.f32.mrf.mxu0 }
 0x45b   :  { %v1347_v23 = vadd.f32 %v1346_v30, %v1342_v26  ;;  %v1371_v59 = vadd.f32 %v1370_v25, %v1342_v26  ;;  %v1395_v45 = vadd.f32 %v1394_v9, %v1342_v26  ;;  %v1419_v34 = vadd.f32 %v1418_v3, %v1342_v26 }
 0x45c   :  { %v1515_v42 = vadd.f32 %v1514_v62, %v1342_v26  ;;  %v1443_v44 = vadd.f32 %v1442_v43, %v1342_v26  ;;  %v1467_v55 = vadd.f32 %v1466_v12, %v1342_v26  ;;  %v1491_v56 = vadd.f32 %v1490_v61, %v1342_v26 }
 0x45d   :  { %v1910_v27 = vpop.permute.xlu0 %1909  ;;  %v6747_v13 = vperm.slane %v1347_v23, 0  ;;  %v6749_v39 = vperm.slane %v1371_v59, 1  ;;  %v6751_v33 = vperm.slane %v1395_v45, 2  ;;  %v6753_v40 = vperm.slane %v1419_v34, 3 }
 0x45e   :  { %1919 = vst.msk [vmem:[#allocation3 + $0x58] sm:$0xf] %vm701_vm1, %v1910_v27  ;;  %v1427_v54 = vpop.permute.xlu1 %1426  ;;  %v6756_v60 = vperm.slane %v1443_v44, 4  ;;  %v6763_v57 = vperm.slane %v1515_v42, 7  ;;  %v6765_v46 = vperm.slane %v1467_v55, 5  ;;  %v6776_v19 = vperm.slane %v1491_v56, 6 }
 0x45f   :  { %v1365_v37 = vsub.f32 %v6747_v13, %v6705_v31  ;;  %v6761_v32 = vsub.f32 %v6749_v39, %v1375_v6  ;;  %v6768_v38 = vsub.f32 %v6751_v33, %v1399_v0  ;;  %v6772_v63 = vsub.f32 %v6753_v40, %v6709_v1 }
 0x460   :  { %v6780_v31 = vsub.f32 %v6756_v60, %v6714_v20  ;;  %v6786_v18 = vsub.f32 %v6763_v57, %v1519_v58  ;;  %v6790_v1 = vsub.f32 %v6765_v46, %v6724_v10  ;;  %v1366_v6 = vsub.f32 %v6747_v13, %v6718_v15 }
 0x461   :  { %v6774_v52 = vpop.permute.xlu2 %1382  ;;  %v1537_v49 = vmax.f32 %v1365_v37, %v6761_v32  ;;  %v1541_v22 = vmax.f32 %v6768_v38, %v6772_v63  ;;  %v1390_v8 = vsub.f32 %v6749_v39, %v1379_v51  ;;  %v1414_v20 = vsub.f32 %v6751_v33, %v1403_v7 }
 0x462   :  { %v1438_v0 = vsub.f32 %v6753_v40, %v1427_v54  ;;  %v1545_v25 = vmax.f32 %v6780_v31, %v6790_v1  ;;  %v6802_v58 = vsub.f32 %v6776_v19, %v1495_v28  ;;  %v1510_v10 = vsub.f32 %v6776_v19, %v1499_v21 }
 0x463   :  { %v1534_v9 = vsub.f32 %v6763_v57, %v1523_v2  ;;  %v1553_v3 = vmax.f32 %v1537_v49, %v1541_v22  ;;  %v1538_v7 = vmax.f32 %v1366_v6, %v1390_v8  ;;  %v1486_v12 = vsub.f32 %v6765_v46, %v6728_v48 }
 0x464   :  { %v1549_v51 = vmax.f32 %v6802_v58, %v6786_v18  ;;  %v1542_v62 = vmax.f32 %v1414_v20, %v1438_v0 }
 0x465   :  { %v6797_v30 = vpop.permute.xlu0 %1530  ;;  %v1550_v28 = vmax.f32 %v1510_v10, %v1534_v9 }
 0x466   :  { %v1557_v61 = vmax.f32 %v1545_v25, %v1549_v51  ;;  %v1554_v21 = vmax.f32 %v1538_v7, %v1542_v62 }
 0x467   :  { %v1451_v15 = vpop.permute.xlu1 %1450 }
 0x468   :  { %v1462_v43 = vsub.f32 %v6756_v60, %v1451_v15  ;;  %v6811_v59 = vmax.f32 %v1553_v3, %v1557_v61 }
 0x46a   :  { %v1546_v26 = vmax.f32 %v1462_v43, %v1486_v12  ;;  %v1407_v23 = vpop.permute.xlu2 %1406  ;;  %v1565_v34 = vsub.f32 %v1365_v37, %v6811_v59 }
 0x46c   :  { %v1558_v2 = vmax.f32 %v1546_v26, %v1550_v28  ;;  %v1569_v44 = vmul.f32 1.442695, %v1565_v34  ;;  %v1577_v26 = vsub.f32 %v6761_v32, %v6811_v59  ;;  %v6840_v34 = vsub.f32 %v6751_v33, %v1407_v23 }
 0x46d   :  { %v1756_v45 = vpop.permute.xlu0 %1755 }
 0x46e   :  { %v1562_v42 = vmax.f32 %v1554_v21, %v1558_v2  ;;  %1764 = vst.msk [vmem:[#allocation3 + $0x1c] sm:$0xf] %vm701_vm1, %v1756_v45  ;;  %5379 = vpow2.f32 %v1569_v44  ;;  %v6833_v21 = vsub.f32 %v6747_v13, %v6735_v53  ;;  %v1391_v53 = vsub.f32 %v6749_v39, %v6774_v52 }
 0x470   :  { %v1566_v55 = vsub.f32 %v1366_v6, %v1562_v42  ;;  %v1578_v56 = vsub.f32 %v1390_v8, %v1562_v42  ;;  %v1590_v27 = vsub.f32 %v1414_v20, %v1562_v42  ;;  %v1602_v54 = vsub.f32 %v1438_v0, %v1562_v42  ;;  %v1431_v48 = vpop.permute.xlu1 %1430 }
 0x471   :  { %v1614_v49 = vsub.f32 %v1462_v43, %v1562_v42  ;;  %v1626_v22 = vsub.f32 %v1486_v12, %v1562_v42  ;;  %v1638_v51 = vsub.f32 %v1510_v10, %v1562_v42  ;;  %v1650_v62 = vsub.f32 %v1534_v9, %v1562_v42 }
 0x472   :  { %v1571_v25 = vmul.f32 1.442695, %v1566_v55  ;;  %v1583_v15 = vmul.f32 1.442695, %v1578_v56  ;;  %v1595_v3 = vmul.f32 1.442695, %v1590_v27  ;;  %v1589_v20 = vsub.f32 %v6768_v38, %v6811_v59 }
 0x473   :  { %v1607_v7 = vmul.f32 1.442695, %v1602_v54  ;;  %v1503_v61 = vpop.permute.xlu2 %1502  ;;  %v1619_v37 = vmul.f32 1.442695, %v1614_v49  ;;  %v1631_v6 = vmul.f32 1.442695, %v1626_v22  ;;  %v1601_v10 = vsub.f32 %v6772_v63, %v6811_v59 }
 0x474   :  { %5381 = vpow2.f32 %v1571_v25  ;;  %v1643_v0 = vmul.f32 1.442695, %v1638_v51  ;;  %v1655_v9 = vmul.f32 1.442695, %v1650_v62  ;;  %v1613_v43 = vsub.f32 %v6780_v31, %v6811_v59  ;;  %v6829_v28 = vpop.eup %5379 }
 0x475   :  { %5383 = vpow2.f32 %v1583_v15  ;;  %v1750_v8 = vpop.permute.xlu0 %1749  ;;  %v6825_v32 = vsub.f32 %v6753_v40, %v1431_v48  ;;  %v1581_v12 = vmul.f32 1.442695, %v1577_v26  ;;  %v1625_v38 = vsub.f32 %v6790_v1, %v6811_v59 }
 0x476   :  { %5385 = vpow2.f32 %v1595_v3  ;;  %1761 = vst.msk [vmem:[#allocation3 + $0x10] sm:$0xf] %vm701_vm1, %v1750_v8  ;;  %v1593_v2 = vmul.f32 1.442695, %v1589_v20  ;;  %v1637_v31 = vsub.f32 %v6802_v58, %v6811_v59  ;;  %v1605_v42 = vmul.f32 1.442695, %v1601_v10 }
 0x477   :  { %5387 = vpow2.f32 %v1607_v7  ;;  %v1649_v1 = vsub.f32 %v6786_v18, %v6811_v59  ;;  %v1617_v58 = vmul.f32 1.442695, %v1613_v43  ;;  %v1543_v23 = vmax.f32 %v6840_v34, %v6825_v32 }
 0x478   :  { %5389 = vpow2.f32 %v1619_v37  ;;  %v6857_v27 = vsub.f32 %v6765_v46, %v6741_v4  ;;  %v1629_v59 = vmul.f32 1.442695, %v1625_v38  ;;  %v6862_v52 = vsub.f32 %v6776_v19, %v1503_v61 }
 0x479   :  { %5391 = vpow2.f32 %v1631_v6  ;;  %v1455_v63 = vpop.permute.xlu1 %1454  ;;  %v1641_v49 = vmul.f32 1.442695, %v1637_v31  ;;  %v1653_v15 = vmul.f32 1.442695, %v1649_v1  ;;  %v1539_v51 = vmax.f32 %v6833_v21, %v1391_v53 }
 0x47a   :  { %v6837_v45 = vpop.eup %5381  ;;  %5393 = vpow2.f32 %v1643_v0  ;;  %v6849_v55 = vsub.f32 %v6756_v60, %v1455_v63 }
 0x47b   :  { %v6844_v44 = vpop.eup %5383  ;;  %5395 = vpow2.f32 %v1655_v9  ;;  %v1555_v6 = vmax.f32 %v1539_v51, %v1543_v23 }
 0x47c   :  { %v6851_v56 = vpop.eup %5385  ;;  %v1527_v18 = vpop.permute.xlu2 %1526  ;;  %5397 = vpow2.f32 %v1581_v12  ;;  %v1662_v25 = vadd.f32 %v6844_v44, %v6837_v45  ;;  %v1547_v7 = vmax.f32 %v6849_v55, %v6857_v27 }
 0x47d   :  { %v6859_v54 = vpop.eup %5387  ;;  %v1535_v48 = vsub.f32 %v6763_v57, %v1527_v18  ;;  %5399 = vpow2.f32 %v1593_v2 }
 0x47e   :  { %v6865_v22 = vpop.eup %5389  ;;  %v1666_v4 = vadd.f32 %v6859_v54, %v6851_v56  ;;  %5401 = vpow2.f32 %v1605_v42 }
 0x47f   :  { %v6871_v3 = vpop.eup %5391  ;;  %v1551_v62 = vmax.f32 %v6862_v52, %v1535_v48  ;;  %5403 = vpow2.f32 %v1617_v58 }
 0x480   :  { %v6877_v61 = vpop.eup %5393  ;;  %v1670_v37 = vadd.f32 %v6871_v3, %v6865_v22  ;;  %5405 = vpow2.f32 %v1629_v59  ;;  %v1678_v10 = vadd.f32 %v1666_v4, %v1662_v25 }
 0x481   :  { %v6881_v26 = vpop.eup %5395  ;;  %v1559_v8 = vmax.f32 %v1547_v7, %v1551_v62  ;;  %5407 = vpow2.f32 %v1641_v49 }
 0x482   :  { %v6883_v20 = vpop.eup %5397  ;;  %v1674_v0 = vadd.f32 %v6881_v26, %v6877_v61  ;;  %v6887_v9 = vpop.permute.xlu1 %1362  ;;  %5409 = vpow2.f32 %v1653_v15 }
 0x483   :  { %v6889_v43 = vpop.eup %5399  ;;  %v1563_v12 = vmax.f32 %v1555_v6, %v1559_v8  ;;  %v1661_v2 = vadd.f32 %v6883_v20, %v6829_v28 }
 0x484   :  { %v6891_v38 = vpop.eup %5401  ;;  %v1682_v63 = vadd.f32 %v1674_v0, %v1670_v37 }
 0x485   :  { %v6895_v31 = vpop.eup %5403  ;;  %v1651_v42 = vsub.f32 %v1535_v48, %v1563_v12  ;;  %v6897_v1 = vpop.permute.xlu2 %1434  ;;  %v1665_v58 = vadd.f32 %v6891_v38, %v6889_v43  ;;  %v1567_v23 = vsub.f32 %v6833_v21, %v1563_v12  ;;  %v1579_v18 = vsub.f32 %v1391_v53, %v1563_v12 }
 0x486   :  { %v6902_v59 = vpop.eup %5405  ;;  %v1686_v49 = vadd.f32 %v1682_v63, %v1678_v10  ;;  %v1591_v25 = vsub.f32 %v6840_v34, %v1563_v12  ;;  %v1603_v4 = vsub.f32 %v6825_v32, %v1563_v12  ;;  %v1615_v0 = vsub.f32 %v6849_v55, %v1563_v12  ;;  %v5595_v55 = vld [vmem:[#allocation5 + $0x8] sm:$0xff] }
 0x487   :  { %v5408_v15 = vpop.eup %5407  ;;  %v1657_v51 = vmul.f32 1.442695, %v1651_v42  ;;  %v1669_v48 = vadd.f32 %v6902_v59, %v6895_v31  ;;  %v1573_v7 = vmul.f32 1.442695, %v1567_v23  ;;  %v1677_v37 = vadd.f32 %v1665_v58, %v1661_v2 }
 0x488   :  { %v5410_v62 = vpop.eup %5409  ;;  %5411 = vrcp.f32 %v1686_v49  ;;  %v1585_v6 = vmul.f32 1.442695, %v1579_v18  ;;  %v1597_v8 = vmul.f32 1.442695, %v1591_v25  ;;  %v1609_v53 = vmul.f32 1.442695, %v1603_v4 }
 0x489   :  { %5413 = vpow2.f32 %v1657_v51  ;;  %v1673_v21 = vadd.f32 %v5410_v62, %v5408_v15  ;;  %v1627_v34 = vsub.f32 %v6857_v27, %v1563_v12  ;;  %v1639_v32 = vsub.f32 %v6862_v52, %v1563_v12 }
 0x48a   :  { %5415 = vpow2.f32 %v1573_v7  ;;  %v1621_v42 = vmul.f32 1.442695, %v1615_v0 }
 0x48b   :  { %v1681_v10 = vadd.f32 %v1673_v21, %v1669_v48  ;;  %v1387_v63 = vpop.permute.xlu1 %1386  ;;  %5417 = vpow2.f32 %v1585_v6  ;;  %v1633_v23 = vmul.f32 1.442695, %v1627_v34  ;;  %v1645_v18 = vmul.f32 1.442695, %v1639_v32  ;;  %v5596_v32 = vld [vmem:[#allocation5] sm:$0xff] }
 0x48c   :  { %5419 = vpow2.f32 %v1597_v8 }
 0x48d   :  { %v1685_v49 = vadd.f32 %v1681_v10, %v1677_v37  ;;  %5421 = vpow2.f32 %v1609_v53 }
 0x48e   :  { %v5412_v2 = vpop.eup %5411  ;;  %v1459_v58 = vpop.permute.xlu2 %1458  ;;  %5423 = vpow2.f32 %v1621_v42 }
 0x48f   :  { %v6911_v25 = vpop.eup %5413  ;;  %v6913_v4 = vmul.f32 %v5595_v55, %v5412_v2  ;;  %5425 = vrcp.f32 %v1685_v49 }
 0x490   :  { %v6915_v27 = vpop.eup %5415  ;;  %5427 = vpow2.f32 %v1633_v23 }
 0x491   :  { %v6917_v52 = vpop.eup %5417  ;;  %v1854_v12 = vmul.f32 %v6865_v22, %v6913_v4  ;;  %v1874_v51 = vmul.f32 %v6871_v3, %v6913_v4  ;;  %5429 = vpow2.f32 %v1645_v18  ;;  %v1698_v0 = vmul.f32 %v6837_v45, %v6913_v4 }
 0x492   :  { %v6923_v48 = vpop.eup %5419  ;;  %v1663_v22 = vadd.f32 %v6917_v52, %v6915_v27 }
 0x493   :  { %v6925_v7 = vpop.eup %5421  ;;  %v1858_v37 = vpack.c.bf16 %v1854_v12, %v1854_v12  ;;  %v1878_v6 = vpack.c.bf16 %v1874_v51, %v1874_v51  ;;  %v1702_v49 = vpack.c.bf16 %v1698_v0, %v1698_v0  ;;  %v6952_v12 = vsub.f32 %v6747_v13, %v6887_v9 }
 0x494   :  { %v6927_v8 = vpop.eup %5423  ;;  %v1483_v21 = vpop.permute.xlu1 %1482  ;;  %v1667_v3 = vadd.f32 %v6925_v7, %v6923_v48  ;;  %v1966_v13 = vmul.f32 %v6881_v26, %v6913_v4  ;;  %v1416_v26 = vsub.f32 %v6751_v33, %v6745_v24  ;;  %v1718_v24 = vmul.f32 %v6844_v44, %v6913_v4 }
 0x495   :  { %v5426_v53 = vpop.eup %5425  ;;  %1862 = vst.msk [vmem:[#allocation2 + $0xc] sm:$0xf] %vm701_vm1, %v1858_v37  ;;  %1887 = vrot.lane.b32.xlu0 %v1878_v6, %s5835_s19 }
 0x496   :  { %v6937_v34 = vpop.eup %5427  ;;  %v6939_v10 = vmul.f32 %v5596_v32, %v5426_v53  ;;  %v1796_v42 = vpop.permute.xlu2 %1795  ;;  %v1679_v37 = vadd.f32 %v1667_v3, %v1663_v22  ;;  %1706 = vst.msk [vmem:[#allocation2 + $0x8] sm:$0xf] %vm701_vm1, %v1702_v49 }
 0x497   :  { %1806 = vst.msk [vmem:[#allocation3 + $0x24] sm:$0xf] %vm701_vm1, %v1796_v42  ;;  %v1671_v23 = vadd.f32 %v6937_v34, %v6927_v8  ;;  %v6944_v2 = vpop.eup %5429 }
 0x498   :  { %v1921_v18 = vmul.f32 %v5408_v15, %v6939_v10  ;;  %v1873_v55 = vmul.f32 %v6902_v59, %v6939_v10  ;;  %v1965_v45 = vmul.f32 %v5410_v62, %v6939_v10  ;;  %v1675_v51 = vadd.f32 %v6944_v2, %v6911_v25 }
 0x499   :  { %v1853_v6 = vmul.f32 %v6895_v31, %v6939_v10  ;;  %v6961_v15 = vsub.f32 %v6753_v40, %v6897_v1  ;;  %v1392_v62 = vsub.f32 %v6749_v39, %v1387_v63  ;;  %v1922_v31 = vmul.f32 %v6877_v61, %v6913_v4 }
 0x49a   :  { %v1925_v59 = vpack.c.bf16 %v1921_v18, %v1921_v18  ;;  %v1877_v53 = vpack.c.bf16 %v1873_v55, %v1873_v55  ;;  %v1969_v9 = vpack.c.bf16 %v1965_v45, %v1965_v45  ;;  %v1683_v0 = vadd.f32 %v1675_v51, %v1671_v23 }
 0x49b   :  { %v1857_v32 = vpack.c.bf16 %v1853_v6, %v1853_v6  ;;  %v6971_v40 = vsub.f32 %v6765_v46, %v1483_v21  ;;  %v1697_v1 = vmul.f32 %v6829_v28, %v6939_v10  ;;  %v1536_v39 = vsub.f32 %v6763_v57, %v6797_v30 }
 0x49c   :  { %1933 = vrot.lane.b32.xlu1 %v1925_v59, %s8397_s3  ;;  %1885 = vrot.lane.b32.xlu2 %v1877_v53, %s5835_s19  ;;  %v1687_v22 = vadd.f32 %v1683_v0, %v1679_v37  ;;  %v1540_v61 = vmax.f32 %v6952_v12, %v1392_v62  ;;  %v1464_v46 = vsub.f32 %v6756_v60, %v1459_v58 }
 0x49d   :  { %1977 = vrot.lane.b32.xlu0 %v1969_v9, %s5842_s4  ;;  %v1507_v63 = vpop.permute.xlu1 %1506  ;;  %1861 = vst.msk [vmem:[#allocation2 + $0x4] sm:$0xf] %vm701_vm1, %v1857_v32  ;;  %v1701_v42 = vpack.c.bf16 %v1697_v1, %v1697_v1  ;;  %v1544_v57 = vmax.f32 %v1416_v26, %v6961_v15  ;;  %v1970_v30 = vpack.c.bf16 %v1966_v13, %v1966_v13 }
 0x49e   :  { %v1512_v21 = vsub.f32 %v6776_v19, %v1507_v63  ;;  %v1754_v3 = vpop.permute.xlu2 %1753  ;;  %v5065_v28 = vld [vmem:[#allocation3 + $0x20] sm:$0xff]  ;;  %v1926_v33 = vpack.c.bf16 %v1922_v31, %v1922_v31  ;;  %v1548_v23 = vmax.f32 %v1464_v46, %v6971_v40  ;;  %5431 = vrcp.f32 %v1687_v22 }
 0x49f   :  { %1763 = vst.msk [vmem:[#allocation3 + $0x18] sm:$0xf] %vm701_vm1, %v1754_v3  ;;  %2168 = vmatpush.bf16.msra.mxu1 %v5065_v28  ;;  %v1556_v60 = vmax.f32 %v1540_v61, %v1544_v57  ;;  %v1722_v58 = vpack.c.bf16 %v1718_v24, %v1718_v24  ;;  %v1765_v55 = vmul.f32 %v6889_v43, %v6939_v10 }
 0x4a0   :  { %v1552_v49 = vmax.f32 %v1512_v21, %v1536_v39  ;;  %1705 = vst.msk [vmem:[#allocation2] sm:$0xf] %vm701_vm1, %v1701_v42  ;;  %v1717_v51 = vmul.f32 %v6883_v20, %v6939_v10  ;;  %v1809_v43 = vmul.f32 %v6891_v38, %v6939_v10  ;;  %v1810_v57 = vmul.f32 %v6859_v54, %v6913_v4 }
 0x4a2   :  { %v1560_v19 = vmax.f32 %v1548_v23, %v1552_v49  ;;  %v1721_v3 = vpack.c.bf16 %v1717_v51, %v1717_v51  ;;  %v1813_v38 = vpack.c.bf16 %v1809_v43, %v1809_v43 }
 0x4a4   :  { %1979 = vrot.lane.b32.xlu1 %v1970_v30, %s5842_s4  ;;  %1935 = vrot.lane.b32.xlu2 %v1926_v33, %s8397_s3  ;;  %v1564_v18 = vmax.f32 %v1556_v60, %v1560_v19  ;;  %v5432_v45 = vpop.eup %5431  ;;  %v1766_v30 = vmul.f32 %v6851_v56, %v6913_v4 }
 0x4a5   :  { %1731 = vrot.lane.b32.xlu0 %v1722_v58, %s5835_s19  ;;  %v1912_v44 = vpop.permute.xlu1 %1911 }
 0x4a6   :  { %v1640_v37 = vsub.f32 %v1512_v21, %v1564_v18  ;;  %v1652_v6 = vsub.f32 %v1536_v39, %v1564_v18  ;;  %1920 = vst.msk [vmem:[#allocation3 + $0x5c] sm:$0xf] %vm701_vm1, %v1912_v44  ;;  %v1908_v59 = vpop.permute.xlu2 %1907  ;;  %v5064_v53 = vld [vmem:[#allocation3 + $0x18] sm:$0xff]  ;;  %v1568_v13 = vsub.f32 %v6952_v12, %v1564_v18  ;;  %v1580_v9 = vsub.f32 %v1392_v62, %v1564_v18 }
 0x4a7   :  { %1918 = vst.msk [vmem:[#allocation3 + $0x54] sm:$0xf] %vm701_vm1, %v1908_v59  ;;  %v1592_v0 = vsub.f32 %v1416_v26, %v1564_v18  ;;  %v1604_v32 = vsub.f32 %v6961_v15, %v1564_v18  ;;  %2169 = vmatpush.bf16.msra.mxu1 %v5064_v53  ;;  %v1616_v20 = vsub.f32 %v1464_v46, %v1564_v18  ;;  %v5597_v39 = vld [vmem:[#allocation5 + $0x10] sm:$0xff] }
 0x4a8   :  { %v1647_v31 = vmul.f32 1.442695, %v1640_v37  ;;  %v1659_v1 = vmul.f32 1.442695, %v1652_v6  ;;  %v7003_v63 = vmul.f32 %v5597_v39, %v5432_v45  ;;  %v1575_v22 = vmul.f32 1.442695, %v1568_v13 }
 0x4a9   :  { %v1587_v61 = vmul.f32 1.442695, %v1580_v9  ;;  %v1628_v12 = vsub.f32 %v6971_v40, %v1564_v18  ;;  %v1769_v21 = vpack.c.bf16 %v1765_v55, %v1765_v55  ;;  %v1599_v28 = vmul.f32 1.442695, %v1592_v0  ;;  %v5070_v13 = vld [vmem:[#allocation3 + $0x48] sm:$0xff] }
 0x4aa   :  { %5433 = vpow2.f32 %v1647_v31  ;;  %v1611_v10 = vmul.f32 1.442695, %v1604_v32  ;;  %v1623_v15 = vmul.f32 1.442695, %v1616_v20  ;;  %v1855_v40 = vmul.f32 %v6927_v8, %v7003_v63  ;;  %v5062_v31 = vld [vmem:[#allocation3 + $0x8] sm:$0xff]  ;;  %v5598_v20 = vld [vmem:[#allocation5 + $0x18] sm:$0xff] }
 0x4ab   :  { %5435 = vpow2.f32 %v1659_v1  ;;  %v1635_v46 = vmul.f32 1.442695, %v1628_v12  ;;  %v1699_v42 = vmul.f32 %v6915_v27, %v7003_v63  ;;  %v1814_v8 = vpack.c.bf16 %v1810_v57, %v1810_v57 }
 0x4ac   :  { %1777 = vrot.lane.b32.xlu1 %v1769_v21, %s8397_s3  ;;  %1729 = vrot.lane.b32.xlu2 %v1721_v3, %s5835_s19  ;;  %5437 = vpow2.f32 %v1575_v22  ;;  %v1859_v24 = vpack.c.bf16 %v1855_v40, %v1855_v40  ;;  %v1770_v60 = vpack.c.bf16 %v1766_v30, %v1766_v30  ;;  %v1923_v45 = vmul.f32 %v6944_v2, %v7003_v63  ;;  %v5061_v22 = vld [vmem:[#allocation3] sm:$0xff] }
 0x4ad   :  { %1821 = vrot.lane.b32.xlu0 %v1813_v38, %s5842_s4  ;;  %v1906_v62 = vpop.permute.xlu1 %1905  ;;  %v5072_v26 = vld [vmem:[#allocation3 + $0x58] sm:$0xff]  ;;  %5439 = vpow2.f32 %v1587_v61  ;;  %v1703_v33 = vpack.c.bf16 %v1699_v42, %v1699_v42  ;;  %v1875_v51 = vmul.f32 %v6937_v34, %v7003_v63  ;;  %v5069_v34 = vld [vmem:[#allocation3 + $0x40] sm:$0xff]  ;;  %v1767_v40 = vmul.f32 %v6923_v48, %v7003_v63 }
 0x4ae   :  { %1917 = vst.msk [vmem:[#allocation3 + $0x50] sm:$0xf] %vm701_vm1, %v1906_v62  ;;  %5441 = vpow2.f32 %v1599_v28  ;;  %2188 = vmatpush.bf16.msra.mxu2 %v5072_v26  ;;  %v1927_v43 = vpack.c.bf16 %v1923_v45, %v1923_v45  ;;  %v1719_v42 = vmul.f32 %v6917_v52, %v7003_v63  ;;  %v1811_v52 = vmul.f32 %v6925_v7, %v7003_v63 }
 0x4af   :  { %5443 = vpow2.f32 %v1611_v10  ;;  %1863 = vst.msk [vmem:[#allocation2 + $0x14] sm:$0xf] %vm701_vm1, %v1859_v24  ;;  %v1879_v9 = vpack.c.bf16 %v1875_v51, %v1875_v51  ;;  %v1771_v30 = vpack.c.bf16 %v1767_v40, %v1767_v40  ;;  %v4760_v40 = vld [vmem:[%s8339_s11 + $0x18] sm:$0xf] }
 0x4b0   :  { %v5434_v23 = vpop.eup %5433  ;;  %5445 = vpow2.f32 %v1623_v15  ;;  %1707 = vst.msk [vmem:[#allocation2 + $0x10] sm:$0xf] %vm701_vm1, %v1703_v33  ;;  %v1723_v24 = vpack.c.bf16 %v1719_v42, %v1719_v42 }
 0x4b1   :  { %v5436_v49 = vpop.eup %5435  ;;  %5447 = vpow2.f32 %v1635_v46  ;;  %v1967_v46 = vmul.f32 %v6911_v25, %v7003_v63  ;;  %v5077_v63 = vld [vmem:[#allocation12] sm:$0xff] }
 0x4b2   :  { %v5438_v27 = vpop.eup %5437  ;;  %v1676_v44 = vadd.f32 %v5436_v49, %v5434_v23  ;;  %2222 = vmatpush.bf16.msrb.mxu0 %v5077_v63 }
 0x4b3   :  { %v5440_v54 = vpop.eup %5439  ;;  %v1971_v57 = vpack.c.bf16 %v1967_v46, %v1967_v46  ;;  %v5080_v46 = vld [vmem:[%s8339_s11 + $0x10] sm:$0xf0] }
 0x4b4   :  { %v7020_v56 = vpop.eup %5441  ;;  %1823 = vrot.lane.b32.xlu1 %v1814_v8, %s5842_s4  ;;  %1779 = vrot.lane.b32.xlu2 %v1770_v60, %s8397_s3  ;;  %v1664_v4 = vadd.f32 %v5440_v54, %v5438_v27  ;;  %v1815_v8 = vpack.c.bf16 %v1811_v52, %v1811_v52 }
 0x4b5   :  { %v5444_v19 = vpop.eup %5443  ;;  %v1752_v58 = vpop.permute.xlu1 %1751  ;;  %v5071_v18 = vld [vmem:[#allocation3 + $0x50] sm:$0xff]  ;;  %4744 = vmatmul.msk.bf16.vlgmr.msrb.gmra.mxu0 %vm241_vm0, %v6021_v11 }
 0x4b6   :  { %v5446_v55 = vpop.eup %5445  ;;  %1762 = vst.msk [vmem:[#allocation3 + $0x14] sm:$0xf] %vm701_vm1, %v1752_v58  ;;  %v1668_v37 = vadd.f32 %v5444_v19, %v7020_v56  ;;  %2189 = vmatpush.bf16.msra.mxu2 %v5071_v18 }
 0x4b7   :  { %v5448_v6 = vpop.eup %5447 }
 0x4b8   :  { %v1672_v59 = vadd.f32 %v5448_v6, %v5446_v55  ;;  %v1680_v53 = vadd.f32 %v1668_v37, %v1664_v4 }
 0x4ba   :  { %v1684_v0 = vadd.f32 %v1676_v44, %v1672_v59  ;;  %2190 = vmatpush.bf16.msra.mxu2 %v5070_v13 }
 0x4bc   :  { %1937 = vrot.lane.b32.xlu1 %v1927_v43, %s8397_s3  ;;  %1889 = vrot.lane.b32.xlu2 %v1879_v9, %s5835_s19  ;;  %v1688_v2 = vadd.f32 %v1684_v0, %v1680_v53 }
 0x4bd   :  { %v5063_v32 = vld [vmem:[#allocation3 + $0x10] sm:$0xff] }
 0x4be   :  { %5449 = vrcp.f32 %v1688_v2  ;;  %2170 = vmatpush.bf16.msra.mxu1 %v5063_v32  ;;  %2191 = vmatpush.bf16.msra.mxu2 %v5069_v34 }
 0x4c2   :  { %2171 = vmatpush.bf16.msra.mxu1 %v5062_v31 }
 0x4c4   :  { %v5450_v1 = vpop.eup %5449 }
 0x4c5   :  { %v1696_v39 = vmul.f32 %v5598_v20, %v5450_v1  ;;  %4745 = vmatmul.msk.bf16.gmra.mxu0 %vm241_vm0, %v6035_v14 }
 0x4c6   :  { %2172 = vmatpush.bf16.msra.mxu1 %v5061_v22 }
 0x4c7   :  { %v1876_v61 = vmul.f32 %v5448_v6, %v1696_v39  ;;  %v1968_v12 = vmul.f32 %v5436_v49, %v1696_v39  ;;  %v1924_v21 = vmul.f32 %v5434_v23, %v1696_v39  ;;  %v1856_v3 = vmul.f32 %v5446_v55, %v1696_v39 }
 0x4c8   :  { %v1700_v28 = vmul.f32 %v5438_v27, %v1696_v39  ;;  %v1720_v33 = vmul.f32 %v5440_v54, %v1696_v39  ;;  %v1812_v23 = vmul.f32 %v5444_v19, %v1696_v39  ;;  %v1768_v25 = vmul.f32 %v7020_v56, %v1696_v39 }
 0x4c9   :  { %v1880_v38 = vpack.c.bf16 %v1876_v61, %v1876_v61  ;;  %v1972_v10 = vpack.c.bf16 %v1968_v12, %v1968_v12  ;;  %v1928_v15 = vpack.c.bf16 %v1924_v21, %v1924_v21  ;;  %v1860_v62 = vpack.c.bf16 %v1856_v3, %v1856_v3 }
 0x4ca   :  { %v1704_v26 = vpack.c.bf16 %v1700_v28, %v1700_v28  ;;  %v1724_v49 = vpack.c.bf16 %v1720_v33, %v1720_v33  ;;  %v1816_v48 = vpack.c.bf16 %v1812_v23, %v1812_v23  ;;  %v1772_v27 = vpack.c.bf16 %v1768_v25, %v1768_v25  ;;  %v4748_v25 = vld [vmem:[%s8339_s11] sm:$0xf] }
 0x4cb   :  { %1891 = vrot.lane.b32.xlu0 %v1880_v38, %s5835_s19  ;;  %1983 = vrot.lane.b32.xlu1 %v1972_v10, %s5842_s4  ;;  %1864 = vst.msk [vmem:[#allocation2 + $0x1c] sm:$0xf] %vm701_vm1, %v1860_v62  ;;  %v4768_v10 = vld [vmem:[%s8339_s11 + $0x20] sm:$0xf] }
 0x4cc   :  { %1939 = vrot.lane.b32.xlu2 %v1928_v15, %s8397_s3  ;;  %1708 = vst.msk [vmem:[#allocation2 + $0x18] sm:$0xf] %vm701_vm1, %v1704_v26  ;;  %v5083_v15 = vld [vmem:[%s8339_s11 + $0x28] sm:$0xf0]  ;;  %v4756_v26 = vld [vmem:[%s8339_s11 + $0x8] sm:$0xf] }
 0x4cd   :  { %v4769_v62 = vor.u32 %v5083_v15, %v4768_v10  ;;  %v4757_v42 = vor.u32 %v5080_v46, %v4756_v26 }
 0x4cf   :  { %2334 = vmatpush.bf16.msrb.mxu2 %v4769_v62 }
 0x4d3   :  { %1981 = vrot.lane.b32.xlu0 %v1971_v57, %s5842_s4  ;;  %1781 = vrot.lane.b32.xlu1 %v1771_v30, %s8397_s3  ;;  %v5082_v57 = vld [vmem:[%s8339_s11 + $0x20] sm:$0xf0]  ;;  %v5081_v30 = vld [vmem:[%s8339_s11 + $0x1c] sm:$0xf] }
 0x4d4   :  { %1733 = vrot.lane.b32.xlu2 %v1723_v24, %s5835_s19  ;;  %v4762_v24 = vld [vmem:[%s8339_s11 + $0x24] sm:$0xf0]  ;;  %v4761_v33 = vor.u32 %v5082_v57, %v4760_v40  ;;  %2335 = vmatpush.bf16.msrb.mxu2 %v4757_v42 }
 0x4d5   :  { %v4765_v23 = vor.u32 %v5081_v30, %v4762_v24 }
 0x4d6   :  { %2296 = vmatpush.bf16.msrb.mxu3 %v4761_v33 }
 0x4d7   :  { %2315 = vmatpush.bf16.msrb.mxu1 %v4765_v23 }
 0x4db   :  { %1735 = vrot.lane.b32.xlu0 %v1724_v49, %s5835_s19  ;;  %1827 = vrot.lane.b32.xlu1 %v1816_v48, %s5842_s4  ;;  %v5079_v49 = vld [vmem:[%s8339_s11 + $0x8] sm:$0xf0]  ;;  %v5078_v48 = vld [vmem:[%s8339_s11 + $0x4] sm:$0xf] }
 0x4dc   :  { %1783 = vrot.lane.b32.xlu2 %v1772_v27, %s8397_s3  ;;  %v4750_v27 = vld [vmem:[%s8339_s11 + $0xc] sm:$0xf0]  ;;  %v4749_v52 = vor.u32 %v5079_v49, %v4748_v25  ;;  %s7329_s11 = sld [smem:[#allocation14 + $0x2]] }
 0x4de   :  { %2297 = vmatpush.bf16.msrb.mxu3 %v4749_v52 }
 0x4e3   :  { %1825 = vrot.lane.b32.xlu0 %v1815_v8, %s5842_s4  ;;  %v4753_v8 = vor.u32 %v5078_v48, %v4750_v27 }
 0x4e5   :  { %2316 = vmatpush.bf16.msrb.mxu1 %v4753_v8 }
 0x4f6   :  { %v1886_v60 = vpop.permute.xlu2 %1885 }
 0x4f7   :  { %1897 = vst.msk [vmem:[#allocation2 + $0x4] sm:$0xf] %vm738_vm4, %v1886_v60 }
 0x4fe   :  { %v1936_v54 = vpop.permute.xlu2 %1935 }
 0x506   :  { %v1730_v56 = vpop.permute.xlu2 %1729 }
 0x507   :  { %1741 = vst.msk [vmem:[#allocation2] sm:$0xf] %vm738_vm4, %v1730_v56  ;;  %v1888_v4 = vpop.permute.xlu0 %1887 }
 0x508   :  { %1898 = vst.msk [vmem:[#allocation2 + $0xc] sm:$0xf] %vm738_vm4, %v1888_v4 }
 0x509   :  { %1946 = vst.msk [vmem:[#allocation2 + $0xc] sm:$0xf] %vm787_vm5, %v1936_v54  ;;  %v5300_v54 = vld [vmem:[%s8336_s8] ss:$0 sm:$0xff]  ;;  %s2379_s8 = sld [smem:[#allocation14]] }
 0x50e   :  { %v1934_v19 = vpop.permute.xlu1 %1933  ;;  %v1780_v58 = vpop.permute.xlu2 %1779 }
 0x50f   :  { %1945 = vst.msk [vmem:[#allocation2 + $0x4] sm:$0xf] %vm787_vm5, %v1934_v19  ;;  %v1978_v7 = vpop.permute.xlu0 %1977 }
 0x510   :  { %1989 = vst.msk [vmem:[#allocation2 + $0x4] sm:$0xf] %vm832_vm6, %v1978_v7 }
 0x516   :  { %v1980_v18 = vpop.permute.xlu1 %1979  ;;  %v1890_v55 = vpop.permute.xlu2 %1889 }
 0x517   :  { %1990 = vst.msk [vmem:[#allocation2 + $0xc] sm:$0xf] %vm832_vm6, %v1980_v18  ;;  %v1732_v44 = vpop.permute.xlu0 %1731  ;;  %v5057_v45 = vld [vmem:[#allocation2 + $0x4] sm:$0xf] }
 0x518   :  { %1899 = vst.msk [vmem:[#allocation2 + $0x14] sm:$0xf] %vm738_vm4, %v1890_v55 }
 0x519   :  { %1742 = vst.msk [vmem:[#allocation2 + $0x8] sm:$0xf] %vm738_vm4, %v1732_v44 }
 0x51a   :  { %1790 = vst.msk [vmem:[#allocation2 + $0x8] sm:$0xf] %vm787_vm5, %v1780_v58  ;;  %v5301_v58 = vld [vmem:[%s8338_s10] ss:$0 sm:$0xff]  ;;  %s4781_s10 = sld [smem:[#allocation14 + $0x1]] }
 0x51e   :  { %v1778_v51 = vpop.permute.xlu1 %1777  ;;  %v4664_v37 = vld [vmem:[#allocation2 + $0x8] sm:$0xf0] }
 0x51f   :  { %1789 = vst.msk [vmem:[#allocation2] sm:$0xf] %vm787_vm5, %v1778_v51  ;;  %v4667_v6 = vor.u32 %v5057_v45, %v4664_v37  ;;  %v1822_v59 = vpop.permute.xlu0 %1821 }
 0x520   :  { %1833 = vst.msk [vmem:[#allocation2] sm:$0xf] %vm832_vm6, %v1822_v59 }
 0x521   :  { %2192 = vmatmul.bf16.vlgmr.msra.gmra.mxu2 %v4667_v6 }
 0x526   :  { %v1824_v11 = vpop.permute.xlu1 %1823  ;;  %v1940_v53 = vpop.permute.xlu2 %1939 }
 0x527   :  { %1834 = vst.msk [vmem:[#allocation2 + $0x8] sm:$0xf] %vm832_vm6, %v1824_v11  ;;  %v4662_v13 = vld [vmem:[#allocation2] sm:$0xf] }
 0x52e   :  { %v1938_v43 = vpop.permute.xlu1 %1937  ;;  %v5058_v9 = vld [vmem:[#allocation2 + $0x4] sm:$0xf0]  ;;  %v1734_v0 = vpop.permute.xlu2 %1733 }
 0x52f   :  { %1947 = vst.msk [vmem:[#allocation2 + $0x14] sm:$0xf] %vm787_vm5, %v1938_v43  ;;  %v4663_v2 = vor.u32 %v5058_v9, %v4662_v13 }
 0x530   :  { %1743 = vst.msk [vmem:[#allocation2 + $0x10] sm:$0xf] %vm738_vm4, %v1734_v0 }
 0x531   :  { %2173 = vmatmul.bf16.vlgmr.msra.gmra.mxu1 %v4663_v2 }
 0x532   :  { %v2224_v60 = vpop.f32.mrf.mxu0 }
 0x533   :  { %v2225_v63 = vadd.f32 %v5301_v58, %v2224_v60 }
 0x536   :  { %v1784_v22 = vpop.permute.xlu2 %1783 }
 0x53a   :  { %v2226_v55 = vpop.f32.mrf.mxu0 }
 0x53b   :  { %v2227_v6 = vadd.f32 %v5301_v58, %v2226_v55 }
 0x53d   :  { %v1892_v32 = vpop.permute.xlu0 %1891  ;;  %v1984_v34 = vpop.permute.xlu1 %1983 }
 0x53e   :  { %1900 = vst.msk [vmem:[#allocation2 + $0x1c] sm:$0xf] %vm738_vm4, %v1892_v32 }
 0x53f   :  { %1948 = vst.msk [vmem:[#allocation2 + $0x1c] sm:$0xf] %vm787_vm5, %v1940_v53 }
 0x540   :  { %1992 = vst.msk [vmem:[#allocation2 + $0x1c] sm:$0xf] %vm832_vm6, %v1984_v34 }
 0x542   :  { %v2229_v43 = vpop.f32.mrf.mxu0 }
 0x543   :  { %v2230_v34 = vadd.f32 %v5301_v58, %v2229_v43 }
 0x545   :  { %v1982_v14 = vpop.permute.xlu0 %1981  ;;  %v1782_v31 = vpop.permute.xlu1 %1781 }
 0x546   :  { %1991 = vst.msk [vmem:[#allocation2 + $0x14] sm:$0xf] %vm832_vm6, %v1982_v14 }
 0x547   :  { %1791 = vst.msk [vmem:[#allocation2 + $0x10] sm:$0xf] %vm787_vm5, %v1782_v31  ;;  %v4672_v39 = vld [vmem:[#allocation2 + $0x18] sm:$0xf0] }
 0x54a   :  { %v2231_v32 = vpop.f32.mrf.mxu0 }
 0x54d   :  { %v1736_v1 = vpop.permute.xlu0 %1735  ;;  %v5059_v20 = vld [vmem:[#allocation2 + $0x14] sm:$0xf]  ;;  %v1828_v12 = vpop.permute.xlu1 %1827 }
 0x54e   :  { %1744 = vst.msk [vmem:[#allocation2 + $0x18] sm:$0xf] %vm738_vm4, %v1736_v1  ;;  %v4675_v61 = vor.u32 %v5059_v20, %v4672_v39  ;;  %v2232_v1 = vadd.f32 %v5301_v58, %v2231_v32 }
 0x54f   :  { %1792 = vst.msk [vmem:[#allocation2 + $0x18] sm:$0xf] %vm787_vm5, %v1784_v22 }
 0x550   :  { %1836 = vst.msk [vmem:[#allocation2 + $0x18] sm:$0xf] %vm832_vm6, %v1828_v12  ;;  %2197 = vmatmul.bf16.gmra.mxu2 %v4675_v61 }
 0x555   :  { %v1826_v21 = vpop.permute.xlu0 %1825 }
 0x556   :  { %1835 = vst.msk [vmem:[#allocation2 + $0x10] sm:$0xf] %vm832_vm6, %v1826_v21 }
 0x557   :  { %v5060_v28 = vld [vmem:[#allocation2 + $0x14] sm:$0xf0] }
 0x55d   :  { %v4670_v3 = vld [vmem:[#allocation2 + $0x10] sm:$0xf] }
 0x55e   :  { %v4671_v38 = vor.u32 %v5060_v28, %v4670_v3 }
 0x560   :  { %2178 = vmatmul.bf16.gmra.mxu1 %v4671_v38 }
 0x5a4   :  { %v2193_v56 = vpop.f32.mrf.mxu2 }
 0x5ac   :  { %v2195_v45 = vpop.f32.mrf.mxu2 }
 0x5ae   :  { %v2174_v4 = vpop.f32.mrf.mxu1 }
 0x5af   :  { %v2175_v19 = vadd.f32 %v5300_v54, %v2174_v4 }
 0x5b1   :  { %v2194_v7 = vadd.f32 %v2193_v56, %v2175_v19 }
 0x5b3   :  { %v7123_v51 = vadd.f32 %v2225_v63, %v2194_v7 }
 0x5b5   :  { %8406 = vst [vmem:[#allocation31_spill] sm:$0xff] %v7123_v51  ;;  %v8370_v11 = vmax.f32 %v7123_v51, 0.0 }
 0x5b6   :  { %v2176_v18 = vpop.f32.mrf.mxu1 }
 0x5b7   :  { %v2177_v44 = vadd.f32 %v5300_v54, %v2176_v18 }
 0x5b9   :  { %v2196_v37 = vadd.f32 %v2195_v45, %v2177_v44 }
 0x5bb   :  { %v7125_v59 = vadd.f32 %v2227_v6, %v2196_v37 }
 0x5bd   :  { %8407 = vst [vmem:[#allocation32_spill] sm:$0xff] %v7125_v59  ;;  %v8369_v53 = vmax.f32 %v7125_v59, 0.0 }
 0x5bf   :  { %v7133_v13 = vpack.c.bf16 %v8369_v53, %v8370_v11 }
 0x5c1   :  { %4770 = vmatmul.msk.bf16.vlgmr.msrb.gmra.mxu3 %vm1249_vm7, %v7133_v13  ;;  %4772 = vmatmul.msk.bf16.vlgmr.msrb.gmra.mxu1 %vm1249_vm7, %v7133_v13 }
 0x5c2   :  { %4774 = vmatmul.msk.bf16.vlgmr.msrb.gmra.mxu2 %vm1249_vm7, %v7133_v13 }
 0x5d3   :  { %v2198_v9 = vpop.f32.mrf.mxu2 }
 0x5db   :  { %v2200_v39 = vpop.f32.mrf.mxu2 }
 0x5dd   :  { %v2179_v0 = vpop.f32.mrf.mxu1 }
 0x5de   :  { %v2180_v2 = vadd.f32 %v5300_v54, %v2179_v0 }
 0x5e0   :  { %v2199_v14 = vadd.f32 %v2198_v9, %v2180_v2 }
 0x5e2   :  { %v7141_v22 = vadd.f32 %v2230_v34, %v2199_v14 }
 0x5e4   :  { %8408 = vst [vmem:[#allocation33_spill] sm:$0xff] %v7141_v22  ;;  %v8368_v21 = vmax.f32 %v7141_v22, 0.0 }
 0x5e5   :  { %v2181_v31 = vpop.f32.mrf.mxu1 }
 0x5e6   :  { %v2182_v20 = vadd.f32 %v5300_v54, %v2181_v31 }
 0x5e8   :  { %v2201_v61 = vadd.f32 %v2200_v39, %v2182_v20 }
 0x5ea   :  { %v7143_v12 = vadd.f32 %v2232_v1, %v2201_v61 }
 0x5ec   :  { %8409 = vst [vmem:[#allocation34_spill] sm:$0xff] %v7143_v12  ;;  %v8367_v3 = vmax.f32 %v7143_v12, 0.0 }
 0x5ee   :  { %v7151_v28 = vpack.c.bf16 %v8367_v3, %v8368_v21 }
 0x5f0   :  { %4771 = vmatmul.msk.bf16.gmra.mxu3 %vm1249_vm7, %v7151_v28  ;;  %4773 = vmatmul.msk.bf16.gmra.mxu1 %vm1249_vm7, %v7151_v28 }
 0x5f1   :  { %4775 = vmatmul.msk.bf16.gmra.mxu2 %vm1249_vm7, %v7151_v28 }
 0x63e   :  { %v2318_v38 = vpop.f32.mrf.mxu1 }
 0x63f   :  { %v7159_v10 = vpack.c.bf16 %v2318_v38, %v2318_v38 }
 0x641   :  { %2903 = vst.msk [vmem:[#allocation3 + $0x40] sm:$0xf] %vm701_vm1, %v7159_v10  ;;  %3027 = vrot.lane.b32.xlu0 %v7159_v10, %s5835_s19 }
 0x644   :  { %v2299_v15 = vpop.f32.mrf.mxu3 }
 0x645   :  { %v2743_v62 = vpack.c.bf16 %v2299_v15, %v2299_v15  ;;  %v7165_v26 = vpop.f32.mrf.mxu2 }
 0x646   :  { %2408 = vperm.xlu1 %5230, %v7165_v26   ;;  %2384 = vperm.xlu2 %5229, %v7165_v26   ;;  %v2320_v46 = vpop.f32.mrf.mxu1 }
 0x647   :  { %2747 = vst.msk [vmem:[#allocation3] sm:$0xf] %vm701_vm1, %v2743_v62  ;;  %v7170_v40 = vpack.c.bf16 %v2320_v46, %v2320_v46 }
 0x649   :  { %2904 = vst.msk [vmem:[#allocation3 + $0x44] sm:$0xf] %vm701_vm1, %v7170_v40  ;;  %2456 = vperm.xlu0 %5232, %v7165_v26  }
 0x64c   :  { %v2301_v42 = vpop.f32.mrf.mxu3 }
 0x64d   :  { %v2744_v57 = vpack.c.bf16 %v2301_v42, %v2301_v42  ;;  %v2339_v30 = vpop.f32.mrf.mxu2 }
 0x64e   :  { %5231 = vset.pattern.permute.xlu1 %v8371_v17  ;;  %5233 = vset.pattern.permute.xlu2 %v8375_v35 }
 0x64f   :  { %2748 = vst.msk [vmem:[#allocation3 + $0x4] sm:$0xf] %vm701_vm1, %v2744_v57  ;;  %2432 = vperm.xlu1 %5231, %v7165_v26   ;;  %2480 = vperm.xlu2 %5233, %v7165_v26  }
 0x651   :  { %2783 = vrot.lane.b32.xlu0 %v2743_v62, %s5842_s4 }
 0x652   :  { %5237 = vset.pattern.permute.xlu0 %v8377_v16 }
 0x657   :  { %5235 = vset.pattern.permute.xlu1 %v8402_v50  ;;  %5234 = vset.pattern.permute.xlu2 %v8373_v41 }
 0x658   :  { %2528 = vperm.xlu1 %5235, %v7165_v26   ;;  %2504 = vperm.xlu2 %5234, %v7165_v26  }
 0x659   :  { %2388 = vperm.xlu0 %5237, %v2339_v30  }
 0x660   :  { %5236 = vset.pattern.permute.xlu1 %v8403_v29  ;;  %5238 = vset.pattern.permute.xlu2 %v8404_v5 }
 0x661   :  { %2552 = vperm.xlu1 %5236, %v7165_v26   ;;  %2412 = vperm.xlu2 %5238, %v2339_v30  }
 0x662   :  { %5242 = vset.pattern.permute.xlu0 %v8373_v41 }
 0x663   :  { %2508 = vperm.xlu0 %5242, %v2339_v30  }
 0x669   :  { %5239 = vset.pattern.permute.xlu2 %v8371_v17  ;;  %2871 = vrot.lane.b32.xlu1 %v2743_v62, %s5835_s19 }
 0x66a   :  { %2436 = vperm.xlu2 %5239, %v2339_v30   ;;  %5240 = vset.pattern.permute.xlu1 %v8405_v36 }
 0x66b   :  { %5245 = vset.pattern.permute.xlu0 %v8377_v16 }
 0x66d   :  { %v2323_v24 = vpop.f32.mrf.mxu1 }
 0x66e   :  { %v7194_v33 = vpack.c.bf16 %v2323_v24, %v2323_v24 }
 0x670   :  { %2905 = vst.msk [vmem:[#allocation3 + $0x48] sm:$0xf] %vm701_vm1, %v7194_v33 }
 0x671   :  { %2827 = vrot.lane.b32.xlu1 %v2743_v62, %s8397_s3 }
 0x672   :  { %5243 = vset.pattern.permute.xlu2 %v8402_v50 }
 0x673   :  { %2532 = vperm.xlu2 %5243, %v2339_v30   ;;  %v2304_v23 = vpop.f32.mrf.mxu3 }
 0x674   :  { %v2342_v25 = vpop.f32.mrf.mxu2  ;;  %v2745_v49 = vpack.c.bf16 %v2304_v23, %v2304_v23  ;;  %v2404_v23 = vstv %s4781_s10 }
 0x675   :  { %2392 = vperm.xlu0 %5245, %v2342_v25   ;;  %v2325_v48 = vpop.f32.mrf.mxu1 }
 0x676   :  { %2749 = vst.msk [vmem:[#allocation3 + $0x8] sm:$0xf] %vm701_vm1, %v2745_v49  ;;  %v7201_v27 = vpack.c.bf16 %v2325_v48, %v2325_v48  ;;  %v2524_v48 = vstv %s4786_s26 }
 0x678   :  { %2906 = vst.msk [vmem:[#allocation3 + $0x4c] sm:$0xf] %vm701_vm1, %v7201_v27 }
 0x679   :  { %3029 = vrot.lane.b32.xlu1 %v7170_v40, %s5835_s19 }
 0x67b   :  { %5244 = vset.pattern.permute.xlu2 %v8403_v29  ;;  %v2306_v52 = vpop.f32.mrf.mxu3 }
 0x67c   :  { %2556 = vperm.xlu2 %5244, %v2339_v30   ;;  %v7208_v8 = vpack.c.bf16 %v2306_v52, %v2306_v52  ;;  %v7210_v60 = vpop.f32.mrf.mxu2 }
 0x67d   :  { %4776 = vmatpush.xpose.msk.msra.mxu2 %vm305_vm2, %v7210_v60  ;;  %5250 = vset.pattern.permute.xlu0 %v8373_v41 }
 0x67e   :  { %2750 = vst.msk [vmem:[#allocation3 + $0xc] sm:$0xf] %vm701_vm1, %v7208_v8  ;;  %2512 = vperm.xlu0 %5250, %v2342_v25  }
 0x681   :  { %2460 = vperm.xlu1 %5240, %v2339_v30   ;;  %4777 = vmatpush.xpose.msk.msra.mxu2 %vm305_vm2, %v2342_v25 }
 0x684   :  { %2873 = vrot.lane.b32.xlu2 %v2744_v57, %s5835_s19 }
 0x685   :  { %4778 = vmatpush.xpose.msk.msra.mxu2 %vm305_vm2, %v2339_v30  ;;  %5246 = vset.pattern.permute.xlu2 %v8404_v5 }
 0x686   :  { %2831 = vrot.lane.b32.xlu0 %v2745_v49, %s8397_s3 }
 0x687   :  { %5255 = vset.pattern.permute.xlu0 %v8371_v17 }
 0x689   :  { %5241 = vset.pattern.permute.xlu1 %v8375_v35  ;;  %4779 = vmatpush.xpose.msk.msra.mxu2 %vm305_vm2, %v7165_v26 }
 0x68a   :  { %2484 = vperm.xlu1 %5241, %v2339_v30  }
 0x68c   :  { %2829 = vrot.lane.b32.xlu2 %v2744_v57, %s8397_s3  ;;  %4780 = vmatmul.msk.f32.vlgmr.msra.gmra.mxu2 %vm305_vm2, %v6107_v47 }
 0x68e   :  { %3033 = vrot.lane.b32.xlu0 %v7201_v27, %s5835_s19 }
 0x692   :  { %2785 = vrot.lane.b32.xlu1 %v2744_v57, %s5842_s4 }
 0x693   :  { %5248 = vset.pattern.permute.xlu1 %v8405_v36 }
 0x694   :  { %3031 = vrot.lane.b32.xlu2 %v7194_v33, %s5835_s19 }
 0x696   :  { %2444 = vperm.xlu0 %5255, %v7210_v60  }
 0x69a   :  { %2987 = vrot.lane.b32.xlu1 %v7194_v33, %s8397_s3 }
 0x69c   :  { %2416 = vperm.xlu2 %5246, %v2342_v25  }
 0x69e   :  { %2985 = vrot.lane.b32.xlu0 %v7170_v40, %s8397_s3 }
 0x69f   :  { %5260 = vset.pattern.permute.xlu0 %v8403_v29 }
 0x6a0   :  { %v7241_v54 = vpop.permute.xlu2 %2384 }
 0x6a2   :  { %2464 = vperm.xlu1 %5248, %v2342_v25  }
 0x6a4   :  { %5247 = vset.pattern.permute.xlu2 %v8371_v17 }
 0x6a5   :  { %2440 = vperm.xlu2 %5247, %v2342_v25  }
 0x6a6   :  { %2564 = vperm.xlu0 %5260, %v7210_v60  }
 0x6a9   :  { %v7245_v56 = vpop.permute.xlu2 %2480 }
 0x6aa   :  { %5249 = vset.pattern.permute.xlu1 %v8375_v35 }
 0x6ab   :  { %2488 = vperm.xlu1 %5249, %v2342_v25  }
 0x6ad   :  { %5251 = vset.pattern.permute.xlu2 %v8402_v50 }
 0x6ae   :  { %2536 = vperm.xlu2 %5251, %v2342_v25   ;;  %2939 = vrot.lane.b32.xlu0 %v7159_v10, %s5842_s4 }
 0x6af   :  { %5264 = vset.pattern.permute.xlu0 %v8405_v36 }
 0x6b2   :  { %v7252_v4 = vpop.permute.xlu2 %2504 }
 0x6b3   :  { %2875 = vrot.lane.b32.xlu1 %v2745_v49, %s5835_s19  ;;  %v3028_v19 = vpop.permute.xlu0 %3027 }
 0x6b4   :  { %3039 = vst.msk [vmem:[#allocation3 + $0x70] sm:$0xf] %vm701_vm1, %v3028_v19  ;;  %5253 = vset.pattern.permute.xlu1 %v8377_v16 }
 0x6b6   :  { %5252 = vset.pattern.permute.xlu2 %v8403_v29  ;;  %2789 = vrot.lane.b32.xlu0 %v7208_v8, %s5842_s4 }
 0x6b7   :  { %2560 = vperm.xlu2 %5252, %v2342_v25   ;;  %v2476_v25 = vstv %s4784_s29 }
 0x6b8   :  { %v7260_v58 = vpop.permute.xlu1 %2408 }
 0x6bb   :  { %v7262_v7 = vpop.permute.xlu2 %2412  ;;  %2396 = vperm.xlu1 %5253, %v7210_v60   ;;  %v7265_v63 = vpop.permute.xlu0 %2456 }
 0x6bf   :  { %2787 = vrot.lane.b32.xlu2 %v2745_v49, %s5842_s4  ;;  %v2500_v49 = vstv %s4785_s16 }
 0x6c0   :  { %5256 = vset.pattern.permute.xlu2 %v8405_v36 }
 0x6c1   :  { %v7269_v18 = vpop.permute.xlu1 %2432 }
 0x6c3   :  { %5254 = vset.pattern.permute.xlu1 %v8404_v5  ;;  %v2784_v55 = vpop.permute.xlu0 %2783 }
 0x6c4   :  { %v7272_v44 = vpop.permute.xlu2 %2436  ;;  %2795 = vst.msk [vmem:[#allocation3 + $0x10] sm:$0xf] %vm701_vm1, %v2784_v55  ;;  %2420 = vperm.xlu1 %5254, %v7210_v60  }
 0x6c7   :  { %2989 = vrot.lane.b32.xlu2 %v7201_v27, %s8397_s3 }
 0x6ca   :  { %v7278_v45 = vpop.permute.xlu1 %2528 }
 0x6cb   :  { %v7287_v43 = vpop.permute.xlu0 %2388 }
 0x6cc   :  { %5258 = vset.pattern.permute.xlu1 %v8373_v41 }
 0x6cd   :  { %v7281_v37 = vpop.permute.xlu2 %2532  ;;  %2516 = vperm.xlu1 %5258, %v7210_v60  }
 0x6cf   :  { %2468 = vperm.xlu2 %5256, %v7210_v60  }
 0x6d3   :  { %v7285_v6 = vpop.permute.xlu1 %2552 }
 0x6d5   :  { %5259 = vset.pattern.permute.xlu1 %v8402_v50  ;;  %v7298_v32 = vpop.permute.xlu0 %2508 }
 0x6d6   :  { %v7290_v9 = vpop.permute.xlu2 %2556  ;;  %2540 = vperm.xlu1 %5259, %v7210_v60  }
 0x6d7   :  { %5257 = vset.pattern.permute.xlu2 %v8375_v35 }
 0x6d8   :  { %2492 = vperm.xlu2 %5257, %v7210_v60   ;;  %v2452_v60 = vstv %s4783_s0 }
 0x6db   :  { %v2872_v0 = vpop.permute.xlu1 %2871 }
 0x6dc   :  { %2883 = vst.msk [vmem:[#allocation3 + $0x30] sm:$0xf] %vm701_vm1, %v2872_v0 }
 0x6de   :  { %v2874_v2 = vpop.permute.xlu2 %2873  ;;  %2943 = vrot.lane.b32.xlu1 %v7194_v33, %s5842_s4  ;;  %v2380_v33 = vstv %s2379_s8 }
 0x6df   :  { %2884 = vst.msk [vmem:[#allocation3 + $0x34] sm:$0xf] %vm701_vm1, %v2874_v2  ;;  %5262 = vset.pattern.permute.xlu1 %v8404_v5 }
 0x6e0   :  { %2983 = vrot.lane.b32.xlu2 %v7159_v10, %s8397_s3 }
 0x6e1   :  { %5261 = vset.pattern.permute.xlu2 %v8377_v16 }
 0x6e3   :  { %v2828_v34 = vpop.permute.xlu1 %2827 }
 0x6e4   :  { %2839 = vst.msk [vmem:[#allocation3 + $0x20] sm:$0xf] %vm701_vm1, %v2828_v34 }
 0x6e6   :  { %v2830_v14 = vpop.permute.xlu2 %2829  ;;  %2941 = vrot.lane.b32.xlu1 %v7170_v40, %s5842_s4 }
 0x6e7   :  { %2840 = vst.msk [vmem:[#allocation3 + $0x24] sm:$0xf] %vm701_vm1, %v2830_v14  ;;  %v7309_v31 = vpop.permute.xlu0 %2392 }
 0x6e8   :  { %2945 = vrot.lane.b32.xlu2 %v7201_v27, %s5842_s4  ;;  %v2548_v27 = vstv %s4787_s15 }
 0x6eb   :  { %v3030_v1 = vpop.permute.xlu1 %3029 }
 0x6ec   :  { %3040 = vst.msk [vmem:[#allocation3 + $0x74] sm:$0xf] %vm701_vm1, %v3030_v1 }
 0x6ee   :  { %v3032_v20 = vpop.permute.xlu2 %3031  ;;  %2833 = vrot.lane.b32.xlu1 %v7208_v8, %s8397_s3 }
 0x6ef   :  { %3041 = vst.msk [vmem:[#allocation3 + $0x78] sm:$0xf] %vm701_vm1, %v3032_v20 }
 0x6f0   :  { %2877 = vrot.lane.b32.xlu2 %v7208_v8, %s5835_s19  ;;  %v7319_v39 = vpop.permute.xlu0 %2512  ;;  %v2428_v8 = vstv %s7329_s11  ;;  %s8415_s11 = sld [smem:[#allocation37_spill]] }
 0x6f3   :  { %v7321_v61 = vpop.permute.xlu1 %2460  ;;  %v5102_v24 = vld [vmem:[#allocation3 + $0x70] sm:$0xff] }
 0x6f6   :  { %v7323_v38 = vpop.permute.xlu2 %2416 }
 0x6f8   :  { %v2832_v10 = vpop.permute.xlu0 %2831 }
 0x6f9   :  { %2841 = vst.msk [vmem:[#allocation3 + $0x28] sm:$0xf] %vm701_vm1, %v2832_v10 }
 0x6fc   :  { %v2485_v15 = vpop.permute.xlu1 %2484 }
 0x6ff   :  { %v7326_v62 = vpop.permute.xlu2 %2440 }
 0x700   :  { %v3034_v26 = vpop.permute.xlu0 %3033 }
 0x701   :  { %3042 = vst.msk [vmem:[#allocation3 + $0x7c] sm:$0xf] %vm701_vm1, %v3034_v26 }
 0x704   :  { %v2786_v46 = vpop.permute.xlu1 %2785 }
 0x705   :  { %2796 = vst.msk [vmem:[#allocation3 + $0x14] sm:$0xf] %vm701_vm1, %v2786_v46 }
 0x708   :  { %v2537_v40 = vpop.permute.xlu2 %2536  ;;  %v7332_v42 = vpop.permute.xlu0 %2444  ;;  %v5103_v57 = vld [vmem:[#allocation3 + $0x78] sm:$0xff] }
 0x709   :  { %3218 = vmatpush.bf16.msra.mxu1 %v5103_v57 }
 0x70c   :  { %v2988_v30 = vpop.permute.xlu1 %2987 }
 0x70d   :  { %2997 = vst.msk [vmem:[#allocation3 + $0x68] sm:$0xf] %vm701_vm1, %v2988_v30  ;;  %3219 = vmatpush.bf16.msra.mxu1 %v5102_v24 }
 0x70f   :  { %v2376_v52 = vpop.f32.mrf.mxu2 }
 0x710   :  { %v2381_v19 = vadd.f32 %v2380_v33, %v2376_v52  ;;  %v2405_v55 = vadd.f32 %v2404_v23, %v2376_v52  ;;  %v2986_v0 = vpop.permute.xlu0 %2985  ;;  %v2477_v34 = vadd.f32 %v2476_v25, %v2376_v52  ;;  %v2501_v14 = vadd.f32 %v2500_v49, %v2376_v52 }
 0x711   :  { %v2561_v2 = vpop.permute.xlu2 %2560  ;;  %2996 = vst.msk [vmem:[#allocation3 + $0x64] sm:$0xf] %vm701_vm1, %v2986_v0  ;;  %v2525_v1 = vadd.f32 %v2524_v48, %v2376_v52  ;;  %v2549_v20 = vadd.f32 %v2548_v27, %v2376_v52  ;;  %v2429_v10 = vadd.f32 %v2428_v8, %v2376_v52  ;;  %v2453_v26 = vadd.f32 %v2452_v60, %v2376_v52 }
 0x712   :  { %v7337_v46 = vperm.slane %v2477_v34, 4  ;;  %v7339_v57 = vperm.slane %v2501_v14, 5  ;;  %v7345_v23 = vperm.slane %v2381_v19, 0  ;;  %v7347_v3 = vperm.slane %v2405_v55, 1 }
 0x713   :  { %v7341_v30 = vperm.slane %v2525_v1, 6  ;;  %v7343_v24 = vperm.slane %v2549_v20, 7  ;;  %v7352_v49 = vperm.slane %v2429_v10, 2  ;;  %v7354_v48 = vperm.slane %v2453_v26, 3 }
 0x714   :  { %v2465_v33 = vpop.permute.xlu1 %2464  ;;  %v7350_v25 = vsub.f32 %v7337_v46, %v2485_v15  ;;  %v7358_v27 = vsub.f32 %v7339_v57, %v7298_v32  ;;  %v2401_v15 = vsub.f32 %v7345_v23, %v7309_v31  ;;  %v2400_v0 = vsub.f32 %v7345_v23, %v7287_v43 }
 0x715   :  { %v7362_v52 = vsub.f32 %v7341_v30, %v7281_v37  ;;  %v7366_v8 = vsub.f32 %v7343_v24, %v7290_v9  ;;  %v2425_v37 = vsub.f32 %v7347_v3, %v7323_v38  ;;  %v2473_v9 = vsub.f32 %v7354_v48, %v2465_v33 }
 0x716   :  { %v2580_v55 = vmax.f32 %v7350_v25, %v7358_v27  ;;  %v2449_v31 = vsub.f32 %v7352_v49, %v7326_v62  ;;  %v2424_v34 = vsub.f32 %v7347_v3, %v7262_v7  ;;  %v7388_v14 = vsub.f32 %v7352_v49, %v7272_v44 }
 0x717   :  { %v2584_v32 = vmax.f32 %v7362_v52, %v7366_v8  ;;  %v7392_v38 = vsub.f32 %v7337_v46, %v7245_v56  ;;  %v7396_v43 = vsub.f32 %v7339_v57, %v7252_v4  ;;  %v7400_v1 = vsub.f32 %v7354_v48, %v7321_v61 }
 0x718   :  { %v7370_v60 = vpop.permute.xlu0 %2564  ;;  %v2521_v62 = vsub.f32 %v7339_v57, %v7319_v39  ;;  %v7405_v7 = vsub.f32 %v7341_v30, %v2537_v40  ;;  %v7408_v44 = vsub.f32 %v7343_v24, %v2561_v2  ;;  %v2572_v20 = vmax.f32 %v2400_v0, %v2424_v34 }
 0x719   :  { %v2788_v19 = vpop.permute.xlu2 %2787  ;;  %v7412_v56 = vsub.f32 %v7341_v30, %v7278_v45  ;;  %v7416_v4 = vsub.f32 %v7343_v24, %v7285_v6  ;;  %v2592_v61 = vmax.f32 %v2580_v55, %v2584_v32  ;;  %v2576_v39 = vmax.f32 %v7388_v14, %v7400_v1 }
 0x71a   :  { %2797 = vst.msk [vmem:[#allocation3 + $0x18] sm:$0xf] %vm701_vm1, %v2788_v19  ;;  %v2573_v26 = vmax.f32 %v2401_v15, %v2425_v37  ;;  %v2577_v33 = vmax.f32 %v2449_v31, %v2473_v9  ;;  %v7423_v2 = vsub.f32 %v7345_v23, %v7241_v54  ;;  %v7427_v45 = vsub.f32 %v7347_v3, %v7260_v58 }
 0x71b   :  { %v2588_v19 = vmax.f32 %v2572_v20, %v2576_v39  ;;  %v7431_v6 = vsub.f32 %v7352_v49, %v7269_v18  ;;  %v7435_v55 = vsub.f32 %v7354_v48, %v7265_v63  ;;  %v2579_v54 = vmax.f32 %v7392_v38, %v7396_v43 }
 0x71c   :  { %v2583_v58 = vmax.f32 %v7412_v56, %v7416_v4  ;;  %v2589_v39 = vmax.f32 %v2573_v26, %v2577_v33  ;;  %v2571_v17 = vmax.f32 %v7423_v2, %v7427_v45 }
 0x71d   :  { %v2489_v10 = vpop.permute.xlu1 %2488  ;;  %v7444_v18 = vmax.f32 %v2588_v19, %v2592_v61  ;;  %v2575_v41 = vmax.f32 %v7431_v6, %v7435_v55 }
 0x71e   :  { %v2497_v40 = vsub.f32 %v7337_v46, %v2489_v10  ;;  %v2585_v10 = vmax.f32 %v7405_v7, %v7408_v44  ;;  %v2591_v16 = vmax.f32 %v2579_v54, %v2583_v58 }
 0x71f   :  { %v2600_v63 = vsub.f32 %v2400_v0, %v7444_v18  ;;  %v2612_v11 = vsub.f32 %v2424_v34, %v7444_v18 }
 0x720   :  { %v2581_v32 = vmax.f32 %v2497_v40, %v2521_v62  ;;  %v2940_v21 = vpop.permute.xlu0 %2939 }
 0x721   :  { %v2990_v20 = vpop.permute.xlu2 %2989  ;;  %2951 = vst.msk [vmem:[#allocation3 + $0x50] sm:$0xf] %vm701_vm1, %v2940_v21  ;;  %v2605_v21 = vmul.f32 1.442695, %v2600_v63  ;;  %v2617_v61 = vmul.f32 1.442695, %v2612_v11 }
 0x722   :  { %v2593_v53 = vmax.f32 %v2581_v32, %v2585_v10  ;;  %2998 = vst.msk [vmem:[#allocation3 + $0x6c] sm:$0xf] %vm701_vm1, %v2990_v20  ;;  %v2587_v20 = vmax.f32 %v2571_v17, %v2575_v41  ;;  %v2636_v17 = vsub.f32 %v7400_v1, %v7444_v18 }
 0x723   :  { %5451 = vpow2.f32 %v2605_v21 }
 0x724   :  { %v2597_v35 = vmax.f32 %v2589_v39, %v2593_v53  ;;  %5453 = vpow2.f32 %v2617_v61 }
 0x725   :  { %v2876_v12 = vpop.permute.xlu1 %2875 }
 0x726   :  { %v2601_v19 = vsub.f32 %v2401_v15, %v2597_v35  ;;  %v2613_v26 = vsub.f32 %v2425_v37, %v2597_v35  ;;  %v2625_v33 = vsub.f32 %v2449_v31, %v2597_v35  ;;  %v2637_v32 = vsub.f32 %v2473_v9, %v2597_v35  ;;  %2885 = vst.msk [vmem:[#allocation3 + $0x38] sm:$0xf] %vm701_vm1, %v2876_v12 }
 0x727   :  { %v2649_v0 = vsub.f32 %v2497_v40, %v2597_v35  ;;  %v2661_v10 = vsub.f32 %v2521_v62, %v2597_v35  ;;  %v2673_v34 = vsub.f32 %v7405_v7, %v2597_v35  ;;  %v2685_v54 = vsub.f32 %v7408_v44, %v2597_v35 }
 0x728   :  { %v2607_v22 = vmul.f32 1.442695, %v2601_v19  ;;  %v2619_v59 = vmul.f32 1.442695, %v2613_v26  ;;  %v2631_v51 = vmul.f32 1.442695, %v2625_v33  ;;  %v2790_v36 = vpop.permute.xlu0 %2789  ;;  %v2624_v12 = vsub.f32 %v7388_v14, %v7444_v18 }
 0x729   :  { %v2643_v53 = vmul.f32 1.442695, %v2637_v32  ;;  %v7456_v11 = vpop.permute.xlu2 %2468  ;;  %v2655_v15 = vmul.f32 1.442695, %v2649_v0  ;;  %v5101_v37 = vld [vmem:[#allocation3 + $0x68] sm:$0xff]  ;;  %v2648_v35 = vsub.f32 %v7350_v25, %v7444_v18  ;;  %v7465_v31 = vmax.f32 %v2587_v20, %v2591_v16  ;;  %v7471_v14 = vpop.eup %5451 }
 0x72a   :  { %5455 = vpow2.f32 %v2607_v22  ;;  %v2667_v9 = vmul.f32 1.442695, %v2661_v10  ;;  %2798 = vst.msk [vmem:[#allocation3 + $0x1c] sm:$0xf] %vm701_vm1, %v2790_v36  ;;  %v2679_v41 = vmul.f32 1.442695, %v2673_v34  ;;  %3220 = vmatpush.bf16.msra.mxu1 %v5101_v37  ;;  %v7475_v1 = vpop.eup %5453  ;;  %v2684_v16 = vsub.f32 %v7366_v8, %v7444_v18 }
 0x72b   :  { %5457 = vpow2.f32 %v2619_v59  ;;  %v2691_v22 = vmul.f32 1.442695, %v2685_v54  ;;  %v2660_v59 = vsub.f32 %v7358_v27, %v7444_v18  ;;  %v2629_v36 = vmul.f32 1.442695, %v2624_v12 }
 0x72c   :  { %5459 = vpow2.f32 %v2631_v51  ;;  %v2672_v51 = vsub.f32 %v7362_v52, %v7444_v18  ;;  %v2641_v25 = vmul.f32 1.442695, %v2636_v17  ;;  %v2653_v44 = vmul.f32 1.442695, %v2648_v35 }
 0x72d   :  { %5461 = vpow2.f32 %v2643_v53  ;;  %v7467_v62 = vpop.permute.xlu1 %2396  ;;  %v2599_v27 = vsub.f32 %v7423_v2, %v7465_v31  ;;  %v2665_v58 = vmul.f32 1.442695, %v2660_v59  ;;  %v2611_v52 = vsub.f32 %v7427_v45, %v7465_v31 }
 0x72e   :  { %5463 = vpow2.f32 %v2655_v15  ;;  %v2677_v8 = vmul.f32 1.442695, %v2672_v51  ;;  %v2623_v18 = vsub.f32 %v7431_v6, %v7465_v31  ;;  %v2689_v2 = vmul.f32 1.442695, %v2684_v16 }
 0x72f   :  { %5465 = vpow2.f32 %v2667_v9  ;;  %v2635_v61 = vsub.f32 %v7435_v55, %v7465_v31  ;;  %v2647_v19 = vsub.f32 %v7392_v38, %v7465_v31  ;;  %v2603_v6 = vmul.f32 1.442695, %v2599_v27 }
 0x730   :  { %v7479_v7 = vpop.eup %5455  ;;  %5467 = vpow2.f32 %v2679_v41  ;;  %v2615_v0 = vmul.f32 1.442695, %v2611_v52  ;;  %v2659_v55 = vsub.f32 %v7396_v43, %v7465_v31  ;;  %v2627_v20 = vmul.f32 1.442695, %v2623_v18 }
 0x731   :  { %v7483_v40 = vpop.eup %5457  ;;  %5469 = vpow2.f32 %v2691_v22  ;;  %v2639_v54 = vmul.f32 1.442695, %v2635_v61  ;;  %v2651_v15 = vmul.f32 1.442695, %v2647_v19  ;;  %v2671_v37 = vsub.f32 %v7412_v56, %v7465_v31 }
 0x732   :  { %v7487_v39 = vpop.eup %5459  ;;  %v7489_v63 = vpop.permute.xlu2 %2492  ;;  %5471 = vpow2.f32 %v2629_v36  ;;  %v2697_v26 = vadd.f32 %v7483_v40, %v7479_v7  ;;  %v2683_v17 = vsub.f32 %v7416_v4, %v7465_v31  ;;  %v2663_v35 = vmul.f32 1.442695, %v2659_v55 }
 0x733   :  { %v7493_v21 = vpop.eup %5461  ;;  %5473 = vpow2.f32 %v2641_v25  ;;  %v2696_v56 = vadd.f32 %v7475_v1, %v7471_v14  ;;  %v2675_v4 = vmul.f32 1.442695, %v2671_v37 }
 0x734   :  { %v7499_v45 = vpop.eup %5463  ;;  %v2701_v33 = vadd.f32 %v7493_v21, %v7487_v39  ;;  %5475 = vpow2.f32 %v2653_v44  ;;  %v2687_v27 = vmul.f32 1.442695, %v2683_v17  ;;  %v5599_v17 = vld [vmem:[#allocation5 + $0x10] sm:$0xff] }
 0x735   :  { %v7505_v32 = vpop.eup %5465  ;;  %5477 = vpow2.f32 %v2665_v58 }
 0x736   :  { %v7509_v10 = vpop.eup %5467  ;;  %v2705_v38 = vadd.f32 %v7505_v32, %v7499_v45  ;;  %v2421_v34 = vpop.permute.xlu1 %2420  ;;  %5479 = vpow2.f32 %v2677_v8  ;;  %v2713_v9 = vadd.f32 %v2701_v33, %v2697_v26 }
 0x737   :  { %v7513_v53 = vpop.eup %5469  ;;  %5481 = vpow2.f32 %v2689_v2 }
 0x738   :  { %v7517_v12 = vpop.eup %5471  ;;  %v2709_v43 = vadd.f32 %v7513_v53, %v7509_v10  ;;  %5483 = vpow2.f32 %v2603_v6 }
 0x739   :  { %v7523_v41 = vpop.eup %5473  ;;  %5485 = vpow2.f32 %v2615_v0 }
 0x73a   :  { %v7525_v22 = vpop.eup %5475  ;;  %v2717_v59 = vadd.f32 %v2709_v43, %v2705_v38  ;;  %v2984_v36 = vpop.permute.xlu2 %2983  ;;  %v2700_v51 = vadd.f32 %v7523_v41, %v7517_v12  ;;  %5487 = vpow2.f32 %v2627_v20  ;;  %v2426_v43 = vsub.f32 %v7347_v3, %v2421_v34 }
 0x73b   :  { %v7531_v25 = vpop.eup %5477  ;;  %2995 = vst.msk [vmem:[#allocation3 + $0x60] sm:$0xf] %vm701_vm1, %v2984_v36  ;;  %5489 = vpow2.f32 %v2639_v54  ;;  %v2474_v3 = vsub.f32 %v7354_v48, %v7456_v11  ;;  %v2402_v34 = vsub.f32 %v7345_v23, %v7467_v62 }
 0x73c   :  { %v7534_v31 = vpop.eup %5479  ;;  %v2721_v16 = vadd.f32 %v2717_v59, %v2713_v9  ;;  %v2704_v44 = vadd.f32 %v7531_v25, %v7525_v22  ;;  %5491 = vpow2.f32 %v2651_v15  ;;  %v2712_v18 = vadd.f32 %v2700_v51, %v2696_v56 }
 0x73d   :  { %v7538_v58 = vpop.eup %5481  ;;  %5493 = vpow2.f32 %v2663_v35  ;;  %v2450_v59 = vsub.f32 %v7352_v49, %v7332_v42  ;;  %v7572_v51 = vsub.f32 %v7343_v24, %v7370_v60  ;;  %v2498_v24 = vsub.f32 %v7337_v46, %v7489_v63  ;;  %v5600_v63 = vld [vmem:[#allocation5 + $0x8] sm:$0xff] }
 0x73e   :  { %v7540_v52 = vpop.eup %5483  ;;  %5495 = vrcp.f32 %v2721_v16  ;;  %v2708_v8 = vadd.f32 %v7538_v58, %v7534_v31  ;;  %v2574_v60 = vmax.f32 %v2402_v34, %v2426_v43 }
 0x73f   :  { %v7544_v2 = vpop.eup %5485  ;;  %v2517_v61 = vpop.permute.xlu1 %2516  ;;  %5497 = vpow2.f32 %v2675_v4 }
 0x740   :  { %v7546_v19 = vpop.eup %5487  ;;  %v2716_v26 = vadd.f32 %v2708_v8, %v2704_v44  ;;  %5499 = vpow2.f32 %v2687_v27  ;;  %v2695_v54 = vadd.f32 %v7544_v2, %v7540_v52  ;;  %v2522_v4 = vsub.f32 %v7339_v57, %v2517_v61 }
 0x741   :  { %v7548_v33 = vpop.eup %5489  ;;  %v2578_v8 = vmax.f32 %v2450_v59, %v2474_v3 }
 0x742   :  { %v7550_v6 = vpop.eup %5491  ;;  %v2720_v0 = vadd.f32 %v2716_v26, %v2712_v18  ;;  %v2946_v55 = vpop.permute.xlu2 %2945  ;;  %v5100_v38 = vld [vmem:[#allocation3 + $0x60] sm:$0xff]  ;;  %v2699_v15 = vadd.f32 %v7548_v33, %v7546_v19  ;;  %v2582_v46 = vmax.f32 %v2498_v24, %v2522_v4 }
 0x743   :  { %v7552_v20 = vpop.eup %5493  ;;  %2954 = vst.msk [vmem:[#allocation3 + $0x5c] sm:$0xf] %vm701_vm1, %v2946_v55  ;;  %3221 = vmatpush.bf16.msra.mxu1 %v5100_v38 }
 0x744   :  { %v5496_v37 = vpop.eup %5495  ;;  %5501 = vrcp.f32 %v2720_v0  ;;  %v2703_v36 = vadd.f32 %v7552_v20, %v7550_v6  ;;  %v2711_v44 = vadd.f32 %v2699_v15, %v2695_v54  ;;  %v2590_v0 = vmax.f32 %v2574_v60, %v2578_v8 }
 0x745   :  { %v7560_v9 = vpop.eup %5497  ;;  %v7562_v35 = vmul.f32 %v5599_v17, %v5496_v37 }
 0x746   :  { %v7568_v56 = vpop.eup %5499 }
 0x747   :  { %v2733_v42 = vmul.f32 %v7479_v7, %v7562_v35  ;;  %v2889_v49 = vmul.f32 %v7499_v45, %v7562_v35  ;;  %v2707_v16 = vadd.f32 %v7568_v56, %v7560_v9  ;;  %v7589_v23 = vmul.f32 %v7509_v10, %v7562_v35 }
 0x748   :  { %v2541_v48 = vpop.permute.xlu1 %2540  ;;  %v7593_v57 = vmul.f32 %v7505_v32, %v7562_v35  ;;  %v7603_v32 = vmul.f32 %v7513_v53, %v7562_v35 }
 0x749   :  { %v2737_v11 = vpack.c.bf16 %v2733_v42, %v2733_v42  ;;  %v2893_v62 = vpack.c.bf16 %v2889_v49, %v2889_v49  ;;  %v2715_v7 = vadd.f32 %v2707_v16, %v2703_v36  ;;  %v2546_v45 = vsub.f32 %v7341_v30, %v2541_v48 }
 0x74a   :  { %v5502_v27 = vpop.eup %5501  ;;  %v2878_v18 = vpop.permute.xlu2 %2877 }
 0x74b   :  { %2741 = vst.msk [vmem:[#allocation2 + $0x10] sm:$0xf] %vm701_vm1, %v2737_v11  ;;  %v7597_v61 = vmul.f32 %v5600_v63, %v5502_v27  ;;  %v2719_v10 = vadd.f32 %v2715_v7, %v2711_v44  ;;  %v2586_v26 = vmax.f32 %v2546_v45, %v7572_v51 }
 0x74c   :  { %2897 = vst.msk [vmem:[#allocation2 + $0x14] sm:$0xf] %vm701_vm1, %v2893_v62  ;;  %v5601_v62 = vld [vmem:[#allocation5] sm:$0xff] }
 0x74d   :  { %v2752_v30 = vmul.f32 %v7475_v1, %v7597_v61  ;;  %5503 = vrcp.f32 %v2719_v10  ;;  %v2594_v55 = vmax.f32 %v2582_v46, %v2586_v26  ;;  %2886 = vst.msk [vmem:[#allocation3 + $0x3c] sm:$0xf] %vm701_vm1, %v2878_v18  ;;  %v2732_v11 = vmul.f32 %v7471_v14, %v7597_v61 }
 0x74f   :  { %v2756_v38 = vpack.c.bf16 %v2752_v30, %v2752_v30  ;;  %v2598_v54 = vmax.f32 %v2590_v0, %v2594_v55  ;;  %v2888_v0 = vmul.f32 %v7525_v22, %v7597_v61  ;;  %v2844_v55 = vmul.f32 %v7523_v41, %v7597_v61 }
 0x750   :  { %v2944_v15 = vpop.permute.xlu1 %2943  ;;  %v2908_v22 = vmul.f32 %v7531_v25, %v7597_v61 }
 0x751   :  { %2765 = vrot.lane.b32.xlu0 %v2756_v38, %s5835_s19  ;;  %v2602_v37 = vsub.f32 %v2402_v34, %v2598_v54  ;;  %v2614_v17 = vsub.f32 %v2426_v43, %v2598_v54  ;;  %v2626_v36 = vsub.f32 %v2450_v59, %v2598_v54  ;;  %v2638_v42 = vsub.f32 %v2474_v3, %v2598_v54 }
 0x752   :  { %v2650_v49 = vsub.f32 %v2498_v24, %v2598_v54  ;;  %v2662_v53 = vsub.f32 %v2522_v4, %v2598_v54  ;;  %v2674_v16 = vsub.f32 %v2546_v45, %v2598_v54  ;;  %2953 = vst.msk [vmem:[#allocation3 + $0x58] sm:$0xf] %vm701_vm1, %v2944_v15  ;;  %v2686_v43 = vsub.f32 %v7572_v51, %v2598_v54 }
 0x753   :  { %v5504_v44 = vpop.eup %5503  ;;  %v2609_v1 = vmul.f32 1.442695, %v2602_v37  ;;  %v2621_v60 = vmul.f32 1.442695, %v2614_v17  ;;  %v2633_v48 = vmul.f32 1.442695, %v2626_v36  ;;  %v2736_v4 = vpack.c.bf16 %v2732_v11, %v2732_v11 }
 0x754   :  { %v7612_v7 = vmul.f32 %v5601_v62, %v5504_v44  ;;  %v2645_v27 = vmul.f32 1.442695, %v2638_v42  ;;  %v2657_v59 = vmul.f32 1.442695, %v2650_v49  ;;  %v2669_v3 = vmul.f32 1.442695, %v2662_v53 }
 0x755   :  { %5505 = vpow2.f32 %v2609_v1  ;;  %v5095_v34 = vld [vmem:[#allocation3 + $0x38] sm:$0xff]  ;;  %v2681_v8 = vmul.f32 1.442695, %v2674_v16  ;;  %2740 = vst.msk [vmem:[#allocation2 + $0x8] sm:$0xf] %vm701_vm1, %v2736_v4  ;;  %v2800_v38 = vmul.f32 %v7517_v12, %v7597_v61  ;;  %v2892_v15 = vpack.c.bf16 %v2888_v0, %v2888_v0  ;;  %v5090_v0 = vld [vmem:[#allocation3 + $0x10] sm:$0xff] }
 0x756   :  { %v2799_v24 = vmul.f32 %v7546_v19, %v7612_v7  ;;  %v2751_v45 = vmul.f32 %v7544_v2, %v7612_v7  ;;  %5507 = vpow2.f32 %v2621_v60  ;;  %v2843_v14 = vmul.f32 %v7548_v33, %v7612_v7  ;;  %3199 = vmatpush.bf16.msra.mxu3 %v5095_v34  ;;  %v5094_v19 = vld [vmem:[#allocation3 + $0x30] sm:$0xff]  ;;  %v5097_v34 = vld [vmem:[#allocation3 + $0x48] sm:$0xff] }
 0x757   :  { %5509 = vpow2.f32 %v2633_v48  ;;  %v2693_v46 = vmul.f32 1.442695, %v2686_v43  ;;  %v2731_v33 = vmul.f32 %v7540_v52, %v7612_v7  ;;  %v2887_v26 = vmul.f32 %v7550_v6, %v7612_v7  ;;  %2896 = vst.msk [vmem:[#allocation2 + $0xc] sm:$0xf] %vm701_vm1, %v2892_v15 }
 0x758   :  { %v2803_v51 = vpack.c.bf16 %v2799_v24, %v2799_v24  ;;  %v2755_v18 = vpack.c.bf16 %v2751_v45, %v2751_v45  ;;  %5511 = vpow2.f32 %v2645_v27  ;;  %v2942_v63 = vpop.permute.xlu1 %2941  ;;  %v2847_v10 = vpack.c.bf16 %v2843_v14, %v2843_v14 }
 0x759   :  { %5513 = vpow2.f32 %v2657_v59  ;;  %2952 = vst.msk [vmem:[#allocation3 + $0x54] sm:$0xf] %vm701_vm1, %v2942_v63  ;;  %v5099_v2 = vld [vmem:[#allocation3 + $0x58] sm:$0xff]  ;;  %v2735_v52 = vpack.c.bf16 %v2731_v33, %v2731_v33  ;;  %v2891_v6 = vpack.c.bf16 %v2887_v26, %v2887_v26  ;;  %v2848_v49 = vpack.c.bf16 %v2844_v55, %v2844_v55 }
 0x75a   :  { %2811 = vrot.lane.b32.xlu1 %v2803_v51, %s8397_s3  ;;  %2763 = vrot.lane.b32.xlu2 %v2755_v18, %s5835_s19  ;;  %5515 = vpow2.f32 %v2669_v3  ;;  %v2804_v53 = vpack.c.bf16 %v2800_v38, %v2800_v38  ;;  %v2912_v60 = vpack.c.bf16 %v2908_v22, %v2908_v22  ;;  %v2955_v27 = vmul.f32 %v7560_v9, %v7612_v7  ;;  %v5096_v9 = vld [vmem:[#allocation3 + $0x40] sm:$0xff] }
 0x75b   :  { %v7631_v30 = vpop.eup %5505  ;;  %5517 = vpow2.f32 %v2681_v8  ;;  %2855 = vrot.lane.b32.xlu0 %v2847_v10, %s5842_s4  ;;  %3200 = vmatpush.bf16.msra.mxu3 %v5094_v19  ;;  %2739 = vst.msk [vmem:[#allocation2] sm:$0xf] %vm701_vm1, %v2735_v52  ;;  %v2907_v43 = vmul.f32 %v7552_v20, %v7612_v7  ;;  %v2999_v3 = vmul.f32 %v7568_v56, %v7612_v7  ;;  %v5092_v7 = vld [vmem:[#allocation3 + $0x20] sm:$0xff]  ;;  %v5091_v19 = vld [vmem:[#allocation3 + $0x18] sm:$0xff] }
 0x75c   :  { %v5508_v54 = vpop.eup %5507  ;;  %5519 = vpow2.f32 %v2693_v46  ;;  %3222 = vmatpush.bf16.msra.mxu1 %v5099_v2  ;;  %2895 = vst.msk [vmem:[#allocation2 + $0x4] sm:$0xf] %vm701_vm1, %v2891_v6  ;;  %v2959_v24 = vpack.c.bf16 %v2955_v27, %v2955_v27  ;;  %v3000_v20 = vmul.f32 %v7538_v58, %v7597_v61  ;;  %v2956_v56 = vmul.f32 %v7534_v31, %v7597_v61  ;;  %v5602_v18 = vld [vmem:[#allocation5 + $0x18] sm:$0xff] }
 0x75d   :  { %v7638_v37 = vpop.eup %5509  ;;  %v2698_v36 = vadd.f32 %v5508_v54, %v7631_v30  ;;  %v2911_v45 = vpack.c.bf16 %v2907_v43, %v2907_v43  ;;  %v3003_v8 = vpack.c.bf16 %v2999_v3, %v2999_v3  ;;  %v2801_v31 = vmul.f32 %v7487_v39, %v7562_v35  ;;  %v5089_v39 = vld [vmem:[#allocation3 + $0x8] sm:$0xff]  ;;  %v5088_v22 = vld [vmem:[#allocation3] sm:$0xff] }
 0x75e   :  { %v7642_v17 = vpop.eup %5511  ;;  %v3004_v63 = vpack.c.bf16 %v3000_v20, %v3000_v20  ;;  %v2960_v10 = vpack.c.bf16 %v2956_v56, %v2956_v56  ;;  %v2753_v61 = vmul.f32 %v7483_v40, %v7562_v35 }
 0x75f   :  { %v5514_v41 = vpop.eup %5513  ;;  %v2702_v12 = vadd.f32 %v7642_v17, %v7638_v37 }
 0x760   :  { %v7649_v42 = vpop.eup %5515  ;;  %v2834_v16 = vpop.permute.xlu1 %2833  ;;  %v5098_v44 = vld [vmem:[#allocation3 + $0x50] sm:$0xff]  ;;  %v2757_v52 = vpack.c.bf16 %v2753_v61, %v2753_v61 }
 0x761   :  { %v7652_v25 = vpop.eup %5517  ;;  %v2706_v1 = vadd.f32 %v7649_v42, %v5514_v41  ;;  %2842 = vst.msk [vmem:[#allocation3 + $0x2c] sm:$0xf] %vm701_vm1, %v2834_v16  ;;  %v2714_v62 = vadd.f32 %v2702_v12, %v2698_v36  ;;  %3223 = vmatpush.bf16.msra.mxu1 %v5098_v44 }
 0x762   :  { %v7656_v48 = vpop.eup %5519  ;;  %2857 = vrot.lane.b32.xlu1 %v2848_v49, %s5842_s4  ;;  %2813 = vrot.lane.b32.xlu2 %v2804_v53, %s8397_s3  ;;  %v3005_v49 = vpack.c.bf16 %v7603_v32, %v7603_v32 }
 0x763   :  { %v2710_v11 = vadd.f32 %v7656_v48, %v7652_v25  ;;  %2921 = vrot.lane.b32.xlu0 %v2912_v60, %s5835_s19 }
 0x765   :  { %v2718_v59 = vadd.f32 %v2710_v11, %v2706_v1  ;;  %3224 = vmatpush.bf16.msra.mxu1 %v5097_v34 }
 0x767   :  { %v2722_v4 = vadd.f32 %v2718_v59, %v2714_v62 }
 0x768   :  { %v5093_v14 = vld [vmem:[#allocation3 + $0x28] sm:$0xff] }
 0x769   :  { %5521 = vrcp.f32 %v2722_v4  ;;  %3201 = vmatpush.bf16.msra.mxu3 %v5093_v14  ;;  %3225 = vmatpush.bf16.msra.mxu1 %v5096_v9 }
 0x76a   :  { %2967 = vrot.lane.b32.xlu1 %v2959_v24, %s8397_s3  ;;  %2919 = vrot.lane.b32.xlu2 %v2911_v45, %s5835_s19 }
 0x76b   :  { %3011 = vrot.lane.b32.xlu0 %v3003_v8, %s5842_s4 }
 0x76d   :  { %3202 = vmatpush.bf16.msra.mxu3 %v5092_v7 }
 0x76f   :  { %v5522_v51 = vpop.eup %5521 }
 0x770   :  { %v2730_v46 = vmul.f32 %v5602_v18, %v5522_v51 }
 0x771   :  { %3203 = vmatpush.bf16.msra.mxu3 %v5091_v19 }
 0x772   :  { %3013 = vrot.lane.b32.xlu1 %v3004_v63, %s5842_s4  ;;  %2969 = vrot.lane.b32.xlu2 %v2960_v10, %s8397_s3  ;;  %v2754_v2 = vmul.f32 %v5508_v54, %v2730_v46  ;;  %v2734_v58 = vmul.f32 %v7631_v30, %v2730_v46  ;;  %v2890_v26 = vmul.f32 %v5514_v41, %v2730_v46 }
 0x773   :  { %v2805_v54 = vpack.c.bf16 %v2801_v31, %v2801_v31  ;;  %v2845_v30 = vmul.f32 %v7493_v21, %v7562_v35  ;;  %v2846_v40 = vmul.f32 %v7642_v17, %v2730_v46  ;;  %v2802_v6 = vmul.f32 %v7638_v37, %v2730_v46 }
 0x774   :  { %v2758_v33 = vpack.c.bf16 %v2754_v2, %v2754_v2  ;;  %v2738_v55 = vpack.c.bf16 %v2734_v58, %v2734_v58  ;;  %v2894_v38 = vpack.c.bf16 %v2890_v26, %v2890_v26  ;;  %v2910_v21 = vmul.f32 %v7649_v42, %v2730_v46 }
 0x775   :  { %3204 = vmatpush.bf16.msra.mxu3 %v5090_v0  ;;  %v2849_v15 = vpack.c.bf16 %v2845_v30, %v2845_v30  ;;  %v2850_v41 = vpack.c.bf16 %v2846_v40, %v2846_v40  ;;  %v2806_v36 = vpack.c.bf16 %v2802_v6, %v2802_v6  ;;  %v2961_v37 = vpack.c.bf16 %v7589_v23, %v7589_v23  ;;  %v4882_v0 = vld [vmem:[#allocation15 + $0x18] sm:$0xf]  ;;  %v5105_v40 = vld [vmem:[#allocation15 + $0x8] sm:$0xf0]  ;;  %v5104_v6 = vld [vmem:[#allocation15 + $0x4] sm:$0xf] }
 0x776   :  { %2769 = vrot.lane.b32.xlu0 %v2758_v33, %s5835_s19  ;;  %2742 = vst.msk [vmem:[#allocation2 + $0x18] sm:$0xf] %vm701_vm1, %v2738_v55  ;;  %v2914_v35 = vpack.c.bf16 %v2910_v21, %v2910_v21  ;;  %v2913_v17 = vpack.c.bf16 %v7593_v57, %v7593_v57  ;;  %v3002_v12 = vmul.f32 %v7656_v48, %v2730_v46  ;;  %v5108_v55 = vld [vmem:[#allocation15 + $0x20] sm:$0xf0] }
 0x777   :  { %2898 = vst.msk [vmem:[#allocation2 + $0x1c] sm:$0xf] %vm701_vm1, %v2894_v38  ;;  %v2958_v42 = vmul.f32 %v7652_v25, %v2730_v46  ;;  %v5107_v38 = vld [vmem:[#allocation15 + $0x1c] sm:$0xf] }
 0x778   :  { %v3006_v53 = vpack.c.bf16 %v3002_v12, %v3002_v12 }
 0x779   :  { %3205 = vmatpush.bf16.msra.mxu3 %v5089_v39  ;;  %v2962_v16 = vpack.c.bf16 %v2958_v42, %v2958_v42  ;;  %v4870_v39 = vld [vmem:[#allocation15] sm:$0xf] }
 0x77a   :  { %2815 = vrot.lane.b32.xlu1 %v2805_v54, %s8397_s3  ;;  %2767 = vrot.lane.b32.xlu2 %v2757_v52, %s5835_s19  ;;  %v4883_v54 = vor.u32 %v5108_v55, %v4882_v0  ;;  %v4884_v52 = vld [vmem:[#allocation15 + $0x24] sm:$0xf0]  ;;  %v8410_v55 = vmov 0  }
 0x77b   :  { %v4887_v30 = vor.u32 %v5107_v38, %v4884_v52  ;;  %v8411_v38 = vmov 4   ;;  %v8412_v52 = vmov 5  }
 0x77c   :  { %3295 = vmatpush.bf16.msra.mxu0 %v4883_v54 }
 0x77d   :  { %3206 = vmatpush.bf16.msra.mxu3 %v5088_v22  ;;  %v4872_v22 = vld [vmem:[#allocation15 + $0xc] sm:$0xf0]  ;;  %3314 = vmatpush.bf16.msrb.mxu2 %v4887_v30 }
 0x77e   :  { %2859 = vrot.lane.b32.xlu0 %v2849_v15, %s5842_s4  ;;  %v4871_v15 = vor.u32 %v5105_v40, %v4870_v39  ;;  %v8413_v39 = vmov 2  }
 0x780   :  { %3296 = vmatpush.bf16.msra.mxu0 %v4871_v15  ;;  %v8414_v15 = vmov 3  }
 0x782   :  { %2861 = vrot.lane.b32.xlu1 %v2850_v41, %s5842_s4  ;;  %2817 = vrot.lane.b32.xlu2 %v2806_v36, %s8397_s3  ;;  %v4875_v41 = vor.u32 %v5104_v6, %v4872_v22 }
 0x784   :  { %3315 = vmatpush.bf16.msrb.mxu2 %v4875_v41 }
 0x786   :  { %2925 = vrot.lane.b32.xlu0 %v2914_v35, %s5835_s19  ;;  %v5302_v35 = vld [vmem:[%s8341_s13] ss:$0 sm:$0xff] }
 0x78a   :  { %2971 = vrot.lane.b32.xlu1 %v2961_v37, %s8397_s3  ;;  %2923 = vrot.lane.b32.xlu2 %v2913_v17, %s5835_s19 }
 0x78e   :  { %3015 = vrot.lane.b32.xlu0 %v3005_v49, %s5842_s4 }
 0x792   :  { %3017 = vrot.lane.b32.xlu1 %v3006_v53, %s5842_s4  ;;  %2973 = vrot.lane.b32.xlu2 %v2962_v16, %s8397_s3 }
 0x7b4   :  { %v2764_v23 = vpop.permute.xlu2 %2763 }
 0x7b5   :  { %2775 = vst.msk [vmem:[#allocation2] sm:$0xf] %vm738_vm4, %v2764_v23 }
 0x7bc   :  { %v2814_v57 = vpop.permute.xlu2 %2813 }
 0x7c3   :  { %v2766_v44 = vpop.permute.xlu0 %2765 }
 0x7c4   :  { %v2920_v1 = vpop.permute.xlu2 %2919  ;;  %2776 = vst.msk [vmem:[#allocation2 + $0x8] sm:$0xf] %vm738_vm4, %v2766_v44  ;;  %v4890_v44 = vld [vmem:[#allocation15 + $0x20] sm:$0xf] }
 0x7c5   :  { %2931 = vst.msk [vmem:[#allocation2 + $0x4] sm:$0xf] %vm738_vm4, %v2920_v1  ;;  %v5109_v1 = vld [vmem:[#allocation15 + $0x28] sm:$0xf0] }
 0x7c6   :  { %2824 = vst.msk [vmem:[#allocation2 + $0x8] sm:$0xf] %vm787_vm5, %v2814_v57 }
 0x7cc   :  { %v2812_v32 = vpop.permute.xlu1 %2811  ;;  %v2970_v25 = vpop.permute.xlu2 %2969 }
 0x7cd   :  { %2823 = vst.msk [vmem:[#allocation2] sm:$0xf] %vm787_vm5, %v2812_v32  ;;  %v2856_v60 = vpop.permute.xlu0 %2855  ;;  %v4878_v32 = vld [vmem:[#allocation15 + $0x8] sm:$0xf] }
 0x7ce   :  { %2867 = vst.msk [vmem:[#allocation2] sm:$0xf] %vm832_vm6, %v2856_v60  ;;  %v5106_v60 = vld [vmem:[#allocation15 + $0x10] sm:$0xf0] }
 0x7d4   :  { %v2858_v48 = vpop.permute.xlu1 %2857  ;;  %v2768_v11 = vpop.permute.xlu2 %2767 }
 0x7d5   :  { %2868 = vst.msk [vmem:[#allocation2 + $0x8] sm:$0xf] %vm832_vm6, %v2858_v48  ;;  %v2922_v62 = vpop.permute.xlu0 %2921  ;;  %v4790_v27 = vld [vmem:[#allocation2] sm:$0xf]  ;;  %v4879_v48 = vor.u32 %v5106_v60, %v4878_v32 }
 0x7d6   :  { %2777 = vst.msk [vmem:[#allocation2 + $0x10] sm:$0xf] %vm738_vm4, %v2768_v11 }
 0x7d7   :  { %2932 = vst.msk [vmem:[#allocation2 + $0xc] sm:$0xf] %vm738_vm4, %v2922_v62 }
 0x7d8   :  { %2980 = vst.msk [vmem:[#allocation2 + $0xc] sm:$0xf] %vm787_vm5, %v2970_v25  ;;  %v4891_v25 = vor.u32 %v5109_v1, %v4890_v44 }
 0x7da   :  { %3333 = vmatpush.bf16.msrb.mxu0 %v4891_v25 }
 0x7dc   :  { %v2968_v43 = vpop.permute.xlu1 %2967  ;;  %v5085_v59 = vld [vmem:[#allocation2 + $0x4] sm:$0xf0]  ;;  %v2818_v3 = vpop.permute.xlu2 %2817 }
 0x7dd   :  { %2979 = vst.msk [vmem:[#allocation2 + $0x4] sm:$0xf] %vm787_vm5, %v2968_v43  ;;  %v4791_v34 = vor.u32 %v5085_v59, %v4790_v27  ;;  %v3012_v4 = vpop.permute.xlu0 %3011 }
 0x7de   :  { %3023 = vst.msk [vmem:[#allocation2 + $0x4] sm:$0xf] %vm832_vm6, %v3012_v4  ;;  %3334 = vmatpush.bf16.msrb.mxu0 %v4879_v48 }
 0x7df   :  { %3207 = vmatmul.bf16.vlgmr.msra.gmra.mxu3 %v4791_v34 }
 0x7e4   :  { %v3014_v24 = vpop.permute.xlu1 %3013  ;;  %v2924_v45 = vpop.permute.xlu2 %2923 }
 0x7e5   :  { %3024 = vst.msk [vmem:[#allocation2 + $0xc] sm:$0xf] %vm832_vm6, %v3014_v24  ;;  %v5084_v8 = vld [vmem:[#allocation2 + $0x4] sm:$0xf] }
 0x7e6   :  { %2933 = vst.msk [vmem:[#allocation2 + $0x14] sm:$0xf] %vm738_vm4, %v2924_v45 }
 0x7e8   :  { %v2770_v14 = vpop.permute.xlu0 %2769 }
 0x7e9   :  { %2778 = vst.msk [vmem:[#allocation2 + $0x18] sm:$0xf] %vm738_vm4, %v2770_v14 }
 0x7ea   :  { %2826 = vst.msk [vmem:[#allocation2 + $0x18] sm:$0xf] %vm787_vm5, %v2818_v3 }
 0x7ec   :  { %v2816_v9 = vpop.permute.xlu1 %2815  ;;  %v4792_v20 = vld [vmem:[#allocation2 + $0x8] sm:$0xf0]  ;;  %v2974_v46 = vpop.permute.xlu2 %2973 }
 0x7ed   :  { %2825 = vst.msk [vmem:[#allocation2 + $0x10] sm:$0xf] %vm787_vm5, %v2816_v9  ;;  %v4795_v56 = vor.u32 %v5084_v8, %v4792_v20  ;;  %v5131_v8 = vld [vmem:[%s8345_s17 + $0x8] sm:$0xff]  ;;  %v5130_v9 = vld [vmem:[%s8345_s17] sm:$0xff] }
 0x7ef   :  { %3226 = vmatmul.bf16.vlgmr.msra.gmra.mxu1 %v4795_v56 }
 0x7f0   :  { %v2860_v7 = vpop.permute.xlu0 %2859 }
 0x7f1   :  { %2869 = vst.msk [vmem:[#allocation2 + $0x10] sm:$0xf] %vm832_vm6, %v2860_v7 }
 0x7f4   :  { %v2862_v51 = vpop.permute.xlu1 %2861 }
 0x7f5   :  { %2870 = vst.msk [vmem:[#allocation2 + $0x18] sm:$0xf] %vm832_vm6, %v2862_v51 }
 0x7f8   :  { %v2926_v18 = vpop.permute.xlu0 %2925  ;;  %v4798_v63 = vld [vmem:[#allocation2 + $0x10] sm:$0xf] }
 0x7f9   :  { %2934 = vst.msk [vmem:[#allocation2 + $0x1c] sm:$0xf] %vm738_vm4, %v2926_v18 }
 0x7fa   :  { %2982 = vst.msk [vmem:[#allocation2 + $0x1c] sm:$0xf] %vm787_vm5, %v2974_v46 }
 0x7fc   :  { %v2972_v10 = vpop.permute.xlu1 %2971  ;;  %v5087_v19 = vld [vmem:[#allocation2 + $0x14] sm:$0xf0] }
 0x7fd   :  { %2981 = vst.msk [vmem:[#allocation2 + $0x14] sm:$0xf] %vm787_vm5, %v2972_v10  ;;  %v4799_v2 = vor.u32 %v5087_v19, %v4798_v63 }
 0x7ff   :  { %3212 = vmatmul.bf16.gmra.mxu3 %v4799_v2 }
 0x800   :  { %v3016_v58 = vpop.permute.xlu0 %3015 }
 0x801   :  { %3025 = vst.msk [vmem:[#allocation2 + $0x14] sm:$0xf] %vm832_vm6, %v3016_v58 }
 0x804   :  { %v3018_v31 = vpop.permute.xlu1 %3017 }
 0x805   :  { %3026 = vst.msk [vmem:[#allocation2 + $0x1c] sm:$0xf] %vm832_vm6, %v3018_v31 }
 0x808   :  { %v5086_v61 = vld [vmem:[#allocation2 + $0x14] sm:$0xf] }
 0x80c   :  { %v4800_v33 = vld [vmem:[#allocation2 + $0x18] sm:$0xf0] }
 0x80d   :  { %v4803_v26 = vor.u32 %v5086_v61, %v4800_v33 }
 0x80f   :  { %3231 = vmatmul.bf16.gmra.mxu1 %v4803_v26 }
 0x862   :  { %v3208_v36 = vpop.f32.mrf.mxu3 }
 0x863   :  { %v3209_v17 = vadd.f32 %v5302_v35, %v3208_v36 }
 0x86a   :  { %v3210_v37 = vpop.f32.mrf.mxu3 }
 0x86b   :  { %v3211_v12 = vadd.f32 %v5302_v35, %v3210_v37 }
 0x86c   :  { %v3227_v21 = vpop.f32.mrf.mxu1 }
 0x86d   :  { %v3228_v42 = vadd.f32 %v3227_v21, %v3209_v17 }
 0x86f   :  { %v3237_v16 = vmax.f32 %v3228_v42, 0.0 }
 0x874   :  { %v3229_v49 = vpop.f32.mrf.mxu1 }
 0x875   :  { %v3230_v53 = vadd.f32 %v3229_v49, %v3211_v12 }
 0x877   :  { %v3238_v23 = vmax.f32 %v3230_v53, 0.0 }
 0x879   :  { %v3241_v57 = vpack.c.bf16 %v3238_v23, %v3237_v16 }
 0x87b   :  { %4892 = vmatmul.msk.bf16.vlgmr.msra.gmra.mxu0 %vm1249_vm7, %v3241_v57  ;;  %4894 = vmatmul.msk.bf16.vlgmr.msrb.gmra.mxu2 %vm1249_vm7, %v3241_v57 }
 0x87c   :  { %4309 = vmatpush.bf16.msra.mxu0 %v5131_v8 }
 0x880   :  { %4310 = vmatpush.bf16.msra.mxu0 %v5130_v9 }
 0x882   :  { %v3213_v11 = vpop.f32.mrf.mxu3 }
 0x883   :  { %v3214_v43 = vadd.f32 %v5302_v35, %v3213_v11 }
 0x88a   :  { %v3215_v27 = vpop.f32.mrf.mxu3 }
 0x88b   :  { %v3216_v59 = vadd.f32 %v5302_v35, %v3215_v27 }
 0x88c   :  { %v3232_v62 = vpop.f32.mrf.mxu1 }
 0x88d   :  { %v3233_v3 = vadd.f32 %v3232_v62, %v3214_v43 }
 0x88f   :  { %v3239_v24 = vmax.f32 %v3233_v3, 0.0 }
 0x894   :  { %v3234_v34 = vpop.f32.mrf.mxu1 }
 0x895   :  { %v3235_v4 = vadd.f32 %v3234_v34, %v3216_v59 }
 0x897   :  { %v3240_v45 = vmax.f32 %v3235_v4, 0.0 }
 0x899   :  { %v3242_v14 = vpack.c.bf16 %v3240_v45, %v3239_v24 }
 0x89b   :  { %4893 = vmatmul.msk.bf16.gmra.mxu0 %vm1249_vm7, %v3242_v14  ;;  %4895 = vmatmul.msk.bf16.gmra.mxu2 %vm1249_vm7, %v3242_v14 }
 0x8ab   :  { %4896 = vmatmul.msk.bf16.vlgmr.msrb.gmra.mxu0 %vm1249_vm7, %v3241_v57 }
 0x8bb   :  { %4897 = vmatmul.msk.bf16.gmra.mxu0 %vm1249_vm7, %v3242_v14 }
 0x8cb   :  { %5008 = vmatmul.msk.bf16.vlgmr.msra.gmra.mxu0 %vm1249_vm7, %v7133_v13 }
 0x8db   :  { %5009 = vmatmul.msk.bf16.gmra.mxu0 %vm1249_vm7, %v7151_v28 }
 0x8f8   :  { %v3298_v20 = vpop.f32.mrf.mxu0 }
 0x8f9   :  { %v7753_v56 = vpack.c.bf16 %v3298_v20, %v3298_v20 }
 0x8fb   :  { %3746 = vst.msk [vmem:[#allocation3] sm:$0xf] %vm701_vm1, %v7753_v56  ;;  %3826 = vrot.lane.b32.xlu1 %v7753_v56, %s8397_s3  ;;  %3870 = vrot.lane.b32.xlu2 %v7753_v56, %s5835_s19 }
 0x8fe   :  { %v3317_v7 = vpop.f32.mrf.mxu2 }
 0x8ff   :  { %v7761_v51 = vpack.c.bf16 %v3317_v7, %v3317_v7 }
 0x900   :  { %v3300_v18 = vpop.f32.mrf.mxu0 }
 0x901   :  { %3902 = vst.msk [vmem:[#allocation3 + $0x40] sm:$0xf] %vm701_vm1, %v7761_v51  ;;  %v7765_v13 = vpack.c.bf16 %v3300_v18, %v3300_v18  ;;  %4026 = vrot.lane.b32.xlu0 %v7761_v51, %s5835_s19  ;;  %v3403_v18 = vstv %s4903_s1 }
 0x903   :  { %3747 = vst.msk [vmem:[#allocation3 + $0x4] sm:$0xf] %vm701_vm1, %v7765_v13  ;;  %3982 = vrot.lane.b32.xlu2 %v7761_v51, %s8397_s3 }
 0x906   :  { %v3319_v28 = vpop.f32.mrf.mxu2 }
 0x907   :  { %v7773_v46 = vpack.c.bf16 %v3319_v28, %v3319_v28  ;;  %v3451_v28 = vstv %s4905_s6 }
 0x909   :  { %3903 = vst.msk [vmem:[#allocation3 + $0x44] sm:$0xf] %vm701_vm1, %v7773_v46  ;;  %4028 = vrot.lane.b32.xlu1 %v7773_v46, %s5835_s19  ;;  %3872 = vrot.lane.b32.xlu0 %v7765_v13, %s5835_s19 }
 0x911   :  { %3984 = vrot.lane.b32.xlu0 %v7773_v46, %s8397_s3 }
 0x918   :  { %v3303_v63 = vpop.f32.mrf.mxu0 }
 0x919   :  { %v7783_v10 = vpack.c.bf16 %v3303_v63, %v3303_v63  ;;  %v3475_v63 = vstv %s4906_s28 }
 0x91b   :  { %3748 = vst.msk [vmem:[#allocation3 + $0x8] sm:$0xf] %vm701_vm1, %v7783_v10  ;;  %3830 = vrot.lane.b32.xlu0 %v7783_v10, %s8397_s3  ;;  %3874 = vrot.lane.b32.xlu1 %v7783_v10, %s5835_s19 }
 0x91e   :  { %v3322_v19 = vpop.f32.mrf.mxu2 }
 0x91f   :  { %v3900_v2 = vpack.c.bf16 %v3322_v19, %v3322_v19  ;;  %v3523_v19 = vstv %s4908_s27 }
 0x920   :  { %v3305_v58 = vpop.f32.mrf.mxu0 }
 0x921   :  { %3904 = vst.msk [vmem:[#allocation3 + $0x48] sm:$0xf] %vm701_vm1, %v3900_v2  ;;  %v3745_v31 = vpack.c.bf16 %v3305_v58, %v3305_v58 }
 0x923   :  { %3749 = vst.msk [vmem:[#allocation3 + $0xc] sm:$0xf] %vm701_vm1, %v3745_v31  ;;  %4030 = vrot.lane.b32.xlu1 %v3900_v2, %s5835_s19  ;;  %3876 = vrot.lane.b32.xlu2 %v3745_v31, %s5835_s19 }
 0x926   :  { %v3324_v61 = vpop.f32.mrf.mxu2 }
 0x927   :  { %v7795_v33 = vpack.c.bf16 %v3324_v61, %v3324_v61 }
 0x928   :  { %v3336_v26 = vpop.f32.mrf.mxu0 }
 0x929   :  { %3905 = vst.msk [vmem:[#allocation3 + $0x4c] sm:$0xf] %vm701_vm1, %v7795_v33  ;;  %3455 = vperm.xlu0 %5264, %v3336_v26  }
 0x92b   :  { %3986 = vrot.lane.b32.xlu1 %v3900_v2, %s8397_s3  ;;  %3383 = vperm.xlu2 %5261, %v3336_v26  }
 0x930   :  { %v3338_v0 = vpop.f32.mrf.mxu0 }
 0x931   :  { %5269 = vset.pattern.permute.xlu0 %v8410_v55 }
 0x932   :  { %3387 = vperm.xlu0 %5269, %v3338_v0  }
 0x933   :  { %3832 = vrot.lane.b32.xlu1 %v3745_v31, %s8397_s3  ;;  %5265 = vset.pattern.permute.xlu2 %v8411_v38 }
 0x934   :  { %3479 = vperm.xlu2 %5265, %v3336_v26  }
 0x938   :  { %v7803_v54 = vpop.f32.mrf.mxu0 }
 0x93a   :  { %5274 = vset.pattern.permute.xlu0 %v8412_v52 }
 0x93b   :  { %3407 = vperm.xlu1 %5262, %v3336_v26   ;;  %3507 = vperm.xlu0 %5274, %v3338_v0  }
 0x93c   :  { %5266 = vset.pattern.permute.xlu2 %v8412_v52 }
 0x93d   :  { %3503 = vperm.xlu2 %5266, %v3336_v26  }
 0x940   :  { %v7807_v30 = vpop.f32.mrf.mxu0 }
 0x941   :  { %4898 = vmatpush.xpose.msk.msrb.mxu3 %vm305_vm2, %v7807_v30 }
 0x943   :  { %5263 = vset.pattern.permute.xlu1 %v8413_v39  ;;  %5277 = vset.pattern.permute.xlu0 %v8410_v55 }
 0x944   :  { %3431 = vperm.xlu1 %5263, %v3336_v26   ;;  %3391 = vperm.xlu0 %5277, %v7803_v54  }
 0x945   :  { %4032 = vrot.lane.b32.xlu2 %v7795_v33, %s5835_s19  ;;  %4899 = vmatpush.xpose.msk.msrb.mxu3 %vm305_vm2, %v7803_v54 }
 0x946   :  { %5270 = vset.pattern.permute.xlu2 %v8404_v5 }
 0x949   :  { %4900 = vmatpush.xpose.msk.msrb.mxu3 %vm305_vm2, %v3338_v0 }
 0x94c   :  { %5267 = vset.pattern.permute.xlu1 %v8402_v50  ;;  %5282 = vset.pattern.permute.xlu0 %v8412_v52 }
 0x94d   :  { %3527 = vperm.xlu1 %5267, %v3336_v26   ;;  %3988 = vrot.lane.b32.xlu2 %v7795_v33, %s8397_s3 }
 0x94e   :  { %3511 = vperm.xlu0 %5282, %v7803_v54   ;;  %4901 = vmatpush.xpose.msk.msrb.mxu3 %vm305_vm2, %v3336_v26 }
 0x951   :  { %4902 = vmatmul.msk.f32.vlgmr.msrb.gmra.mxu3 %vm305_vm2, %v6107_v47 }
 0x955   :  { %v3871_v40 = vpop.permute.xlu2 %3870  ;;  %5268 = vset.pattern.permute.xlu1 %v8403_v29  ;;  %3411 = vperm.xlu2 %5270, %v3338_v0  }
 0x956   :  { %3882 = vst.msk [vmem:[#allocation3 + $0x30] sm:$0xf] %vm701_vm1, %v3871_v40  ;;  %5287 = vset.pattern.permute.xlu0 %v8413_v39  ;;  %3551 = vperm.xlu1 %5268, %v3336_v26  }
 0x957   :  { %3443 = vperm.xlu0 %5287, %v7807_v30  }
 0x95d   :  { %v3983_v6 = vpop.permute.xlu2 %3982  ;;  %5271 = vset.pattern.permute.xlu2 %v8413_v39 }
 0x95e   :  { %3994 = vst.msk [vmem:[#allocation3 + $0x60] sm:$0xf] %vm701_vm1, %v3983_v6  ;;  %5272 = vset.pattern.permute.xlu1 %v8414_v15  ;;  %3435 = vperm.xlu2 %5271, %v3338_v0  }
 0x95f   :  { %3942 = vrot.lane.b32.xlu0 %v3900_v2, %s5842_s4  ;;  %3459 = vperm.xlu1 %5272, %v3338_v0  }
 0x960   :  { %5292 = vset.pattern.permute.xlu0 %v8403_v29 }
 0x966   :  { %5275 = vset.pattern.permute.xlu2 %v8402_v50 }
 0x967   :  { %3563 = vperm.xlu0 %5292, %v7807_v30   ;;  %5273 = vset.pattern.permute.xlu1 %v8411_v38 }
 0x968   :  { %3531 = vperm.xlu2 %5275, %v3338_v0   ;;  %3483 = vperm.xlu1 %5273, %v3338_v0  }
 0x96d   :  { %v3827_v47 = vpop.permute.xlu1 %3826 }
 0x96e   :  { %3838 = vst.msk [vmem:[#allocation3 + $0x20] sm:$0xf] %vm701_vm1, %v3827_v47 }
 0x96f   :  { %3788 = vrot.lane.b32.xlu0 %v3745_v31, %s5842_s4 }
 0x970   :  { %5276 = vset.pattern.permute.xlu2 %v8403_v29  ;;  %5280 = vset.pattern.permute.xlu1 %v8414_v15 }
 0x971   :  { %3555 = vperm.xlu2 %5276, %v3338_v0   ;;  %3463 = vperm.xlu1 %5280, %v7803_v54  }
 0x972   :  { %5294 = vset.pattern.permute.xlu0 %v8410_v55 }
 0x973   :  { %v4027_v22 = vpop.permute.xlu0 %4026 }
 0x974   :  { %4038 = vst.msk [vmem:[#allocation3 + $0x70] sm:$0xf] %vm701_vm1, %v4027_v22 }
 0x977   :  { %3782 = vrot.lane.b32.xlu0 %v7753_v56, %s5842_s4 }
 0x979   :  { %5278 = vset.pattern.permute.xlu2 %v8404_v5  ;;  %5281 = vset.pattern.permute.xlu1 %v8411_v38 }
 0x97a   :  { %3415 = vperm.xlu2 %5278, %v7803_v54   ;;  %3487 = vperm.xlu1 %5281, %v7803_v54  }
 0x97b   :  { %v4029_v41 = vpop.permute.xlu1 %4028  ;;  %v3873_v36 = vpop.permute.xlu0 %3872 }
 0x97c   :  { %4039 = vst.msk [vmem:[#allocation3 + $0x74] sm:$0xf] %vm701_vm1, %v4029_v41 }
 0x97d   :  { %3883 = vst.msk [vmem:[#allocation3 + $0x34] sm:$0xf] %vm701_vm1, %v3873_v36  ;;  %v3877_v21 = vpop.permute.xlu2 %3876 }
 0x97e   :  { %3885 = vst.msk [vmem:[#allocation3 + $0x3c] sm:$0xf] %vm701_vm1, %v3877_v21 }
 0x982   :  { %5279 = vset.pattern.permute.xlu2 %v8413_v39  ;;  %5285 = vset.pattern.permute.xlu1 %v8410_v55 }
 0x983   :  { %v3985_v35 = vpop.permute.xlu0 %3984  ;;  %3439 = vperm.xlu2 %5279, %v7803_v54   ;;  %3395 = vperm.xlu1 %5285, %v7807_v30   ;;  %v5128_v60 = vld [vmem:[#allocation3 + $0x70] sm:$0xff] }
 0x984   :  { %3995 = vst.msk [vmem:[#allocation3 + $0x64] sm:$0xf] %vm701_vm1, %v3985_v35  ;;  %v5120_v23 = vld [vmem:[#allocation3 + $0x30] sm:$0xff] }
 0x985   :  { %v7861_v37 = vpop.permute.xlu2 %3383 }
 0x98b   :  { %5283 = vset.pattern.permute.xlu2 %v8402_v50  ;;  %5286 = vset.pattern.permute.xlu1 %v8404_v5  ;;  %v5126_v59 = vld [vmem:[#allocation3 + $0x60] sm:$0xff] }
 0x98c   :  { %3535 = vperm.xlu2 %5283, %v7803_v54   ;;  %3419 = vperm.xlu1 %5286, %v7807_v30  }
 0x98d   :  { %v3831_v17 = vpop.permute.xlu0 %3830  ;;  %v3875_v12 = vpop.permute.xlu1 %3874 }
 0x98e   :  { %3840 = vst.msk [vmem:[#allocation3 + $0x28] sm:$0xf] %vm701_vm1, %v3831_v17  ;;  %v7868_v42 = vpop.permute.xlu2 %3479 }
 0x98f   :  { %3884 = vst.msk [vmem:[#allocation3 + $0x38] sm:$0xf] %vm701_vm1, %v3875_v12 }
 0x994   :  { %5284 = vset.pattern.permute.xlu2 %v8403_v29  ;;  %5290 = vset.pattern.permute.xlu1 %v8412_v52 }
 0x995   :  { %3559 = vperm.xlu2 %5284, %v7803_v54   ;;  %v4031_v49 = vpop.permute.xlu1 %4030  ;;  %3515 = vperm.xlu1 %5290, %v7807_v30  }
 0x996   :  { %4040 = vst.msk [vmem:[#allocation3 + $0x78] sm:$0xf] %vm701_vm1, %v4031_v49  ;;  %v5121_v53 = vld [vmem:[#allocation3 + $0x38] sm:$0xff] }
 0x997   :  { %v7876_v16 = vpop.permute.xlu2 %3503  ;;  %4198 = vmatpush.bf16.msrb.mxu1 %v5121_v53 }
 0x99b   :  { %v7878_v57 = vpop.permute.xlu0 %3455  ;;  %4199 = vmatpush.bf16.msrb.mxu1 %v5120_v23 }
 0x99d   :  { %5288 = vset.pattern.permute.xlu2 %v8414_v15  ;;  %v3987_v29 = vpop.permute.xlu1 %3986  ;;  %5291 = vset.pattern.permute.xlu1 %v8402_v50 }
 0x99e   :  { %3996 = vst.msk [vmem:[#allocation3 + $0x68] sm:$0xf] %vm701_vm1, %v3987_v29  ;;  %3467 = vperm.xlu2 %5288, %v7807_v30   ;;  %3539 = vperm.xlu1 %5291, %v7807_v30  }
 0x99f   :  { %v4033_v44 = vpop.permute.xlu2 %4032 }
 0x9a0   :  { %4041 = vst.msk [vmem:[#allocation3 + $0x7c] sm:$0xf] %vm701_vm1, %v4033_v44 }
 0x9a4   :  { %v7886_v1 = vpop.permute.xlu0 %3387 }
 0x9a5   :  { %v3833_v32 = vpop.permute.xlu1 %3832 }
 0x9a6   :  { %3841 = vst.msk [vmem:[#allocation3 + $0x2c] sm:$0xf] %vm701_vm1, %v3833_v32  ;;  %5289 = vset.pattern.permute.xlu2 %v8411_v38  ;;  %3944 = vrot.lane.b32.xlu1 %v7795_v33, %s5842_s4 }
 0x9a7   :  { %3491 = vperm.xlu2 %5289, %v7807_v30   ;;  %v3989_v50 = vpop.permute.xlu2 %3988  ;;  %v5129_v25 = vld [vmem:[#allocation3 + $0x78] sm:$0xff]  ;;  %5295 = vset.pattern.permute.xlu1 %v8410_v55 }
 0x9a8   :  { %3997 = vst.msk [vmem:[#allocation3 + $0x6c] sm:$0xf] %vm701_vm1, %v3989_v50  ;;  %4217 = vmatpush.bf16.msra.mxu2 %v5129_v25 }
 0x9ac   :  { %4218 = vmatpush.bf16.msra.mxu2 %v5128_v60 }
 0x9ad   :  { %v7895_v48 = vpop.permute.xlu1 %3407  ;;  %v7897_v11 = vpop.permute.xlu0 %3507  ;;  %v5119_v62 = vld [vmem:[#allocation3 + $0x28] sm:$0xff] }
 0x9ae   :  { %3938 = vrot.lane.b32.xlu1 %v7761_v51, %s5842_s4  ;;  %4200 = vmatpush.bf16.msrb.mxu1 %v5119_v62  ;;  %v3379_v51 = vstv %s3378_s5 }
 0x9af   :  { %3828 = vrot.lane.b32.xlu2 %v7765_v13, %s8397_s3  ;;  %v3412_v27 = vpop.permute.xlu2 %3411  ;;  %v5127_v43 = vld [vmem:[#allocation3 + $0x68] sm:$0xff] }
 0x9b0   :  { %5293 = vset.pattern.permute.xlu2 %v8410_v55  ;;  %4219 = vmatpush.bf16.msra.mxu2 %v5127_v43 }
 0x9b4   :  { %4220 = vmatpush.bf16.msra.mxu2 %v5126_v59 }
 0x9b6   :  { %v7904_v3 = vpop.permute.xlu1 %3431  ;;  %v7906_v34 = vpop.permute.xlu0 %3391  ;;  %3784 = vrot.lane.b32.xlu1 %v7765_v13, %s5842_s4  ;;  %v3427_v13 = vstv %s4904_s2  ;;  %s5843_s2 = smov [#allocation21]  }
 0x9b7   :  { %3786 = vrot.lane.b32.xlu2 %v7783_v10, %s5842_s4  ;;  %v3499_v10 = vstv %s4907_s7  ;;  %s4490_s6 = sshll.u32 %s5843_s2, 4  ;;  %s8424_s7 = sld [smem:[#allocation43_spill]]  ;;  %s4491_s6 = int_to_ptr.vmem [resolvable:$true] %s4490_s6 }
 0x9b8   :  { %v3436_v4 = vpop.permute.xlu2 %3435 }
 0x9bd   :  { %s4492_s27 = sshll.u32 %s8424_s7, 4  ;;  %s4493_s27 = int_to_ptr.hbm [resolvable:$true] %s4492_s27 }
 0x9bf   :  { %3940 = vrot.lane.b32.xlu2 %v7773_v46, %s5842_s4  ;;  %v7914_v24 = vpop.permute.xlu1 %3527  ;;  %v3547_v46 = vstv %s4909_s12 }
 0x9c0   :  { %v7916_v45 = vpop.permute.xlu0 %3511 }
 0x9c2   :  { %v3532_v14 = vpop.permute.xlu2 %3531 }
 0x9c8   :  { %v3552_v8 = vpop.permute.xlu1 %3551 }
 0x9c9   :  { %v7918_v9 = vpop.permute.xlu0 %3443 }
 0x9cb   :  { %v3556_v20 = vpop.permute.xlu2 %3555 }
 0x9d1   :  { %v3943_v56 = vpop.permute.xlu0 %3942  ;;  %v3460_v7 = vpop.permute.xlu1 %3459 }
 0x9d2   :  { %3952 = vst.msk [vmem:[#allocation3 + $0x58] sm:$0xf] %vm701_vm1, %v3943_v56 }
 0x9d4   :  { %v7921_v2 = vpop.permute.xlu2 %3415  ;;  %v3375_v58 = vpop.f32.mrf.mxu3 }
 0x9d5   :  { %v3380_v31 = vadd.f32 %v3379_v51, %v3375_v58  ;;  %v3404_v61 = vadd.f32 %v3403_v18, %v3375_v58  ;;  %v3428_v33 = vadd.f32 %v3427_v13, %v3375_v58  ;;  %v3452_v26 = vadd.f32 %v3451_v28, %v3375_v58 }
 0x9d6   :  { %v3548_v0 = vadd.f32 %v3547_v46, %v3375_v58  ;;  %v3476_v38 = vadd.f32 %v3475_v63, %v3375_v58  ;;  %v3500_v54 = vadd.f32 %v3499_v10, %v3375_v58  ;;  %v3524_v52 = vadd.f32 %v3523_v19, %v3375_v58 }
 0x9d7   :  { %v7923_v30 = vperm.slane %v3380_v31, 0  ;;  %v7925_v39 = vperm.slane %v3404_v61, 1  ;;  %v7927_v40 = vperm.slane %v3428_v33, 2  ;;  %v7929_v6 = vperm.slane %v3452_v26, 3 }
 0x9d8   :  { %v7931_v15 = vperm.slane %v3548_v0, 7  ;;  %v7933_v47 = vperm.slane %v3476_v38, 4  ;;  %v7935_v22 = vperm.slane %v3500_v54, 5  ;;  %v7937_v41 = vperm.slane %v3524_v52, 6 }
 0x9d9   :  { %v7939_v36 = vpop.permute.xlu0 %3563  ;;  %v3399_v21 = vsub.f32 %v7923_v30, %v7886_v1  ;;  %v3423_v35 = vsub.f32 %v7925_v39, %v3412_v27  ;;  %v3447_v17 = vsub.f32 %v7927_v40, %v3436_v4  ;;  %v3471_v12 = vsub.f32 %v7929_v6, %v3460_v7 }
 0x9da   :  { %v3484_v49 = vpop.permute.xlu1 %3483  ;;  %v3519_v23 = vsub.f32 %v7935_v22, %v7897_v11  ;;  %v3543_v29 = vsub.f32 %v7937_v41, %v3532_v14  ;;  %v3567_v44 = vsub.f32 %v7931_v15, %v3556_v20  ;;  %v7952_v62 = vsub.f32 %v7931_v15, %v3552_v8 }
 0x9db   :  { %v3495_v53 = vsub.f32 %v7933_v47, %v3484_v49  ;;  %v3571_v32 = vmax.f32 %v3399_v21, %v3423_v35  ;;  %v3575_v50 = vmax.f32 %v3447_v17, %v3471_v12  ;;  %v7956_v27 = vsub.f32 %v7923_v30, %v7861_v37 }
 0x9dc   :  { %v3583_v1 = vmax.f32 %v3543_v29, %v3567_v44  ;;  %v3422_v11 = vsub.f32 %v7925_v39, %v7895_v48  ;;  %v3446_v4 = vsub.f32 %v7927_v40, %v7904_v3  ;;  %v7964_v14 = vsub.f32 %v7933_v47, %v7868_v42 }
 0x9dd   :  { %v3579_v25 = vmax.f32 %v3495_v53, %v3519_v23  ;;  %v3440_v60 = vpop.permute.xlu2 %3439  ;;  %v3587_v43 = vmax.f32 %v3571_v32, %v3575_v50  ;;  %v7968_v8 = vsub.f32 %v7935_v22, %v7876_v16  ;;  %v7972_v37 = vsub.f32 %v7929_v6, %v7878_v57 }
 0x9de   :  { %v7976_v20 = vsub.f32 %v7937_v41, %v7914_v24  ;;  %v3570_v3 = vmax.f32 %v7956_v27, %v3422_v11  ;;  %v7987_v33 = vsub.f32 %v7923_v30, %v7906_v34  ;;  %v7991_v54 = vsub.f32 %v7925_v39, %v7921_v2 }
 0x9df   :  { %v3591_v59 = vmax.f32 %v3579_v25, %v3583_v1  ;;  %v3574_v42 = vmax.f32 %v3446_v4, %v7972_v37  ;;  %v3578_v57 = vmax.f32 %v7964_v14, %v7968_v8 }
 0x9e0   :  { %v3582_v24 = vmax.f32 %v7976_v20, %v7952_v62  ;;  %v3572_v2 = vmax.f32 %v7987_v33, %v7991_v54 }
 0x9e1   :  { %v3595_v48 = vmax.f32 %v3587_v43, %v3591_v59  ;;  %v3789_v56 = vpop.permute.xlu0 %3788  ;;  %v3586_v0 = vmax.f32 %v3570_v3, %v3574_v42 }
 0x9e2   :  { %3797 = vst.msk [vmem:[#allocation3 + $0x1c] sm:$0xf] %vm701_vm1, %v3789_v56 }
 0x9e3   :  { %v3599_v7 = vsub.f32 %v3399_v21, %v3595_v48  ;;  %v3611_v51 = vsub.f32 %v3423_v35, %v3595_v48  ;;  %v3623_v16 = vsub.f32 %v3447_v17, %v3595_v48  ;;  %v3635_v18 = vsub.f32 %v3471_v12, %v3595_v48  ;;  %v3464_v13 = vpop.permute.xlu1 %3463 }
 0x9e4   :  { %v3647_v28 = vsub.f32 %v3495_v53, %v3595_v48  ;;  %v3659_v46 = vsub.f32 %v3519_v23, %v3595_v48  ;;  %v3671_v58 = vsub.f32 %v3543_v29, %v3595_v48  ;;  %v3683_v61 = vsub.f32 %v3567_v44, %v3595_v48 }
 0x9e5   :  { %v3604_v63 = vmul.f32 1.442695, %v3599_v7  ;;  %v3616_v10 = vmul.f32 1.442695, %v3611_v51  ;;  %v3628_v19 = vmul.f32 1.442695, %v3623_v16  ;;  %v7994_v52 = vsub.f32 %v7929_v6, %v3464_v13 }
 0x9e6   :  { %v3640_v31 = vmul.f32 1.442695, %v3635_v18  ;;  %v3536_v26 = vpop.permute.xlu2 %3535  ;;  %v3652_v38 = vmul.f32 1.442695, %v3647_v28  ;;  %v3664_v21 = vmul.f32 1.442695, %v3659_v46  ;;  %v3590_v35 = vmax.f32 %v3578_v57, %v3582_v24 }
 0x9e7   :  { %5523 = vpow2.f32 %v3604_v63  ;;  %v3676_v17 = vmul.f32 1.442695, %v3671_v58  ;;  %v7997_v12 = vsub.f32 %v7927_v40, %v3440_v60  ;;  %v3688_v49 = vmul.f32 1.442695, %v3683_v61 }
 0x9e8   :  { %5525 = vpow2.f32 %v3616_v10  ;;  %v3594_v53 = vmax.f32 %v3586_v0, %v3590_v35  ;;  %v8006_v29 = vsub.f32 %v7935_v22, %v7916_v45 }
 0x9e9   :  { %5527 = vpow2.f32 %v3628_v19  ;;  %v3783_v34 = vpop.permute.xlu0 %3782  ;;  %v3576_v23 = vmax.f32 %v7997_v12, %v7994_v52 }
 0x9ea   :  { %5529 = vpow2.f32 %v3640_v31  ;;  %3794 = vst.msk [vmem:[#allocation3 + $0x10] sm:$0xf] %vm701_vm1, %v3783_v34  ;;  %v3598_v32 = vsub.f32 %v7956_v27, %v3594_v53  ;;  %v3610_v50 = vsub.f32 %v3422_v11, %v3594_v53  ;;  %v3622_v25 = vsub.f32 %v3446_v4, %v3594_v53 }
 0x9eb   :  { %5531 = vpow2.f32 %v3652_v38  ;;  %v3634_v43 = vsub.f32 %v7972_v37, %v3594_v53  ;;  %v3646_v59 = vsub.f32 %v7964_v14, %v3594_v53  ;;  %v8023_v11 = vsub.f32 %v7937_v41, %v3536_v26 }
 0x9ec   :  { %5533 = vpow2.f32 %v3664_v21  ;;  %v3488_v44 = vpop.permute.xlu1 %3487  ;;  %v3602_v45 = vmul.f32 1.442695, %v3598_v32  ;;  %v3614_v56 = vmul.f32 1.442695, %v3610_v50  ;;  %v3626_v3 = vmul.f32 1.442695, %v3622_v25 }
 0x9ed   :  { %v8009_v1 = vpop.eup %5523  ;;  %5535 = vpow2.f32 %v3676_v17  ;;  %v8012_v60 = vsub.f32 %v7933_v47, %v3488_v44  ;;  %v3638_v7 = vmul.f32 1.442695, %v3634_v43  ;;  %v3650_v51 = vmul.f32 1.442695, %v3646_v59 }
 0x9ee   :  { %v8016_v48 = vpop.eup %5525  ;;  %5537 = vpow2.f32 %v3688_v49  ;;  %v3658_v16 = vsub.f32 %v7968_v8, %v3594_v53  ;;  %v3670_v18 = vsub.f32 %v7976_v20, %v3594_v53  ;;  %v3682_v46 = vsub.f32 %v7952_v62, %v3594_v53 }
 0x9ef   :  { %v8018_v42 = vpop.eup %5527  ;;  %v3695_v27 = vadd.f32 %v8016_v48, %v8009_v1  ;;  %v3560_v4 = vpop.permute.xlu2 %3559  ;;  %5539 = vpow2.f32 %v3602_v45  ;;  %v3580_v28 = vmax.f32 %v8012_v60, %v8006_v29  ;;  %v3588_v61 = vmax.f32 %v3572_v2, %v3576_v23 }
 0x9f0   :  { %v8025_v37 = vpop.eup %5529  ;;  %v8028_v14 = vsub.f32 %v7931_v15, %v3560_v4  ;;  %5541 = vpow2.f32 %v3614_v56  ;;  %v3662_v8 = vmul.f32 1.442695, %v3658_v16  ;;  %v3674_v10 = vmul.f32 1.442695, %v3670_v18 }
 0x9f1   :  { %v8032_v13 = vpop.eup %5531  ;;  %v3699_v57 = vadd.f32 %v8025_v37, %v8018_v42  ;;  %5543 = vpow2.f32 %v3626_v3  ;;  %v3686_v58 = vmul.f32 1.442695, %v3682_v46 }
 0x9f2   :  { %v8039_v24 = vpop.eup %5533  ;;  %v3584_v63 = vmax.f32 %v8023_v11, %v8028_v14  ;;  %5545 = vpow2.f32 %v3638_v7 }
 0x9f3   :  { %v8043_v20 = vpop.eup %5535  ;;  %v3703_v19 = vadd.f32 %v8039_v24, %v8032_v13  ;;  %5547 = vpow2.f32 %v3650_v51  ;;  %v3711_v0 = vadd.f32 %v3699_v57, %v3695_v27 }
 0x9f4   :  { %v8047_v31 = vpop.eup %5537  ;;  %v3592_v26 = vmax.f32 %v3580_v28, %v3584_v63  ;;  %5549 = vpow2.f32 %v3662_v8 }
 0x9f5   :  { %v3707_v62 = vadd.f32 %v8047_v31, %v8043_v20  ;;  %v8051_v38 = vpop.permute.xlu1 %3395  ;;  %v8053_v21 = vpop.eup %5539  ;;  %5551 = vpow2.f32 %v3674_v10 }
 0x9f6   :  { %v3596_v35 = vmax.f32 %v3588_v61, %v3592_v26  ;;  %v8055_v17 = vpop.eup %5541  ;;  %5553 = vpow2.f32 %v3686_v58  ;;  %v5603_v58 = vld [vmem:[#allocation5 + $0x8] sm:$0xff] }
 0x9f7   :  { %v3715_v34 = vadd.f32 %v3707_v62, %v3703_v19  ;;  %v8057_v49 = vpop.eup %5543 }
 0x9f8   :  { %v3600_v53 = vsub.f32 %v7987_v33, %v3596_v35  ;;  %v3612_v2 = vsub.f32 %v7991_v54, %v3596_v35  ;;  %v3624_v23 = vsub.f32 %v7997_v12, %v3596_v35  ;;  %v3636_v44 = vsub.f32 %v7994_v52, %v3596_v35  ;;  %v8063_v32 = vpop.permute.xlu2 %3467  ;;  %v8065_v50 = vpop.eup %5545 }
 0x9f9   :  { %v3719_v25 = vadd.f32 %v3715_v34, %v3711_v0  ;;  %v3648_v43 = vsub.f32 %v8012_v60, %v3596_v35  ;;  %v3660_v59 = vsub.f32 %v8006_v29, %v3596_v35  ;;  %v8069_v45 = vpop.eup %5547  ;;  %v3672_v54 = vsub.f32 %v8023_v11, %v3596_v35 }
 0x9fa   :  { %v3606_v56 = vmul.f32 1.442695, %v3600_v53  ;;  %v3618_v3 = vmul.f32 1.442695, %v3612_v2  ;;  %v3630_v33 = vmul.f32 1.442695, %v3624_v23  ;;  %v8072_v27 = vpop.eup %5549  ;;  %v3684_v12 = vsub.f32 %v8028_v14, %v3596_v35 }
 0x9fb   :  { %5555 = vrcp.f32 %v3719_v25  ;;  %v3642_v52 = vmul.f32 1.442695, %v3636_v44  ;;  %v5552_v4 = vpop.eup %5551  ;;  %v3654_v7 = vmul.f32 1.442695, %v3648_v43  ;;  %v3666_v51 = vmul.f32 1.442695, %v3660_v59 }
 0x9fc   :  { %5557 = vpow2.f32 %v3606_v56  ;;  %v5554_v60 = vpop.eup %5553  ;;  %v3694_v29 = vadd.f32 %v8055_v17, %v8053_v21  ;;  %v3698_v16 = vadd.f32 %v8065_v50, %v8057_v49  ;;  %v3702_v11 = vadd.f32 %v8072_v27, %v8069_v45 }
 0x9fd   :  { %5559 = vpow2.f32 %v3618_v3  ;;  %v3678_v18 = vmul.f32 1.442695, %v3672_v54  ;;  %v3706_v28 = vadd.f32 %v5554_v60, %v5552_v4  ;;  %v3690_v14 = vmul.f32 1.442695, %v3684_v12 }
 0x9fe   :  { %5561 = vpow2.f32 %v3630_v33  ;;  %v3420_v57 = vpop.permute.xlu1 %3419  ;;  %v3710_v46 = vadd.f32 %v3698_v16, %v3694_v29  ;;  %v5604_v29 = vld [vmem:[#allocation5] sm:$0xff] }
 0x9ff   :  { %5563 = vpow2.f32 %v3642_v52  ;;  %v3714_v63 = vadd.f32 %v3706_v28, %v3702_v11  ;;  %v8127_v28 = vsub.f32 %v7929_v6, %v8063_v32 }
 0xa00   :  { %5565 = vpow2.f32 %v3654_v7 }
 0xa01   :  { %v5556_v8 = vpop.eup %5555  ;;  %5567 = vpow2.f32 %v3666_v51  ;;  %v3492_v10 = vpop.permute.xlu2 %3491  ;;  %v3718_v26 = vadd.f32 %v3714_v63, %v3710_v46  ;;  %v8119_v51 = vsub.f32 %v7931_v15, %v7939_v36 }
 0xa02   :  { %v8081_v19 = vpop.eup %5557  ;;  %v8083_v61 = vmul.f32 %v5603_v58, %v5556_v8  ;;  %5569 = vpow2.f32 %v3678_v18  ;;  %v8123_v18 = vsub.f32 %v7923_v30, %v8051_v38 }
 0xa03   :  { %v8085_v62 = vpop.eup %5559  ;;  %5571 = vpow2.f32 %v3690_v14  ;;  %v8130_v14 = vsub.f32 %v7925_v39, %v3420_v57  ;;  %v3449_v39 = vsub.f32 %v7927_v40, %v7918_v9 }
 0xa04   :  { %v8087_v0 = vpop.eup %5561  ;;  %v3731_v35 = vmul.f32 %v8009_v1, %v8083_v61  ;;  %v3887_v34 = vmul.f32 %v8032_v13, %v8083_v61  ;;  %5573 = vrcp.f32 %v3718_v26  ;;  %v3907_v2 = vmul.f32 %v8039_v24, %v8083_v61 }
 0xa05   :  { %v8093_v53 = vpop.eup %5563  ;;  %v3696_v43 = vadd.f32 %v8085_v62, %v8081_v19  ;;  %v3577_v57 = vmax.f32 %v3449_v39, %v8127_v28  ;;  %v3999_v26 = vmul.f32 %v8047_v31, %v8083_v61 }
 0xa06   :  { %v8097_v23 = vpop.eup %5565  ;;  %v3735_v44 = vpack.c.bf16 %v3731_v35, %v3731_v35  ;;  %v3891_v25 = vpack.c.bf16 %v3887_v34, %v3887_v34  ;;  %v3700_v59 = vadd.f32 %v8093_v53, %v8087_v0  ;;  %v3911_v56 = vpack.c.bf16 %v3907_v2, %v3907_v2  ;;  %v5605_v2 = vld [vmem:[#allocation5 + $0x10] sm:$0xff] }
 0xa07   :  { %v8103_v1 = vpop.eup %5567  ;;  %v3516_v13 = vpop.permute.xlu1 %3515  ;;  %v3955_v35 = vmul.f32 %v8043_v20, %v8083_v61 }
 0xa08   :  { %v8105_v3 = vpop.eup %5569  ;;  %3739 = vst.msk [vmem:[#allocation2 + $0x8] sm:$0xf] %vm701_vm1, %v3735_v44  ;;  %v3704_v24 = vadd.f32 %v8103_v1, %v8097_v23  ;;  %3920 = vrot.lane.b32.xlu0 %v3911_v56, %s5835_s19  ;;  %v3712_v7 = vadd.f32 %v3700_v59, %v3696_v43 }
 0xa09   :  { %v8110_v33 = vpop.eup %5571  ;;  %3895 = vst.msk [vmem:[#allocation2 + $0xc] sm:$0xf] %vm701_vm1, %v3891_v25  ;;  %v3829_v54 = vpop.permute.xlu2 %3828  ;;  %v4003_v25 = vpack.c.bf16 %v3999_v26, %v3999_v26  ;;  %v3959_v43 = vpack.c.bf16 %v3955_v35, %v3955_v35 }
 0xa0a   :  { %v5574_v52 = vpop.eup %5573  ;;  %v3708_v12 = vadd.f32 %v8110_v33, %v8105_v3  ;;  %3839 = vst.msk [vmem:[#allocation3 + $0x24] sm:$0xf] %vm701_vm1, %v3829_v54 }
 0xa0b   :  { %v3726_v16 = vmul.f32 %v5604_v29, %v5574_v52 }
 0xa0c   :  { %v3716_v11 = vadd.f32 %v3708_v12, %v3704_v24 }
 0xa0d   :  { %v3954_v46 = vmul.f32 %v5552_v4, %v3726_v16  ;;  %v3906_v63 = vmul.f32 %v8072_v27, %v3726_v16  ;;  %v3998_v8 = vmul.f32 %v5554_v60, %v3726_v16  ;;  %v8134_v15 = vmul.f32 %v8057_v49, %v3726_v16 }
 0xa0e   :  { %v3720_v36 = vadd.f32 %v3716_v11, %v3712_v7  ;;  %v8137_v58 = vmul.f32 %v8055_v17, %v3726_v16  ;;  %v8140_v30 = vmul.f32 %v8065_v50, %v3726_v16  ;;  %v3886_v6 = vmul.f32 %v8069_v45, %v3726_v16 }
 0xa0f   :  { %v3958_v38 = vpack.c.bf16 %v3954_v46, %v3954_v46  ;;  %v3910_v32 = vpack.c.bf16 %v3906_v63, %v3906_v63  ;;  %v8146_v27 = vsub.f32 %v7935_v22, %v3516_v13  ;;  %v3573_v49 = vmax.f32 %v8123_v18, %v8130_v14 }
 0xa10   :  { %5575 = vrcp.f32 %v3720_v36  ;;  %v4002_v4 = vpack.c.bf16 %v3998_v8, %v3998_v8  ;;  %v3540_v17 = vpop.permute.xlu1 %3539  ;;  %v3890_v60 = vpack.c.bf16 %v3886_v6, %v3886_v6  ;;  %v3497_v50 = vsub.f32 %v7933_v47, %v3492_v10 }
 0xa11   :  { %3966 = vrot.lane.b32.xlu1 %v3958_v38, %s8397_s3  ;;  %3918 = vrot.lane.b32.xlu2 %v3910_v32, %s5835_s19  ;;  %v3787_v45 = vpop.permute.xlu2 %3786  ;;  %v3545_v9 = vsub.f32 %v7937_v41, %v3540_v17  ;;  %v5118_v40 = vld [vmem:[#allocation3 + $0x20] sm:$0xff]  ;;  %v3730_v22 = vmul.f32 %v8053_v21, %v3726_v16  ;;  %v3751_v21 = vmul.f32 %v8016_v48, %v8083_v61 }
 0xa12   :  { %4010 = vrot.lane.b32.xlu0 %v4002_v4, %s5842_s4  ;;  %3796 = vst.msk [vmem:[#allocation3 + $0x18] sm:$0xf] %vm701_vm1, %v3787_v45  ;;  %v3581_v47 = vmax.f32 %v3497_v50, %v8146_v27  ;;  %4201 = vmatpush.bf16.msrb.mxu1 %v5118_v40  ;;  %v3589_v34 = vmax.f32 %v3573_v49, %v3577_v57 }
 0xa13   :  { %v3585_v10 = vmax.f32 %v3545_v9, %v8119_v51  ;;  %3894 = vst.msk [vmem:[#allocation2 + $0x4] sm:$0xf] %vm701_vm1, %v3890_v60  ;;  %v3734_v41 = vpack.c.bf16 %v3730_v22, %v3730_v22  ;;  %v3755_v56 = vpack.c.bf16 %v3751_v21, %v3751_v21  ;;  %v3802_v38 = vpack.c.bf16 %v8134_v15, %v8134_v15 }
 0xa14   :  { %v3754_v32 = vpack.c.bf16 %v8137_v58, %v8137_v58  ;;  %v3846_v4 = vpack.c.bf16 %v8140_v30, %v8140_v30  ;;  %v3843_v15 = vmul.f32 %v8025_v37, %v8083_v61  ;;  %v3799_v58 = vmul.f32 %v8018_v42, %v8083_v61 }
 0xa15   :  { %v3593_v31 = vmax.f32 %v3581_v47, %v3585_v10  ;;  %3738 = vst.msk [vmem:[#allocation2] sm:$0xf] %vm701_vm1, %v3734_v41 }
 0xa16   :  { %v5576_v20 = vpop.eup %5575  ;;  %v3847_v57 = vpack.c.bf16 %v3843_v15, %v3843_v15  ;;  %v3803_v26 = vpack.c.bf16 %v3799_v58, %v3799_v58 }
 0xa17   :  { %v8168_v44 = vmul.f32 %v5605_v2, %v5576_v20  ;;  %v3597_v59 = vmax.f32 %v3589_v34, %v3593_v31  ;;  %v5123_v20 = vld [vmem:[#allocation3 + $0x48] sm:$0xff] }
 0xa18   :  { %v3945_v13 = vpop.permute.xlu1 %3944 }
 0xa19   :  { %v3732_v24 = vmul.f32 %v8081_v19, %v8168_v44  ;;  %v3888_v54 = vmul.f32 %v8097_v23, %v8168_v44  ;;  %4012 = vrot.lane.b32.xlu1 %v4003_v25, %s5842_s4  ;;  %3968 = vrot.lane.b32.xlu2 %v3959_v43, %s8397_s3  ;;  %v3601_v48 = vsub.f32 %v8123_v18, %v3597_v59  ;;  %v3941_v52 = vpop.permute.xlu2 %3940  ;;  %v5117_v12 = vld [vmem:[#allocation3 + $0x18] sm:$0xff] }
 0xa1a   :  { %3953 = vst.msk [vmem:[#allocation3 + $0x5c] sm:$0xf] %vm701_vm1, %v3945_v13  ;;  %v3613_v7 = vsub.f32 %v8130_v14, %v3597_v59  ;;  %v3625_v29 = vsub.f32 %v3449_v39, %v3597_v59  ;;  %v3637_v16 = vsub.f32 %v8127_v28, %v3597_v59  ;;  %v3649_v11 = vsub.f32 %v3497_v50, %v3597_v59  ;;  %v5122_v13 = vld [vmem:[#allocation3 + $0x40] sm:$0xff] }
 0xa1b   :  { %3764 = vrot.lane.b32.xlu0 %v3755_v56, %s5835_s19  ;;  %v3736_v19 = vpack.c.bf16 %v3732_v24, %v3732_v24  ;;  %v3892_v23 = vpack.c.bf16 %v3888_v54, %v3888_v54  ;;  %v3608_v46 = vmul.f32 1.442695, %v3601_v48  ;;  %v3661_v63 = vsub.f32 %v8146_v27, %v3597_v59  ;;  %3951 = vst.msk [vmem:[#allocation3 + $0x54] sm:$0xf] %vm701_vm1, %v3941_v52  ;;  %v5115_v24 = vld [vmem:[#allocation3 + $0x8] sm:$0xff]  ;;  %v5606_v54 = vld [vmem:[#allocation5 + $0x18] sm:$0xff] }
 0xa1c   :  { %4202 = vmatpush.bf16.msrb.mxu1 %v5117_v12  ;;  %v3620_v18 = vmul.f32 1.442695, %v3613_v7  ;;  %v3632_v8 = vmul.f32 1.442695, %v3625_v29  ;;  %v3644_v36 = vmul.f32 1.442695, %v3637_v16  ;;  %v3673_v6 = vsub.f32 %v3545_v9, %v3597_v59 }
 0xa1d   :  { %3740 = vst.msk [vmem:[#allocation2 + $0x10] sm:$0xf] %vm701_vm1, %v3736_v19  ;;  %5577 = vpow2.f32 %v3608_v46  ;;  %v3656_v14 = vmul.f32 1.442695, %v3649_v11  ;;  %v3685_v28 = vsub.f32 %v8119_v51, %v3597_v59  ;;  %v3668_v39 = vmul.f32 1.442695, %v3661_v63 }
 0xa1e   :  { %3896 = vst.msk [vmem:[#allocation2 + $0x14] sm:$0xf] %vm701_vm1, %v3892_v23  ;;  %5579 = vpow2.f32 %v3620_v18  ;;  %v3680_v27 = vmul.f32 1.442695, %v3673_v6  ;;  %v3956_v34 = vmul.f32 %v8105_v3, %v8168_v44  ;;  %v3908_v31 = vmul.f32 %v8103_v1, %v8168_v44  ;;  %v5114_v48 = vld [vmem:[#allocation3] sm:$0xff] }
 0xa1f   :  { %5581 = vpow2.f32 %v3632_v8  ;;  %v3692_v49 = vmul.f32 1.442695, %v3685_v28  ;;  %v4000_v18 = vmul.f32 %v8110_v33, %v8168_v44  ;;  %v3800_v8 = vmul.f32 %v8087_v0, %v8168_v44 }
 0xa20   :  { %5583 = vpow2.f32 %v3644_v36  ;;  %v3939_v17 = vpop.permute.xlu1 %3938  ;;  %v3960_v43 = vpack.c.bf16 %v3956_v34, %v3956_v34  ;;  %v3912_v59 = vpack.c.bf16 %v3908_v31, %v3908_v31  ;;  %v3752_v36 = vmul.f32 %v8085_v62, %v8168_v44 }
 0xa21   :  { %v5125_v60 = vld [vmem:[#allocation3 + $0x58] sm:$0xff]  ;;  %3810 = vrot.lane.b32.xlu1 %v3802_v38, %s8397_s3  ;;  %3762 = vrot.lane.b32.xlu2 %v3754_v32, %s5835_s19  ;;  %5585 = vpow2.f32 %v3656_v14  ;;  %3950 = vst.msk [vmem:[#allocation3 + $0x50] sm:$0xf] %vm701_vm1, %v3939_v17  ;;  %v4004_v6 = vpack.c.bf16 %v4000_v18, %v4000_v18  ;;  %v3804_v14 = vpack.c.bf16 %v3800_v8, %v3800_v8 }
 0xa22   :  { %5587 = vpow2.f32 %v3668_v39  ;;  %4221 = vmatpush.bf16.msra.mxu2 %v5125_v60  ;;  %v3756_v28 = vpack.c.bf16 %v3752_v36, %v3752_v36  ;;  %v3844_v62 = vmul.f32 %v8093_v53, %v8168_v44 }
 0xa23   :  { %3854 = vrot.lane.b32.xlu0 %v3846_v4, %s5842_s4  ;;  %v5578_v51 = vpop.eup %5577  ;;  %5589 = vpow2.f32 %v3680_v27 }
 0xa24   :  { %v8200_v30 = vpop.eup %5579  ;;  %5591 = vpow2.f32 %v3692_v49  ;;  %v3848_v49 = vpack.c.bf16 %v3844_v62, %v3844_v62 }
 0xa25   :  { %v8202_v50 = vpop.eup %5581  ;;  %v3697_v40 = vadd.f32 %v8200_v30, %v5578_v51 }
 0xa26   :  { %v8204_v45 = vpop.eup %5583 }
 0xa27   :  { %v5586_v9 = vpop.eup %5585  ;;  %v3701_v22 = vadd.f32 %v8204_v45, %v8202_v50 }
 0xa28   :  { %v5588_v35 = vpop.eup %5587  ;;  %v3785_v37 = vpop.permute.xlu1 %3784  ;;  %v5124_v47 = vld [vmem:[#allocation3 + $0x50] sm:$0xff] }
 0xa29   :  { %v5590_v10 = vpop.eup %5589  ;;  %v3705_v42 = vadd.f32 %v5588_v35, %v5586_v9  ;;  %3856 = vrot.lane.b32.xlu1 %v3847_v57, %s5842_s4  ;;  %3812 = vrot.lane.b32.xlu2 %v3803_v26, %s8397_s3  ;;  %3795 = vst.msk [vmem:[#allocation3 + $0x14] sm:$0xf] %vm701_vm1, %v3785_v37  ;;  %v3713_v21 = vadd.f32 %v3701_v22, %v3697_v40 }
 0xa2a   :  { %v5592_v61 = vpop.eup %5591  ;;  %4222 = vmatpush.bf16.msra.mxu2 %v5124_v47 }
 0xa2b   :  { %v3709_v41 = vadd.f32 %v5592_v61, %v5590_v10 }
 0xa2d   :  { %v3717_v2 = vadd.f32 %v3709_v41, %v3705_v42 }
 0xa2e   :  { %4223 = vmatpush.bf16.msra.mxu2 %v5123_v20 }
 0xa2f   :  { %v3721_v25 = vadd.f32 %v3717_v2, %v3713_v21 }
 0xa30   :  { %v5116_v56 = vld [vmem:[#allocation3 + $0x10] sm:$0xff] }
 0xa31   :  { %5593 = vrcp.f32 %v3721_v25  ;;  %3970 = vrot.lane.b32.xlu1 %v3960_v43, %s8397_s3  ;;  %3922 = vrot.lane.b32.xlu2 %v3912_v59, %s5835_s19 }
 0xa32   :  { %4203 = vmatpush.bf16.msrb.mxu1 %v5116_v56  ;;  %4224 = vmatpush.bf16.msra.mxu2 %v5122_v13 }
 0xa36   :  { %4204 = vmatpush.bf16.msrb.mxu1 %v5115_v24 }
 0xa37   :  { %v5594_v3 = vpop.eup %5593 }
 0xa38   :  { %v3729_v1 = vmul.f32 %v5606_v54, %v5594_v3 }
 0xa3a   :  { %v3733_v52 = vmul.f32 %v5578_v51, %v3729_v1  ;;  %v3889_v12 = vmul.f32 %v5586_v9, %v3729_v1  ;;  %v3909_v7 = vmul.f32 %v5588_v35, %v3729_v1  ;;  %v4001_v29 = vmul.f32 %v5592_v61, %v3729_v1  ;;  %4205 = vmatpush.bf16.msrb.mxu1 %v5114_v48  ;;  %v5132_v48 = vld [vmem:[%s8345_s17 + $0x10] sm:$0xff] }
 0xa3b   :  { %v3957_v16 = vmul.f32 %v5590_v10, %v3729_v1  ;;  %v3753_v39 = vmul.f32 %v8200_v30, %v3729_v1  ;;  %v3845_v38 = vmul.f32 %v8204_v45, %v3729_v1  ;;  %v3801_v33 = vmul.f32 %v8202_v50, %v3729_v1  ;;  %v5133_v1 = vld [vmem:[%s8345_s17 + $0x18] sm:$0xff] }
 0xa3c   :  { %v3737_v11 = vpack.c.bf16 %v3733_v52, %v3733_v52  ;;  %v3893_v19 = vpack.c.bf16 %v3889_v12, %v3889_v12  ;;  %v3913_v23 = vpack.c.bf16 %v3909_v7, %v3909_v7  ;;  %v4005_v46 = vpack.c.bf16 %v4001_v29, %v4001_v29  ;;  %4278 = vmatpush.bf16.msra.mxu3 %v5133_v1  ;;  %v210_v52 = vld [vmem:[%s8415_s11 + $0x10] sm:$0xff]  ;;  %v208_v12 = vld [vmem:[%s8415_s11] sm:$0xff] }
 0xa3d   :  { %v3961_v63 = vpack.c.bf16 %v3957_v16, %v3957_v16  ;;  %v3757_v32 = vpack.c.bf16 %v3753_v39, %v3753_v39  ;;  %v3849_v0 = vpack.c.bf16 %v3845_v38, %v3845_v38  ;;  %v3805_v27 = vpack.c.bf16 %v3801_v33, %v3801_v33  ;;  %v5303_v16 = vld [vmem:[#allocation18] ss:$0 sm:$0xff] }
 0xa3e   :  { %3741 = vst.msk [vmem:[#allocation2 + $0x18] sm:$0xf] %vm701_vm1, %v3737_v11  ;;  %3924 = vrot.lane.b32.xlu0 %v3913_v23, %s5835_s19  ;;  %4016 = vrot.lane.b32.xlu1 %v4005_v46, %s5842_s4  ;;  %vm4332_vm8 = vcmp.gt.f32.partialorder %v210_v52, 0.5  ;;  %vm4330_vm9 = vcmp.gt.f32.partialorder %v208_v12, 0.5  ;;  %v209_v46 = vld [vmem:[%s8415_s11 + $0x8] sm:$0xff]  ;;  %v8418_v33 = vld [vmem:[#allocation32_spill] sm:$0xff] }
 0xa3f   :  { %3897 = vst.msk [vmem:[#allocation2 + $0x1c] sm:$0xf] %vm701_vm1, %v3893_v19  ;;  %3972 = vrot.lane.b32.xlu2 %v3961_v63, %s8397_s3  ;;  %v4336_v7 = vsel %vm4332_vm8, 1, %v8410_v55  ;;  %v4334_v29 = vsel %vm4330_vm9, 1, %v8410_v55  ;;  %vm4331_vm10 = vcmp.gt.f32.partialorder %v209_v46, 0.5 }
 0xa40   :  { %4279 = vmatpush.bf16.msra.mxu3 %v5132_v48  ;;  %v4335_v63 = vsel %vm4331_vm10, 1, %v8410_v55 }
 0xa46   :  { %4014 = vrot.lane.b32.xlu0 %v4004_v6, %s5842_s4  ;;  %3814 = vrot.lane.b32.xlu1 %v3804_v14, %s8397_s3  ;;  %v8416_v14 = vld [vmem:[#allocation31_spill] sm:$0xff] }
 0xa47   :  { %3766 = vrot.lane.b32.xlu2 %v3756_v28, %s5835_s19  ;;  %v8417_v28 = vmax.f32 %v8416_v14, 0.0 }
 0xa4e   :  { %3768 = vrot.lane.b32.xlu0 %v3757_v32, %s5835_s19  ;;  %3860 = vrot.lane.b32.xlu1 %v3849_v0, %s5842_s4  ;;  %v8419_v32 = vmax.f32 %v8418_v33, 0.0 }
 0xa4f   :  { %3816 = vrot.lane.b32.xlu2 %v3805_v27, %s8397_s3 }
 0xa56   :  { %3858 = vrot.lane.b32.xlu0 %v3848_v49, %s5842_s4  ;;  %4345 = vperm.xlu1 %5295, %v4336_v7  }
 0xa57   :  { %4339 = vperm.xlu2 %5293, %v4334_v29  }
 0xa5e   :  { %5296 = vset.pattern.permute.xlu1 %v8404_v5  ;;  %4342 = vperm.xlu0 %5294, %v4335_v63  }
 0xa5f   :  { %4374 = vperm.xlu1 %5296, %v4334_v29  }
 0xa66   :  { %5298 = vset.pattern.permute.xlu0 %v8404_v5 }
 0xa67   :  { %4380 = vperm.xlu0 %5298, %v4336_v7  }
 0xa6b   :  { %v3919_v4 = vpop.permute.xlu2 %3918 }
 0xa6c   :  { %3930 = vst.msk [vmem:[#allocation2 + $0x4] sm:$0xf] %vm738_vm4, %v3919_v4  ;;  %v211_v4 = vld [vmem:[%s8415_s11 + $0x18] sm:$0xff] }
 0xa6d   :  { %vm4333_vm11 = vcmp.gt.f32.partialorder %v211_v4, 0.5 }
 0xa73   :  { %v3969_v17 = vpop.permute.xlu2 %3968 }
 0xa7a   :  { %v3921_v51 = vpop.permute.xlu0 %3920 }
 0xa7b   :  { %v3763_v60 = vpop.permute.xlu2 %3762  ;;  %3931 = vst.msk [vmem:[#allocation2 + $0xc] sm:$0xf] %vm738_vm4, %v3921_v51 }
 0xa7c   :  { %3774 = vst.msk [vmem:[#allocation2] sm:$0xf] %vm738_vm4, %v3763_v60 }
 0xa7d   :  { %3979 = vst.msk [vmem:[#allocation2 + $0xc] sm:$0xf] %vm787_vm5, %v3969_v17  ;;  %v4337_v17 = vsel %vm4333_vm11, 1, %v8410_v55 }
 0xa7e   :  { %4348 = vperm.xlu2 %5293, %v4337_v17   ;;  %4383 = vperm.xlu1 %5296, %v4337_v17  }
 0xa83   :  { %v3967_v15 = vpop.permute.xlu1 %3966  ;;  %v3813_v58 = vpop.permute.xlu2 %3812 }
 0xa84   :  { %3978 = vst.msk [vmem:[#allocation2 + $0x4] sm:$0xf] %vm787_vm5, %v3967_v15  ;;  %v4011_v53 = vpop.permute.xlu0 %4010 }
 0xa85   :  { %4022 = vst.msk [vmem:[#allocation2 + $0x4] sm:$0xf] %vm832_vm6, %v4011_v53 }
 0xa86   :  { %5297 = vset.pattern.permute.xlu2 %v8404_v5  ;;  %v4312_v5 = vpop.f32.mrf.mxu0 }
 0xa87   :  { %4377 = vperm.xlu2 %5297, %v4335_v63   ;;  %v5137_v63 = vld [vmem:[%s8349_s21 + $0x8] sm:$0xff] }
 0xa88   :  { %4476 = vmatpush.bf16.msra.mxu1 %v5137_v63 }
 0xa8b   :  { %v4013_v44 = vpop.permute.xlu1 %4012  ;;  %v3923_v30 = vpop.permute.xlu2 %3922 }
 0xa8c   :  { %4023 = vst.msk [vmem:[#allocation2 + $0xc] sm:$0xf] %vm832_vm6, %v4013_v44  ;;  %v5110_v45 = vld [vmem:[#allocation2 + $0x4] sm:$0xf] }
 0xa8d   :  { %v3765_v50 = vpop.permute.xlu0 %3764  ;;  %3932 = vst.msk [vmem:[#allocation2 + $0x14] sm:$0xf] %vm738_vm4, %v3923_v30 }
 0xa8e   :  { %3775 = vst.msk [vmem:[#allocation2 + $0x8] sm:$0xf] %vm738_vm4, %v3765_v50  ;;  %v8420_v50 = vld [vmem:[#allocation33_spill] sm:$0xff] }
 0xa8f   :  { %3823 = vst.msk [vmem:[#allocation2 + $0x8] sm:$0xf] %vm787_vm5, %v3813_v58 }
 0xa93   :  { %v3811_v9 = vpop.permute.xlu1 %3810  ;;  %v4914_v40 = vld [vmem:[#allocation2 + $0x8] sm:$0xf0] }
 0xa94   :  { %3822 = vst.msk [vmem:[#allocation2] sm:$0xf] %vm787_vm5, %v3811_v9  ;;  %v4917_v22 = vor.u32 %v5110_v45, %v4914_v40  ;;  %v8421_v45 = vmax.f32 %v8420_v50, 0.0 }
 0xa95   :  { %v3855_v57 = vpop.permute.xlu0 %3854 }
 0xa96   :  { %3866 = vst.msk [vmem:[#allocation2] sm:$0xf] %vm832_vm6, %v3855_v57  ;;  %4225 = vmatmul.bf16.vlgmr.msra.gmra.mxu2 %v4917_v22  ;;  %v8422_v22 = vld [vmem:[#allocation34_spill] sm:$0xff] }
 0xa97   :  { %v8423_v57 = vmax.f32 %v8422_v22, 0.0 }
 0xa99   :  { %v3973_v26 = vpop.permute.xlu2 %3972 }
 0xa9b   :  { %v3857_v35 = vpop.permute.xlu1 %3856 }
 0xa9c   :  { %3867 = vst.msk [vmem:[#allocation2 + $0x8] sm:$0xf] %vm832_vm6, %v3857_v35 }
 0xa9d   :  { %v4912_v37 = vld [vmem:[#allocation2] sm:$0xf] }
 0xaa1   :  { %v3767_v47 = vpop.permute.xlu2 %3766 }
 0xaa2   :  { %3776 = vst.msk [vmem:[#allocation2 + $0x10] sm:$0xf] %vm738_vm4, %v3767_v47 }
 0xaa3   :  { %v3971_v10 = vpop.permute.xlu1 %3970  ;;  %v5111_v42 = vld [vmem:[#allocation2 + $0x4] sm:$0xf0] }
 0xaa4   :  { %3980 = vst.msk [vmem:[#allocation2 + $0x14] sm:$0xf] %vm787_vm5, %v3971_v10  ;;  %v4913_v61 = vor.u32 %v5111_v42, %v4912_v37  ;;  %v4314_v42 = vpop.f32.mrf.mxu0 }
 0xaa6   :  { %4206 = vmatmul.bf16.vlgmr.msrb.gmra.mxu1 %v4913_v61 }
 0xaa9   :  { %v3817_v43 = vpop.permute.xlu2 %3816 }
 0xab0   :  { %v3925_v41 = vpop.permute.xlu0 %3924  ;;  %v4017_v21 = vpop.permute.xlu1 %4016 }
 0xab1   :  { %3933 = vst.msk [vmem:[#allocation2 + $0x1c] sm:$0xf] %vm738_vm4, %v3925_v41  ;;  %v4340_v10 = vpop.permute.xlu2 %4339 }
 0xab2   :  { %3981 = vst.msk [vmem:[#allocation2 + $0x1c] sm:$0xf] %vm787_vm5, %v3973_v26  ;;  %vm4350_vm14 = vcmp.eq.s32.totalorder %v4340_v10, 1 }
 0xab3   :  { %4025 = vst.msk [vmem:[#allocation2 + $0x1c] sm:$0xf] %vm832_vm6, %v4017_v21 }
 0xab8   :  { %v4015_v34 = vpop.permute.xlu0 %4014  ;;  %v3815_v31 = vpop.permute.xlu1 %3814 }
 0xab9   :  { %4024 = vst.msk [vmem:[#allocation2 + $0x14] sm:$0xf] %vm832_vm6, %v4015_v34 }
 0xaba   :  { %3824 = vst.msk [vmem:[#allocation2 + $0x10] sm:$0xf] %vm787_vm5, %v3815_v31  ;;  %v4922_v25 = vld [vmem:[#allocation2 + $0x18] sm:$0xf0]  ;;  %v4317_v31 = vpop.f32.mrf.mxu0 }
 0xac0   :  { %v3769_v20 = vpop.permute.xlu0 %3768  ;;  %v5112_v2 = vld [vmem:[#allocation2 + $0x14] sm:$0xf]  ;;  %v3861_v56 = vpop.permute.xlu1 %3860 }
 0xac1   :  { %3777 = vst.msk [vmem:[#allocation2 + $0x18] sm:$0xf] %vm738_vm4, %v3769_v20  ;;  %v4925_v59 = vor.u32 %v5112_v2, %v4922_v25  ;;  %v5135_v2 = vld [vmem:[#allocation20 + $0x8] sm:$0xff]  ;;  %vm4371_vm4 = vcmask 253952  }
 0xac2   :  { %3825 = vst.msk [vmem:[#allocation2 + $0x18] sm:$0xf] %vm787_vm5, %v3817_v43  ;;  %4438 = vmatpush.bf16.msrb.mxu3 %v5135_v2  ;;  %v4319_v12 = vpop.f32.mrf.mxu0  ;;  %vm4483_vm5 = vcmask 74752  }
 0xac3   :  { %3869 = vst.msk [vmem:[#allocation2 + $0x18] sm:$0xf] %vm832_vm6, %v3861_v56  ;;  %4230 = vmatmul.bf16.gmra.mxu2 %v4925_v59  ;;  %v5304_v56 = vld [vmem:[%s8346_s18] ss:$0 sm:$0xff] }
 0xac8   :  { %v3859_v13 = vpop.permute.xlu0 %3858  ;;  %v4346_v61 = vpop.permute.xlu1 %4345 }
 0xac9   :  { %3868 = vst.msk [vmem:[#allocation2 + $0x10] sm:$0xf] %vm832_vm6, %v3859_v13  ;;  %v5134_v13 = vld [vmem:[#allocation20] sm:$0xff]  ;;  %vm4352_vm1 = vcmp.eq.s32.totalorder %v4346_v61, 1 }
 0xaca   :  { %v5113_v3 = vld [vmem:[#allocation2 + $0x14] sm:$0xf0]  ;;  %4439 = vmatpush.bf16.msrb.mxu3 %v5134_v13 }
 0xad0   :  { %v4920_v24 = vld [vmem:[#allocation2 + $0x10] sm:$0xf]  ;;  %v4343_v34 = vpop.permute.xlu0 %4342 }
 0xad1   :  { %v4921_v54 = vor.u32 %v5113_v3, %v4920_v24  ;;  %v4375_v25 = vpop.permute.xlu1 %4374  ;;  %vm4351_vm12 = vcmp.eq.s32.totalorder %v4343_v34, 1  ;;  %v5306_v34 = vld [vmem:[%s8350_s22] ss:$0 sm:$0xff] }
 0xad2   :  { %vm4385_vm15 = vcmp.eq.s32.totalorder %v4375_v25, 1 }
 0xad3   :  { %4211 = vmatmul.bf16.gmra.mxu1 %v4921_v54 }
 0xad8   :  { %v4349_v21 = vpop.permute.xlu2 %4348 }
 0xad9   :  { %v4381_v1 = vpop.permute.xlu0 %4380  ;;  %vm4353_vm2 = vcmp.eq.s32.totalorder %v4349_v21, 1 }
 0xada   :  { %vm4387_vm0 = vcmp.eq.s32.totalorder %v4381_v1, 1 }
 0xae1   :  { %v4378_v24 = vpop.permute.xlu2 %4377 }
 0xae2   :  { %vm4386_vm13 = vcmp.eq.s32.totalorder %v4378_v24, 1 }
 0xb19   :  { %v4226_v11 = vpop.f32.mrf.mxu2 }
 0xb21   :  { %v4228_v6 = vpop.f32.mrf.mxu2 }
 0xb23   :  { %v4207_v19 = vpop.f32.mrf.mxu1 }
 0xb24   :  { %v4208_v23 = vadd.f32 %v5303_v16, %v4207_v19  ;;  %v4384_v19 = vpop.permute.xlu1 %4383 }
 0xb25   :  { %vm4388_vm3 = vcmp.eq.s32.totalorder %v4384_v19, 1 }
 0xb26   :  { %v4227_v18 = vadd.f32 %v4226_v11, %v4208_v23 }
 0xb28   :  { %v4236_v39 = vadd.f32 %v4227_v18, %v8417_v28  ;;  %v5136_v28 = vld [vmem:[%s8349_s21] sm:$0xff] }
 0xb29   :  { %4477 = vmatpush.bf16.msra.mxu1 %v5136_v28 }
 0xb2a   :  { %v4240_v27 = vmax.f32 %v4236_v39, 0.0 }
 0xb2b   :  { %v4209_v8 = vpop.f32.mrf.mxu1 }
 0xb2c   :  { %v4210_v36 = vadd.f32 %v5303_v16, %v4209_v8 }
 0xb2e   :  { %v4229_v38 = vadd.f32 %v4228_v6, %v4210_v36 }
 0xb30   :  { %v4237_v0 = vadd.f32 %v4229_v38, %v8419_v32 }
 0xb32   :  { %v4241_v62 = vmax.f32 %v4237_v0, 0.0 }
 0xb34   :  { %v4248_v49 = vpack.c.bf16 %v4241_v62, %v4240_v27 }
 0xb36   :  { %4998 = vmatmul.msk.bf16.vlgmr.msra.gmra.mxu3 %vm1249_vm7, %v4248_v49 }
 0xb46   :  { %v4231_v60 = vpop.f32.mrf.mxu2 }
 0xb4e   :  { %v4233_v30 = vpop.f32.mrf.mxu2 }
 0xb50   :  { %v4212_v51 = vpop.f32.mrf.mxu1 }
 0xb51   :  { %v4213_v15 = vadd.f32 %v5303_v16, %v4212_v51 }
 0xb53   :  { %v4232_v58 = vadd.f32 %v4231_v60, %v4213_v15 }
 0xb55   :  { %v4238_v9 = vadd.f32 %v4232_v58, %v8421_v45 }
 0xb57   :  { %v4242_v55 = vmax.f32 %v4238_v9, 0.0 }
 0xb58   :  { %v4214_v53 = vpop.f32.mrf.mxu1 }
 0xb59   :  { %v4215_v44 = vadd.f32 %v5303_v16, %v4214_v53 }
 0xb5b   :  { %v4234_v40 = vadd.f32 %v4233_v30, %v4215_v44 }
 0xb5d   :  { %v4239_v26 = vadd.f32 %v4234_v40, %v8423_v57 }
 0xb5f   :  { %v4243_v35 = vmax.f32 %v4239_v26, 0.0 }
 0xb61   :  { %v4249_v37 = vpack.c.bf16 %v4243_v35, %v4242_v55 }
 0xb63   :  { %4999 = vmatmul.msk.bf16.gmra.mxu3 %vm1249_vm7, %v4249_v37 }
 0xbb9   :  { %v4281_v47 = vpop.f32.mrf.mxu3 }
 0xbba   :  { %v4313_v59 = vadd.f32 %v4312_v5, %v4281_v47  ;;  %v5305_v47 = vld [vmem:[%s8348_s20] ss:$0 sm:$0xff] }
 0xbbc   :  { %v4326_v48 = vadd.f32 %v5304_v56, %v4313_v59 }
 0xbbe   :  { %v4354_v23 = vsel %vm4350_vm14, %v4326_v48, -3.4028235e+38  ;;  %v4389_v46 = vsel %vm4385_vm15, %v4326_v48, -3.4028235e+38 }
 0xbbf   :  { %v4393_v39 = vsel %vm1249_vm7, %v4389_v46, -inf  ;;  %v4358_v38 = vsel %vm1249_vm7, %v4354_v23, -inf }
 0xbc1   :  { %v4283_v41 = vpop.f32.mrf.mxu3 }
 0xbc2   :  { %v4315_v43 = vadd.f32 %v4314_v42, %v4283_v41 }
 0xbc4   :  { %v4327_v54 = vadd.f32 %v5304_v56, %v4315_v43 }
 0xbc6   :  { %v4355_v29 = vsel %vm4351_vm12, %v4327_v54, -3.4028235e+38  ;;  %v4390_v16 = vsel %vm4386_vm13, %v4327_v54, -3.4028235e+38 }
 0xbc7   :  { %v4359_v6 = vsel %vm1249_vm7, %v4355_v29, -inf  ;;  %v4394_v14 = vsel %vm1249_vm7, %v4390_v16, -inf }
 0xbc8   :  { %v4362_v4 = vmax.f32 %v4358_v38, %v4359_v6  ;;  %v4397_v17 = vmax.f32 %v4393_v39, %v4394_v14 }
 0xbe6   :  { %v4286_v20 = vpop.f32.mrf.mxu3 }
 0xbe7   :  { %v4318_v3 = vadd.f32 %v4317_v31, %v4286_v20 }
 0xbe9   :  { %v4328_v52 = vadd.f32 %v5304_v56, %v4318_v3 }
 0xbeb   :  { %v4356_v18 = vsel %vm4352_vm1, %v4328_v52, -3.4028235e+38  ;;  %v4391_v8 = vsel %vm4387_vm0, %v4328_v52, -3.4028235e+38 }
 0xbec   :  { %v4360_v0 = vsel %vm1249_vm7, %v4356_v18, -inf  ;;  %v4395_v27 = vsel %vm1249_vm7, %v4391_v8, -inf }
 0xbee   :  { %v4288_v7 = vpop.f32.mrf.mxu3 }
 0xbef   :  { %v4320_v11 = vadd.f32 %v4319_v12, %v4288_v7 }
 0xbf1   :  { %v4329_v36 = vadd.f32 %v5304_v56, %v4320_v11 }
 0xbf3   :  { %v4357_v33 = vsel %vm4353_vm2, %v4329_v36, -3.4028235e+38  ;;  %v4392_v32 = vsel %vm4388_vm3, %v4329_v36, -3.4028235e+38 }
 0xbf4   :  { %v4361_v62 = vsel %vm1249_vm7, %v4357_v33, -inf  ;;  %v4396_v49 = vsel %vm1249_vm7, %v4392_v32, -inf }
 0xbf5   :  { %v4363_v60 = vmax.f32 %v4360_v0, %v4361_v62  ;;  %v4398_v51 = vmax.f32 %v4395_v27, %v4396_v49 }
 0xbf7   :  { %v4364_v15 = vmax.f32 %v4362_v4, %v4363_v60  ;;  %v4399_v58 = vmax.f32 %v4397_v17, %v4398_v51 }
 0xbf9   :  { %v4365_v53 = vrot.slane %v4364_v15, 4  ;;  %v4400_v44 = vrot.slane %v4399_v58, 4 }
 0xbfb   :  { %v4366_v30 = vmax.f32 %v4364_v15, %v4365_v53  ;;  %v4401_v50 = vmax.f32 %v4399_v58, %v4400_v44 }
 0xbfd   :  { %v4367_v45 = vrot.slane %v4366_v30, 2  ;;  %v4402_v9 = vrot.slane %v4401_v50, 2 }
 0xbff   :  { %v4368_v40 = vmax.f32 %v4366_v30, %v4367_v45  ;;  %v4403_v22 = vmax.f32 %v4401_v50, %v4402_v9 }
 0xc01   :  { %v4369_v57 = vrot.slane %v4368_v40, 1  ;;  %v4404_v26 = vrot.slane %v4403_v22, 1 }
 0xc03   :  { %v4370_v55 = vmax.f32 %v4368_v40, %v4369_v57  ;;  %v4405_v35 = vmax.f32 %v4403_v22, %v4404_v26 }
 0xc05   :  { %4372 = vst.msk [vmem:[#allocation4] sm:$0x1] %vm4371_vm4, %v4370_v55 }
 0xc06   :  { %4406 = vst.msk [vmem:[#allocation4 + $0x1] sm:$0x1] %vm4371_vm4, %v4405_v35 }
 0xc0d   :  { %v4407_v37 = vld [vmem:[#allocation4] sm:$0x3] }
 0xc0e   :  { %v4408_v5 = vpack.c.bf16 %v4407_v37, %v4407_v37 }
 0xc10   :  { %5018 = vmatmul.msk.bf16.vlgmr.msrb.gmra.mxu3 %vm1249_vm7, %v4408_v5 }
 0xc93   :  { %v4441_v10 = vpop.f32.mrf.mxu3 }
 0xc94   :  { %v4442_v42 = vadd.f32 %v5305_v47, %v4441_v10 }
 0xc96   :  { %v4445_v61 = vmax.f32 %v4442_v42, 0.0 }
 0xc98   :  { %v4446_v41 = vpack.c.bf16 %v4445_v61, %v4445_v61 }
 0xc9a   :  { %5027 = vmatmul.msk.bf16.vlgmr.msra.gmra.mxu1 %vm1249_vm7, %v4446_v41 }
 0xc9b   :  { %v4443_v21 = vpop.f32.mrf.mxu3 }
 0xd17   :  { %v4479_v31 = vpop.f32.mrf.mxu1 }
 0xd18   :  { %v4480_v20 = vadd.f32 %v5306_v34, %v4479_v31 }
 0xd1a   :  { %4484 = vst.msk [vmem:[#allocation21] sm:$0x3] %vm4483_vm5, %v4480_v20 }
 0xd1b   :  { %4495 = dma.vmem_to_hbm [thread:$0]  %s4491_s6, 32, %s4493_s27, [#allocation7]  }
 0xd1f   :  { %v4481_v2 = vpop.f32.mrf.mxu1 }
 0xd20   :  { %5815 = dma.done.wait [#allocation7], 32  }
 0xd21   :  { %5816 = vsyncadd [#allocation7], 4294967264 }
 0xd22   :  { %4500 = vsyncpa [#allocation6], 1 }
 0xd23   :  { %4501 = vsyncpa [#allocation13], 1 }
 0xd24   :  { %4502 = vsyncpa [#allocation19], 1 }
 0xd25   :  { %4503 = vsyncpa [#allocation7], 1 }
 0xd26   :  { %4504 = vsyncpa [#allocation8], 1 }
 0xd27   :  { %4505 = vsyncpa [#allocation11], 1 }
 0xd28   :  { %4506 = vsyncpa [#allocation17], 1 }

</bundles_post_ra>
